<compile_context>
chip_gen: v7x
topology: tpu7x:2x2x1
jax: 0.10.0
libtpu: 0.0.40
codegen_flags: <defaults>
</compile_context>

<pallas_src>
import functools
import math

import jax
import jax.numpy as jnp
from jax.experimental import pallas as pl
from jax.experimental.pallas import tpu as pltpu

EPS = 1e-5
LANE = 128


# ---------------------------------------------------------------------------
# small helpers
# ---------------------------------------------------------------------------
def _round_up(x, m):
    return (x + m - 1) // m * m


def _divisor_tile(n, target, mult=1):
    """Largest divisor of n that is <= target and a multiple of `mult` (fallback n)."""
    best = None
    for d in range(1, int(math.isqrt(n)) + 1):
        if n % d == 0:
            for c in (d, n // d):
                if c <= target and c % mult == 0 and (best is None or c > best):
                    best = c
    return best if best is not None else n


def _vmem_limit_bytes():
    """Generation-aware scoped-VMEM budget (v7x: 64 MiB/TC; v5e/v6e: 128 MiB)."""
    cap = 128 * 1024 * 1024
    try:
        cap = int(getattr(pltpu.get_tpu_info(), "vmem_capacity_bytes", cap))
    except Exception:
        pass
    # ~48 MiB on v7x, ~96 MiB on v5e/v6e.
    return max(32 * 1024 * 1024, min(cap * 3 // 4, 100 * 1024 * 1024))


def _pick_tn(cp):
    # v6e/v7x MXUs are 256 wide -> prefer 256-channel output tiles when the
    # channel count allows (v5e's 4x128x128 MXU simply takes two passes).
    if cp % 256 == 0:
        return 256
    if cp % 128 == 0:
        return 128
    return cp


# ---------------------------------------------------------------------------
# Pallas kernels
# ---------------------------------------------------------------------------
def _conv_finish(patch_ref, w_ref, y_ref, sum_ref, sq_ref, *, hh, ww, pad_out):
    """Shared tail: one im2col MXU matmul, fused BN-stats accumulation, bf16 store."""
    acc = jnp.dot(patch_ref[...], w_ref[...],
                  preferred_element_type=jnp.float32)      # [hh*ww, tn] f32

    @pl.when(pl.program_id(1) == 0)       # first batch block of this Cout tile
    def _():
        sum_ref[...] = jnp.zeros_like(sum_ref)
        sq_ref[...] = jnp.zeros_like(sq_ref)

    sum_ref[...] += jnp.sum(acc, axis=0, keepdims=True)
    sq_ref[...] += jnp.sum(acc * acc, axis=0, keepdims=True)

    y = acc.astype(y_ref.dtype).reshape(hh, ww, acc.shape[-1])
    if pad_out:
        # Keep a zero "same"-padding ring so the next conv reads this tensor
        # directly as its halo'd input (no extra pad copy in HBM).
        y_ref[...] = jnp.zeros_like(y_ref)
        y_ref[1:hh + 1, 1:ww + 1, :] = y
    else:
        y_ref[...] = y


def _conv_stats_kernel(x_ref, w_ref, y_ref, sum_ref, sq_ref, patch_ref,
                       *, hh, ww, cin, pad_out):
    """3x3 'same' conv as one K=9*Cin im2col matmul + per-channel sum/sumsq."""
    for kh in range(3):
        for kw in range(3):
            t = kh * 3 + kw
            patch_ref[:, t * cin:(t + 1) * cin] = (
                x_ref[kh:kh + hh, kw:kw + ww, :].reshape(hh * ww, cin))
    _conv_finish(patch_ref, w_ref, y_ref, sum_ref, sq_ref,
                 hh=hh, ww=ww, pad_out=pad_out)


def _bn_conv_stats_kernel(x_ref, sc_ref, sh_ref, w_ref, y_ref, sum_ref, sq_ref,
                          patch_ref, *, hh, ww, cin, pad_out):
    """Previous-stage BN apply + ReLU fused onto the loaded tile, then conv + stats."""
    x = x_ref[...].astype(jnp.float32)                 # [hh+2, ww+2, cin]
    a = jnp.maximum(x * sc_ref[...] + sh_ref[...], 0.0)
    # Re-zero the 1-pixel "same"-padding ring (the BN shift would leak in).
    r = jax.lax.broadcasted_iota(jnp.int32, a.shape, 0)
    c = jax.lax.broadcasted_iota(jnp.int32, a.shape, 1)
    ring = (r < 1) | (r > hh) | (c < 1) | (c > ww)
    a = jnp.where(ring, 0.0, a).astype(jnp.bfloat16)
    for kh in range(3):
        for kw in range(3):
            t = kh * 3 + kw
            patch_ref[:, t * cin:(t + 1) * cin] = (
                a[kh:kh + hh, kw:kw + ww, :].reshape(hh * ww, cin))
    _conv_finish(patch_ref, w_ref, y_ref, sum_ref, sq_ref,
                 hh=hh, ww=ww, pad_out=pad_out)


def _bn_apply_kernel(x_ref, sc_ref, sh_ref, o_ref):
    """Pure load-FMA-ReLU-store stream (scale/shift precomputed outside)."""
    x = x_ref[...].astype(jnp.float32)
    o_ref[...] = jnp.maximum(x * sc_ref[...] + sh_ref[...], 0.0).astype(o_ref.dtype)


# ---------------------------------------------------------------------------
# Pallas wrappers
# ---------------------------------------------------------------------------
def _conv_stage(x_pad, wmat, tn, vmem, *, pad_out, scale=None, shift=None):
    """One conv3x3 stage with fused BN statistics.

    x_pad : [N, H+2, W+2, Cin] bf16, zero spatial padding ring.
    wmat  : [9*Cin, Cp]        bf16.
    scale/shift (optional): [1, 1, Cin] f32 -> fused previous-stage BN + ReLU.
    Returns (y bf16 [spatially padded iff pad_out], sum f32 [1,Cp], sumsq f32 [1,Cp]).
    """
    n, hp2, wp2, cin = x_pad.shape
    hh, ww = hp2 - 2, wp2 - 2
    k, cp = wmat.shape
    assert k == 9 * cin
    n_co = cp // tn
    grid = (n_co, n)   # Cout tile outermost so the stats accumulators stay resident

    if pad_out:
        y_shape, y_block = (n, hp2, wp2, cp), (None, hp2, wp2, tn)
    else:
        y_shape, y_block = (n, hh, ww, cp), (None, hh, ww, tn)

    out_shape = (jax.ShapeDtypeStruct(y_shape, jnp.bfloat16),
                 jax.ShapeDtypeStruct((1, cp), jnp.float32),
                 jax.ShapeDtypeStruct((1, cp), jnp.float32))
    out_specs = (pl.BlockSpec(y_block, lambda j, b: (b, 0, 0, j)),
                 pl.BlockSpec((1, tn), lambda j, b: (0, j)),
                 pl.BlockSpec((1, tn), lambda j, b: (0, j)))

    x_spec = pl.BlockSpec((None, hp2, wp2, cin), lambda j, b: (b, 0, 0, 0))
    w_spec = pl.BlockSpec((k, tn), lambda j, b: (0, j))

    if scale is None:
        kernel = functools.partial(_conv_stats_kernel,
                                   hh=hh, ww=ww, cin=cin, pad_out=pad_out)
        in_specs, args = [x_spec, w_spec], (x_pad, wmat)
    else:
        kernel = functools.partial(_bn_conv_stats_kernel,
                                   hh=hh, ww=ww, cin=cin, pad_out=pad_out)
        v_spec = pl.BlockSpec((1, 1, cin), lambda j, b: (0, 0, 0))
        in_specs = [x_spec, v_spec, v_spec, w_spec]
        args = (x_pad, scale, shift, wmat)

    return pl.pallas_call(
        kernel,
        out_shape=out_shape,
        grid=grid,
        in_specs=in_specs,
        out_specs=out_specs,
        scratch_shapes=[pltpu.VMEM((hh * ww, k), jnp.bfloat16)],   # im2col patch
        compiler_params=pltpu.CompilerParams(
            dimension_semantics=("parallel", "arbitrary"),
            vmem_limit_bytes=vmem),
    )(*args)


def _bn_coeffs(s, sq, gamma, beta, count):
    """Train-mode BN (batch stats, biased variance) -> per-channel scale/shift."""
    mean = s / count
    var = jnp.maximum(sq / count - mean * mean, 0.0)
    scale = gamma * jax.lax.rsqrt(var + EPS)
    shift = beta - mean * scale
    return scale, shift


def _bn_apply(y2d, scale, shift, vmem):
    m, cp = y2d.shape
    tm = _divisor_tile(m, 2048, mult=8)   # large streaming tiles (HBM roofline)
    return pl.pallas_call(
        _bn_apply_kernel,
        out_shape=jax.ShapeDtypeStruct((m, cp), jnp.float32),
        grid=(m // tm,),
        in_specs=[pl.BlockSpec((tm, cp), lambda i: (i, 0)),
                  pl.BlockSpec((1, cp), lambda i: (0, 0)),
                  pl.BlockSpec((1, cp), lambda i: (0, 0))],
        out_specs=pl.BlockSpec((tm, cp), lambda i: (i, 0)),
        compiler_params=pltpu.CompilerParams(
            dimension_semantics=("parallel",),
            vmem_limit_bytes=vmem),
    )(y2d, scale, shift)


# ---------------------------------------------------------------------------
# DoubleConv forward
# ---------------------------------------------------------------------------
def double_conv(x_nchw, params):
    w1, g1, b1, w2, g2, b2 = params
    n, cin, h, w = x_nchw.shape
    cout = w1.shape[0]
    # Carry 128-lane channel padding through HBM only when Cout is big enough
    # for it to be free; tiny channel counts stay unpadded end to end.
    cp = _round_up(cout, LANE) if cout >= LANE else cout
    pad_c = cp - cout
    tn = _pick_tn(cp)
    vmem = _vmem_limit_bytes()

    # NCHW -> NHWC, bf16 matmul operands, one spatial zero-padding ring.
    x = jnp.transpose(x_nchw, (0, 2, 3, 1)).astype(jnp.bfloat16)
    x_pad = jnp.pad(x, ((0, 0), (1, 1), (1, 1), (0, 0)))

    # Weights [Cout, Cin, 3, 3] -> [9*Cin, Cp] with K ordered (kh, kw, cin).
    w1m = jnp.pad(jnp.transpose(w1, (2, 3, 1, 0)),
                  ((0, 0), (0, 0), (0, 0), (0, pad_c)))
    w1m = w1m.astype(jnp.bfloat16).reshape(9 * cin, cp)
    w2m = jnp.pad(jnp.transpose(w2, (2, 3, 1, 0)),
                  ((0, 0), (0, 0), (0, pad_c), (0, pad_c)))
    w2m = w2m.astype(jnp.bfloat16).reshape(9 * cp, cp)

    g1p = jnp.pad(g1, (0, pad_c), constant_values=1.0).reshape(1, cp).astype(jnp.float32)
    b1p = jnp.pad(b1, (0, pad_c)).reshape(1, cp).astype(jnp.float32)
    g2p = jnp.pad(g2, (0, pad_c), constant_values=1.0).reshape(1, cp).astype(jnp.float32)
    b2p = jnp.pad(b2, (0, pad_c)).reshape(1, cp).astype(jnp.float32)

    count = float(n * h * w)

    # Stage 1: conv1 + fused BN1 statistics. Output keeps a zero padding ring
    # so stage 2 consumes it directly as its halo'd input.
    y1, s1, q1 = _conv_stage(x_pad, w1m, tn, vmem, pad_out=True)
    sc1, sh1 = _bn_coeffs(s1, q1, g1p, b1p, count)

    # Stage 2: BN1 apply + ReLU fused into the input load, conv2 + BN2 stats.
    y2, s2, q2 = _conv_stage(y1, w2m, tn, vmem, pad_out=False,
                             scale=sc1.reshape(1, 1, cp),
                             shift=sh1.reshape(1, 1, cp))
    sc2, sh2 = _bn_coeffs(s2, q2, g2p, b2p, count)

    # Stage 3: BN2 apply + ReLU (streaming, large M tiles).
    out2d = _bn_apply(y2.reshape(n * h * w, cp), sc2, sh2, vmem)

    out = out2d.reshape(n, h, w, cp)[..., :cout]
    return jnp.transpose(out, (0, 3, 1, 2))


def init_params(key, in_channels, out_channels):
    k1, k2 = jax.random.split(key)
    # Conv weights (bias=False); BatchNorm gamma=1 / beta=0 (PyTorch defaults).
    w1 = 0.1 * jax.random.normal(k1, (out_channels, in_channels, 3, 3), jnp.float32)
    w2 = 0.1 * jax.random.normal(k2, (out_channels, out_channels, 3, 3), jnp.float32)
    g1 = jnp.ones((out_channels,), jnp.float32)
    b1 = jnp.zeros((out_channels,), jnp.float32)
    g2 = jnp.ones((out_channels,), jnp.float32)
    b2 = jnp.zeros((out_channels,), jnp.float32)
    return (w1, g1, b1, w2, g2, b2)


# ---------------------------------------------------------------------------
# Pure-JAX f32 reference (forward semantics of the PyTorch module)
# ---------------------------------------------------------------------------
def _reference(x_nchw, params):
    w1, g1, b1, w2, g2, b2 = params

    def stage(x, wgt, g, b):
        y = jax.lax.conv_general_dilated(
            x, wgt, window_strides=(1, 1), padding=((1, 1), (1, 1)),
            dimension_numbers=("NCHW", "OIHW", "NCHW"))
        mean = jnp.mean(y, axis=(0, 2, 3), keepdims=True)
        var = jnp.mean(jnp.square(y - mean), axis=(0, 2, 3), keepdims=True)
        y = (y - mean) * jax.lax.rsqrt(var + EPS) * g.reshape(1, -1, 1, 1) \
            + b.reshape(1, -1, 1, 1)
        return jnp.maximum(y, 0.0)

    return stage(stage(x_nchw, w1, g1, b1), w2, g2, b2)


if __name__ == "__main__":
    key = jax.random.PRNGKey(0)
    kx, kp = jax.random.split(key)

    N, Cin, Cout, H, W = 2, 4, 8, 16, 16
    x = jax.random.normal(kx, (N, Cin, H, W), jnp.float32)
    params = init_params(kp, Cin, Cout)

    out = jax.jit(double_conv)(x, params)
    out = jax.block_until_ready(out)

    assert out.shape == (N, Cout, H, W), out.shape
    assert out.dtype == jnp.float32

    ref = _reference(x, params)
    err = float(jnp.max(jnp.abs(out - ref)))
    assert err < 2e-1, f"max abs err vs f32 reference: {err}"

    print("KERNEL_OK")
</pallas_src>

<mosaic_0001>
module attributes {stable_mosaic.version = 11 : i64} {
  func.func @_bn_conv_stats_kernel(%arg0: i32, %arg1: i32, %arg2: memref<1x18x18x8xbf16, #tpu.memory_space<vmem>>, %arg3: memref<1x1x8xf32, #tpu.memory_space<vmem>>, %arg4: memref<1x1x8xf32, #tpu.memory_space<vmem>>, %arg5: memref<72x8xbf16, #tpu.memory_space<vmem>>, %arg6: memref<1x16x16x8xbf16, #tpu.memory_space<vmem>>, %arg7: memref<1x8xf32, #tpu.memory_space<vmem>>, %arg8: memref<1x8xf32, #tpu.memory_space<vmem>>, %arg9: memref<256x72xbf16, #tpu.memory_space<vmem>>) attributes {dimension_semantics = [#tpu.dimension_semantics<parallel>, #tpu.dimension_semantics<arbitrary>], iteration_bounds = array<i64: 1, 2>, scalar_prefetch = 0 : i64, scratch_operands = 1 : i64, tpu.core_type = #tpu.core_type<tc>, window_params = [{transform_indices = @transform_0, window_bounds = array<i64: 1, 18, 18, 8>}, {pipeline_mode = #tpu.pipeline_mode<synchronous>, transform_indices = @transform_1, window_bounds = array<i64: 1, 1, 8>}, {pipeline_mode = #tpu.pipeline_mode<synchronous>, transform_indices = @transform_2, window_bounds = array<i64: 1, 1, 8>}, {transform_indices = @transform_3, window_bounds = array<i64: 72, 8>}, {transform_indices = @transform_4, window_bounds = array<i64: 1, 16, 16, 8>}, {transform_indices = @transform_5, window_bounds = array<i64: 1, 8>}, {transform_indices = @transform_6, window_bounds = array<i64: 1, 8>}]} {
    %c0 = arith.constant 0 : index
    %c0_0 = arith.constant 0 : index
    %c0_1 = arith.constant 0 : index
    %c0_2 = arith.constant 0 : index
    %0 = vector.load %arg2[%c0, %c0_0, %c0_1, %c0_2] : memref<1x18x18x8xbf16, #tpu.memory_space<vmem>>, vector<1x18x18x8xbf16>
    %1 = vector.shape_cast %0 : vector<1x18x18x8xbf16> to vector<18x18x8xbf16>
    %2 = arith.extf %1 : vector<18x18x8xbf16> to vector<18x18x8xf32>
    %c0_3 = arith.constant 0 : index
    %c0_4 = arith.constant 0 : index
    %c0_5 = arith.constant 0 : index
    %3 = vector.load %arg3[%c0_3, %c0_4, %c0_5] : memref<1x1x8xf32, #tpu.memory_space<vmem>>, vector<1x1x8xf32>
    %4 = vector.broadcast %3 : vector<1x1x8xf32> to vector<18x18x8xf32>
    %5 = arith.mulf %2, %4 : vector<18x18x8xf32>
    %c0_6 = arith.constant 0 : index
    %c0_7 = arith.constant 0 : index
    %c0_8 = arith.constant 0 : index
    %6 = vector.load %arg4[%c0_6, %c0_7, %c0_8] : memref<1x1x8xf32, #tpu.memory_space<vmem>>, vector<1x1x8xf32>
    %7 = vector.broadcast %6 : vector<1x1x8xf32> to vector<18x18x8xf32>
    %8 = arith.addf %5, %7 : vector<18x18x8xf32>
    %cst = arith.constant 0.000000e+00 : f32
    %9 = vector.broadcast %cst : f32 to vector<18x18x8xf32>
    %10 = arith.maximumf %8, %9 : vector<18x18x8xf32>
    %11 = tpu.iota {dimensions = array<i32: 0>} : vector<18x18x8xi32>
    %12 = tpu.iota {dimensions = array<i32: 1>} : vector<18x18x8xi32>
    %c1_i32 = arith.constant 1 : i32
    %13 = vector.broadcast %c1_i32 : i32 to vector<18x18x8xi32>
    %14 = arith.cmpi slt, %11, %13 : vector<18x18x8xi32>
    %c16_i32 = arith.constant 16 : i32
    %15 = vector.broadcast %c16_i32 : i32 to vector<18x18x8xi32>
    %16 = arith.cmpi sgt, %11, %15 : vector<18x18x8xi32>
    %17 = arith.ori %14, %16 : vector<18x18x8xi1>
    %c1_i32_9 = arith.constant 1 : i32
    %18 = vector.broadcast %c1_i32_9 : i32 to vector<18x18x8xi32>
    %19 = arith.cmpi slt, %12, %18 : vector<18x18x8xi32>
    %20 = arith.ori %17, %19 : vector<18x18x8xi1>
    %c16_i32_10 = arith.constant 16 : i32
    %21 = vector.broadcast %c16_i32_10 : i32 to vector<18x18x8xi32>
    %22 = arith.cmpi sgt, %12, %21 : vector<18x18x8xi32>
    %23 = arith.ori %20, %22 : vector<18x18x8xi1>
    %cst_11 = arith.constant 0.000000e+00 : f32
    %24 = vector.broadcast %cst_11 : f32 to vector<18x18x8xf32>
    %25 = arith.select %23, %24, %10 : vector<18x18x8xi1>, vector<18x18x8xf32>
    %26 = arith.truncf %25 : vector<18x18x8xf32> to vector<18x18x8xbf16>
    %27 = vector.extract_strided_slice %26 {offsets = [0, 0, 0], sizes = [16, 16, 8], strides = [1, 1, 1]} : vector<18x18x8xbf16> to vector<16x16x8xbf16>
    %28 = vector.shape_cast %27 : vector<16x16x8xbf16> to vector<256x8xbf16>
    %c0_12 = arith.constant 0 : index
    %c0_13 = arith.constant 0 : index
    %29 = vector.load %arg9[%c0_12, %c0_13] : memref<256x72xbf16, #tpu.memory_space<vmem>>, vector<256x8xbf16>
    tpu.vector_store %arg9[%c0_12, %c0_13], %28 {strides = array<i32>} : memref<256x72xbf16, #tpu.memory_space<vmem>>, vector<256x8xbf16>,
    %30 = vector.extract_strided_slice %26 {offsets = [0, 1, 0], sizes = [16, 16, 8], strides = [1, 1, 1]} : vector<18x18x8xbf16> to vector<16x16x8xbf16>
    %31 = vector.shape_cast %30 : vector<16x16x8xbf16> to vector<256x8xbf16>
    %c0_14 = arith.constant 0 : index
    %c8 = arith.constant 8 : index
    %32 = vector.load %arg9[%c0_14, %c8] : memref<256x72xbf16, #tpu.memory_space<vmem>>, vector<256x8xbf16>
    tpu.vector_store %arg9[%c0_14, %c8], %31 {strides = array<i32>} : memref<256x72xbf16, #tpu.memory_space<vmem>>, vector<256x8xbf16>,
    %33 = vector.extract_strided_slice %26 {offsets = [0, 2, 0], sizes = [16, 16, 8], strides = [1, 1, 1]} : vector<18x18x8xbf16> to vector<16x16x8xbf16>
    %34 = vector.shape_cast %33 : vector<16x16x8xbf16> to vector<256x8xbf16>
    %c0_15 = arith.constant 0 : index
    %c16 = arith.constant 16 : index
    %35 = vector.load %arg9[%c0_15, %c16] : memref<256x72xbf16, #tpu.memory_space<vmem>>, vector<256x8xbf16>
    tpu.vector_store %arg9[%c0_15, %c16], %34 {strides = array<i32>} : memref<256x72xbf16, #tpu.memory_space<vmem>>, vector<256x8xbf16>,
    %36 = vector.extract_strided_slice %26 {offsets = [1, 0, 0], sizes = [16, 16, 8], strides = [1, 1, 1]} : vector<18x18x8xbf16> to vector<16x16x8xbf16>
    %37 = vector.shape_cast %36 : vector<16x16x8xbf16> to vector<256x8xbf16>
    %c0_16 = arith.constant 0 : index
    %c24 = arith.constant 24 : index
    %38 = vector.load %arg9[%c0_16, %c24] : memref<256x72xbf16, #tpu.memory_space<vmem>>, vector<256x8xbf16>
    tpu.vector_store %arg9[%c0_16, %c24], %37 {strides = array<i32>} : memref<256x72xbf16, #tpu.memory_space<vmem>>, vector<256x8xbf16>,
    %39 = vector.extract_strided_slice %26 {offsets = [1, 1, 0], sizes = [16, 16, 8], strides = [1, 1, 1]} : vector<18x18x8xbf16> to vector<16x16x8xbf16>
    %40 = vector.shape_cast %39 : vector<16x16x8xbf16> to vector<256x8xbf16>
    %c0_17 = arith.constant 0 : index
    %c32 = arith.constant 32 : index
    %41 = vector.load %arg9[%c0_17, %c32] : memref<256x72xbf16, #tpu.memory_space<vmem>>, vector<256x8xbf16>
    tpu.vector_store %arg9[%c0_17, %c32], %40 {strides = array<i32>} : memref<256x72xbf16, #tpu.memory_space<vmem>>, vector<256x8xbf16>,
    %42 = vector.extract_strided_slice %26 {offsets = [1, 2, 0], sizes = [16, 16, 8], strides = [1, 1, 1]} : vector<18x18x8xbf16> to vector<16x16x8xbf16>
    %43 = vector.shape_cast %42 : vector<16x16x8xbf16> to vector<256x8xbf16>
    %c0_18 = arith.constant 0 : index
    %c40 = arith.constant 40 : index
    %44 = vector.load %arg9[%c0_18, %c40] : memref<256x72xbf16, #tpu.memory_space<vmem>>, vector<256x8xbf16>
    tpu.vector_store %arg9[%c0_18, %c40], %43 {strides = array<i32>} : memref<256x72xbf16, #tpu.memory_space<vmem>>, vector<256x8xbf16>,
    %45 = vector.extract_strided_slice %26 {offsets = [2, 0, 0], sizes = [16, 16, 8], strides = [1, 1, 1]} : vector<18x18x8xbf16> to vector<16x16x8xbf16>
    %46 = vector.shape_cast %45 : vector<16x16x8xbf16> to vector<256x8xbf16>
    %c0_19 = arith.constant 0 : index
    %c48 = arith.constant 48 : index
    %47 = vector.load %arg9[%c0_19, %c48] : memref<256x72xbf16, #tpu.memory_space<vmem>>, vector<256x8xbf16>
    tpu.vector_store %arg9[%c0_19, %c48], %46 {strides = array<i32>} : memref<256x72xbf16, #tpu.memory_space<vmem>>, vector<256x8xbf16>,
    %48 = vector.extract_strided_slice %26 {offsets = [2, 1, 0], sizes = [16, 16, 8], strides = [1, 1, 1]} : vector<18x18x8xbf16> to vector<16x16x8xbf16>
    %49 = vector.shape_cast %48 : vector<16x16x8xbf16> to vector<256x8xbf16>
    %c0_20 = arith.constant 0 : index
    %c56 = arith.constant 56 : index
    %50 = vector.load %arg9[%c0_20, %c56] : memref<256x72xbf16, #tpu.memory_space<vmem>>, vector<256x8xbf16>
    tpu.vector_store %arg9[%c0_20, %c56], %49 {strides = array<i32>} : memref<256x72xbf16, #tpu.memory_space<vmem>>, vector<256x8xbf16>,
    %51 = vector.extract_strided_slice %26 {offsets = [2, 2, 0], sizes = [16, 16, 8], strides = [1, 1, 1]} : vector<18x18x8xbf16> to vector<16x16x8xbf16>
    %52 = vector.shape_cast %51 : vector<16x16x8xbf16> to vector<256x8xbf16>
    %c0_21 = arith.constant 0 : index
    %c64 = arith.constant 64 : index
    %53 = vector.load %arg9[%c0_21, %c64] : memref<256x72xbf16, #tpu.memory_space<vmem>>, vector<256x8xbf16>
    tpu.vector_store %arg9[%c0_21, %c64], %52 {strides = array<i32>} : memref<256x72xbf16, #tpu.memory_space<vmem>>, vector<256x8xbf16>,
    %c0_22 = arith.constant 0 : index
    %c0_23 = arith.constant 0 : index
    %54 = vector.load %arg9[%c0_22, %c0_23] : memref<256x72xbf16, #tpu.memory_space<vmem>>, vector<256x72xbf16>
    %c0_24 = arith.constant 0 : index
    %c0_25 = arith.constant 0 : index
    %55 = vector.load %arg5[%c0_24, %c0_25] : memref<72x8xbf16, #tpu.memory_space<vmem>>, vector<72x8xbf16>
    %cst_26 = arith.constant dense<0.000000e+00> : vector<256x8xf32>
    %56 = tpu.matmul %54, %55, %cst_26 {dimension_numbers = #tpu.dot_dimension_numbers<[1], [0], [0], [1], [0, 0, 1, 1], [], []>} : vector<256x72xbf16>, vector<72x8xbf16>, vector<256x8xf32> -> vector<256x8xf32>
    %c0_i32 = arith.constant 0 : i32
    %57 = arith.cmpi eq, %arg1, %c0_i32 : i32
    %58 = arith.extui %57 : i1 to i32
    %c0_i32_27 = arith.constant 0 : i32
    %59 = arith.cmpi ne, %58, %c0_i32_27 : i32
    scf.if %59 {
      %cst_42 = arith.constant 0.000000e+00 : f32
      %76 = vector.broadcast %cst_42 : f32 to vector<1x8xf32>
      %c0_43 = arith.constant 0 : index
      %c0_44 = arith.constant 0 : index
      %77 = vector.load %arg7[%c0_43, %c0_44] : memref<1x8xf32, #tpu.memory_space<vmem>>, vector<1x8xf32>
      tpu.vector_store %arg7[%c0_43, %c0_44], %76 {strides = array<i32>} : memref<1x8xf32, #tpu.memory_space<vmem>>, vector<1x8xf32>,
      %cst_45 = arith.constant 0.000000e+00 : f32
      %78 = vector.broadcast %cst_45 : f32 to vector<1x8xf32>
      %c0_46 = arith.constant 0 : index
      %c0_47 = arith.constant 0 : index
      %79 = vector.load %arg8[%c0_46, %c0_47] : memref<1x8xf32, #tpu.memory_space<vmem>>, vector<1x8xf32>
      tpu.vector_store %arg8[%c0_46, %c0_47], %78 {strides = array<i32>} : memref<1x8xf32, #tpu.memory_space<vmem>>, vector<1x8xf32>,
    } else {
    }
    %c0_28 = arith.constant 0 : index
    %c0_29 = arith.constant 0 : index
    %60 = vector.load %arg7[%c0_28, %c0_29] : memref<1x8xf32, #tpu.memory_space<vmem>>, vector<1x8xf32>
    %cst_30 = arith.constant dense<0.000000e+00> : vector<8xf32>
    %61 = vector.multi_reduction <add>, %56, %cst_30 [0] : vector<256x8xf32> to vector<8xf32>
    %62 = vector.shape_cast %61 : vector<8xf32> to vector<1x8xf32>
    %63 = arith.addf %60, %62 : vector<1x8xf32>
    %c0_31 = arith.constant 0 : index
    %c0_32 = arith.constant 0 : index
    %64 = vector.load %arg7[%c0_31, %c0_32] : memref<1x8xf32, #tpu.memory_space<vmem>>, vector<1x8xf32>
    tpu.vector_store %arg7[%c0_31, %c0_32], %63 {strides = array<i32>} : memref<1x8xf32, #tpu.memory_space<vmem>>, vector<1x8xf32>,
    %c0_33 = arith.constant 0 : index
    %c0_34 = arith.constant 0 : index
    %65 = vector.load %arg8[%c0_33, %c0_34] : memref<1x8xf32, #tpu.memory_space<vmem>>, vector<1x8xf32>
    %66 = arith.mulf %56, %56 : vector<256x8xf32>
    %cst_35 = arith.constant dense<0.000000e+00> : vector<8xf32>
    %67 = vector.multi_reduction <add>, %66, %cst_35 [0] : vector<256x8xf32> to vector<8xf32>
    %68 = vector.shape_cast %67 : vector<8xf32> to vector<1x8xf32>
    %69 = arith.addf %65, %68 : vector<1x8xf32>
    %c0_36 = arith.constant 0 : index
    %c0_37 = arith.constant 0 : index
    %70 = vector.load %arg8[%c0_36, %c0_37] : memref<1x8xf32, #tpu.memory_space<vmem>>, vector<1x8xf32>
    tpu.vector_store %arg8[%c0_36, %c0_37], %69 {strides = array<i32>} : memref<1x8xf32, #tpu.memory_space<vmem>>, vector<1x8xf32>,
    %71 = arith.truncf %56 : vector<256x8xf32> to vector<256x8xbf16>
    %72 = vector.shape_cast %71 : vector<256x8xbf16> to vector<16x16x8xbf16>
    %c0_38 = arith.constant 0 : index
    %c0_39 = arith.constant 0 : index
    %c0_40 = arith.constant 0 : index
    %c0_41 = arith.constant 0 : index
    %73 = vector.load %arg6[%c0_38, %c0_39, %c0_40, %c0_41] : memref<1x16x16x8xbf16, #tpu.memory_space<vmem>>, vector<1x16x16x8xbf16>
    %74 = vector.shape_cast %73 : vector<1x16x16x8xbf16> to vector<16x16x8xbf16>
    %75 = vector.shape_cast %72 : vector<16x16x8xbf16> to vector<1x16x16x8xbf16>
    tpu.vector_store %arg6[%c0_38, %c0_39, %c0_40, %c0_41], %75 {strides = array<i32>} : memref<1x16x16x8xbf16, #tpu.memory_space<vmem>>, vector<1x16x16x8xbf16>,
    return
  }
  func.func @transform_0(%arg0: i32, %arg1: i32) -> (i32, i32, i32, i32) {
    %c0_i32 = arith.constant 0 : i32
    %c0_i32_0 = arith.constant 0 : i32
    %c0_i32_1 = arith.constant 0 : i32
    %c0_i32_2 = arith.constant 0 : i32
    return %arg1, %c0_i32, %c0_i32_0, %c0_i32_1 : i32, i32, i32, i32
  }
  func.func @transform_1(%arg0: i32, %arg1: i32) -> (i32, i32, i32) {
    %c0_i32 = arith.constant 0 : i32
    %c0_i32_0 = arith.constant 0 : i32
    %c0_i32_1 = arith.constant 0 : i32
    %c0_i32_2 = arith.constant 0 : i32
    return %c0_i32, %c0_i32_0, %c0_i32_1 : i32, i32, i32
  }
  func.func @transform_2(%arg0: i32, %arg1: i32) -> (i32, i32, i32) {
    %c0_i32 = arith.constant 0 : i32
    %c0_i32_0 = arith.constant 0 : i32
    %c0_i32_1 = arith.constant 0 : i32
    %c0_i32_2 = arith.constant 0 : i32
    return %c0_i32, %c0_i32_0, %c0_i32_1 : i32, i32, i32
  }
  func.func @transform_3(%arg0: i32, %arg1: i32) -> (i32, i32) {
    %c0_i32 = arith.constant 0 : i32
    %c0_i32_0 = arith.constant 0 : i32
    return %c0_i32, %arg0 : i32, i32
  }
  func.func @transform_4(%arg0: i32, %arg1: i32) -> (i32, i32, i32, i32) {
    %c0_i32 = arith.constant 0 : i32
    %c0_i32_0 = arith.constant 0 : i32
    %c0_i32_1 = arith.constant 0 : i32
    return %arg1, %c0_i32, %c0_i32_0, %arg0 : i32, i32, i32, i32
  }
  func.func @transform_5(%arg0: i32, %arg1: i32) -> (i32, i32) {
    %c0_i32 = arith.constant 0 : i32
    %c0_i32_0 = arith.constant 0 : i32
    return %c0_i32, %arg0 : i32, i32
  }
  func.func @transform_6(%arg0: i32, %arg1: i32) -> (i32, i32) {
    %c0_i32 = arith.constant 0 : i32
    %c0_i32_0 = arith.constant 0 : i32
    return %c0_i32, %arg0 : i32, i32
  }
}

module attributes {stable_mosaic.version = 11 : i64} {
  func.func @_conv_stats_kernel(%arg0: i32, %arg1: i32, %arg2: memref<1x18x18x4xbf16, #tpu.memory_space<vmem>>, %arg3: memref<36x8xbf16, #tpu.memory_space<vmem>>, %arg4: memref<1x18x18x8xbf16, #tpu.memory_space<vmem>>, %arg5: memref<1x8xf32, #tpu.memory_space<vmem>>, %arg6: memref<1x8xf32, #tpu.memory_space<vmem>>, %arg7: memref<256x36xbf16, #tpu.memory_space<vmem>>) attributes {dimension_semantics = [#tpu.dimension_semantics<parallel>, #tpu.dimension_semantics<arbitrary>], iteration_bounds = array<i64: 1, 2>, scalar_prefetch = 0 : i64, scratch_operands = 1 : i64, tpu.core_type = #tpu.core_type<tc>, window_params = [{transform_indices = @transform_0, window_bounds = array<i64: 1, 18, 18, 4>}, {transform_indices = @transform_1, window_bounds = array<i64: 36, 8>}, {transform_indices = @transform_2, window_bounds = array<i64: 1, 18, 18, 8>}, {transform_indices = @transform_3, window_bounds = array<i64: 1, 8>}, {transform_indices = @transform_4, window_bounds = array<i64: 1, 8>}]} {
    %c0 = arith.constant 0 : index
    %c0_0 = arith.constant 0 : index
    %c0_1 = arith.constant 0 : index
    %c0_2 = arith.constant 0 : index
    %0 = vector.load %arg2[%c0, %c0_0, %c0_1, %c0_2] : memref<1x18x18x4xbf16, #tpu.memory_space<vmem>>, vector<1x16x16x4xbf16>
    %1 = vector.shape_cast %0 : vector<1x16x16x4xbf16> to vector<16x16x4xbf16>
    %2 = vector.shape_cast %1 : vector<16x16x4xbf16> to vector<256x4xbf16>
    %c0_3 = arith.constant 0 : index
    %c0_4 = arith.constant 0 : index
    %3 = vector.load %arg7[%c0_3, %c0_4] : memref<256x36xbf16, #tpu.memory_space<vmem>>, vector<256x4xbf16>
    tpu.vector_store %arg7[%c0_3, %c0_4], %2 {strides = array<i32>} : memref<256x36xbf16, #tpu.memory_space<vmem>>, vector<256x4xbf16>,
    %c0_5 = arith.constant 0 : index
    %c0_6 = arith.constant 0 : index
    %c1 = arith.constant 1 : index
    %c0_7 = arith.constant 0 : index
    %4 = vector.load %arg2[%c0_5, %c0_6, %c1, %c0_7] : memref<1x18x18x4xbf16, #tpu.memory_space<vmem>>, vector<1x16x16x4xbf16>
    %5 = vector.shape_cast %4 : vector<1x16x16x4xbf16> to vector<16x16x4xbf16>
    %6 = vector.shape_cast %5 : vector<16x16x4xbf16> to vector<256x4xbf16>
    %c0_8 = arith.constant 0 : index
    %c4 = arith.constant 4 : index
    %7 = vector.load %arg7[%c0_8, %c4] : memref<256x36xbf16, #tpu.memory_space<vmem>>, vector<256x4xbf16>
    tpu.vector_store %arg7[%c0_8, %c4], %6 {strides = array<i32>} : memref<256x36xbf16, #tpu.memory_space<vmem>>, vector<256x4xbf16>,
    %c0_9 = arith.constant 0 : index
    %c0_10 = arith.constant 0 : index
    %c2 = arith.constant 2 : index
    %c0_11 = arith.constant 0 : index
    %8 = vector.load %arg2[%c0_9, %c0_10, %c2, %c0_11] : memref<1x18x18x4xbf16, #tpu.memory_space<vmem>>, vector<1x16x16x4xbf16>
    %9 = vector.shape_cast %8 : vector<1x16x16x4xbf16> to vector<16x16x4xbf16>
    %10 = vector.shape_cast %9 : vector<16x16x4xbf16> to vector<256x4xbf16>
    %c0_12 = arith.constant 0 : index
    %c8 = arith.constant 8 : index
    %11 = vector.load %arg7[%c0_12, %c8] : memref<256x36xbf16, #tpu.memory_space<vmem>>, vector<256x4xbf16>
    tpu.vector_store %arg7[%c0_12, %c8], %10 {strides = array<i32>} : memref<256x36xbf16, #tpu.memory_space<vmem>>, vector<256x4xbf16>,
    %c0_13 = arith.constant 0 : index
    %c1_14 = arith.constant 1 : index
    %c0_15 = arith.constant 0 : index
    %c0_16 = arith.constant 0 : index
    %12 = vector.load %arg2[%c0_13, %c1_14, %c0_15, %c0_16] : memref<1x18x18x4xbf16, #tpu.memory_space<vmem>>, vector<1x16x16x4xbf16>
    %13 = vector.shape_cast %12 : vector<1x16x16x4xbf16> to vector<16x16x4xbf16>
    %14 = vector.shape_cast %13 : vector<16x16x4xbf16> to vector<256x4xbf16>
    %c0_17 = arith.constant 0 : index
    %c12 = arith.constant 12 : index
    %15 = vector.load %arg7[%c0_17, %c12] : memref<256x36xbf16, #tpu.memory_space<vmem>>, vector<256x4xbf16>
    tpu.vector_store %arg7[%c0_17, %c12], %14 {strides = array<i32>} : memref<256x36xbf16, #tpu.memory_space<vmem>>, vector<256x4xbf16>,
    %c0_18 = arith.constant 0 : index
    %c1_19 = arith.constant 1 : index
    %c1_20 = arith.constant 1 : index
    %c0_21 = arith.constant 0 : index
    %16 = vector.load %arg2[%c0_18, %c1_19, %c1_20, %c0_21] : memref<1x18x18x4xbf16, #tpu.memory_space<vmem>>, vector<1x16x16x4xbf16>
    %17 = vector.shape_cast %16 : vector<1x16x16x4xbf16> to vector<16x16x4xbf16>
    %18 = vector.shape_cast %17 : vector<16x16x4xbf16> to vector<256x4xbf16>
    %c0_22 = arith.constant 0 : index
    %c16 = arith.constant 16 : index
    %19 = vector.load %arg7[%c0_22, %c16] : memref<256x36xbf16, #tpu.memory_space<vmem>>, vector<256x4xbf16>
    tpu.vector_store %arg7[%c0_22, %c16], %18 {strides = array<i32>} : memref<256x36xbf16, #tpu.memory_space<vmem>>, vector<256x4xbf16>,
    %c0_23 = arith.constant 0 : index
    %c1_24 = arith.constant 1 : index
    %c2_25 = arith.constant 2 : index
    %c0_26 = arith.constant 0 : index
    %20 = vector.load %arg2[%c0_23, %c1_24, %c2_25, %c0_26] : memref<1x18x18x4xbf16, #tpu.memory_space<vmem>>, vector<1x16x16x4xbf16>
    %21 = vector.shape_cast %20 : vector<1x16x16x4xbf16> to vector<16x16x4xbf16>
    %22 = vector.shape_cast %21 : vector<16x16x4xbf16> to vector<256x4xbf16>
    %c0_27 = arith.constant 0 : index
    %c20 = arith.constant 20 : index
    %23 = vector.load %arg7[%c0_27, %c20] : memref<256x36xbf16, #tpu.memory_space<vmem>>, vector<256x4xbf16>
    tpu.vector_store %arg7[%c0_27, %c20], %22 {strides = array<i32>} : memref<256x36xbf16, #tpu.memory_space<vmem>>, vector<256x4xbf16>,
    %c0_28 = arith.constant 0 : index
    %c2_29 = arith.constant 2 : index
    %c0_30 = arith.constant 0 : index
    %c0_31 = arith.constant 0 : index
    %24 = vector.load %arg2[%c0_28, %c2_29, %c0_30, %c0_31] : memref<1x18x18x4xbf16, #tpu.memory_space<vmem>>, vector<1x16x16x4xbf16>
    %25 = vector.shape_cast %24 : vector<1x16x16x4xbf16> to vector<16x16x4xbf16>
    %26 = vector.shape_cast %25 : vector<16x16x4xbf16> to vector<256x4xbf16>
    %c0_32 = arith.constant 0 : index
    %c24 = arith.constant 24 : index
    %27 = vector.load %arg7[%c0_32, %c24] : memref<256x36xbf16, #tpu.memory_space<vmem>>, vector<256x4xbf16>
    tpu.vector_store %arg7[%c0_32, %c24], %26 {strides = array<i32>} : memref<256x36xbf16, #tpu.memory_space<vmem>>, vector<256x4xbf16>,
    %c0_33 = arith.constant 0 : index
    %c2_34 = arith.constant 2 : index
    %c1_35 = arith.constant 1 : index
    %c0_36 = arith.constant 0 : index
    %28 = vector.load %arg2[%c0_33, %c2_34, %c1_35, %c0_36] : memref<1x18x18x4xbf16, #tpu.memory_space<vmem>>, vector<1x16x16x4xbf16>
    %29 = vector.shape_cast %28 : vector<1x16x16x4xbf16> to vector<16x16x4xbf16>
    %30 = vector.shape_cast %29 : vector<16x16x4xbf16> to vector<256x4xbf16>
    %c0_37 = arith.constant 0 : index
    %c28 = arith.constant 28 : index
    %31 = vector.load %arg7[%c0_37, %c28] : memref<256x36xbf16, #tpu.memory_space<vmem>>, vector<256x4xbf16>
    tpu.vector_store %arg7[%c0_37, %c28], %30 {strides = array<i32>} : memref<256x36xbf16, #tpu.memory_space<vmem>>, vector<256x4xbf16>,
    %c0_38 = arith.constant 0 : index
    %c2_39 = arith.constant 2 : index
    %c2_40 = arith.constant 2 : index
    %c0_41 = arith.constant 0 : index
    %32 = vector.load %arg2[%c0_38, %c2_39, %c2_40, %c0_41] : memref<1x18x18x4xbf16, #tpu.memory_space<vmem>>, vector<1x16x16x4xbf16>
    %33 = vector.shape_cast %32 : vector<1x16x16x4xbf16> to vector<16x16x4xbf16>
    %34 = vector.shape_cast %33 : vector<16x16x4xbf16> to vector<256x4xbf16>
    %c0_42 = arith.constant 0 : index
    %c32 = arith.constant 32 : index
    %35 = vector.load %arg7[%c0_42, %c32] : memref<256x36xbf16, #tpu.memory_space<vmem>>, vector<256x4xbf16>
    tpu.vector_store %arg7[%c0_42, %c32], %34 {strides = array<i32>} : memref<256x36xbf16, #tpu.memory_space<vmem>>, vector<256x4xbf16>,
    %c0_43 = arith.constant 0 : index
    %c0_44 = arith.constant 0 : index
    %36 = vector.load %arg7[%c0_43, %c0_44] : memref<256x36xbf16, #tpu.memory_space<vmem>>, vector<256x36xbf16>
    %c0_45 = arith.constant 0 : index
    %c0_46 = arith.constant 0 : index
    %37 = vector.load %arg3[%c0_45, %c0_46] : memref<36x8xbf16, #tpu.memory_space<vmem>>, vector<36x8xbf16>
    %cst = arith.constant dense<0.000000e+00> : vector<256x8xf32>
    %38 = tpu.matmul %36, %37, %cst {dimension_numbers = #tpu.dot_dimension_numbers<[1], [0], [0], [1], [0, 0, 1, 1], [], []>} : vector<256x36xbf16>, vector<36x8xbf16>, vector<256x8xf32> -> vector<256x8xf32>
    %c0_i32 = arith.constant 0 : i32
    %39 = arith.cmpi eq, %arg1, %c0_i32 : i32
    %40 = arith.extui %39 : i1 to i32
    %c0_i32_47 = arith.constant 0 : i32
    %41 = arith.cmpi ne, %40, %c0_i32_47 : i32
    scf.if %41 {
      %cst_67 = arith.constant 0.000000e+00 : f32
      %62 = vector.broadcast %cst_67 : f32 to vector<1x8xf32>
      %c0_68 = arith.constant 0 : index
      %c0_69 = arith.constant 0 : index
      %63 = vector.load %arg5[%c0_68, %c0_69] : memref<1x8xf32, #tpu.memory_space<vmem>>, vector<1x8xf32>
      tpu.vector_store %arg5[%c0_68, %c0_69], %62 {strides = array<i32>} : memref<1x8xf32, #tpu.memory_space<vmem>>, vector<1x8xf32>,
      %cst_70 = arith.constant 0.000000e+00 : f32
      %64 = vector.broadcast %cst_70 : f32 to vector<1x8xf32>
      %c0_71 = arith.constant 0 : index
      %c0_72 = arith.constant 0 : index
      %65 = vector.load %arg6[%c0_71, %c0_72] : memref<1x8xf32, #tpu.memory_space<vmem>>, vector<1x8xf32>
      tpu.vector_store %arg6[%c0_71, %c0_72], %64 {strides = array<i32>} : memref<1x8xf32, #tpu.memory_space<vmem>>, vector<1x8xf32>,
    } else {
    }
    %c0_48 = arith.constant 0 : index
    %c0_49 = arith.constant 0 : index
    %42 = vector.load %arg5[%c0_48, %c0_49] : memref<1x8xf32, #tpu.memory_space<vmem>>, vector<1x8xf32>
    %cst_50 = arith.constant dense<0.000000e+00> : vector<8xf32>
    %43 = vector.multi_reduction <add>, %38, %cst_50 [0] : vector<256x8xf32> to vector<8xf32>
    %44 = vector.shape_cast %43 : vector<8xf32> to vector<1x8xf32>
    %45 = arith.addf %42, %44 : vector<1x8xf32>
    %c0_51 = arith.constant 0 : index
    %c0_52 = arith.constant 0 : index
    %46 = vector.load %arg5[%c0_51, %c0_52] : memref<1x8xf32, #tpu.memory_space<vmem>>, vector<1x8xf32>
    tpu.vector_store %arg5[%c0_51, %c0_52], %45 {strides = array<i32>} : memref<1x8xf32, #tpu.memory_space<vmem>>, vector<1x8xf32>,
    %c0_53 = arith.constant 0 : index
    %c0_54 = arith.constant 0 : index
    %47 = vector.load %arg6[%c0_53, %c0_54] : memref<1x8xf32, #tpu.memory_space<vmem>>, vector<1x8xf32>
    %48 = arith.mulf %38, %38 : vector<256x8xf32>
    %cst_55 = arith.constant dense<0.000000e+00> : vector<8xf32>
    %49 = vector.multi_reduction <add>, %48, %cst_55 [0] : vector<256x8xf32> to vector<8xf32>
    %50 = vector.shape_cast %49 : vector<8xf32> to vector<1x8xf32>
    %51 = arith.addf %47, %50 : vector<1x8xf32>
    %c0_56 = arith.constant 0 : index
    %c0_57 = arith.constant 0 : index
    %52 = vector.load %arg6[%c0_56, %c0_57] : memref<1x8xf32, #tpu.memory_space<vmem>>, vector<1x8xf32>
    tpu.vector_store %arg6[%c0_56, %c0_57], %51 {strides = array<i32>} : memref<1x8xf32, #tpu.memory_space<vmem>>, vector<1x8xf32>,
    %53 = arith.truncf %38 : vector<256x8xf32> to vector<256x8xbf16>
    %54 = vector.shape_cast %53 : vector<256x8xbf16> to vector<16x16x8xbf16>
    %cst_58 = arith.constant 0.000000e+00 : bf16
    %55 = vector.broadcast %cst_58 : bf16 to vector<18x18x8xbf16>
    %c0_59 = arith.constant 0 : index
    %c0_60 = arith.constant 0 : index
    %c0_61 = arith.constant 0 : index
    %c0_62 = arith.constant 0 : index
    %56 = vector.load %arg4[%c0_59, %c0_60, %c0_61, %c0_62] : memref<1x18x18x8xbf16, #tpu.memory_space<vmem>>, vector<1x18x18x8xbf16>
    %57 = vector.shape_cast %56 : vector<1x18x18x8xbf16> to vector<18x18x8xbf16>
    %58 = vector.shape_cast %55 : vector<18x18x8xbf16> to vector<1x18x18x8xbf16>
    tpu.vector_store %arg4[%c0_59, %c0_60, %c0_61, %c0_62], %58 {strides = array<i32>} : memref<1x18x18x8xbf16, #tpu.memory_space<vmem>>, vector<1x18x18x8xbf16>,
    %c0_63 = arith.constant 0 : index
    %c1_64 = arith.constant 1 : index
    %c1_65 = arith.constant 1 : index
    %c0_66 = arith.constant 0 : index
    %59 = vector.load %arg4[%c0_63, %c1_64, %c1_65, %c0_66] : memref<1x18x18x8xbf16, #tpu.memory_space<vmem>>, vector<1x16x16x8xbf16>
    %60 = vector.shape_cast %59 : vector<1x16x16x8xbf16> to vector<16x16x8xbf16>
    %61 = vector.shape_cast %54 : vector<16x16x8xbf16> to vector<1x16x16x8xbf16>
    tpu.vector_store %arg4[%c0_63, %c1_64, %c1_65, %c0_66], %61 {strides = array<i32>} : memref<1x18x18x8xbf16, #tpu.memory_space<vmem>>, vector<1x16x16x8xbf16>,
    return
  }
  func.func @transform_0(%arg0: i32, %arg1: i32) -> (i32, i32, i32, i32) {
    %c0_i32 = arith.constant 0 : i32
    %c0_i32_0 = arith.constant 0 : i32
    %c0_i32_1 = arith.constant 0 : i32
    %c0_i32_2 = arith.constant 0 : i32
    return %arg1, %c0_i32, %c0_i32_0, %c0_i32_1 : i32, i32, i32, i32
  }
  func.func @transform_1(%arg0: i32, %arg1: i32) -> (i32, i32) {
    %c0_i32 = arith.constant 0 : i32
    %c0_i32_0 = arith.constant 0 : i32
    return %c0_i32, %arg0 : i32, i32
  }
  func.func @transform_2(%arg0: i32, %arg1: i32) -> (i32, i32, i32, i32) {
    %c0_i32 = arith.constant 0 : i32
    %c0_i32_0 = arith.constant 0 : i32
    %c0_i32_1 = arith.constant 0 : i32
    return %arg1, %c0_i32, %c0_i32_0, %arg0 : i32, i32, i32, i32
  }
  func.func @transform_3(%arg0: i32, %arg1: i32) -> (i32, i32) {
    %c0_i32 = arith.constant 0 : i32
    %c0_i32_0 = arith.constant 0 : i32
    return %c0_i32, %arg0 : i32, i32
  }
  func.func @transform_4(%arg0: i32, %arg1: i32) -> (i32, i32) {
    %c0_i32 = arith.constant 0 : i32
    %c0_i32_0 = arith.constant 0 : i32
    return %c0_i32, %arg0 : i32, i32
  }
}

module attributes {stable_mosaic.version = 11 : i64} {
  func.func @_bn_apply_kernel(%arg0: i32, %arg1: memref<512x8xbf16, #tpu.memory_space<vmem>>, %arg2: memref<1x8xf32, #tpu.memory_space<vmem>>, %arg3: memref<1x8xf32, #tpu.memory_space<vmem>>, %arg4: memref<512x8xf32, #tpu.memory_space<vmem>>) attributes {dimension_semantics = [#tpu.dimension_semantics<parallel>], iteration_bounds = array<i64: 1>, scalar_prefetch = 0 : i64, scratch_operands = 0 : i64, tpu.core_type = #tpu.core_type<tc>, window_params = [{transform_indices = @transform_0, window_bounds = array<i64: 512, 8>}, {pipeline_mode = #tpu.pipeline_mode<synchronous>, transform_indices = @transform_1, window_bounds = array<i64: 1, 8>}, {pipeline_mode = #tpu.pipeline_mode<synchronous>, transform_indices = @transform_2, window_bounds = array<i64: 1, 8>}, {transform_indices = @transform_3, window_bounds = array<i64: 512, 8>}]} {
    %c0 = arith.constant 0 : index
    %c0_0 = arith.constant 0 : index
    %0 = vector.load %arg1[%c0, %c0_0] : memref<512x8xbf16, #tpu.memory_space<vmem>>, vector<512x8xbf16>
    %1 = arith.extf %0 : vector<512x8xbf16> to vector<512x8xf32>
    %c0_1 = arith.constant 0 : index
    %c0_2 = arith.constant 0 : index
    %2 = vector.load %arg2[%c0_1, %c0_2] : memref<1x8xf32, #tpu.memory_space<vmem>>, vector<1x8xf32>
    %3 = vector.broadcast %2 : vector<1x8xf32> to vector<512x8xf32>
    %4 = arith.mulf %1, %3 : vector<512x8xf32>
    %c0_3 = arith.constant 0 : index
    %c0_4 = arith.constant 0 : index
    %5 = vector.load %arg3[%c0_3, %c0_4] : memref<1x8xf32, #tpu.memory_space<vmem>>, vector<1x8xf32>
    %6 = vector.broadcast %5 : vector<1x8xf32> to vector<512x8xf32>
    %7 = arith.addf %4, %6 : vector<512x8xf32>
    %cst = arith.constant 0.000000e+00 : f32
    %8 = vector.broadcast %cst : f32 to vector<512x8xf32>
    %9 = arith.maximumf %7, %8 : vector<512x8xf32>
    %c0_5 = arith.constant 0 : index
    %c0_6 = arith.constant 0 : index
    %10 = vector.load %arg4[%c0_5, %c0_6] : memref<512x8xf32, #tpu.memory_space<vmem>>, vector<512x8xf32>
    tpu.vector_store %arg4[%c0_5, %c0_6], %9 {strides = array<i32>} : memref<512x8xf32, #tpu.memory_space<vmem>>, vector<512x8xf32>,
    return
  }
  func.func @transform_0(%arg0: i32) -> (i32, i32) {
    %c0_i32 = arith.constant 0 : i32
    %c0_i32_0 = arith.constant 0 : i32
    return %arg0, %c0_i32 : i32, i32
  }
  func.func @transform_1(%arg0: i32) -> (i32, i32) {
    %c0_i32 = arith.constant 0 : i32
    %c0_i32_0 = arith.constant 0 : i32
    %c0_i32_1 = arith.constant 0 : i32
    return %c0_i32, %c0_i32_0 : i32, i32
  }
  func.func @transform_2(%arg0: i32) -> (i32, i32) {
    %c0_i32 = arith.constant 0 : i32
    %c0_i32_0 = arith.constant 0 : i32
    %c0_i32_1 = arith.constant 0 : i32
    return %c0_i32, %c0_i32_0 : i32, i32
  }
  func.func @transform_3(%arg0: i32) -> (i32, i32) {
    %c0_i32 = arith.constant 0 : i32
    %c0_i32_0 = arith.constant 0 : i32
    return %arg0, %c0_i32 : i32, i32
  }
}

</mosaic_0001>

<bundles_post_ra>
// kernel: double_conv.5
= control target key start
LH: loop header
LB: loop body
LE: loop exit
PB: predicated region body
PF: predicated region fallthrough
CT: control target
= control target key end

     0   :  { %8 = vsyncpa [#allocation3], 0  ;;  %s1011_s0 = inlined_call_operand.hbm [shape: bf16[512,8], index: 0, kind: input, shape index: {}]   ;;  %s1012_s1 = inlined_call_operand.hbm [shape: f32[1,8], index: 1, kind: input, shape index: {}]   ;;  %s1013_s2 = inlined_call_operand.hbm [shape: f32[1,8], index: 2, kind: input, shape index: {}]   ;;  %s1014_s3 = inlined_call_operand.hbm [shape: f32[512,8], index: 3, kind: output, shape index: {}]  }
   0x1   :  { %9 = vsyncpa [#allocation6], 0 }
   0x2   :  { %10 = vsyncpa [#allocation4], 0  ;;  %s732_s12 = smov [#allocation5]   ;;  %s733_s14 = smov [#allocation2]  }
   0x3   :  { %s29_s13 = sshll.u32 %s732_s12, 4  ;;  %s16_s15 = sshll.u32 %s733_s14, 4  ;;  %s30_s13 = int_to_ptr.vmem [resolvable:$true] %s29_s13  ;;  %s760_s15 = int_to_ptr.vmem [resolvable:$true] %s16_s15 }
   0x4   :  { %s638_s18 = scalar_lea.hbm %s1012_s1, 16 }
   0x5   :  { %p639_p0 = scmp.ne.s32.totalorder %s1012_s1, %s638_s18  ;;  %p642_p1 = scmp.lt.u32.totalorder %s638_s18, %s1012_s1 }
   0x7   :  { %p644_p2 = pnand %p642_p1, %p639_p0 }
   0x9   :  { %647 = shalt.err (!%p644_p2)
}
   0xa   :  { %s648_s23 = scalar_lea.vmem %s30_s13, 16  ;;  %s652_s24 = scalar_lea.vmem %s30_s13, 32 }
   0xb   :  { %p649_p3 = scmp.ne.s32.totalorder %s30_s13, %s648_s23  ;;  %p653_p4 = scmp.lt.s32.totalorder %s30_s13, %s30_s13 }
   0xc   :  { %p654_p5 = scmp.lt.s32.totalorder %s652_s24, %s648_s23 }
   0xe   :  { %p655_p6 = por %p654_p5, %p653_p4 }
  0x10   :  { %p656_p7 = pnand %p655_p6, %p649_p3 }
  0x12   :  { %659 = shalt.err (!%p656_p7)
}
  0x13   :  { %32 = dma.hbm_to_vmem [thread:$0]  %s1012_s1, 16, %s30_s13, [#allocation6]  }
  0x14   :  { %s660_s29 = scalar_lea.hbm %s1011_s0, 4096 }
  0x15   :  { %p661_p8 = scmp.ne.s32.totalorder %s1011_s0, %s660_s29  ;;  %p664_p9 = scmp.lt.u32.totalorder %s660_s29, %s1011_s0 }
  0x17   :  { %p666_p10 = pnand %p664_p9, %p661_p8 }
  0x19   :  { %669 = shalt.err (!%p666_p10)
}
  0x1a   :  { %s670_s7 = scalar_lea.vmem %s760_s15, 4096  ;;  %p675_p12 = scmp.lt.s32.totalorder %s760_s15, %s760_s15 }
  0x1b   :  { %p671_p11 = scmp.ne.s32.totalorder %s760_s15, %s670_s7  ;;  %p676_p13 = scmp.lt.s32.totalorder %s670_s7, %s670_s7 }
  0x1d   :  { %p677_p0 = por %p676_p13, %p675_p12 }
  0x1f   :  { %p678_p1 = pnand %p677_p0, %p671_p11 }
  0x21   :  { %681 = shalt.err (!%p678_p1)
}
  0x22   :  { %s734_s1 = smov 64   ;;  %s735_s8 = smov 4  }
  0x23   :  { %22 = dma.hbm_to_vmem [thread:$0]  %s1011_s0, 4096, %s760_s15, [#allocation3], %s734_s1, %s734_s1, %s735_s8  }
  0x24   :  { %s736_s11 = smov [#allocation7]   ;;  %s682_s16 = scalar_lea.hbm %s1013_s2, 16 }
  0x25   :  { %s39_s12 = sshll.u32 %s736_s11, 4  ;;  %p683_p2 = scmp.ne.s32.totalorder %s1013_s2, %s682_s16  ;;  %s40_s12 = int_to_ptr.vmem [resolvable:$true] %s39_s12 }
  0x26   :  { %p686_p3 = scmp.lt.u32.totalorder %s682_s16, %s1013_s2 }
  0x28   :  { %p688_p4 = pnand %p686_p3, %p683_p2 }
  0x2a   :  { %691 = shalt.err (!%p688_p4)
}
  0x2b   :  { %s692_s21 = scalar_lea.vmem %s40_s12, 16  ;;  %s696_s0 = scalar_lea.vmem %s40_s12, 32 }
  0x2c   :  { %p693_p5 = scmp.ne.s32.totalorder %s40_s12, %s692_s21  ;;  %p697_p6 = scmp.lt.s32.totalorder %s40_s12, %s40_s12 }
  0x2d   :  { %p698_p7 = scmp.lt.s32.totalorder %s696_s0, %s692_s21 }
  0x2f   :  { %p699_p8 = por %p698_p7, %p697_p6 }
  0x31   :  { %p700_p9 = pnand %p699_p8, %p693_p5 }
  0x33   :  { %703 = shalt.err (!%p700_p9)
}
  0x34   :  { %42 = dma.hbm_to_vmem [thread:$0]  %s1013_s2, 16, %s40_s12, [#allocation6]  }
  0x35   :  { %726 = dma.done.wait [#allocation3], 4096  }
  0x36   :  { %727 = vsyncadd [#allocation3], 4294963200 }
  0x37   :  { %728 = dma.done.wait [#allocation6], 32  }
  0x38   :  { %729 = vsyncadd [#allocation6], 4294967264  ;;  %v472_v0 = vld [vmem:[#allocation2] sm:$0xff]   ;;  %vm386_vm0 = vcmask 64512   ;;  %v599_v4 = vld [vmem:[#allocation2 + $0x8] sm:$0xff]   ;;  %s737_s2 = smov [#allocation8]  }
  0x39   :  { %v803_v1 = vld [vmem:[#allocation5] ss:$0 sm:$0xff]  ;;  %v473_v2 = vunpack.c.l.bf16 %v472_v0  ;;  %v474_v3 = vunpack.c.h.bf16 %v472_v0  ;;  %v600_v5 = vld [vmem:[#allocation2 + $0x10] sm:$0xff]   ;;  %v601_v6 = vld [vmem:[#allocation2 + $0x18] sm:$0xff]   ;;  %v477_v8 = vunpack.c.l.bf16 %v599_v4  ;;  %v478_v9 = vunpack.c.h.bf16 %v599_v4  ;;  %s456_s23 = sshll.u32 %s737_s2, 4  ;;  %s457_s23 = int_to_ptr.vmem [resolvable:$true] %s456_s23 }
  0x3a   :  { %v805_v7 = vld [vmem:[#allocation7] ss:$0 sm:$0xff]  ;;  %v481_v10 = vunpack.c.l.bf16 %v600_v5  ;;  %v482_v11 = vunpack.c.h.bf16 %v600_v5  ;;  %v485_v14 = vunpack.c.l.bf16 %v601_v6  ;;  %v486_v15 = vunpack.c.h.bf16 %v601_v6  ;;  %v603_v33 = vld [vmem:[#allocation2 + $0x28] sm:$0xff]   ;;  %v604_v34 = vld [vmem:[#allocation2 + $0x30] sm:$0xff]   ;;  %s704_s24 = scalar_lea.vmem %s457_s23, 8192  ;;  %p709_p11 = scmp.lt.s32.totalorder %s457_s23, %s457_s23 }
  0x3b   :  { %v187_v12 = vmul.f32 %v473_v2, %v803_v1  ;;  %v188_v13 = vmul.f32 %v474_v3, %v803_v1  ;;  %v189_v16 = vmul.f32 %v477_v8, %v803_v1  ;;  %v190_v17 = vmul.f32 %v478_v9, %v803_v1  ;;  %v602_v28 = vld [vmem:[#allocation2 + $0x20] sm:$0xff]   ;;  %v605_v39 = vld [vmem:[#allocation2 + $0x38] sm:$0xff]   ;;  %v607_v6 = vld [vmem:[#allocation2 + $0x48] sm:$0xff]   ;;  %p705_p10 = scmp.ne.s32.totalorder %s457_s23, %s704_s24  ;;  %p710_p12 = scmp.lt.s32.totalorder %s704_s24, %s704_s24 }
  0x3c   :  { %v191_v18 = vmul.f32 %v481_v10, %v803_v1  ;;  %v192_v19 = vmul.f32 %v482_v11, %v803_v1  ;;  %v193_v22 = vmul.f32 %v485_v14, %v803_v1  ;;  %v194_v23 = vmul.f32 %v486_v15, %v803_v1  ;;  %v606_v0 = vld [vmem:[#allocation2 + $0x40] sm:$0xff]   ;;  %v608_v8 = vld [vmem:[#allocation2 + $0x50] sm:$0xff]  }
  0x3d   :  { %v258_v20 = vadd.f32 %v805_v7, %v187_v12  ;;  %v259_v21 = vadd.f32 %v805_v7, %v188_v13  ;;  %v260_v24 = vadd.f32 %v805_v7, %v189_v16  ;;  %v261_v25 = vadd.f32 %v805_v7, %v190_v17  ;;  %v609_v13 = vld [vmem:[#allocation2 + $0x58] sm:$0xff]   ;;  %p711_p13 = por %p710_p12, %p709_p11 }
  0x3e   :  { %v262_v26 = vadd.f32 %v805_v7, %v191_v18  ;;  %v263_v27 = vadd.f32 %v805_v7, %v192_v19  ;;  %v264_v31 = vadd.f32 %v805_v7, %v193_v22  ;;  %v265_v32 = vadd.f32 %v805_v7, %v194_v23 }
  0x3f   :  { %v322_v29 = vmax.f32 %v258_v20, 0.0  ;;  %v323_v30 = vmax.f32 %v259_v21, 0.0  ;;  %v324_v35 = vmax.f32 %v260_v24, 0.0  ;;  %v325_v36 = vmax.f32 %v261_v25, 0.0  ;;  %p712_p0 = pnand %p711_p13, %p705_p10 }
  0x40   :  { %v326_v37 = vmax.f32 %v262_v26, 0.0  ;;  %v327_v38 = vmax.f32 %v263_v27, 0.0  ;;  %v328_v40 = vmax.f32 %v264_v31, 0.0  ;;  %v329_v41 = vmax.f32 %v265_v32, 0.0 }
  0x41   :  { %387 = vst.msk [vmem:[#allocation8] sm:$0xff] %vm386_vm0, %v322_v29  ;;  %388 = vst.msk [vmem:[#allocation8 + $0x8] sm:$0xff] %vm386_vm0, %v323_v30  ;;  %v489_v42 = vunpack.c.l.bf16 %v602_v28  ;;  %v490_v43 = vunpack.c.h.bf16 %v602_v28  ;;  %v493_v44 = vunpack.c.l.bf16 %v603_v33  ;;  %v494_v45 = vunpack.c.h.bf16 %v603_v33 }
  0x42   :  { %389 = vst.msk [vmem:[#allocation8 + $0x10] sm:$0xff] %vm386_vm0, %v324_v35  ;;  %390 = vst.msk [vmem:[#allocation8 + $0x18] sm:$0xff] %vm386_vm0, %v325_v36  ;;  %v497_v46 = vunpack.c.l.bf16 %v604_v34  ;;  %v498_v47 = vunpack.c.h.bf16 %v604_v34  ;;  %v501_v50 = vunpack.c.l.bf16 %v605_v39  ;;  %v502_v51 = vunpack.c.h.bf16 %v605_v39 }
  0x43   :  { %391 = vst.msk [vmem:[#allocation8 + $0x20] sm:$0xff] %vm386_vm0, %v326_v37  ;;  %392 = vst.msk [vmem:[#allocation8 + $0x28] sm:$0xff] %vm386_vm0, %v327_v38  ;;  %v195_v48 = vmul.f32 %v489_v42, %v803_v1  ;;  %v196_v49 = vmul.f32 %v490_v43, %v803_v1  ;;  %v197_v52 = vmul.f32 %v493_v44, %v803_v1  ;;  %v505_v16 = vunpack.c.l.bf16 %v606_v0  ;;  %v610_v38 = vld [vmem:[#allocation2 + $0x60] sm:$0xff]   ;;  %v611_v43 = vld [vmem:[#allocation2 + $0x68] sm:$0xff]  }
  0x44   :  { %393 = vst.msk [vmem:[#allocation8 + $0x30] sm:$0xff] %vm386_vm0, %v328_v40  ;;  %394 = vst.msk [vmem:[#allocation8 + $0x38] sm:$0xff] %vm386_vm0, %v329_v41  ;;  %v198_v53 = vmul.f32 %v494_v45, %v803_v1  ;;  %v199_v54 = vmul.f32 %v497_v46, %v803_v1  ;;  %v200_v55 = vmul.f32 %v498_v47, %v803_v1  ;;  %v506_v17 = vunpack.c.h.bf16 %v606_v0  ;;  %v612_v44 = vld [vmem:[#allocation2 + $0x70] sm:$0xff]  }
  0x45   :  { %v266_v56 = vadd.f32 %v805_v7, %v195_v48  ;;  %v267_v57 = vadd.f32 %v805_v7, %v196_v49  ;;  %v201_v58 = vmul.f32 %v501_v50, %v803_v1  ;;  %v202_v59 = vmul.f32 %v502_v51, %v803_v1  ;;  %v613_v49 = vld [vmem:[#allocation2 + $0x78] sm:$0xff]  }
  0x46   :  { %v268_v60 = vadd.f32 %v805_v7, %v197_v52  ;;  %v269_v61 = vadd.f32 %v805_v7, %v198_v53  ;;  %v270_v62 = vadd.f32 %v805_v7, %v199_v54  ;;  %v271_v63 = vadd.f32 %v805_v7, %v200_v55 }
  0x47   :  { %v330_v2 = vmax.f32 %v266_v56, 0.0  ;;  %v331_v3 = vmax.f32 %v267_v57, 0.0  ;;  %v272_v4 = vadd.f32 %v805_v7, %v201_v58  ;;  %v273_v5 = vadd.f32 %v805_v7, %v202_v59 }
  0x48   :  { %v332_v9 = vmax.f32 %v268_v60, 0.0  ;;  %v333_v10 = vmax.f32 %v269_v61, 0.0  ;;  %v334_v11 = vmax.f32 %v270_v62, 0.0  ;;  %v335_v12 = vmax.f32 %v271_v63, 0.0 }
  0x49   :  { %395 = vst.msk [vmem:[#allocation8 + $0x40] sm:$0xff] %vm386_vm0, %v330_v2  ;;  %396 = vst.msk [vmem:[#allocation8 + $0x48] sm:$0xff] %vm386_vm0, %v331_v3  ;;  %v336_v14 = vmax.f32 %v272_v4, 0.0  ;;  %v337_v15 = vmax.f32 %v273_v5, 0.0  ;;  %v509_v18 = vunpack.c.l.bf16 %v607_v6  ;;  %v510_v19 = vunpack.c.h.bf16 %v607_v6 }
  0x4a   :  { %397 = vst.msk [vmem:[#allocation8 + $0x50] sm:$0xff] %vm386_vm0, %v332_v9  ;;  %398 = vst.msk [vmem:[#allocation8 + $0x58] sm:$0xff] %vm386_vm0, %v333_v10  ;;  %v513_v20 = vunpack.c.l.bf16 %v608_v8  ;;  %v514_v21 = vunpack.c.h.bf16 %v608_v8  ;;  %v203_v22 = vmul.f32 %v505_v16, %v803_v1  ;;  %v204_v23 = vmul.f32 %v506_v17, %v803_v1  ;;  %v615_v17 = vld [vmem:[#allocation2 + $0x88] sm:$0xff]  }
  0x4b   :  { %399 = vst.msk [vmem:[#allocation8 + $0x60] sm:$0xff] %vm386_vm0, %v334_v11  ;;  %400 = vst.msk [vmem:[#allocation8 + $0x68] sm:$0xff] %vm386_vm0, %v335_v12  ;;  %v517_v24 = vunpack.c.l.bf16 %v609_v13  ;;  %v518_v25 = vunpack.c.h.bf16 %v609_v13  ;;  %v205_v26 = vmul.f32 %v509_v18, %v803_v1  ;;  %v206_v27 = vmul.f32 %v510_v19, %v803_v1  ;;  %v614_v12 = vld [vmem:[#allocation2 + $0x80] sm:$0xff]   ;;  %v616_v18 = vld [vmem:[#allocation2 + $0x90] sm:$0xff]  }
  0x4c   :  { %401 = vst.msk [vmem:[#allocation8 + $0x70] sm:$0xff] %vm386_vm0, %v336_v14  ;;  %402 = vst.msk [vmem:[#allocation8 + $0x78] sm:$0xff] %vm386_vm0, %v337_v15  ;;  %v207_v28 = vmul.f32 %v513_v20, %v803_v1  ;;  %v208_v29 = vmul.f32 %v514_v21, %v803_v1  ;;  %v274_v30 = vadd.f32 %v805_v7, %v203_v22  ;;  %v521_v52 = vunpack.c.l.bf16 %v610_v38 }
  0x4d   :  { %v275_v31 = vadd.f32 %v805_v7, %v204_v23  ;;  %v209_v32 = vmul.f32 %v517_v24, %v803_v1  ;;  %v210_v33 = vmul.f32 %v518_v25, %v803_v1  ;;  %v276_v34 = vadd.f32 %v805_v7, %v205_v26  ;;  %v617_v23 = vld [vmem:[#allocation2 + $0x98] sm:$0xff]  }
  0x4e   :  { %v277_v35 = vadd.f32 %v805_v7, %v206_v27  ;;  %v278_v36 = vadd.f32 %v805_v7, %v207_v28  ;;  %v279_v37 = vadd.f32 %v805_v7, %v208_v29  ;;  %v338_v39 = vmax.f32 %v274_v30, 0.0 }
  0x4f   :  { %v339_v40 = vmax.f32 %v275_v31, 0.0  ;;  %v280_v41 = vadd.f32 %v805_v7, %v209_v32  ;;  %v281_v42 = vadd.f32 %v805_v7, %v210_v33  ;;  %v340_v45 = vmax.f32 %v276_v34, 0.0 }
  0x50   :  { %v341_v46 = vmax.f32 %v277_v35, 0.0  ;;  %v342_v47 = vmax.f32 %v278_v36, 0.0  ;;  %v343_v48 = vmax.f32 %v279_v37, 0.0  ;;  %403 = vst.msk [vmem:[#allocation8 + $0x80] sm:$0xff] %vm386_vm0, %v338_v39  ;;  %v522_v53 = vunpack.c.h.bf16 %v610_v38 }
  0x51   :  { %404 = vst.msk [vmem:[#allocation8 + $0x88] sm:$0xff] %vm386_vm0, %v339_v40  ;;  %v344_v50 = vmax.f32 %v280_v41, 0.0  ;;  %v345_v51 = vmax.f32 %v281_v42, 0.0  ;;  %405 = vst.msk [vmem:[#allocation8 + $0x90] sm:$0xff] %vm386_vm0, %v340_v45  ;;  %v525_v54 = vunpack.c.l.bf16 %v611_v43  ;;  %v526_v55 = vunpack.c.h.bf16 %v611_v43 }
  0x52   :  { %406 = vst.msk [vmem:[#allocation8 + $0x98] sm:$0xff] %vm386_vm0, %v341_v46  ;;  %407 = vst.msk [vmem:[#allocation8 + $0xa0] sm:$0xff] %vm386_vm0, %v342_v47  ;;  %v529_v56 = vunpack.c.l.bf16 %v612_v44  ;;  %v530_v57 = vunpack.c.h.bf16 %v612_v44  ;;  %v211_v58 = vmul.f32 %v521_v52, %v803_v1  ;;  %v212_v59 = vmul.f32 %v522_v53, %v803_v1  ;;  %v619_v53 = vld [vmem:[#allocation2 + $0xa8] sm:$0xff]  }
  0x53   :  { %408 = vst.msk [vmem:[#allocation8 + $0xa8] sm:$0xff] %vm386_vm0, %v343_v48  ;;  %409 = vst.msk [vmem:[#allocation8 + $0xb0] sm:$0xff] %vm386_vm0, %v344_v50  ;;  %v533_v60 = vunpack.c.l.bf16 %v613_v49  ;;  %v534_v61 = vunpack.c.h.bf16 %v613_v49  ;;  %v213_v62 = vmul.f32 %v525_v54, %v803_v1  ;;  %v214_v63 = vmul.f32 %v526_v55, %v803_v1  ;;  %v618_v48 = vld [vmem:[#allocation2 + $0xa0] sm:$0xff]   ;;  %v620_v54 = vld [vmem:[#allocation2 + $0xb0] sm:$0xff]  }
  0x54   :  { %410 = vst.msk [vmem:[#allocation8 + $0xb8] sm:$0xff] %vm386_vm0, %v345_v51  ;;  %v215_v0 = vmul.f32 %v529_v56, %v803_v1  ;;  %v216_v2 = vmul.f32 %v530_v57, %v803_v1  ;;  %v282_v3 = vadd.f32 %v805_v7, %v211_v58  ;;  %v283_v4 = vadd.f32 %v805_v7, %v212_v59  ;;  %v621_v59 = vld [vmem:[#allocation2 + $0xb8] sm:$0xff]  }
  0x55   :  { %v217_v5 = vmul.f32 %v533_v60, %v803_v1  ;;  %v218_v6 = vmul.f32 %v534_v61, %v803_v1  ;;  %v284_v8 = vadd.f32 %v805_v7, %v213_v62  ;;  %v285_v9 = vadd.f32 %v805_v7, %v214_v63 }
  0x56   :  { %v286_v10 = vadd.f32 %v805_v7, %v215_v0  ;;  %v287_v11 = vadd.f32 %v805_v7, %v216_v2  ;;  %v346_v13 = vmax.f32 %v282_v3, 0.0  ;;  %v347_v14 = vmax.f32 %v283_v4, 0.0 }
  0x57   :  { %v288_v15 = vadd.f32 %v805_v7, %v217_v5  ;;  %v289_v16 = vadd.f32 %v805_v7, %v218_v6  ;;  %v348_v19 = vmax.f32 %v284_v8, 0.0  ;;  %v349_v20 = vmax.f32 %v285_v9, 0.0 }
  0x58   :  { %v350_v21 = vmax.f32 %v286_v10, 0.0  ;;  %v351_v22 = vmax.f32 %v287_v11, 0.0  ;;  %411 = vst.msk [vmem:[#allocation8 + $0xc0] sm:$0xff] %vm386_vm0, %v346_v13  ;;  %412 = vst.msk [vmem:[#allocation8 + $0xc8] sm:$0xff] %vm386_vm0, %v347_v14  ;;  %v537_v26 = vunpack.c.l.bf16 %v614_v12  ;;  %v538_v27 = vunpack.c.h.bf16 %v614_v12 }
  0x59   :  { %v352_v24 = vmax.f32 %v288_v15, 0.0  ;;  %v353_v25 = vmax.f32 %v289_v16, 0.0  ;;  %413 = vst.msk [vmem:[#allocation8 + $0xd0] sm:$0xff] %vm386_vm0, %v348_v19  ;;  %414 = vst.msk [vmem:[#allocation8 + $0xd8] sm:$0xff] %vm386_vm0, %v349_v20  ;;  %v541_v28 = vunpack.c.l.bf16 %v615_v17  ;;  %v542_v29 = vunpack.c.h.bf16 %v615_v17 }
  0x5a   :  { %415 = vst.msk [vmem:[#allocation8 + $0xe0] sm:$0xff] %vm386_vm0, %v350_v21  ;;  %416 = vst.msk [vmem:[#allocation8 + $0xe8] sm:$0xff] %vm386_vm0, %v351_v22  ;;  %v545_v30 = vunpack.c.l.bf16 %v616_v18  ;;  %v546_v31 = vunpack.c.h.bf16 %v616_v18  ;;  %v219_v32 = vmul.f32 %v537_v26, %v803_v1  ;;  %v220_v33 = vmul.f32 %v538_v27, %v803_v1  ;;  %v622_v22 = vld [vmem:[#allocation2 + $0xc0] sm:$0xff]   ;;  %v623_v27 = vld [vmem:[#allocation2 + $0xc8] sm:$0xff]  }
  0x5b   :  { %417 = vst.msk [vmem:[#allocation8 + $0xf0] sm:$0xff] %vm386_vm0, %v352_v24  ;;  %418 = vst.msk [vmem:[#allocation8 + $0xf8] sm:$0xff] %vm386_vm0, %v353_v25  ;;  %v549_v34 = vunpack.c.l.bf16 %v617_v23  ;;  %v550_v35 = vunpack.c.h.bf16 %v617_v23  ;;  %v221_v36 = vmul.f32 %v541_v28, %v803_v1  ;;  %v222_v37 = vmul.f32 %v542_v29, %v803_v1  ;;  %v624_v28 = vld [vmem:[#allocation2 + $0xd0] sm:$0xff]  }
  0x5c   :  { %v223_v38 = vmul.f32 %v545_v30, %v803_v1  ;;  %v224_v39 = vmul.f32 %v546_v31, %v803_v1  ;;  %v290_v40 = vadd.f32 %v805_v7, %v219_v32  ;;  %v291_v41 = vadd.f32 %v805_v7, %v220_v33  ;;  %v625_v33 = vld [vmem:[#allocation2 + $0xd8] sm:$0xff]  }
  0x5d   :  { %v225_v42 = vmul.f32 %v549_v34, %v803_v1  ;;  %v226_v43 = vmul.f32 %v550_v35, %v803_v1  ;;  %v292_v44 = vadd.f32 %v805_v7, %v221_v36  ;;  %v293_v45 = vadd.f32 %v805_v7, %v222_v37 }
  0x5e   :  { %v294_v46 = vadd.f32 %v805_v7, %v223_v38  ;;  %v295_v47 = vadd.f32 %v805_v7, %v224_v39  ;;  %v354_v49 = vmax.f32 %v290_v40, 0.0  ;;  %v355_v50 = vmax.f32 %v291_v41, 0.0 }
  0x5f   :  { %v296_v51 = vadd.f32 %v805_v7, %v225_v42  ;;  %v297_v52 = vadd.f32 %v805_v7, %v226_v43  ;;  %v356_v55 = vmax.f32 %v292_v44, 0.0  ;;  %v357_v56 = vmax.f32 %v293_v45, 0.0 }
  0x60   :  { %v358_v57 = vmax.f32 %v294_v46, 0.0  ;;  %v359_v58 = vmax.f32 %v295_v47, 0.0  ;;  %419 = vst.msk [vmem:[#allocation8 + $0x100] sm:$0xff] %vm386_vm0, %v354_v49  ;;  %420 = vst.msk [vmem:[#allocation8 + $0x108] sm:$0xff] %vm386_vm0, %v355_v50  ;;  %v553_v62 = vunpack.c.l.bf16 %v618_v48  ;;  %v554_v63 = vunpack.c.h.bf16 %v618_v48 }
  0x61   :  { %v360_v60 = vmax.f32 %v296_v51, 0.0  ;;  %v361_v61 = vmax.f32 %v297_v52, 0.0  ;;  %421 = vst.msk [vmem:[#allocation8 + $0x110] sm:$0xff] %vm386_vm0, %v356_v55  ;;  %422 = vst.msk [vmem:[#allocation8 + $0x118] sm:$0xff] %vm386_vm0, %v357_v56  ;;  %v557_v0 = vunpack.c.l.bf16 %v619_v53  ;;  %v558_v2 = vunpack.c.h.bf16 %v619_v53 }
  0x62   :  { %423 = vst.msk [vmem:[#allocation8 + $0x120] sm:$0xff] %vm386_vm0, %v358_v57  ;;  %424 = vst.msk [vmem:[#allocation8 + $0x128] sm:$0xff] %vm386_vm0, %v359_v58  ;;  %v561_v3 = vunpack.c.l.bf16 %v620_v54  ;;  %v562_v4 = vunpack.c.h.bf16 %v620_v54  ;;  %v227_v5 = vmul.f32 %v553_v62, %v803_v1  ;;  %v228_v6 = vmul.f32 %v554_v63, %v803_v1  ;;  %v626_v58 = vld [vmem:[#allocation2 + $0xe0] sm:$0xff]   ;;  %v627_v63 = vld [vmem:[#allocation2 + $0xe8] sm:$0xff]  }
  0x63   :  { %425 = vst.msk [vmem:[#allocation8 + $0x130] sm:$0xff] %vm386_vm0, %v360_v60  ;;  %426 = vst.msk [vmem:[#allocation8 + $0x138] sm:$0xff] %vm386_vm0, %v361_v61  ;;  %v565_v8 = vunpack.c.l.bf16 %v621_v59  ;;  %v566_v9 = vunpack.c.h.bf16 %v621_v59  ;;  %v229_v10 = vmul.f32 %v557_v0, %v803_v1  ;;  %v230_v11 = vmul.f32 %v558_v2, %v803_v1  ;;  %v628_v0 = vld [vmem:[#allocation2 + $0xf0] sm:$0xff]  }
  0x64   :  { %v231_v12 = vmul.f32 %v561_v3, %v803_v1  ;;  %v232_v13 = vmul.f32 %v562_v4, %v803_v1  ;;  %v298_v14 = vadd.f32 %v805_v7, %v227_v5  ;;  %v299_v15 = vadd.f32 %v805_v7, %v228_v6  ;;  %v629_v6 = vld [vmem:[#allocation2 + $0xf8] sm:$0xff]  }
  0x65   :  { %v233_v16 = vmul.f32 %v565_v8, %v803_v1  ;;  %v234_v17 = vmul.f32 %v566_v9, %v803_v1  ;;  %v300_v18 = vadd.f32 %v805_v7, %v229_v10  ;;  %v301_v19 = vadd.f32 %v805_v7, %v230_v11 }
  0x66   :  { %v302_v20 = vadd.f32 %v805_v7, %v231_v12  ;;  %v303_v21 = vadd.f32 %v805_v7, %v232_v13  ;;  %v362_v23 = vmax.f32 %v298_v14, 0.0  ;;  %v363_v24 = vmax.f32 %v299_v15, 0.0 }
  0x67   :  { %v304_v25 = vadd.f32 %v805_v7, %v233_v16  ;;  %v305_v26 = vadd.f32 %v805_v7, %v234_v17  ;;  %v364_v29 = vmax.f32 %v300_v18, 0.0  ;;  %v365_v30 = vmax.f32 %v301_v19, 0.0 }
  0x68   :  { %v366_v31 = vmax.f32 %v302_v20, 0.0  ;;  %v367_v32 = vmax.f32 %v303_v21, 0.0  ;;  %427 = vst.msk [vmem:[#allocation8 + $0x140] sm:$0xff] %vm386_vm0, %v362_v23  ;;  %428 = vst.msk [vmem:[#allocation8 + $0x148] sm:$0xff] %vm386_vm0, %v363_v24  ;;  %v569_v36 = vunpack.c.l.bf16 %v622_v22  ;;  %v570_v37 = vunpack.c.h.bf16 %v622_v22 }
  0x69   :  { %v368_v34 = vmax.f32 %v304_v25, 0.0  ;;  %v369_v35 = vmax.f32 %v305_v26, 0.0  ;;  %429 = vst.msk [vmem:[#allocation8 + $0x150] sm:$0xff] %vm386_vm0, %v364_v29  ;;  %430 = vst.msk [vmem:[#allocation8 + $0x158] sm:$0xff] %vm386_vm0, %v365_v30  ;;  %v573_v38 = vunpack.c.l.bf16 %v623_v27  ;;  %v574_v39 = vunpack.c.h.bf16 %v623_v27 }
  0x6a   :  { %431 = vst.msk [vmem:[#allocation8 + $0x160] sm:$0xff] %vm386_vm0, %v366_v31  ;;  %432 = vst.msk [vmem:[#allocation8 + $0x168] sm:$0xff] %vm386_vm0, %v367_v32  ;;  %v577_v40 = vunpack.c.l.bf16 %v624_v28  ;;  %v578_v41 = vunpack.c.h.bf16 %v624_v28  ;;  %v235_v42 = vmul.f32 %v569_v36, %v803_v1  ;;  %v236_v43 = vmul.f32 %v570_v37, %v803_v1 }
  0x6b   :  { %433 = vst.msk [vmem:[#allocation8 + $0x170] sm:$0xff] %vm386_vm0, %v368_v34  ;;  %434 = vst.msk [vmem:[#allocation8 + $0x178] sm:$0xff] %vm386_vm0, %v369_v35  ;;  %v581_v44 = vunpack.c.l.bf16 %v625_v33  ;;  %v582_v45 = vunpack.c.h.bf16 %v625_v33  ;;  %v237_v46 = vmul.f32 %v573_v38, %v803_v1  ;;  %v238_v47 = vmul.f32 %v574_v39, %v803_v1 }
  0x6c   :  { %v239_v48 = vmul.f32 %v577_v40, %v803_v1  ;;  %v240_v49 = vmul.f32 %v578_v41, %v803_v1  ;;  %v306_v50 = vadd.f32 %v805_v7, %v235_v42  ;;  %v307_v51 = vadd.f32 %v805_v7, %v236_v43 }
  0x6d   :  { %v241_v52 = vmul.f32 %v581_v44, %v803_v1  ;;  %v242_v53 = vmul.f32 %v582_v45, %v803_v1  ;;  %v308_v54 = vadd.f32 %v805_v7, %v237_v46  ;;  %v309_v55 = vadd.f32 %v805_v7, %v238_v47 }
  0x6e   :  { %v310_v56 = vadd.f32 %v805_v7, %v239_v48  ;;  %v311_v57 = vadd.f32 %v805_v7, %v240_v49  ;;  %v370_v59 = vmax.f32 %v306_v50, 0.0  ;;  %v371_v60 = vmax.f32 %v307_v51, 0.0 }
  0x6f   :  { %v312_v61 = vadd.f32 %v805_v7, %v241_v52  ;;  %v313_v62 = vadd.f32 %v805_v7, %v242_v53  ;;  %v372_v2 = vmax.f32 %v308_v54, 0.0  ;;  %v373_v3 = vmax.f32 %v309_v55, 0.0 }
  0x70   :  { %v374_v4 = vmax.f32 %v310_v56, 0.0  ;;  %v375_v5 = vmax.f32 %v311_v57, 0.0  ;;  %435 = vst.msk [vmem:[#allocation8 + $0x180] sm:$0xff] %vm386_vm0, %v370_v59  ;;  %436 = vst.msk [vmem:[#allocation8 + $0x188] sm:$0xff] %vm386_vm0, %v371_v60  ;;  %v585_v10 = vunpack.c.l.bf16 %v626_v58  ;;  %v586_v11 = vunpack.c.h.bf16 %v626_v58 }
  0x71   :  { %v376_v8 = vmax.f32 %v312_v61, 0.0  ;;  %v377_v9 = vmax.f32 %v313_v62, 0.0  ;;  %437 = vst.msk [vmem:[#allocation8 + $0x190] sm:$0xff] %vm386_vm0, %v372_v2  ;;  %438 = vst.msk [vmem:[#allocation8 + $0x198] sm:$0xff] %vm386_vm0, %v373_v3  ;;  %v589_v12 = vunpack.c.l.bf16 %v627_v63  ;;  %v590_v13 = vunpack.c.h.bf16 %v627_v63 }
  0x72   :  { %439 = vst.msk [vmem:[#allocation8 + $0x1a0] sm:$0xff] %vm386_vm0, %v374_v4  ;;  %440 = vst.msk [vmem:[#allocation8 + $0x1a8] sm:$0xff] %vm386_vm0, %v375_v5  ;;  %v593_v14 = vunpack.c.l.bf16 %v628_v0  ;;  %v594_v15 = vunpack.c.h.bf16 %v628_v0  ;;  %v243_v16 = vmul.f32 %v585_v10, %v803_v1  ;;  %v244_v17 = vmul.f32 %v586_v11, %v803_v1 }
  0x73   :  { %441 = vst.msk [vmem:[#allocation8 + $0x1b0] sm:$0xff] %vm386_vm0, %v376_v8  ;;  %442 = vst.msk [vmem:[#allocation8 + $0x1b8] sm:$0xff] %vm386_vm0, %v377_v9  ;;  %v597_v18 = vunpack.c.l.bf16 %v629_v6  ;;  %v598_v19 = vunpack.c.h.bf16 %v629_v6  ;;  %v245_v20 = vmul.f32 %v589_v12, %v803_v1  ;;  %v246_v21 = vmul.f32 %v590_v13, %v803_v1 }
  0x74   :  { %v247_v22 = vmul.f32 %v593_v14, %v803_v1  ;;  %v248_v23 = vmul.f32 %v594_v15, %v803_v1  ;;  %v314_v24 = vadd.f32 %v805_v7, %v243_v16  ;;  %v315_v25 = vadd.f32 %v805_v7, %v244_v17 }
  0x75   :  { %v249_v26 = vmul.f32 %v597_v18, %v803_v1  ;;  %v250_v27 = vmul.f32 %v598_v19, %v803_v1  ;;  %v316_v28 = vadd.f32 %v805_v7, %v245_v20  ;;  %v317_v29 = vadd.f32 %v805_v7, %v246_v21 }
  0x76   :  { %v318_v30 = vadd.f32 %v805_v7, %v247_v22  ;;  %v319_v31 = vadd.f32 %v805_v7, %v248_v23  ;;  %v378_v32 = vmax.f32 %v314_v24, 0.0  ;;  %v379_v33 = vmax.f32 %v315_v25, 0.0 }
  0x77   :  { %v320_v34 = vadd.f32 %v805_v7, %v249_v26  ;;  %v321_v35 = vadd.f32 %v805_v7, %v250_v27  ;;  %v380_v36 = vmax.f32 %v316_v28, 0.0  ;;  %v381_v37 = vmax.f32 %v317_v29, 0.0 }
  0x78   :  { %v382_v38 = vmax.f32 %v318_v30, 0.0  ;;  %v383_v1 = vmax.f32 %v319_v31, 0.0  ;;  %443 = vst.msk [vmem:[#allocation8 + $0x1c0] sm:$0xff] %vm386_vm0, %v378_v32  ;;  %444 = vst.msk [vmem:[#allocation8 + $0x1c8] sm:$0xff] %vm386_vm0, %v379_v33 }
  0x79   :  { %v384_v39 = vmax.f32 %v320_v34, 0.0  ;;  %v385_v40 = vmax.f32 %v321_v35, 0.0  ;;  %445 = vst.msk [vmem:[#allocation8 + $0x1d0] sm:$0xff] %vm386_vm0, %v380_v36  ;;  %446 = vst.msk [vmem:[#allocation8 + $0x1d8] sm:$0xff] %vm386_vm0, %v381_v37 }
  0x7a   :  { %447 = vst.msk [vmem:[#allocation8 + $0x1e0] sm:$0xff] %vm386_vm0, %v382_v38  ;;  %448 = vst.msk [vmem:[#allocation8 + $0x1e8] sm:$0xff] %vm386_vm0, %v383_v1 }
  0x7b   :  { %449 = vst.msk [vmem:[#allocation8 + $0x1f0] sm:$0xff] %vm386_vm0, %v384_v39  ;;  %450 = vst.msk [vmem:[#allocation8 + $0x1f8] sm:$0xff] %vm386_vm0, %v385_v40 }
  0x7c   :  { %715 = shalt.err (!%p712_p0)
}
  0x7d   :  { %s716_s27 = scalar_lea.hbm %s1014_s3, 8192 }
  0x7e   :  { %p717_p1 = scmp.ne.s32.totalorder %s1014_s3, %s716_s27  ;;  %p720_p2 = scmp.lt.u32.totalorder %s716_s27, %s1014_s3 }
  0x80   :  { %p722_p3 = pnand %p720_p2, %p717_p1 }
  0x82   :  { %725 = shalt.err (!%p722_p3)
}
  0x83   :  { %s738_s5 = smov 128   ;;  %s739_s6 = smov 8  }
  0x84   :  { %462 = dma.vmem_to_hbm [thread:$0]  %s457_s23, 8192, %s1014_s3, [#allocation4], %s738_s5, %s738_s5, %s739_s6  }
  0x85   :  { %730 = dma.done.wait [#allocation4], 8192  }
  0x86   :  { %731 = vsyncadd [#allocation4], 4294959104 }
  0x87   :  { %466 = vsyncpa [#allocation3], 1 }
  0x88   :  { %467 = vsyncpa [#allocation6], 1 }
  0x89   :  { %468 = vsyncpa [#allocation4], 1 }

// kernel: double_conv.4
= control target key start
LH: loop header
LB: loop body
LE: loop exit
PB: predicated region body
PF: predicated region fallthrough
CT: control target
= control target key end

     0   :  { %s4581_s0 = inlined_call_operand.hbm [shape: bf16[2,18,18,8], index: 0, kind: input, shape index: {}]   ;;  %s4582_s1 = inlined_call_operand.hbm [shape: f32[1,1,8], index: 1, kind: input, shape index: {}]   ;;  %s4583_s2 = inlined_call_operand.hbm [shape: f32[1,1,8], index: 2, kind: input, shape index: {}]   ;;  %s4584_s3 = inlined_call_operand.hbm [shape: bf16[72,8], index: 3, kind: input, shape index: {}]   ;;  %s4585_s4 = inlined_call_operand.hbm [shape: bf16[2,16,16,8], index: 4, kind: output, shape index: {0}]   ;;  %s4586_s5 = inlined_call_operand.hbm [shape: f32[1,8], index: 5, kind: output, shape index: {1}]   ;;  %s4587_s6 = inlined_call_operand.hbm [shape: f32[1,8], index: 6, kind: output, shape index: {2}]  }
   0x1   :  { %4596 = sst [smem:[#allocation21_spill]] %s4582_s1 }
   0x2   :  { %4597 = sst [smem:[#allocation22_spill]] %s4583_s2 }
   0x3   :  { %12 = vsyncpa [#allocation4], 0 }
   0x4   :  { %14 = vsyncpa [#allocation4 + $0x1], 0 }
   0x5   :  { %15 = vsyncpa [#allocation7], 0 }
   0x6   :  { %16 = vsyncpa [#allocation10], 0 }
   0x7   :  { %17 = vsyncpa [#allocation5], 0 }
   0x8   :  { %19 = vsyncpa [#allocation5 + $0x1], 0 }
   0x9   :  { %20 = vsyncpa [#allocation13], 0  ;;  %s3045_s21 = smov 0   ;;  %s3047_s22 = smov 0  }
   0xa   :  { %s3049_s23 = smov 0   ;;  %s3051_s24 = smov 0  }
   0xb   :  { %s3053_s25 = smov 0   ;;  %s3055_s26 = smov 0  }
   0xc LB: > { %s2370_s27 = sadd.s32 4294967295, %s2987_s26   ;;  %s2371_s28 = sadd.s32 4294967294, %s2987_s26   ;;  %s2987_s26 = sphi %s3055_s26, %s26_s26   ;;  %s2983_s25 = sphi %s3053_s25, %s4624_s25   ;;  %s2979_s24 = sphi %s3051_s24, %s4623_s24   ;;  %s2975_s23 = sphi %s3049_s23, %s4622_s23   ;;  %s2971_s22 = sphi %s3047_s22, %s4621_s22   ;;  %s2967_s21 = sphi %s3045_s21, %s4620_s21  }
   0xd   : > { %p58_p0 = scmp.ne.s32.totalorder %s2971_s22, %s2967_s21  ;;  %p3079_p1 = scmp.eq.s32.totalorder %s2370_s27, 0 }
   0xe   : > { %p3083_p2 = scmp.eq.s32.totalorder %s2370_s27, 1  ;;  %p158_p3 = scmp.eq.s32.totalorder %s2371_s28, 1 }
   0xf   : > { %s4598_s29 = scalar_select %p3079_p1, 1, 0 }
  0x10   : > { %s4599_s30 = scalar_select %p3083_p2, 1, 0 }
  0x11   : > { %p3089_p4 = por %p3079_p1, %p58_p0  ;;  %p2372_p5 = scmp.ge.s32.totalorder %s2987_s26, 1 }
  0x12   : > { %p3094_p6 = por %p158_p3, %p58_p0  ;;  %p217_p7 = scmp.lt.s32.totalorder %s2987_s26, 3 }
  0x13   : > { %s4600_s7 = scalar_select %p3089_p4, 1, 0 }
  0x14   : > { %s4601_s8 = scalar_select %p3094_p6, 1, 0 }
  0x15   : > { %p3099_p8 = pnand %p2372_p5, %p217_p7  ;;  %s2989_s10 = smov [#allocation6]  }
  0x16   : > { %4602 = sst [smem:[#allocation20_spill]] %s4601_s8  ;;  %s230_s11 = sshll.u32 %s2989_s10, 4  ;;  %s231_s11 = int_to_ptr.vmem [resolvable:$true] %s230_s11 }
  0x17   : > { %s4603_s9 = scalar_select %p3099_p8, 1, 0 }
  0x18   : > { %p2623_p10 = pneg %p3099_p8  ;;  %s2990_s12 = smov [#allocation8]  }
  0x19   : > { %s241_s13 = sshll.u32 %s2990_s12, 4  ;;  %s2991_s15 = smov [#allocation9]   ;;  %s3112_s13 = int_to_ptr.vmem [resolvable:$true] %s241_s13 }
  0x1a   : > { %p3108_p11 = pnand %p2623_p10, %p3079_p1  ;;  %s253_s16 = sshll.u32 %s2991_s15, 4  ;;  %s3114_s16 = int_to_ptr.vmem [resolvable:$true] %s253_s16 }
  0x1b   : > { %s4605_s1 = sld [smem:[#allocation21_spill]] }
  0x1c   : > { %p3124_p13 = pneg %p3108_p11 }
  0x21   : > { %s2727_s19 = scalar_lea.hbm %s4605_s1, 16 }
  0x22   : > { %p2728_p12 = scmp.ne.s32.totalorder %s4605_s1, %s2727_s19  ;;  %p2734_p5 = scmp.lt.u32.totalorder %s2727_s19, %s4605_s1 }
  0x24   : > { %p2730_p0 = pnand %p3124_p13, %p2728_p12 }
  0x26   : > { %p2731_p3 = pneg %p2730_p0 }
  0x28   : > { %p2736_p7 = pnand %p2734_p5, %p2731_p3 }
  0x2a   : > { %2739 = shalt.err (!%p2736_p7)
}
  0x2b   : > { %s2740_s15 = scalar_lea.vmem %s231_s11, 16  ;;  %s2747_s17 = scalar_lea.vmem %s231_s11, 32 }
  0x2c   : > { %p2741_p10 = scmp.ne.s32.totalorder %s231_s11, %s2740_s15  ;;  %p2748_p1 = scmp.lt.s32.totalorder %s231_s11, %s231_s11 }
  0x2d   : > { %p2749_p4 = scmp.lt.s32.totalorder %s2747_s17, %s2740_s15 }
  0x2e   : > { %p2743_p9 = pnand %p2741_p10, %p3124_p13 }
  0x2f   : > { %p2750_p8 = por %p2749_p4, %p2748_p1 }
  0x30   : > { %p2744_p6 = pneg %p2743_p9 }
  0x32   : > { %p2751_p2 = pnand %p2750_p8, %p2744_p6 }
  0x34   : > { %2754 = shalt.err (!%p2751_p2)
}
  0x35   : > { %2626 = dma.hbm_to_vmem [thread:$0]  (!%p3108_p11), %s4605_s1, 16, %s231_s11, [#allocation7]  }
  0x36   : > { %s4607_s2 = sld [smem:[#allocation22_spill]] }
  0x3c   : > { %s2755_s10 = scalar_lea.hbm %s4607_s2, 16 }
  0x3d   : > { %p2756_p9 = scmp.ne.s32.totalorder %s4607_s2, %s2755_s10  ;;  %p2762_p2 = scmp.lt.u32.totalorder %s2755_s10, %s4607_s2 }
  0x3f   : > { %p2758_p12 = pnand %p2756_p9, %p3124_p13 }
  0x41   : > { %p2759_p1 = pneg %p2758_p12 }
  0x43   : > { %p2764_p4 = pnand %p2762_p2, %p2759_p1 }
  0x45   : > { %2767 = shalt.err (!%p2764_p4)
}
  0x46   : > { %s2768_s11 = scalar_lea.vmem %s3112_s13, 16  ;;  %s2775_s8 = scalar_lea.vmem %s3112_s13, 32 }
  0x47   : > { %p2769_p6 = scmp.ne.s32.totalorder %s3112_s13, %s2768_s11  ;;  %p2776_p3 = scmp.lt.s32.totalorder %s3112_s13, %s3112_s13 }
  0x48   : > { %p2777_p5 = scmp.lt.s32.totalorder %s2775_s8, %s2768_s11 }
  0x49   : > { %p2771_p8 = pnand %p2769_p6, %p3124_p13 }
  0x4a   : > { %p2778_p7 = por %p2777_p5, %p2776_p3 }
  0x4b   : > { %p2772_p0 = pneg %p2771_p8 }
  0x4d   : > { %p2779_p10 = pnand %p2778_p7, %p2772_p0 }
  0x4f   : > { %2782 = shalt.err (!%p2779_p10)
}
  0x50   : > { %2629 = dma.hbm_to_vmem [thread:$0]  (!%p3108_p11), %s4607_s2, 16, %s3112_s13, [#allocation7]  }
  0x51   : > { %s2783_s10 = scalar_lea.hbm %s4584_s3, 576 }
  0x52   : > { %p2784_p9 = scmp.ne.s32.totalorder %s4584_s3, %s2783_s10  ;;  %p2790_p2 = scmp.lt.u32.totalorder %s2783_s10, %s4584_s3 }
  0x54   : > { %p2786_p12 = pnand %p2784_p9, %p3124_p13 }
  0x56   : > { %p2787_p1 = pneg %p2786_p12 }
  0x58   : > { %p2792_p4 = pnand %p2790_p2, %p2787_p1 }
  0x5a   : > { %2795 = shalt.err (!%p2792_p4)
}
  0x5b   : > { %s2796_s13 = scalar_lea.vmem %s3114_s16, 576  ;;  %p2804_p3 = scmp.lt.s32.totalorder %s3114_s16, %s3114_s16 }
  0x5c   : > { %p2797_p6 = scmp.ne.s32.totalorder %s3114_s16, %s2796_s13  ;;  %p2805_p5 = scmp.lt.s32.totalorder %s2796_s13, %s2796_s13 }
  0x5e   : > { %p2799_p8 = pnand %p2797_p6, %p3124_p13  ;;  %p2806_p7 = por %p2805_p5, %p2804_p3 }
  0x60   : > { %p2800_p0 = pneg %p2799_p8 }
  0x62   : > { %p2807_p10 = pnand %p2806_p7, %p2800_p0 }
  0x64   : > { %2810 = shalt.err (!%p2807_p10)
}
  0x65   : > { %s4594_s8 = smov 64   ;;  %s4595_s28 = smov 4  }
  0x66   : > { %2632 = dma.hbm_to_vmem [thread:$0]  (!%p3108_p11), %s4584_s3, 576, %s3114_s16, [#allocation10], %s4594_s8, %s4594_s8, %s4595_s28  }
  0x67   : > { %s45_s19 = sadd.s32 1, %s2975_s23  ;;  %s35_s27 = sadd.s32 1, %s2983_s25 }
  0x68   : > { %p52_p13 = scmp.ne.s32.totalorder %s2975_s23, %s2971_s22  ;;  %p36_p9 = scmp.ge.s32.totalorder %s35_s27, 2 }
  0x69   : > { %p53_p12 = scmp.eq.s32.totalorder %s2987_s26, 0  ;;  %p4608_p1 = scmp.ne.s32.totalorder %s4599_s30, 0 }
  0x6a   : > { %p2644_p4 = scmp.lt.s32.totalorder %s2987_s26, 2  ;;  %s4626_s27 = smov (%p36_p9, %s35_s27), 0 }
  0x6b   : > { %p3197_p2 = por %p4608_p1, %p52_p13  ;;  %p54_p6 = por %p53_p12, %p52_p13 }
  0x6c   : > { %s267_s14 = sand.u32 1, %s2975_s23   ;;  %s42_s12 = ssub.s32 %s2983_s25, %s4626_s27 }
  0x6d   : > { %p43_p8 = scmp.eq.s32.totalorder %s42_s12, 0  ;;  %s2596_s16 = smul.u32 216, %s267_s14 }
  0x6e   : > { %s2597_s15 = smul.u32 3456, %s2983_s25  ;;  %p3208_p11 = pnand %p2644_p4, %p54_p6 }
  0x6f   : > { %s3213_s11 = scalar_select %p43_p8, %s2975_s23, %s45_s19  }
  0x70   : > { %s3218_s20 = scalar_lea.hbm %s4581_s0, %s2597_s15  ;;  %s271_s12 = scalar_lea.vmem [#allocation3], %s2596_s16 }
  0x71   : > { %s278_s8 = sshll.u32 %s271_s12, 4  ;;  %s3222_s28 = scalar_lea.sflag [#allocation4], %s267_s14  ;;  %s3220_s8 = int_to_ptr.vmem [resolvable:$true] %s278_s8 }
  0x72   : > { %s2811_s1 = scalar_lea.hbm %s3218_s20, 3456  ;;  %p2813_p3 = pneg %p3208_p11 }
  0x73   : > { %p2812_p0 = scmp.ne.s32.totalorder %s3218_s20, %s2811_s1  ;;  %s2816_s13 = scalar_lea.hbm %s4581_s0, 6912 }
  0x74   : > { %p2817_p10 = scmp.lt.u32.totalorder %s3218_s20, %s4581_s0  ;;  %p2818_p13 = scmp.lt.u32.totalorder %s2816_s13, %s2811_s1 }
  0x75   : > { %p2814_p5 = pnand %p2813_p3, %p2812_p0  ;;  %p2820_p12 = scmp.lt.u32.totalorder %s2811_s1, %s3218_s20 }
  0x76   : > { %p2819_p9 = por %p2818_p13, %p2817_p10 }
  0x77   : > { %p2815_p7 = pneg %p2814_p5 }
  0x78   : > { %p2821_p1 = por %p2820_p12, %p2819_p9 }
  0x7a   : > { %p2822_p4 = pnand %p2821_p1, %p2815_p7 }
  0x7c   : > { %2825 = shalt.err (!%p2822_p4)
}
  0x7d   : > { %s2826_s14 = scalar_lea.vmem %s3220_s8, 3456  ;;  %s2994_s16 = smov [#allocation3]  }
  0x7e   : > { %p2827_p6 = scmp.ne.s32.totalorder %s3220_s8, %s2826_s14  ;;  %s2831_s12 = sshll.u32 %s2994_s16, 4  ;;  %s2832_s12 = int_to_ptr.vmem [resolvable:$false] %s2831_s12 }
  0x7f   : > { %s2833_s2 = scalar_lea.vmem %s2832_s12, 6912  ;;  %p2834_p5 = scmp.lt.s32.totalorder %s3220_s8, %s2832_s12 }
  0x80   : > { %p2829_p8 = pnand %p2827_p6, %p2813_p3  ;;  %p2835_p10 = scmp.lt.s32.totalorder %s2833_s2, %s2826_s14 }
  0x82   : > { %p2830_p0 = pneg %p2829_p8  ;;  %p2836_p13 = por %p2835_p10, %p2834_p5 }
  0x84   : > { %p2837_p9 = pnand %p2836_p13, %p2830_p0 }
  0x86   : > { %2840 = shalt.err (!%p2837_p9)
}
  0x87   : > { %s4611_s1 = smov 4   ;;  %s4612_s19 = smov 64  }
  0x88   : > { %2636 = dma.hbm_to_vmem [thread:$0]  (!%p3208_p11), %s3218_s20, 3456, %s3220_s8, %s3222_s28, %s4612_s19, %s4612_s19, %s4611_s1  }
  0x89   : > { %p4613_p3 = scmp.ne.s32.totalorder %s4603_s9, 0 }
  0x8a   : > { %s3256_s15 = sand.u32 (!%p4613_p3), 1, %s2971_s22   ;;  %p4614_p7 = scmp.ne.s32.totalorder (!%p4613_p3), %s4600_s7, 0 }
  0x8b   : > { %290 = sbr.rel (%p4613_p3) target bundleno = 893 (0x37d), region = 36  ;;  %s293_s18 = scalar_lea.sflag (!%p4613_p3), [#allocation4], %s3256_s15 }
  0x8c   : > { %s2598_s13 = smul.u32 (!%p4613_p3), 216, %s3256_s15 }
  0x8e   : > { %s3260_s14 = scalar_lea.vmem (!%p4613_p3), [#allocation3], %s2598_s13 }
  0x92   : > { %2946 = dma.done.wait (%p4614_p7), %s293_s18, 3456  }
  0x93   : > { %2948 = vsyncadd (%p4614_p7), %s293_s18, 4294963840  ;;  %p4615_p11 = scmp.ne.s32.totalorder %s4598_s29, 0 }
  0x95   : > { %2950 = dma.done.wait (%p4615_p11), [#allocation7], 32  }
  0x96   : > { %2952 = vsyncadd (%p4615_p11), [#allocation7], 4294967264 }
  0x97   : > { %2954 = dma.done.wait (%p4615_p11), [#allocation10], 576  }
  0x98   : > { %2956 = vsyncadd (%p4615_p11), [#allocation10], 4294966720  ;;  %v622_v0 = vlaneseq  ;;  %v2995_v1 = vmov 0   ;;  %vm734_vm0 = vcmask 64512   ;;  %s2996_s7 = smov 8   ;;  %v2997_v3 = vmov 0.0|0.0  }
  0x99   : > { %v3274_v2 = vrot.slane %v2995_v1, 1  ;;  %v3279_v4 = vrot.slane %v2997_v3, 1  ;;  %735 = vst.msk [vmem:[#allocation2] sm:$0xff] %vm734_vm0, %v2997_v3  ;;  %s2998_s29 = smov 16   ;;  %v365_v6 = vld [vmem:[%s3260_s14 + $0x6c] sm:$0xff]   ;;  %v2517_v11 = vld [vmem:[%s3260_s14 + $0x78] sm:$0xff]  }
  0x9a   : > { %v3283_v5 = vshrl.u32 %v622_v0, 7  ;;  %v3288_v7 = vld [vmem:[#allocation6] ss:$0 sm:$0xff]  ;;  %v419_v8 = vunpack.c.l.bf16 %v365_v6  ;;  %v420_v9 = vunpack.c.h.bf16 %v365_v6  ;;  %v3297_v14 = vld [vmem:[#allocation8] ss:$0 sm:$0xff]  ;;  %v2499_v17 = vunpack.c.l.bf16 %v2517_v11  ;;  %v2516_v35 = vld [vmem:[%s3260_s14 + $0x60] sm:$0xff]  }
  0x9b   : > { %944 = vrot.lane.b32.xlu0 %v3274_v2, %s2996_s7  ;;  %v341_v10 = vld [vmem:[%s3260_s14 + $0xc] sm:$0xff]   ;;  %v2513_v12 = vld [vmem:[%s3260_s14 + $0x18] sm:$0xff]   ;;  %v2500_v18 = vunpack.c.h.bf16 %v2517_v11  ;;  %v364_v40 = vld [vmem:[%s3260_s14 + $0x68] sm:$0x1]  ;;  %v2495_v50 = vunpack.c.l.bf16 %v2516_v35  ;;  %v2496_v54 = vunpack.c.h.bf16 %v2516_v35  ;;  %s2999_s9 = smov 24   ;;  %vm1041_vm3 = vcmask 1046528  }
  0x9c   : > { %vm626_vm1 = vcmp.lt.s32.totalorder %v3283_v5, 1  ;;  %v3295_v13 = vadd.s32 16, %v3283_v5  ;;  %v395_v15 = vunpack.c.l.bf16 %v341_v10  ;;  %v396_v16 = vunpack.c.h.bf16 %v341_v10  ;;  %v343_v41 = vld [vmem:[%s3260_s14 + $0x14] sm:$0x1]  ;;  %v346_v11 = vld [vmem:[%s3260_s14 + $0x20] sm:$0x1] }
  0x9d   : > { %v480_v19 = vmul.f32 %v3288_v7, %v419_v8  ;;  %v481_v20 = vmul.f32 %v3288_v7, %v420_v9  ;;  %v2483_v21 = vunpack.c.l.bf16 %v2513_v12  ;;  %v2484_v22 = vunpack.c.h.bf16 %v2513_v12  ;;  %v367_v46 = vld [vmem:[%s3260_s14 + $0x74] sm:$0x1]  ;;  %s3000_s8 = smov 32   ;;  %s3001_s28 = smov 40  }
  0x9e   : > { %v456_v23 = vmul.f32 %v3288_v7, %v395_v15  ;;  %v457_v24 = vmul.f32 %v3288_v7, %v396_v16  ;;  %v483_v25 = vmul.f32 %v2499_v17, %v3288_v7  ;;  %v484_v26 = vmul.f32 %v2500_v18, %v3288_v7  ;;  %s3002_s17 = smov 48   ;;  %s2382_s20 = sshll.u32 %s3256_s15, 7 }
  0x9f   : > { %1090 = vrot.lane.b32.xlu0 %v3279_v4, %s2998_s29  ;;  %v541_v27 = vadd.f32 %v3297_v14, %v480_v19  ;;  %v542_v28 = vadd.f32 %v3297_v14, %v481_v20  ;;  %v459_v29 = vmul.f32 %v2483_v21, %v3288_v7  ;;  %v460_v30 = vmul.f32 %v2484_v22, %v3288_v7  ;;  %s3003_s16 = smov 56   ;;  %s3004_s12 = smov 64  }
  0xa0   : > { %v517_v31 = vadd.f32 %v3297_v14, %v456_v23  ;;  %v518_v32 = vadd.f32 %v3297_v14, %v457_v24  ;;  %v544_v33 = vadd.f32 %v3297_v14, %v483_v25  ;;  %v545_v34 = vadd.f32 %v3297_v14, %v484_v26  ;;  %s4166_s2 = scalar_lea.vmem [#allocation11], %s2382_s20  ;;  %p2406_p12 = scmp.ne.s32.totalorder %s2979_s24, 0 }
  0xa1   : > { %v595_v36 = vmax.f32 %v541_v27, 0.0  ;;  %v596_v37 = vmax.f32 %v542_v28, 0.0  ;;  %v520_v38 = vadd.f32 %v3297_v14, %v459_v29  ;;  %v521_v39 = vadd.f32 %v3297_v14, %v460_v30 }
  0xa2   : > { %v571_v42 = vmax.f32 %v517_v31, 0.0  ;;  %v572_v43 = vmax.f32 %v518_v32, 0.0  ;;  %v598_v44 = vmax.f32 %v544_v33, 0.0  ;;  %v599_v45 = vmax.f32 %v545_v34, 0.0 }
  0xa3   : > { %v671_v47 = vsel %vm626_vm1, 0.0, %v595_v36  ;;  %v574_v48 = vmax.f32 %v520_v38, 0.0  ;;  %v575_v49 = vmax.f32 %v521_v39, 0.0  ;;  %v418_v58 = vunpack.c.l.bf16 %v364_v40 }
  0xa4   : > { %v3321_v51 = vpack.c.bf16 %v596_v37, %v671_v47  ;;  %v647_v52 = vsel %vm626_vm1, 0.0, %v571_v42  ;;  %v674_v53 = vsel %vm626_vm1, 0.0, %v598_v44  ;;  %v477_v60 = vmul.f32 %v2495_v50, %v3288_v7  ;;  %v370_v50 = vld [vmem:[%s3260_s14 + $0x80] sm:$0x1] }
  0xa5   : > { %v3327_v55 = vpack.c.bf16 %v572_v43, %v647_v52  ;;  %v3329_v56 = vpack.c.bf16 %v599_v45, %v674_v53  ;;  %v650_v57 = vsel %vm626_vm1, 0.0, %v574_v48  ;;  %v478_v61 = vmul.f32 %v2496_v54, %v3288_v7 }
  0xa6   : > { %1172 = vrot.lane.b32.xlu1 %v3321_v51, %s2999_s9  ;;  %v3335_v59 = vpack.c.bf16 %v575_v49, %v650_v57  ;;  %v397_v62 = vunpack.c.l.bf16 %v343_v41  ;;  %744 = vst.msk [vmem:[#allocation2 + $0x48] sm:$0xff] %vm734_vm0, %v3321_v51  ;;  %v479_v63 = vmul.f32 %v3288_v7, %v418_v58  ;;  %vm637_vm2 = vcmp.gt.s32.totalorder %v3295_v13, 16 }
  0xa7   : > { %1156 = vrot.lane.b32.xlu0 %v3327_v55, %s2999_s9  ;;  %v1045_v0 = vrot.slane %v3327_v55, 1  ;;  %v421_v1 = vunpack.c.l.bf16 %v367_v46  ;;  %736 = vst.msk [vmem:[#allocation2 + $0x8] sm:$0xff] %vm734_vm0, %v3327_v55  ;;  %745 = vst.msk [vmem:[#allocation2 + $0x50] sm:$0xff] %vm734_vm0, %v3329_v56  ;;  %v538_v6 = vadd.f32 %v3297_v14, %v477_v60  ;;  %v539_v8 = vadd.f32 %v3297_v14, %v478_v61 }
  0xa8   : > { %v458_v9 = vmul.f32 %v3288_v7, %v397_v62  ;;  %v1069_v10 = vrot.slane %v3321_v51, 1  ;;  %737 = vst.msk [vmem:[#allocation2 + $0x10] sm:$0xff] %vm734_vm0, %v3335_v59  ;;  %v540_v12 = vadd.f32 %v3297_v14, %v479_v63  ;;  %v765_v16 = vshrl.u32 %v3327_v55, 16 }
  0xa9   : > { %v482_v15 = vmul.f32 %v3288_v7, %v421_v1  ;;  %v767_v17 = vshll.u32 %v3327_v55, 16  ;;  %v592_v18 = vmax.f32 %v538_v6, 0.0  ;;  %v593_v19 = vmax.f32 %v539_v8, 0.0 }
  0xaa   : > { %1174 = vrot.lane.b32.xlu1 %v3329_v56, %s2999_s9  ;;  %v519_v20 = vadd.f32 %v3297_v14, %v458_v9  ;;  %v863_v21 = vshll.u32 %v3321_v51, 16  ;;  %v594_v22 = vmax.f32 %v540_v12, 0.0  ;;  %vm751_vm4 = vsmask.f32 7424 }
  0xab   : > { %1158 = vrot.lane.b32.xlu0 %v3335_v59, %s2999_s9  ;;  %v543_v23 = vadd.f32 %v3297_v14, %v482_v15  ;;  %v769_v24 = vrot.slane %v767_v17, 1  ;;  %v400_v25 = vunpack.c.l.bf16 %v346_v11  ;;  %v668_v26 = vsel %vm626_vm1, 0.0, %v592_v18  ;;  %v371_v17 = vld [vmem:[%s3260_s14 + $0x84] sm:$0xff]  }
  0xac   : > { %v573_v27 = vmax.f32 %v519_v20, 0.0  ;;  %v861_v28 = vshrl.u32 %v3321_v51, 16  ;;  %v865_v29 = vrot.slane %v863_v21, 1  ;;  %v670_v30 = vsel %vm637_vm2, 0.0, %v594_v22 }
  0xad   : > { %v3373_v31 = vpack.c.bf16 %v593_v19, %v668_v26  ;;  %v597_v32 = vmax.f32 %v543_v23, 0.0  ;;  %v777_v33 = vshrl.u32 %v3335_v59, 16  ;;  %v715_v34 = vpack.c.bf16 %v670_v30, %v670_v30 }
  0xae   : > { %v649_v35 = vsel %vm637_vm2, 0.0, %v573_v27  ;;  %v770_v36 = vor.u32 %v769_v24, %v765_v16  ;;  %v461_v37 = vmul.f32 %v3288_v7, %v400_v25  ;;  %v779_v49 = vshll.u32 %v3335_v59, 16 }
  0xaf   : > { %v1066_v38 = vrot.slane %v3373_v31, 1  ;;  %v701_v39 = vpack.c.bf16 %v649_v35, %v649_v35  ;;  %v673_v40 = vsel %vm637_vm2, 0.0, %v597_v32  ;;  %v849_v41 = vshrl.u32 %v3373_v31, 16  ;;  %743 = vst.msk [vmem:[#allocation2 + $0x40] sm:$0xff] %vm734_vm0, %v3373_v31 }
  0xb0   : > { %v1067_v42 = vrot.slane %v715_v34, 1  ;;  %v717_v43 = vpack.c.bf16 %v673_v40, %v673_v40  ;;  %v851_v44 = vshll.u32 %v3373_v31, 16  ;;  %v856_v45 = vshll.u32 %v715_v34, 16 }
  0xb1   : > { %v1046_v46 = vrot.slane %v701_v39, 1  ;;  %v772_v47 = vshll.u32 %v701_v39, 16  ;;  %v522_v48 = vadd.f32 %v3297_v14, %v461_v37  ;;  %v781_v1 = vrot.slane %v779_v49, 1 }
  0xb2   : > { %v3390_v52 = vsel %vm1041_vm3, %v1066_v38, %v1067_v42  ;;  %v1070_v53 = vrot.slane %v717_v43, 1  ;;  %v853_v54 = vrot.slane %v851_v44, 1  ;;  %v858_v55 = vrot.slane %v856_v45, 1  ;;  %v373_v38 = vld [vmem:[%s3260_s14 + $0x8c] sm:$0x1] }
  0xb3   : > { %1106 = vrot.lane.b32.xlu1 %v3390_v52, %s2998_s29  ;;  %v3395_v57 = vsel %vm1041_vm3, %v1045_v0, %v1046_v46  ;;  %v774_v58 = vrot.slane %v772_v47, 1  ;;  %v868_v60 = vshll.u32 %v717_v43, 16  ;;  %v576_v61 = vmax.f32 %v522_v48, 0.0  ;;  %v347_v0 = vld [vmem:[%s3260_s14 + $0x24] sm:$0xff]   ;;  %v2514_v47 = vld [vmem:[%s3260_s14 + $0x30] sm:$0xff]  }
  0xb4   : > { %1092 = vrot.lane.b32.xlu0 %v3395_v57, %s2998_s29  ;;  %v3400_v62 = vsel %vm1041_vm3, %v1069_v10, %v1070_v53  ;;  %v854_v63 = vor.u32 %v853_v54, %v849_v41  ;;  %v424_v6 = vunpack.c.l.bf16 %v370_v50  ;;  %v866_v8 = vor.u32 %v865_v29, %v861_v28  ;;  %v349_v28 = vld [vmem:[%s3260_s14 + $0x2c] sm:$0x1] }
  0xb5   : > { %v870_v9 = vrot.slane %v868_v60, 1  ;;  %v652_v11 = vsel %vm637_vm2, 0.0, %v576_v61  ;;  %v775_v10 = vsel %vm751_vm4, %v770_v36, %v774_v58  ;;  %v873_v18 = vshrl.u32 %v3329_v56, 16 }
  0xb6   : > { %v3406_v12 = vsel %vm751_vm4, %v854_v63, %v858_v55  ;;  %v3408_v15 = vpack.c.bf16 %v652_v11, %v652_v11  ;;  %v485_v16 = vmul.f32 %v3288_v7, %v424_v6  ;;  %v875_v19 = vshll.u32 %v3329_v56, 16 }
  0xb7   : > { %1108 = vrot.lane.b32.xlu1 %v3400_v62, %s2998_s29  ;;  %v782_v20 = vor.u32 %v781_v1, %v777_v33  ;;  %v401_v23 = vunpack.c.l.bf16 %v347_v0  ;;  %v3422_v24 = vsel %vm751_vm4, %v866_v8, %v870_v9  ;;  %v402_v25 = vunpack.c.h.bf16 %v347_v0 }
  0xb8   : > { %960 = vrot.lane.b32.xlu0 %v3406_v12, %s2996_s7  ;;  %v784_v21 = vshll.u32 %v3408_v15, 16  ;;  %v546_v22 = vadd.f32 %v3297_v14, %v485_v16  ;;  %v425_v26 = vunpack.c.l.bf16 %v371_v17  ;;  %v426_v27 = vunpack.c.h.bf16 %v371_v17 }
  0xb9   : > { %v1048_v32 = vrot.slane %v3335_v59, 1  ;;  %v462_v34 = vmul.f32 %v3288_v7, %v401_v23  ;;  %v877_v33 = vrot.slane %v875_v19, 1  ;;  %v463_v35 = vmul.f32 %v3288_v7, %v402_v25 }
  0xba   : > { %v786_v29 = vrot.slane %v784_v21, 1  ;;  %v600_v30 = vmax.f32 %v546_v22, 0.0  ;;  %v486_v36 = vmul.f32 %v3288_v7, %v425_v26  ;;  %v487_v37 = vmul.f32 %v3288_v7, %v426_v27 }
  0xbb   : > { %946 = vrot.lane.b32.xlu1 %v775_v10, %s2996_s7  ;;  %v523_v41 = vadd.f32 %v3297_v14, %v462_v34  ;;  %v403_v42 = vunpack.c.l.bf16 %v349_v28  ;;  %v524_v44 = vadd.f32 %v3297_v14, %v463_v35  ;;  %v1049_v48 = vrot.slane %v3408_v15, 1 }
  0xbc   : > { %1233 = vrot.lane.b32.xlu0 %v775_v10, %s3000_s8  ;;  %v3434_v39 = vsel %vm751_vm4, %v782_v20, %v786_v29  ;;  %v676_v40 = vsel %vm637_vm2, 0.0, %v600_v30  ;;  %v547_v45 = vadd.f32 %v3297_v14, %v486_v36  ;;  %v548_v46 = vadd.f32 %v3297_v14, %v487_v37  ;;  %v2518_v10 = vld [vmem:[%s3260_s14 + $0x90] sm:$0xff]  }
  0xbd   : > { %v719_v43 = vpack.c.bf16 %v676_v40, %v676_v40  ;;  %v577_v49 = vmax.f32 %v523_v41, 0.0  ;;  %v464_v50 = vmul.f32 %v3288_v7, %v403_v42  ;;  %v427_v53 = vunpack.c.l.bf16 %v373_v38  ;;  %v353_v38 = vld [vmem:[%s3260_s14 + $0x3c] sm:$0xff]  }
  0xbe   : > { %v878_v54 = vor.u32 %v877_v33, %v873_v18  ;;  %v578_v58 = vmax.f32 %v524_v44, 0.0  ;;  %v601_v60 = vmax.f32 %v547_v45, 0.0  ;;  %v602_v63 = vmax.f32 %v548_v46, 0.0 }
  0xbf   : > { %962 = vrot.lane.b32.xlu1 %v3422_v24, %s2996_s7  ;;  %v880_v55 = vshll.u32 %v719_v43, 16  ;;  %v653_v61 = vsel %vm626_vm1, 0.0, %v577_v49  ;;  %v525_v1 = vadd.f32 %v3297_v14, %v464_v50  ;;  %v2487_v6 = vunpack.c.l.bf16 %v2514_v47 }
  0xc0   : > { %1235 = vrot.lane.b32.xlu0 %v3434_v39, %s3000_s8  ;;  %v3452_v9 = vpack.c.bf16 %v578_v58, %v653_v61  ;;  %v677_v11 = vsel %vm626_vm1, 0.0, %v601_v60  ;;  %v488_v0 = vmul.f32 %v3288_v7, %v427_v53  ;;  %v2488_v17 = vunpack.c.h.bf16 %v2514_v47 }
  0xc1   : > { %v882_v8 = vrot.slane %v880_v55, 1  ;;  %v3457_v15 = vpack.c.bf16 %v602_v63, %v677_v11  ;;  %v579_v16 = vmax.f32 %v525_v1, 0.0  ;;  %v3472_v19 = vsel %vm1041_vm3, %v1048_v32, %v1049_v48  ;;  %v2720_v55 = vld [vmem:[#allocation9] sm:$0xff]  }
  0xc2   : > { %738 = vst.msk [vmem:[#allocation2 + $0x18] sm:$0xff] %vm734_vm0, %v3452_v9  ;;  %v549_v20 = vadd.f32 %v3297_v14, %v488_v0  ;;  %v465_v21 = vmul.f32 %v2487_v6, %v3288_v7  ;;  %v466_v23 = vmul.f32 %v2488_v17, %v3288_v7  ;;  %v2503_v25 = vunpack.c.l.bf16 %v2518_v10  ;;  %2542 = vmatprep.subr.bf16.mxu0 %v2720_v55 }
  0xc3   : > { %1249 = vrot.lane.b32.xlu1 %v3422_v24, %s3000_s8  ;;  %v3465_v18 = vsel %vm751_vm4, %v878_v54, %v882_v8  ;;  %746 = vst.msk [vmem:[#allocation2 + $0x58] sm:$0xff] %vm734_vm0, %v3457_v15  ;;  %v655_v22 = vsel %vm637_vm2, 0.0, %v579_v16  ;;  %v1073_v26 = vrot.slane %v719_v43, 1  ;;  %v791_v27 = vshll.u32 %v3452_v9, 16  ;;  %2543 = vmatpush3.bf16.msra.mxu0 %v2720_v55 }
  0xc4   : > { %1302 = vrot.lane.b32.xlu0 %v3395_v57, %s3001_s28  ;;  %v1072_v57 = vrot.slane %v3329_v56, 1  ;;  %v526_v28 = vadd.f32 %v3297_v14, %v465_v21  ;;  %v527_v29 = vadd.f32 %v3297_v14, %v466_v23  ;;  %v2504_v30 = vunpack.c.h.bf16 %v2518_v10  ;;  %2584 = vmatprep.subr.bf16.mxu1 %v2720_v55 }
  0xc5   : > { %v3487_v32 = vpack.c.bf16 %v655_v22, %v655_v22  ;;  %v603_v34 = vmax.f32 %v549_v20, 0.0  ;;  %v489_v36 = vmul.f32 %v2503_v25, %v3288_v7  ;;  %v789_v41 = vshrl.u32 %v3452_v9, 16  ;;  %2589 = vmatpush3.bf16.msra.mxu1 %v2720_v55  ;;  %v2721_v20 = vld [vmem:[#allocation9 + $0x8] sm:$0xff]  }
  0xc6   : > { %v580_v33 = vmax.f32 %v526_v28, 0.0  ;;  %v581_v35 = vmax.f32 %v527_v29, 0.0  ;;  %v490_v37 = vmul.f32 %v2504_v30, %v3288_v7  ;;  %v3495_v40 = vsel %vm1041_vm3, %v1072_v57, %v1073_v26  ;;  %2544 = vmatprep.subr.bf16.mxu0 %v2721_v20  ;;  %2585 = vmatprep.subr.bf16.mxu1 %v2721_v20  ;;  %v2722_v29 = vld [vmem:[#allocation9 + $0x10] sm:$0xff]  }
  0xc7   : > { %1251 = vrot.lane.b32.xlu1 %v3465_v18, %s3000_s8  ;;  %v793_v42 = vrot.slane %v791_v27, 1  ;;  %v550_v44 = vadd.f32 %v3297_v14, %v489_v36  ;;  %v796_v46 = vshll.u32 %v3487_v32, 16  ;;  %v679_v47 = vsel %vm637_vm2, 0.0, %v603_v34  ;;  %2545 = vmatpush3.bf16.msra.mxu0 %v2721_v20 }
  0xc8   : > { %1304 = vrot.lane.b32.xlu0 %v3472_v19, %s3001_s28  ;;  %v656_v43 = vsel %vm626_vm1, 0.0, %v580_v33  ;;  %v551_v45 = vadd.f32 %v3297_v14, %v490_v37  ;;  %v407_v49 = vunpack.c.l.bf16 %v353_v38  ;;  %v408_v54 = vunpack.c.h.bf16 %v353_v38  ;;  %2546 = vmatprep.subr.bf16.mxu0 %v2722_v29 }
  0xc9   : > { %v3507_v48 = vpack.c.bf16 %v581_v35, %v656_v43  ;;  %v604_v50 = vmax.f32 %v550_v44, 0.0  ;;  %v887_v58 = vshll.u32 %v3457_v15, 16  ;;  %v3518_v60 = vpack.c.bf16 %v679_v47, %v679_v47  ;;  %2590 = vmatpush3.bf16.msra.mxu1 %v2721_v20  ;;  %v352_v43 = vld [vmem:[%s3260_s14 + $0x38] sm:$0x1]  ;;  %v2519_v44 = vld [vmem:[%s3260_s14 + $0xa8] sm:$0xff]  }
  0xca   : > { %v605_v53 = vmax.f32 %v551_v45, 0.0  ;;  %v468_v63 = vmul.f32 %v3288_v7, %v407_v49  ;;  %v469_v1 = vmul.f32 %v3288_v7, %v408_v54  ;;  %v794_v6 = vor.u32 %v793_v42, %v789_v41  ;;  %2586 = vmatprep.subr.bf16.mxu1 %v2722_v29  ;;  %v2515_v41 = vld [vmem:[%s3260_s14 + $0x48] sm:$0xff]  }
  0xcb   : > { %1318 = vrot.lane.b32.xlu1 %v3400_v62, %s3001_s28  ;;  %739 = vst.msk [vmem:[#allocation2 + $0x20] sm:$0xff] %vm734_vm0, %v3507_v48  ;;  %v680_v61 = vsel %vm626_vm1, 0.0, %v604_v50  ;;  %v798_v8 = vrot.slane %v796_v46, 1  ;;  %v885_v21 = vshrl.u32 %v3457_v15, 16  ;;  %v889_v22 = vrot.slane %v887_v58, 1  ;;  %2547 = vmatpush3.bf16.msra.mxu0 %v2722_v29  ;;  %v2723_v42 = vld [vmem:[#allocation9 + $0x18] sm:$0xff]  }
  0xcc   : > { %1368 = vrot.lane.b32.xlu0 %v3335_v59, %s3002_s17  ;;  %v377_v59 = vld [vmem:[%s3260_s14 + $0x9c] sm:$0xff]   ;;  %v3524_v11 = vpack.c.bf16 %v605_v53, %v680_v61  ;;  %v529_v16 = vadd.f32 %v3297_v14, %v468_v63  ;;  %v530_v17 = vadd.f32 %v3297_v14, %v469_v1  ;;  %v892_v23 = vshll.u32 %v3518_v60, 16  ;;  %2548 = vmatprep.subr.bf16.mxu0 %v2723_v42 }
  0xcd   : > { %v431_v0 = vunpack.c.l.bf16 %v377_v59  ;;  %v432_v10 = vunpack.c.h.bf16 %v377_v59  ;;  %v3537_v57 = vsel %vm751_vm4, %v794_v6, %v798_v8  ;;  %v890_v34 = vor.u32 %v889_v22, %v885_v21  ;;  %2591 = vmatpush3.bf16.msra.mxu1 %v2722_v29  ;;  %v376_v6 = vld [vmem:[%s3260_s14 + $0x98] sm:$0x1] }
  0xce   : > { %747 = vst.msk [vmem:[#allocation2 + $0x60] sm:$0xff] %vm734_vm0, %v3524_v11  ;;  %v583_v25 = vmax.f32 %v529_v16, 0.0  ;;  %v584_v26 = vmax.f32 %v530_v17, 0.0  ;;  %v894_v33 = vrot.slane %v892_v23, 1  ;;  %v1051_v47 = vrot.slane %v3452_v9, 1  ;;  %2587 = vmatprep.subr.bf16.mxu1 %v2723_v42 }
  0xcf   : > { %1320 = vrot.lane.b32.xlu1 %v3495_v40, %s3001_s28  ;;  %v493_v28 = vmul.f32 %v3288_v7, %v432_v10  ;;  %v1052_v49 = vrot.slane %v3487_v32, 1  ;;  %v2491_v53 = vunpack.c.l.bf16 %v2515_v41  ;;  %2549 = vmatpush3.bf16.msra.mxu0 %v2723_v42  ;;  %v406_v54 = vunpack.c.l.bf16 %v352_v43 }
  0xd0   : > { %1370 = vrot.lane.b32.xlu0 %v3452_v9, %s3002_s17  ;;  %v659_v27 = vsel %vm626_vm1, 0.0, %v583_v25  ;;  %v3559_v45 = vsel %vm751_vm4, %v890_v34, %v894_v33  ;;  %v2492_v59 = vunpack.c.h.bf16 %v2515_v41  ;;  %v2507_v55 = vunpack.c.l.bf16 %v2519_v44 }
  0xd1   : > { %v3545_v30 = vpack.c.bf16 %v584_v26, %v659_v27  ;;  %v554_v36 = vadd.f32 %v3297_v14, %v493_v28  ;;  %v2508_v58 = vunpack.c.h.bf16 %v2519_v44  ;;  %2592 = vmatpush3.bf16.msra.mxu1 %v2723_v42  ;;  %v471_v32 = vmul.f32 %v2491_v53, %v3288_v7 }
  0xd2   : > { %v472_v61 = vmul.f32 %v2492_v59, %v3288_v7  ;;  %v495_v63 = vmul.f32 %v2507_v55, %v3288_v7  ;;  %v3579_v1 = vsel %vm1041_vm3, %v1051_v47, %v1052_v49  ;;  %v1075_v20 = vrot.slane %v3457_v15, 1 }
  0xd3   : > { %1384 = vrot.lane.b32.xlu1 %v3329_v56, %s3002_s17  ;;  %v492_v56 = vmul.f32 %v3288_v7, %v431_v0  ;;  %740 = vst.msk [vmem:[#allocation2 + $0x28] sm:$0xff] %vm734_vm0, %v3545_v30  ;;  %v608_v38 = vmax.f32 %v554_v36, 0.0  ;;  %v496_v8 = vmul.f32 %v2508_v58, %v3288_v7  ;;  %v467_v0 = vmul.f32 %v3288_v7, %v406_v54  ;;  %v359_v36 = vld [vmem:[%s3260_s14 + $0x54] sm:$0xff]  }
  0xd4   : > { %1445 = vrot.lane.b32.xlu0 %v3434_v39, %s3003_s16  ;;  %v532_v16 = vadd.f32 %v3297_v14, %v471_v32  ;;  %v533_v17 = vadd.f32 %v3297_v14, %v472_v61  ;;  %v1076_v21 = vrot.slane %v3518_v60, 1  ;;  %v430_v22 = vunpack.c.l.bf16 %v376_v6  ;;  %v355_v61 = vld [vmem:[%s3260_s14 + $0x44] sm:$0x1] }
  0xd5   : > { %v553_v35 = vadd.f32 %v3297_v14, %v492_v56  ;;  %v557_v10 = vadd.f32 %v3297_v14, %v496_v8  ;;  %v528_v27 = vadd.f32 %v3297_v14, %v467_v0  ;;  %v413_v41 = vunpack.c.l.bf16 %v359_v36 }
  0xd6   : > { %v586_v23 = vmax.f32 %v532_v16, 0.0  ;;  %v587_v25 = vmax.f32 %v533_v17, 0.0  ;;  %v3602_v34 = vsel %vm1041_vm3, %v1075_v20, %v1076_v21  ;;  %v491_v60 = vmul.f32 %v3288_v7, %v430_v22  ;;  %v2724_v16 = vld [vmem:[#allocation9 + $0x20] ss:$0 sps:$4 sm:$0xff]  }
  0xd7   : > { %1386 = vrot.lane.b32.xlu1 %v3457_v15, %s3002_s17  ;;  %v607_v37 = vmax.f32 %v553_v35, 0.0  ;;  %v611_v56 = vmax.f32 %v557_v10, 0.0  ;;  %v414_v42 = vunpack.c.h.bf16 %v359_v36  ;;  %v474_v44 = vmul.f32 %v3288_v7, %v413_v41 }
  0xd8   : > { %1447 = vrot.lane.b32.xlu0 %v3537_v57, %s3003_s16  ;;  %v662_v28 = vsel %vm626_vm1, 0.0, %v586_v23  ;;  %v801_v17 = vshrl.u32 %v3507_v48, 16  ;;  %v409_v23 = vunpack.c.l.bf16 %v355_v61  ;;  %vm1680_vm5 = vcmask 1043456  }
  0xd9   : > { %v683_v46 = vsel %vm626_vm1, 0.0, %v607_v37  ;;  %v3607_v33 = vpack.c.bf16 %v587_v25, %v662_v28  ;;  %v383_v37 = vld [vmem:[%s3260_s14 + $0xb4] sm:$0xff]   ;;  %v475_v47 = vmul.f32 %v3288_v7, %v414_v42  ;;  %v535_v54 = vadd.f32 %v3297_v14, %v474_v44  ;;  %2594 = vmatprep.subr.msk.bf16.mxu0 %vm1680_vm5, %v2724_v16  ;;  %2595 = vmatprep.subr.msk.bf16.mxu1 %vm1680_vm5, %v2724_v16 }
  0xda   : > { %v3567_v50 = vpack.c.bf16 %v608_v38, %v683_v46  ;;  %v552_v38 = vadd.f32 %v3297_v14, %v491_v60  ;;  %v437_v46 = vunpack.c.l.bf16 %v383_v37  ;;  %v438_v49 = vunpack.c.h.bf16 %v383_v37 }
  0xdb   : > { %1461 = vrot.lane.b32.xlu1 %v3465_v18, %s3003_s16  ;;  %741 = vst.msk [vmem:[#allocation2 + $0x30] sm:$0xff] %vm734_vm0, %v3607_v33  ;;  %v536_v55 = vadd.f32 %v3297_v14, %v475_v47  ;;  %v470_v36 = vmul.f32 %v3288_v7, %v409_v23  ;;  %v897_v37 = vshrl.u32 %v3524_v11, 16  ;;  %vm992_vm6 = vcmask 130112  }
  0xdc   : > { %1514 = vrot.lane.b32.xlu0 %v3472_v19, %s3004_s12  ;;  %748 = vst.msk [vmem:[#allocation2 + $0x68] sm:$0xff] %vm734_vm0, %v3567_v50  ;;  %v606_v53 = vmax.f32 %v552_v38, 0.0  ;;  %v498_v58 = vmul.f32 %v3288_v7, %v437_v46  ;;  %v499_v32 = vmul.f32 %v3288_v7, %v438_v49  ;;  %v815_v61 = vshll.u32 %v3545_v30, 16 }
  0xdd   : > { %v590_v6 = vmax.f32 %v536_v55, 0.0  ;;  %v531_v44 = vadd.f32 %v3297_v14, %v470_v36  ;;  %vm1138_vm7 = vcmask 195712   ;;  %vm1204_vm8 = vcmask 261312  }
  0xde   : > { %v559_v8 = vadd.f32 %v3297_v14, %v498_v58  ;;  %v560_v0 = vadd.f32 %v3297_v14, %v499_v32  ;;  %v682_v10 = vsel %vm637_vm2, 0.0, %v606_v53  ;;  %vm1281_vm9 = vcmask 326912  }
  0xdf   : > { %1463 = vrot.lane.b32.xlu1 %v3559_v45, %s3003_s16  ;;  %vm1350_vm10 = vcmask 392512   ;;  %vm1416_vm11 = vcmask 458112   ;;  %vm1493_vm12 = vcmask 523712   ;;  %vm1562_vm13 = vcmask 589312  }
  0xe0   : > { %948 = vrot.lane.b32.xlu0 %v3434_v39, %s2996_s7  ;;  %v556_v39 = vadd.f32 %v3297_v14, %v495_v63  ;;  %v589_v63 = vmax.f32 %v535_v54, 0.0  ;;  %v613_v21 = vmax.f32 %v559_v8, 0.0  ;;  %v614_v22 = vmax.f32 %v560_v0, 0.0 }
  0xe1   : > { %v813_v0 = vshrl.u32 %v3545_v30, 16  ;;  %vm1631_vm14 = vcmask 588800   ;;  %vm1849_vm15 = vcmask (!%p2406_p12), 57344  }
  0xe2   : > { %v610_v26 = vmax.f32 %v556_v39, 0.0 }
  0xe3   : > { %1530 = vrot.lane.b32.xlu1 %v3495_v40, %s3004_s12 }
  0xe4   : > { %1516 = vrot.lane.b32.xlu0 %v3579_v1, %s3004_s12  ;;  %v686_v29 = vsel %vm626_vm1, 0.0, %v610_v26  ;;  %v1682_v26 = vsel %vm1680_vm5, %v2724_v16, 0  ;;  %v817_v16 = vrot.slane %v815_v61, 1  ;;  %v827_v61 = vshll.u32 %v3607_v33, 16 }
  0xe5   : > { %v3609_v35 = vpack.c.bf16 %v611_v56, %v686_v29  ;;  %v723_v56 = vpack.c.bf16 %v682_v10, %v682_v10  ;;  %2551 = vmatpush3.bf16.msra.mxu0 %v1682_v26  ;;  %2593 = vmatpush3.bf16.msra.mxu1 %v1682_v26  ;;  %v911_v10 = vshll.u32 %v3567_v50, 16 }
  0xe7   : > { %964 = vrot.lane.b32.xlu1 %v3465_v18, %s2996_s7  ;;  %v582_v18 = vmax.f32 %v528_v27, 0.0  ;;  %749 = vst.msk [vmem:[#allocation2 + $0x70] sm:$0xff] %vm734_vm0, %v3609_v35  ;;  %v899_v27 = vshll.u32 %v3524_v11, 16  ;;  %v904_v41 = vshll.u32 %v723_v56, 16  ;;  %v1079_v58 = vrot.slane %v723_v56, 1 }
  0xe8   : > { %950 = vrot.lane.b32.xlu0 %v3537_v57, %s2996_s7 }
  0xe9   : > { %v658_v43 = vsel %vm637_vm2, 0.0, %v582_v18  ;;  %v379_v18 = vld [vmem:[%s3260_s14 + $0xa4] sm:$0x1]  ;;  %v901_v38 = vrot.slane %v899_v27, 1  ;;  %v906_v46 = vrot.slane %v904_v41, 1 }
  0xea   : > { %v707_v59 = vpack.c.bf16 %v658_v43, %v658_v43  ;;  %v433_v43 = vunpack.c.l.bf16 %v379_v18  ;;  %v358_v27 = vld [vmem:[%s3260_s14 + $0x50] sm:$0x1] }
  0xeb   : > { %1532 = vrot.lane.b32.xlu1 %v3602_v34, %s3004_s12  ;;  %v412_v18 = vunpack.c.l.bf16 %v358_v27  ;;  %v921_v27 = vshrl.u32 %v3609_v35, 16 }
  0xec   : > { %1094 = vrot.lane.b32.xlu0 %v3472_v19, %s2998_s29  ;;  %v803_v19 = vshll.u32 %v3507_v48, 16  ;;  %v808_v20 = vshll.u32 %v707_v59, 16  ;;  %v1055_v47 = vrot.slane %v707_v59, 1  ;;  %v494_v49 = vmul.f32 %v3288_v7, %v433_v43 }
  0xed   : > { %v473_v43 = vmul.f32 %v3288_v7, %v412_v18 }
  0xee   : > { %v805_v39 = vrot.slane %v803_v19, 1  ;;  %v810_v60 = vrot.slane %v808_v20, 1  ;;  %v585_v19 = vmax.f32 %v531_v44, 0.0  ;;  %v555_v55 = vadd.f32 %v3297_v14, %v494_v49  ;;  %v382_v44 = vld [vmem:[%s3260_s14 + $0xb0] sm:$0x1] }
  0xef   : > { %966 = vrot.lane.b32.xlu1 %v3559_v45, %s2996_s7 }
  0xf0   : > { %1096 = vrot.lane.b32.xlu0 %v3579_v1, %s2998_s29  ;;  %v806_v29 = vor.u32 %v805_v39, %v801_v17  ;;  %v661_v59 = vsel %vm637_vm2, 0.0, %v585_v19 }
  0xf2   : > { %v3670_v42 = vsel %vm751_vm4, %v806_v29, %v810_v60  ;;  %v1057_v60 = vrot.slane %v3545_v30, 1 }
  0xf3   : > { %1110 = vrot.lane.b32.xlu1 %v3495_v40, %s2998_s29  ;;  %v665_v40 = vsel %vm626_vm1, 0.0, %v589_v63  ;;  %v609_v63 = vmax.f32 %v555_v55, 0.0 }
  0xf4   : > { %1160 = vrot.lane.b32.xlu0 %v3452_v9, %s2999_s9  ;;  %v3647_v25 = vpack.c.bf16 %v590_v6, %v665_v40  ;;  %v689_v9 = vsel %vm626_vm1, 0.0, %v613_v21  ;;  %v909_v40 = vshrl.u32 %v3567_v50, 16  ;;  %v913_v21 = vrot.slane %v911_v10, 1 }
  0xf5   : > { %v3658_v28 = vpack.c.bf16 %v614_v22, %v689_v9  ;;  %v685_v39 = vsel %vm637_vm2, 0.0, %v609_v63 }
  0xf6   : > { %742 = vst.msk [vmem:[#allocation2 + $0x38] sm:$0xff] %vm734_vm0, %v3647_v25  ;;  %v914_v9 = vor.u32 %v913_v21, %v909_v40 }
  0xf7   : > { %1112 = vrot.lane.b32.xlu1 %v3602_v34, %s2998_s29  ;;  %750 = vst.msk [vmem:[#allocation2 + $0x78] sm:$0xff] %vm734_vm0, %v3658_v28 }
  0xf8   : > { %1162 = vrot.lane.b32.xlu0 %v3507_v48, %s2999_s9 }
  0xfb   : > { %1176 = vrot.lane.b32.xlu1 %v3457_v15, %s2999_s9  ;;  %v902_v15 = vor.u32 %v901_v38, %v897_v37 }
  0xfc   : > { %1237 = vrot.lane.b32.xlu0 %v3537_v57, %s3000_s8  ;;  %v1054_v57 = vrot.slane %v3507_v48, 1 }
  0xfd   : > { %v3682_v53 = vsel %vm751_vm4, %v902_v15, %v906_v46  ;;  %v1081_v15 = vrot.slane %v3567_v50, 1 }
  0xfe   : > { %v3687_v54 = vsel %vm1041_vm3, %v1054_v57, %v1055_v47  ;;  %v436_v47 = vunpack.c.l.bf16 %v382_v44  ;;  %v3816_v44 = vld [vmem:[#allocation8] ss:$0 sm:$0xff] }
  0xff   : > { %1178 = vrot.lane.b32.xlu1 %v3524_v11, %s2999_s9 }
 0x100   : > { %1239 = vrot.lane.b32.xlu0 %v3670_v42, %s3000_s8 }
 0x103   : > { %1253 = vrot.lane.b32.xlu1 %v3559_v45, %s3000_s8  ;;  %v1078_v45 = vrot.slane %v3524_v11, 1 }
 0x104   : > { %1306 = vrot.lane.b32.xlu0 %v3579_v1, %s3001_s28  ;;  %v709_v1 = vpack.c.bf16 %v661_v59, %v661_v59  ;;  %v497_v59 = vmul.f32 %v3288_v7, %v436_v47 }
 0x105   : > { %v3702_v6 = vsel %vm1041_vm3, %v1078_v45, %v1079_v58 }
 0x106   : > { %v820_v17 = vshll.u32 %v709_v1, 16  ;;  %v1058_v36 = vrot.slane %v709_v1, 1 }
 0x107   : > { %1255 = vrot.lane.b32.xlu1 %v3682_v53, %s3000_s8 }
 0x108   : > { %1308 = vrot.lane.b32.xlu0 %v3687_v54, %s3001_s28  ;;  %v822_v20 = vrot.slane %v820_v17, 1  ;;  %v3742_v41 = vsel %vm1041_vm3, %v1057_v60, %v1058_v36  ;;  %v825_v17 = vshrl.u32 %v3607_v33, 16 }
 0x10b   : > { %1322 = vrot.lane.b32.xlu1 %v3602_v34, %s3001_s28  ;;  %v725_v34 = vpack.c.bf16 %v685_v39, %v685_v39  ;;  %v829_v39 = vrot.slane %v827_v61, 1 }
 0x10c   : > { %1372 = vrot.lane.b32.xlu0 %v3507_v48, %s3002_s17  ;;  %v818_v48 = vor.u32 %v817_v16, %v813_v0  ;;  %v361_v0 = vld [vmem:[%s3260_s14 + $0x5c] sm:$0x1] }
 0x10d   : > { %v945_v32 = vpop.permute.xlu0 %944  ;;  %v916_v22 = vshll.u32 %v725_v34, 16  ;;  %v1082_v46 = vrot.slane %v725_v34, 1  ;;  %v830_v21 = vor.u32 %v829_v39, %v825_v17 }
 0x10e   : > { %993 = vst.msk [vmem:[#allocation2] sm:$0xff] %vm992_vm6, %v945_v32  ;;  %v3721_v23 = vsel %vm751_vm4, %v818_v48, %v822_v20  ;;  %v558_v32 = vadd.f32 %v3297_v14, %v497_v59  ;;  %v415_v48 = vunpack.c.l.bf16 %v361_v0  ;;  %v923_v20 = vshll.u32 %v3609_v35, 16 }
 0x10f   : > { %1324 = vrot.lane.b32.xlu1 %v3702_v6, %s3001_s28  ;;  %v918_v26 = vrot.slane %v916_v22, 1  ;;  %v3755_v19 = vsel %vm1041_vm3, %v1081_v15, %v1082_v46 }
 0x110   : > { %1374 = vrot.lane.b32.xlu0 %v3545_v30, %s3002_s17  ;;  %v612_v63 = vmax.f32 %v558_v32, 0.0  ;;  %v925_v60 = vrot.slane %v923_v20, 1 }
 0x111   : > { %v1091_v8 = vpop.permute.xlu0 %1090  ;;  %v3732_v29 = vsel %vm751_vm4, %v914_v9, %v918_v26  ;;  %v3802_v26 = vld [vmem:[#allocation6] ss:$0 sm:$0xff] }
 0x112   : > { %1139 = vst.msk [vmem:[#allocation2] sm:$0xff] %vm1138_vm7, %v1091_v8  ;;  %v688_v10 = vsel %vm637_vm2, 0.0, %v612_v63 }
 0x113   : > { %1388 = vrot.lane.b32.xlu1 %v3524_v11, %s3002_s17 }
 0x114   : > { %1449 = vrot.lane.b32.xlu0 %v3670_v42, %s3003_s16 }
 0x117   : > { %1390 = vrot.lane.b32.xlu1 %v3567_v50, %s3002_s17 }
 0x118   : > { %1451 = vrot.lane.b32.xlu0 %v3721_v23, %s3003_s16  ;;  %v1173_v11 = vpop.permute.xlu1 %1172 }
 0x119   : > { %v1157_v56 = vpop.permute.xlu0 %1156 }
 0x11a   : > { %1205 = vst.msk [vmem:[#allocation2] sm:$0xff] %vm1204_vm8, %v1157_v56  ;;  %v385_v56 = vld [vmem:[%s3260_s14 + $0xbc] sm:$0x1] }
 0x11b   : > { %1465 = vrot.lane.b32.xlu1 %v3682_v53, %s3003_s16 }
 0x11c   : > { %1518 = vrot.lane.b32.xlu0 %v3687_v54, %s3004_s12  ;;  %v1175_v37 = vpop.permute.xlu1 %1174 }
 0x11d   : > { %v1159_v38 = vpop.permute.xlu0 %1158 }
 0x11f   : > { %1467 = vrot.lane.b32.xlu1 %v3732_v29, %s3003_s16 }
 0x120   : > { %952 = vrot.lane.b32.xlu0 %v3670_v42, %s2996_s7  ;;  %v534_v42 = vadd.f32 %v3297_v14, %v473_v43 }
 0x122   : > { %v588_v58 = vmax.f32 %v534_v42, 0.0 }
 0x123   : > { %1534 = vrot.lane.b32.xlu1 %v3702_v6, %s3004_s12 }
 0x124   : > { %1520 = vrot.lane.b32.xlu0 %v3742_v41, %s3004_s12  ;;  %v664_v1 = vsel %vm637_vm2, 0.0, %v588_v58 }
 0x125   : > { %v1107_v57 = vpop.permute.xlu1 %1106 }
 0x126   : > { %v1093_v49 = vpop.permute.xlu0 %1092 }
 0x127   : > { %968 = vrot.lane.b32.xlu1 %v3682_v53, %s2996_s7 }
 0x128   : > { %954 = vrot.lane.b32.xlu0 %v3721_v23, %s2996_s7 }
 0x129   : > { %v1109_v55 = vpop.permute.xlu1 %1108 }
 0x12a   : > { %v961_v45 = vpop.permute.xlu0 %960 }
 0x12b   : > { %1001 = vst.msk [vmem:[#allocation2 + $0x40] sm:$0xff] %vm992_vm6, %v961_v45  ;;  %1536 = vrot.lane.b32.xlu1 %v3755_v19, %s3004_s12 }
 0x12c   : > { %1147 = vst.msk [vmem:[#allocation2 + $0x40] sm:$0xff] %vm1138_vm7, %v1107_v57  ;;  %1098 = vrot.lane.b32.xlu0 %v3687_v54, %s2998_s29  ;;  %v3778_v54 = vpack.c.bf16 %v664_v1, %v664_v1  ;;  %v1060_v57 = vrot.slane %v3607_v33, 1 }
 0x12d   : > { %1213 = vst.msk [vmem:[#allocation2 + $0x40] sm:$0xff] %vm1204_vm8, %v1173_v11  ;;  %v947_v53 = vpop.permute.xlu1 %946  ;;  %v476_v11 = vmul.f32 %v3802_v26, %v415_v48 }
 0x12e   : > { %994 = vst.msk [vmem:[#allocation2 + $0x8] sm:$0xff] %vm992_vm6, %v947_v53  ;;  %v1234_v7 = vpop.permute.xlu0 %1233  ;;  %v832_v34 = vshll.u32 %v3778_v54, 16  ;;  %v1061_v47 = vrot.slane %v3778_v54, 1  ;;  %v839_v54 = vshll.u32 %v3647_v25, 16 }
 0x12f   : > { %1140 = vst.msk [vmem:[#allocation2 + $0x8] sm:$0xff] %vm1138_vm7, %v1093_v49  ;;  %970 = vrot.lane.b32.xlu1 %v3732_v29, %s2996_s7 }
 0x130   : > { %1282 = vst.msk [vmem:[#allocation2] sm:$0xff] %vm1281_vm9, %v1234_v7  ;;  %1100 = vrot.lane.b32.xlu0 %v3742_v41, %s2998_s29  ;;  %v834_v22 = vrot.slane %v832_v34, 1  ;;  %v3837_v58 = vsel %vm1041_vm3, %v1060_v57, %v1061_v47  ;;  %v841_v17 = vrot.slane %v839_v54, 1  ;;  %v2520_v47 = vld [vmem:[%s3260_s14 + $0xc0] sm:$0xff]  }
 0x131   : > { %1206 = vst.msk [vmem:[#allocation2 + $0x8] sm:$0xff] %vm1204_vm8, %v1159_v38  ;;  %v963_v14 = vpop.permute.xlu1 %962  ;;  %v439_v38 = vunpack.c.l.bf16 %v385_v56 }
 0x132   : > { %1002 = vst.msk [vmem:[#allocation2 + $0x48] sm:$0xff] %vm992_vm6, %v963_v14  ;;  %v1236_v8 = vpop.permute.xlu0 %1235 }
 0x133   : > { %1148 = vst.msk [vmem:[#allocation2 + $0x48] sm:$0xff] %vm1138_vm7, %v1109_v55  ;;  %1114 = vrot.lane.b32.xlu1 %v3702_v6, %s2998_s29  ;;  %v500_v49 = vmul.f32 %v3802_v26, %v439_v38 }
 0x134   : > { %1283 = vst.msk [vmem:[#allocation2 + $0x8] sm:$0xff] %vm1281_vm9, %v1236_v8  ;;  %1164 = vrot.lane.b32.xlu0 %v3545_v30, %s2999_s9  ;;  %v727_v30 = vpack.c.bf16 %v688_v10, %v688_v10  ;;  %v935_v10 = vshll.u32 %v3658_v28, 16 }
 0x135   : > { %1214 = vst.msk [vmem:[#allocation2 + $0x48] sm:$0xff] %vm1204_vm8, %v1175_v37  ;;  %v1250_v16 = vpop.permute.xlu1 %1249  ;;  %v3813_v37 = vsel %vm751_vm4, %v830_v21, %v834_v22  ;;  %v561_v53 = vadd.f32 %v3816_v44, %v500_v49 }
 0x136   : > { %1290 = vst.msk [vmem:[#allocation2 + $0x40] sm:$0xff] %vm1281_vm9, %v1250_v16  ;;  %v1303_v6 = vpop.permute.xlu0 %1302  ;;  %v928_v36 = vshll.u32 %v727_v30, 16  ;;  %v1085_v7 = vrot.slane %v727_v30, 1  ;;  %v837_v16 = vshrl.u32 %v3647_v25, 16  ;;  %v937_v21 = vrot.slane %v935_v10, 1 }
 0x137   : > { %1116 = vrot.lane.b32.xlu1 %v3755_v19, %s2998_s29  ;;  %1351 = vst.msk [vmem:[#allocation2] sm:$0xff] %vm1350_vm10, %v1303_v6  ;;  %v615_v61 = vmax.f32 %v561_v53, 0.0  ;;  %v388_v53 = vld [vmem:[%s3260_s14 + $0xc8] sm:$0x1] }
 0x138   : > { %1166 = vrot.lane.b32.xlu0 %v3607_v33, %s2999_s9  ;;  %v930_v15 = vrot.slane %v928_v36, 1  ;;  %v842_v48 = vor.u32 %v841_v17, %v837_v16 }
 0x139   : > { %v1252_v40 = vpop.permute.xlu1 %1251  ;;  %v691_v34 = vsel %vm637_vm2, 0.0, %v615_v61 }
 0x13a   : > { %1291 = vst.msk [vmem:[#allocation2 + $0x48] sm:$0xff] %vm1281_vm9, %v1252_v40  ;;  %v1305_v9 = vpop.permute.xlu0 %1304  ;;  %v933_v40 = vshrl.u32 %v3658_v28, 16 }
 0x13b   : > { %1180 = vrot.lane.b32.xlu1 %v3567_v50, %s2999_s9  ;;  %1352 = vst.msk [vmem:[#allocation2 + $0x8] sm:$0xff] %vm1350_vm10, %v1305_v9  ;;  %v537_v50 = vadd.f32 %v3816_v44, %v476_v11 }
 0x13c   : > { %1241 = vrot.lane.b32.xlu0 %v3721_v23, %s3000_s8  ;;  %v926_v23 = vor.u32 %v925_v60, %v921_v27 }
 0x13d   : > { %v1319_v18 = vpop.permute.xlu1 %1318  ;;  %v591_v55 = vmax.f32 %v537_v50, 0.0 }
 0x13e   : > { %1359 = vst.msk [vmem:[#allocation2 + $0x40] sm:$0xff] %vm1350_vm10, %v1319_v18  ;;  %v1369_v43 = vpop.permute.xlu0 %1368  ;;  %v3832_v59 = vsel %vm751_vm4, %v926_v23, %v930_v15  ;;  %v1063_v23 = vrot.slane %v3647_v25, 1 }
 0x13f   : > { %1182 = vrot.lane.b32.xlu1 %v3609_v35, %s2999_s9  ;;  %1417 = vst.msk [vmem:[#allocation2] sm:$0xff] %vm1416_vm11, %v1369_v43 }
 0x140   : > { %1243 = vrot.lane.b32.xlu0 %v3813_v37, %s3000_s8 }
 0x141   : > { %v1321_v46 = vpop.permute.xlu1 %1320 }
 0x142   : > { %1360 = vst.msk [vmem:[#allocation2 + $0x48] sm:$0xff] %vm1350_vm10, %v1321_v46  ;;  %v1371_v42 = vpop.permute.xlu0 %1370 }
 0x143   : > { %1257 = vrot.lane.b32.xlu1 %v3732_v29, %s3000_s8  ;;  %1418 = vst.msk [vmem:[#allocation2 + $0x8] sm:$0xff] %vm1416_vm11, %v1371_v42  ;;  %v667_v29 = vsel %vm637_vm2, 0.0, %v591_v55  ;;  %v2511_v55 = vunpack.c.l.bf16 %v2520_v47 }
 0x144   : > { %1310 = vrot.lane.b32.xlu0 %v3742_v41, %s3001_s28  ;;  %v1084_v41 = vrot.slane %v3609_v35, 1  ;;  %v3849_v14 = vpack.c.bf16 %v667_v29, %v667_v29  ;;  %v2512_v29 = vunpack.c.h.bf16 %v2520_v47 }
 0x145   : > { %v1385_v45 = vpop.permute.xlu1 %1384 }
 0x146   : > { %1425 = vst.msk [vmem:[#allocation2 + $0x40] sm:$0xff] %vm1416_vm11, %v1385_v45  ;;  %v1446_v32 = vpop.permute.xlu0 %1445  ;;  %v3857_v8 = vsel %vm1041_vm3, %v1084_v41, %v1085_v7  ;;  %v844_v39 = vshll.u32 %v3849_v14, 16  ;;  %v1064_v15 = vrot.slane %v3849_v14, 1  ;;  %v442_v14 = vunpack.c.l.bf16 %v388_v53 }
 0x147   : > { %1259 = vrot.lane.b32.xlu1 %v3832_v59, %s3000_s8  ;;  %1494 = vst.msk [vmem:[#allocation2] sm:$0xff] %vm1493_vm12, %v1446_v32  ;;  %v1087_v32 = vrot.slane %v3658_v28, 1 }
 0x148   : > { %1312 = vrot.lane.b32.xlu0 %v3837_v58, %s3001_s28  ;;  %v846_v30 = vrot.slane %v844_v39, 1  ;;  %v3913_v42 = vsel %vm1041_vm3, %v1063_v23, %v1064_v15  ;;  %v503_v17 = vmul.f32 %v3802_v26, %v442_v14 }
 0x149   : > { %v1387_v1 = vpop.permute.xlu1 %1386 }
 0x14a   : > { %1426 = vst.msk [vmem:[#allocation2 + $0x48] sm:$0xff] %vm1416_vm11, %v1387_v1  ;;  %v1448_v63 = vpop.permute.xlu0 %1447  ;;  %v3883_v11 = vsel %vm751_vm4, %v842_v48, %v846_v30  ;;  %v501_v1 = vmul.f32 %v3802_v26, %v2511_v55 }
 0x14b   : > { %1326 = vrot.lane.b32.xlu1 %v3755_v19, %s3001_s28  ;;  %1495 = vst.msk [vmem:[#allocation2 + $0x8] sm:$0xff] %vm1493_vm12, %v1448_v63  ;;  %v502_v63 = vmul.f32 %v3802_v26, %v2512_v29 }
 0x14c   : > { %1376 = vrot.lane.b32.xlu0 %v3607_v33, %s3002_s17  ;;  %v3871_v33 = vpack.c.bf16 %v691_v34, %v691_v34  ;;  %v562_v16 = vadd.f32 %v3816_v44, %v501_v1 }
 0x14d   : > { %v1462_v0 = vpop.permute.xlu1 %1461 }
 0x14e   : > { %1502 = vst.msk [vmem:[#allocation2 + $0x40] sm:$0xff] %vm1493_vm12, %v1462_v0  ;;  %v1515_v19 = vpop.permute.xlu0 %1514  ;;  %v940_v22 = vshll.u32 %v3871_v33, 16 }
 0x14f   : > { %1328 = vrot.lane.b32.xlu1 %v3857_v8, %s3001_s28  ;;  %1563 = vst.msk [vmem:[#allocation2] sm:$0xff] %vm1562_vm13, %v1515_v19  ;;  %v616_v19 = vmax.f32 %v562_v16, 0.0 }
 0x150   : > { %1378 = vrot.lane.b32.xlu0 %v3647_v25, %s3002_s17  ;;  %v942_v60 = vrot.slane %v940_v22, 1 }
 0x151   : > { %v1464_v6 = vpop.permute.xlu1 %1463 }
 0x152   : > { %1503 = vst.msk [vmem:[#allocation2 + $0x48] sm:$0xff] %vm1493_vm12, %v1464_v6  ;;  %v949_v20 = vpop.permute.xlu0 %948 }
 0x153   : > { %1392 = vrot.lane.b32.xlu1 %v3609_v35, %s3002_s17  ;;  %995 = vst.msk [vmem:[#allocation2 + $0x10] sm:$0xff] %vm992_vm6, %v949_v20  ;;  %v938_v35 = vor.u32 %v937_v21, %v933_v40 }
 0x154   : > { %1453 = vrot.lane.b32.xlu0 %v3813_v37, %s3003_s16 }
 0x155   : > { %v1531_v9 = vpop.permute.xlu1 %1530  ;;  %v3897_v38 = vsel %vm751_vm4, %v938_v35, %v942_v60 }
 0x156   : > { %1571 = vst.msk [vmem:[#allocation2 + $0x40] sm:$0xff] %vm1562_vm13, %v1531_v9  ;;  %v1517_v56 = vpop.permute.xlu0 %1516  ;;  %v1579_v27 = vld [vmem:[#allocation2] sm:$0xff] }
 0x157   : > { %1394 = vrot.lane.b32.xlu1 %v3658_v28, %s3002_s17  ;;  %1564 = vst.msk [vmem:[#allocation2 + $0x8] sm:$0xff] %vm1562_vm13, %v1517_v56  ;;  %2552 = vmatprep.mubr.msk.bf16.mxu0 %vm1631_vm14, %v1579_v27 }
 0x158   : > { %1455 = vrot.lane.b32.xlu0 %v3883_v11, %s3003_s16 }
 0x159   : > { %v965_v36 = vpop.permute.xlu1 %964 }
 0x15a   : > { %1003 = vst.msk [vmem:[#allocation2 + $0x50] sm:$0xff] %vm992_vm6, %v965_v36  ;;  %v951_v18 = vpop.permute.xlu0 %950 }
 0x15b   : > { %1469 = vrot.lane.b32.xlu1 %v3832_v59, %s3003_s16  ;;  %996 = vst.msk [vmem:[#allocation2 + $0x18] sm:$0xff] %vm992_vm6, %v951_v18 }
 0x15c   : > { %1522 = vrot.lane.b32.xlu0 %v3837_v58, %s3004_s12 }
 0x15d   : > { %v1533_v43 = vpop.permute.xlu1 %1532  ;;  %v1587_v50 = vld [vmem:[#allocation2 + $0x40] sm:$0xff] }
 0x15e   : > { %1572 = vst.msk [vmem:[#allocation2 + $0x48] sm:$0xff] %vm1562_vm13, %v1533_v43  ;;  %2568 = vmatprep.mubr.msk.bf16.mxu1 %vm1631_vm14, %v1587_v50  ;;  %v1095_v46 = vpop.permute.xlu0 %1094  ;;  %v1580_v57 = vld [vmem:[#allocation2 + $0x8] sm:$0xff] }
 0x15f   : > { %1471 = vrot.lane.b32.xlu1 %v3897_v38, %s3003_s16  ;;  %1141 = vst.msk [vmem:[#allocation2 + $0x10] sm:$0xff] %vm1138_vm7, %v1095_v46  ;;  %2553 = vmatmul.mubr.msk.bf16.vlgmr.msra.gmra.mrb[0].mxu0 %vm1631_vm14, %v1580_v57 }
 0x160   : > { %956 = vrot.lane.b32.xlu0 %v3813_v37, %s2996_s7  ;;  %v1088_v37 = vrot.slane %v3871_v33, 1  ;;  %v564_v33 = vadd.f32 %v3816_v44, %v503_v17 }
 0x161   : > { %v967_v49 = vpop.permute.xlu1 %966 }
 0x162   : > { %1004 = vst.msk [vmem:[#allocation2 + $0x58] sm:$0xff] %vm992_vm6, %v967_v49  ;;  %v1097_v45 = vpop.permute.xlu0 %1096  ;;  %v3931_v61 = vsel %vm1041_vm3, %v1087_v32, %v1088_v37  ;;  %v618_v48 = vmax.f32 %v564_v33, 0.0 }
 0x163   : > { %1538 = vrot.lane.b32.xlu1 %v3857_v8, %s3004_s12  ;;  %1142 = vst.msk [vmem:[#allocation2 + $0x18] sm:$0xff] %vm1138_vm7, %v1097_v45 }
 0x164   : > { %1524 = vrot.lane.b32.xlu0 %v3913_v42, %s3004_s12  ;;  %v694_v40 = vsel %vm637_vm2, 0.0, %v618_v48 }
 0x165   : > { %v1111_v41 = vpop.permute.xlu1 %1110  ;;  %v1588_v7 = vld [vmem:[#allocation2 + $0x48] sm:$0xff] }
 0x166   : > { %1149 = vst.msk [vmem:[#allocation2 + $0x50] sm:$0xff] %vm1138_vm7, %v1111_v41  ;;  %2569 = vmatmul.mubr.msk.bf16.vlgmr.msra.gmra.mrb[0].mxu1 %vm1631_vm14, %v1588_v7  ;;  %v1161_v54 = vpop.permute.xlu0 %1160 }
 0x167   : > { %972 = vrot.lane.b32.xlu1 %v3832_v59, %s2996_s7  ;;  %1207 = vst.msk [vmem:[#allocation2 + $0x10] sm:$0xff] %vm1204_vm8, %v1161_v54  ;;  %v563_v59 = vadd.f32 %v3816_v44, %v502_v63 }
 0x168   : > { %958 = vrot.lane.b32.xlu0 %v3883_v11, %s2996_s7 }
 0x169   : > { %v1113_v0 = vpop.permute.xlu1 %1112  ;;  %v617_v10 = vmax.f32 %v563_v59, 0.0 }
 0x16a   : > { %1150 = vst.msk [vmem:[#allocation2 + $0x58] sm:$0xff] %vm1138_vm7, %v1113_v0  ;;  %v1163_v39 = vpop.permute.xlu0 %1162 }
 0x16b   : > { %1540 = vrot.lane.b32.xlu1 %v3931_v61, %s3004_s12  ;;  %1208 = vst.msk [vmem:[#allocation2 + $0x18] sm:$0xff] %vm1204_vm8, %v1163_v39 }
 0x16c   : > { %1102 = vrot.lane.b32.xlu0 %v3837_v58, %s2998_s29  ;;  %v692_v58 = vsel %vm626_vm1, 0.0, %v616_v19 }
 0x16d   : > { %v1177_v34 = vpop.permute.xlu1 %1176  ;;  %v730_v30 = vpack.c.bf16 %v617_v10, %v692_v58 }
 0x16e   : > { %1215 = vst.msk [vmem:[#allocation2 + $0x50] sm:$0xff] %vm1204_vm8, %v1177_v34  ;;  %v1238_v26 = vpop.permute.xlu0 %1237 }
 0x16f   : > { %974 = vrot.lane.b32.xlu1 %v3897_v38, %s2996_s7  ;;  %1284 = vst.msk [vmem:[#allocation2 + $0x10] sm:$0xff] %vm1281_vm9, %v1238_v26  ;;  %v1224_v21 = vshll.u32 %v730_v30, 16  ;;  %v1222_v13 = vshrl.u32 %v730_v30, 16  ;;  %v1299_v23 = vrot.slane %v730_v30, 1 }
 0x170   : > { %1104 = vrot.lane.b32.xlu0 %v3913_v42, %s2998_s29 }
 0x171   : > { %v1179_v6 = vpop.permute.xlu1 %1178  ;;  %v1226_v9 = vrot.slane %v1224_v21, 1 }
 0x172   : > { %1216 = vst.msk [vmem:[#allocation2 + $0x58] sm:$0xff] %vm1204_vm8, %v1179_v6  ;;  %v1240_v44 = vpop.permute.xlu0 %1239 }
 0x173   : > { %1118 = vrot.lane.b32.xlu1 %v3857_v8, %s2998_s29  ;;  %1285 = vst.msk [vmem:[#allocation2 + $0x18] sm:$0xff] %vm1281_vm9, %v1240_v44  ;;  %v731_v8 = vpack.c.bf16 %v694_v40, %v694_v40 }
 0x174   : > { %1168 = vrot.lane.b32.xlu0 %v3647_v25, %s2999_s9 }
 0x175   : > { %v1254_v20 = vpop.permute.xlu1 %1253  ;;  %v1229_v56 = vshll.u32 %v731_v8, 16 }
 0x176   : > { %1292 = vst.msk [vmem:[#allocation2 + $0x50] sm:$0xff] %vm1281_vm9, %v1254_v20  ;;  %v1307_v5 = vpop.permute.xlu0 %1306 }
 0x177   : > { %1120 = vrot.lane.b32.xlu1 %v3931_v61, %s2998_s29  ;;  %1353 = vst.msk [vmem:[#allocation2 + $0x10] sm:$0xff] %vm1350_vm10, %v1307_v5  ;;  %v1231_v60 = vrot.slane %v1229_v56, 1 }
 0x178   : > { %1170 = vrot.lane.b32.xlu0 %v3373_v31, %s2999_s9 }
 0x179   : > { %v1256_v22 = vpop.permute.xlu1 %1255 }
 0x17a   : > { %1293 = vst.msk [vmem:[#allocation2 + $0x58] sm:$0xff] %vm1281_vm9, %v1256_v22  ;;  %v1309_v25 = vpop.permute.xlu0 %1308 }
 0x17b   : > { %1184 = vrot.lane.b32.xlu1 %v3658_v28, %s2999_s9  ;;  %1354 = vst.msk [vmem:[#allocation2 + $0x18] sm:$0xff] %vm1350_vm10, %v1309_v25  ;;  %v1227_v28 = vor.u32 %v1226_v9, %v1222_v13 }
 0x17c   : > { %1245 = vrot.lane.b32.xlu0 %v3883_v11, %s3000_s8 }
 0x17d   : > { %v1323_v27 = vpop.permute.xlu1 %1322  ;;  %v1232_v18 = vsel %vm751_vm4, %v1227_v28, %v1231_v60 }
 0x17e   : > { %1361 = vst.msk [vmem:[#allocation2 + $0x50] sm:$0xff] %vm1350_vm10, %v1323_v27  ;;  %v1373_v35 = vpop.permute.xlu0 %1372 }
 0x17f   : > { %1186 = vrot.lane.b32.xlu1 %v730_v30, %s2999_s9  ;;  %1419 = vst.msk [vmem:[#allocation2 + $0x10] sm:$0xff] %vm1416_vm11, %v1373_v35 }
 0x180   : > { %1247 = vrot.lane.b32.xlu0 %v3406_v12, %s3000_s8 }
 0x181   : > { %v1325_v36 = vpop.permute.xlu1 %1324 }
 0x182   : > { %1362 = vst.msk [vmem:[#allocation2 + $0x58] sm:$0xff] %vm1350_vm10, %v1325_v36  ;;  %v1375_v11 = vpop.permute.xlu0 %1374 }
 0x183   : > { %1261 = vrot.lane.b32.xlu1 %v3897_v38, %s3000_s8  ;;  %1420 = vst.msk [vmem:[#allocation2 + $0x18] sm:$0xff] %vm1416_vm11, %v1375_v11  ;;  %v1300_v38 = vrot.slane %v731_v8, 1 }
 0x184   : > { %1314 = vrot.lane.b32.xlu0 %v3913_v42, %s3001_s28 }
 0x185   : > { %v1389_v43 = vpop.permute.xlu1 %1388  ;;  %v1301_v57 = vsel %vm1041_vm3, %v1299_v23, %v1300_v38 }
 0x186   : > { %1427 = vst.msk [vmem:[#allocation2 + $0x50] sm:$0xff] %vm1416_vm11, %v1389_v43  ;;  %v1450_v50 = vpop.permute.xlu0 %1449 }
 0x187   : > { %1263 = vrot.lane.b32.xlu1 %v1232_v18, %s3000_s8  ;;  %1496 = vst.msk [vmem:[#allocation2 + $0x10] sm:$0xff] %vm1493_vm12, %v1450_v50 }
 0x188   : > { %1316 = vrot.lane.b32.xlu0 %v3390_v52, %s3001_s28 }
 0x189   : > { %v1391_v15 = vpop.permute.xlu1 %1390 }
 0x18a   : > { %1428 = vst.msk [vmem:[#allocation2 + $0x58] sm:$0xff] %vm1416_vm11, %v1391_v15  ;;  %v1452_v46 = vpop.permute.xlu0 %1451 }
 0x18b   : > { %1330 = vrot.lane.b32.xlu1 %v3931_v61, %s3001_s28  ;;  %1497 = vst.msk [vmem:[#allocation2 + $0x18] sm:$0xff] %vm1493_vm12, %v1452_v46 }
 0x18c   : > { %1380 = vrot.lane.b32.xlu0 %v3373_v31, %s3002_s17 }
 0x18d   : > { %v1466_v47 = vpop.permute.xlu1 %1465 }
 0x18e   : > { %1504 = vst.msk [vmem:[#allocation2 + $0x50] sm:$0xff] %vm1493_vm12, %v1466_v47  ;;  %v1519_v49 = vpop.permute.xlu0 %1518 }
 0x18f   : > { %1332 = vrot.lane.b32.xlu1 %v1301_v57, %s3001_s28  ;;  %1565 = vst.msk [vmem:[#allocation2 + $0x10] sm:$0xff] %vm1562_vm13, %v1519_v49 }
 0x190   : > { %1382 = vrot.lane.b32.xlu0 %v3321_v51, %s3002_s17 }
 0x191   : > { %v1468_v42 = vpop.permute.xlu1 %1467 }
 0x192   : > { %1505 = vst.msk [vmem:[#allocation2 + $0x58] sm:$0xff] %vm1493_vm12, %v1468_v42  ;;  %v953_v55 = vpop.permute.xlu0 %952 }
 0x193   : > { %1396 = vrot.lane.b32.xlu1 %v730_v30, %s3002_s17  ;;  %997 = vst.msk [vmem:[#allocation2 + $0x20] sm:$0xff] %vm992_vm6, %v953_v55 }
 0x194   : > { %1457 = vrot.lane.b32.xlu0 %v3406_v12, %s3003_s16 }
 0x195   : > { %v1535_v31 = vpop.permute.xlu1 %1534 }
 0x196   : > { %1573 = vst.msk [vmem:[#allocation2 + $0x50] sm:$0xff] %vm1562_vm13, %v1535_v31  ;;  %v1521_v45 = vpop.permute.xlu0 %1520  ;;  %v1581_v53 = vld [vmem:[#allocation2 + $0x10] sm:$0xff] }
 0x197   : > { %1398 = vrot.lane.b32.xlu1 %v2997_v3, %s3002_s17  ;;  %1566 = vst.msk [vmem:[#allocation2 + $0x18] sm:$0xff] %vm1562_vm13, %v1521_v45  ;;  %2556 = vmatprep.mubr.msk.bf16.mxu0 %vm1631_vm14, %v1581_v53 }
 0x198   : > { %1459 = vrot.lane.b32.xlu0 %v3422_v24, %s3003_s16 }
 0x199   : > { %v969_v51 = vpop.permute.xlu1 %968 }
 0x19a   : > { %1005 = vst.msk [vmem:[#allocation2 + $0x60] sm:$0xff] %vm992_vm6, %v969_v51  ;;  %v955_v32 = vpop.permute.xlu0 %954 }
 0x19b   : > { %1473 = vrot.lane.b32.xlu1 %v1232_v18, %s3003_s16  ;;  %998 = vst.msk [vmem:[#allocation2 + $0x28] sm:$0xff] %vm992_vm6, %v955_v32 }
 0x19c   : > { %1526 = vrot.lane.b32.xlu0 %v3390_v52, %s3004_s12 }
 0x19d   : > { %v1537_v12 = vpop.permute.xlu1 %1536  ;;  %v1589_v3 = vld [vmem:[#allocation2 + $0x50] sm:$0xff] }
 0x19e   : > { %1574 = vst.msk [vmem:[#allocation2 + $0x58] sm:$0xff] %vm1562_vm13, %v1537_v12  ;;  %2572 = vmatprep.mubr.msk.bf16.mxu1 %vm1631_vm14, %v1589_v3  ;;  %v1099_v37 = vpop.permute.xlu0 %1098  ;;  %v1582_v29 = vld [vmem:[#allocation2 + $0x18] sm:$0xff] }
 0x19f   : > { %1475 = vrot.lane.b32.xlu1 %v3274_v2, %s3003_s16  ;;  %1143 = vst.msk [vmem:[#allocation2 + $0x20] sm:$0xff] %vm1138_vm7, %v1099_v37  ;;  %2557 = vmatmul.mubr.msk.bf16.gmra.mrb[4].mxu0 %vm1631_vm14, %v1582_v29 }
 0x1a0   : > { %1528 = vrot.lane.b32.xlu0 %v3400_v62, %s3004_s12 }
 0x1a1   : > { %v971_v24 = vpop.permute.xlu1 %970 }
 0x1a2   : > { %1006 = vst.msk [vmem:[#allocation2 + $0x68] sm:$0xff] %vm992_vm6, %v971_v24  ;;  %v1101_v52 = vpop.permute.xlu0 %1100 }
 0x1a3   : > { %1542 = vrot.lane.b32.xlu1 %v1301_v57, %s3004_s12  ;;  %1144 = vst.msk [vmem:[#allocation2 + $0x28] sm:$0xff] %vm1138_vm7, %v1101_v52 }
 0x1a5   : > { %v1115_v41 = vpop.permute.xlu1 %1114  ;;  %v1590_v7 = vld [vmem:[#allocation2 + $0x58] sm:$0xff] }
 0x1a6   : > { %1151 = vst.msk [vmem:[#allocation2 + $0x60] sm:$0xff] %vm1138_vm7, %v1115_v41  ;;  %2573 = vmatmul.mubr.msk.bf16.gmra.mrb[4].mxu1 %vm1631_vm14, %v1590_v7  ;;  %v1165_v2 = vpop.permute.xlu0 %1164 }
 0x1a7   : > { %1544 = vrot.lane.b32.xlu1 %v3279_v4, %s3004_s12  ;;  %1209 = vst.msk [vmem:[#allocation2 + $0x20] sm:$0xff] %vm1204_vm8, %v1165_v2 }
 0x1a9   : > { %v1117_v62 = vpop.permute.xlu1 %1116 }
 0x1aa   : > { %1152 = vst.msk [vmem:[#allocation2 + $0x68] sm:$0xff] %vm1138_vm7, %v1117_v62  ;;  %v1167_v1 = vpop.permute.xlu0 %1166 }
 0x1ab   : > { %1210 = vst.msk [vmem:[#allocation2 + $0x28] sm:$0xff] %vm1204_vm8, %v1167_v1 }
 0x1ad   : > { %v1181_v14 = vpop.permute.xlu1 %1180 }
 0x1ae   : > { %1217 = vst.msk [vmem:[#allocation2 + $0x60] sm:$0xff] %vm1204_vm8, %v1181_v14  ;;  %v1242_v54 = vpop.permute.xlu0 %1241 }
 0x1af   : > { %1286 = vst.msk [vmem:[#allocation2 + $0x20] sm:$0xff] %vm1281_vm9, %v1242_v54 }
 0x1b1   : > { %v1183_v61 = vpop.permute.xlu1 %1182 }
 0x1b2   : > { %1218 = vst.msk [vmem:[#allocation2 + $0x68] sm:$0xff] %vm1204_vm8, %v1183_v61  ;;  %v1244_v63 = vpop.permute.xlu0 %1243 }
 0x1b3   : > { %1287 = vst.msk [vmem:[#allocation2 + $0x28] sm:$0xff] %vm1281_vm9, %v1244_v63 }
 0x1b5   : > { %v1258_v4 = vpop.permute.xlu1 %1257 }
 0x1b6   : > { %1294 = vst.msk [vmem:[#allocation2 + $0x60] sm:$0xff] %vm1281_vm9, %v1258_v4  ;;  %v1311_v0 = vpop.permute.xlu0 %1310 }
 0x1b7   : > { %1355 = vst.msk [vmem:[#allocation2 + $0x20] sm:$0xff] %vm1350_vm10, %v1311_v0 }
 0x1b9   : > { %v1260_v16 = vpop.permute.xlu1 %1259 }
 0x1ba   : > { %1295 = vst.msk [vmem:[#allocation2 + $0x68] sm:$0xff] %vm1281_vm9, %v1260_v16  ;;  %v1313_v17 = vpop.permute.xlu0 %1312 }
 0x1bb   : > { %1356 = vst.msk [vmem:[#allocation2 + $0x28] sm:$0xff] %vm1350_vm10, %v1313_v17 }
 0x1bd   : > { %v1327_v39 = vpop.permute.xlu1 %1326 }
 0x1be   : > { %1363 = vst.msk [vmem:[#allocation2 + $0x60] sm:$0xff] %vm1350_vm10, %v1327_v39  ;;  %v1377_v59 = vpop.permute.xlu0 %1376 }
 0x1bf   : > { %1421 = vst.msk [vmem:[#allocation2 + $0x20] sm:$0xff] %vm1416_vm11, %v1377_v59 }
 0x1c1   : > { %v1329_v34 = vpop.permute.xlu1 %1328 }
 0x1c2   : > { %1364 = vst.msk [vmem:[#allocation2 + $0x68] sm:$0xff] %vm1350_vm10, %v1329_v34  ;;  %v1379_v19 = vpop.permute.xlu0 %1378 }
 0x1c3   : > { %1422 = vst.msk [vmem:[#allocation2 + $0x28] sm:$0xff] %vm1416_vm11, %v1379_v19 }
 0x1c5   : > { %v1393_v33 = vpop.permute.xlu1 %1392 }
 0x1c6   : > { %1429 = vst.msk [vmem:[#allocation2 + $0x60] sm:$0xff] %vm1416_vm11, %v1393_v33  ;;  %v1454_v26 = vpop.permute.xlu0 %1453 }
 0x1c7   : > { %1498 = vst.msk [vmem:[#allocation2 + $0x20] sm:$0xff] %vm1493_vm12, %v1454_v26 }
 0x1c9   : > { %v1395_v10 = vpop.permute.xlu1 %1394 }
 0x1ca   : > { %1430 = vst.msk [vmem:[#allocation2 + $0x68] sm:$0xff] %vm1416_vm11, %v1395_v10  ;;  %v1456_v6 = vpop.permute.xlu0 %1455 }
 0x1cb   : > { %1499 = vst.msk [vmem:[#allocation2 + $0x28] sm:$0xff] %vm1493_vm12, %v1456_v6 }
 0x1cd   : > { %v1470_v58 = vpop.permute.xlu1 %1469 }
 0x1ce   : > { %1506 = vst.msk [vmem:[#allocation2 + $0x60] sm:$0xff] %vm1493_vm12, %v1470_v58  ;;  %v1523_v48 = vpop.permute.xlu0 %1522 }
 0x1cf   : > { %1567 = vst.msk [vmem:[#allocation2 + $0x20] sm:$0xff] %vm1562_vm13, %v1523_v48 }
 0x1d1   : > { %v1472_v44 = vpop.permute.xlu1 %1471 }
 0x1d2   : > { %1507 = vst.msk [vmem:[#allocation2 + $0x68] sm:$0xff] %vm1493_vm12, %v1472_v44  ;;  %v957_v30 = vpop.permute.xlu0 %956 }
 0x1d3   : > { %999 = vst.msk [vmem:[#allocation2 + $0x30] sm:$0xff] %vm992_vm6, %v957_v30 }
 0x1d5   : > { %v1539_v20 = vpop.permute.xlu1 %1538 }
 0x1d6   : > { %1575 = vst.msk [vmem:[#allocation2 + $0x60] sm:$0xff] %vm1562_vm13, %v1539_v20  ;;  %v1525_v40 = vpop.permute.xlu0 %1524  ;;  %v1583_v5 = vld [vmem:[#allocation2 + $0x20] sm:$0xff] }
 0x1d7   : > { %1568 = vst.msk [vmem:[#allocation2 + $0x28] sm:$0xff] %vm1562_vm13, %v1525_v40  ;;  %2560 = vmatprep.mubr.msk.bf16.mxu0 %vm1631_vm14, %v1583_v5 }
 0x1d9   : > { %v973_v8 = vpop.permute.xlu1 %972 }
 0x1da   : > { %1007 = vst.msk [vmem:[#allocation2 + $0x70] sm:$0xff] %vm992_vm6, %v973_v8  ;;  %v959_v21 = vpop.permute.xlu0 %958 }
 0x1db   : > { %1000 = vst.msk [vmem:[#allocation2 + $0x38] sm:$0xff] %vm992_vm6, %v959_v21 }
 0x1dd   : > { %v1541_v22 = vpop.permute.xlu1 %1540  ;;  %v1591_v25 = vld [vmem:[#allocation2 + $0x60] sm:$0xff] }
 0x1de   : > { %1576 = vst.msk [vmem:[#allocation2 + $0x68] sm:$0xff] %vm1562_vm13, %v1541_v22  ;;  %2576 = vmatprep.mubr.msk.bf16.mxu1 %vm1631_vm14, %v1591_v25  ;;  %v1103_v13 = vpop.permute.xlu0 %1102  ;;  %v1584_v9 = vld [vmem:[#allocation2 + $0x28] sm:$0xff] }
 0x1df   : > { %1145 = vst.msk [vmem:[#allocation2 + $0x30] sm:$0xff] %vm1138_vm7, %v1103_v13  ;;  %2561 = vmatmul.mubr.msk.bf16.gmra.mrb[8].mxu0 %vm1631_vm14, %v1584_v9 }
 0x1e1   : > { %v975_v56 = vpop.permute.xlu1 %974 }
 0x1e2   : > { %1008 = vst.msk [vmem:[#allocation2 + $0x78] sm:$0xff] %vm992_vm6, %v975_v56  ;;  %v1105_v27 = vpop.permute.xlu0 %1104 }
 0x1e3   : > { %1146 = vst.msk [vmem:[#allocation2 + $0x38] sm:$0xff] %vm1138_vm7, %v1105_v27  ;;  %v3005_v27 = vmov (!%p2406_p12), 0.0  }
 0x1e4   : > { %1850 = vst.msk [vmem:[#allocation12] sm:$0x1] (!%p2406_p12), %vm1849_vm15, %v3005_v27  ;;  %1851 = vst.msk [vmem:[#allocation14] sm:$0x1] (!%p2406_p12), %vm1849_vm15, %v3005_v27 }
 0x1e5   : > { %v1119_v35 = vpop.permute.xlu1 %1118  ;;  %v1592_v28 = vld [vmem:[#allocation2 + $0x68] sm:$0xff] }
 0x1e6   : > { %1153 = vst.msk [vmem:[#allocation2 + $0x70] sm:$0xff] %vm1138_vm7, %v1119_v35  ;;  %2577 = vmatmul.mubr.msk.bf16.gmra.mrb[8].mxu1 %vm1631_vm14, %v1592_v28  ;;  %v1169_v60 = vpop.permute.xlu0 %1168 }
 0x1e7   : > { %1211 = vst.msk [vmem:[#allocation2 + $0x30] sm:$0xff] %vm1204_vm8, %v1169_v60 }
 0x1e9   : > { %v1121_v36 = vpop.permute.xlu1 %1120 }
 0x1ea   : > { %1154 = vst.msk [vmem:[#allocation2 + $0x78] sm:$0xff] %vm1138_vm7, %v1121_v36  ;;  %v1171_v11 = vpop.permute.xlu0 %1170 }
 0x1eb   : > { %1212 = vst.msk [vmem:[#allocation2 + $0x38] sm:$0xff] %vm1204_vm8, %v1171_v11 }
 0x1ed   : > { %v1185_v18 = vpop.permute.xlu1 %1184 }
 0x1ee   : > { %1219 = vst.msk [vmem:[#allocation2 + $0x70] sm:$0xff] %vm1204_vm8, %v1185_v18  ;;  %v1246_v43 = vpop.permute.xlu0 %1245 }
 0x1ef   : > { %1288 = vst.msk [vmem:[#allocation2 + $0x30] sm:$0xff] %vm1281_vm9, %v1246_v43 }
 0x1f1   : > { %v1187_v50 = vpop.permute.xlu1 %1186 }
 0x1f2   : > { %1220 = vst.msk [vmem:[#allocation2 + $0x78] sm:$0xff] %vm1204_vm8, %v1187_v50  ;;  %v1248_v23 = vpop.permute.xlu0 %1247 }
 0x1f3   : > { %1289 = vst.msk [vmem:[#allocation2 + $0x38] sm:$0xff] %vm1281_vm9, %v1248_v23 }
 0x1f5   : > { %v1262_v38 = vpop.permute.xlu1 %1261 }
 0x1f6   : > { %1296 = vst.msk [vmem:[#allocation2 + $0x70] sm:$0xff] %vm1281_vm9, %v1262_v38  ;;  %v1315_v15 = vpop.permute.xlu0 %1314 }
 0x1f7   : > { %1357 = vst.msk [vmem:[#allocation2 + $0x30] sm:$0xff] %vm1350_vm10, %v1315_v15 }
 0x1f9   : > { %v1264_v46 = vpop.permute.xlu1 %1263 }
 0x1fa   : > { %1297 = vst.msk [vmem:[#allocation2 + $0x78] sm:$0xff] %vm1281_vm9, %v1264_v46  ;;  %v1317_v57 = vpop.permute.xlu0 %1316 }
 0x1fb   : > { %1358 = vst.msk [vmem:[#allocation2 + $0x38] sm:$0xff] %vm1350_vm10, %v1317_v57 }
 0x1fd   : > { %v1331_v47 = vpop.permute.xlu1 %1330 }
 0x1fe   : > { %1365 = vst.msk [vmem:[#allocation2 + $0x70] sm:$0xff] %vm1350_vm10, %v1331_v47  ;;  %v1381_v49 = vpop.permute.xlu0 %1380 }
 0x1ff   : > { %1423 = vst.msk [vmem:[#allocation2 + $0x30] sm:$0xff] %vm1416_vm11, %v1381_v49 }
 0x201   : > { %v1333_v42 = vpop.permute.xlu1 %1332 }
 0x202   : > { %1366 = vst.msk [vmem:[#allocation2 + $0x78] sm:$0xff] %vm1350_vm10, %v1333_v42  ;;  %v1383_v55 = vpop.permute.xlu0 %1382 }
 0x203   : > { %1424 = vst.msk [vmem:[#allocation2 + $0x38] sm:$0xff] %vm1416_vm11, %v1383_v55 }
 0x205   : > { %v1397_v31 = vpop.permute.xlu1 %1396 }
 0x206   : > { %1431 = vst.msk [vmem:[#allocation2 + $0x70] sm:$0xff] %vm1416_vm11, %v1397_v31  ;;  %v1458_v45 = vpop.permute.xlu0 %1457 }
 0x207   : > { %1500 = vst.msk [vmem:[#allocation2 + $0x30] sm:$0xff] %vm1493_vm12, %v1458_v45 }
 0x209   : > { %v1399_v53 = vpop.permute.xlu1 %1398 }
 0x20a   : > { %1432 = vst.msk [vmem:[#allocation2 + $0x78] sm:$0xff] %vm1416_vm11, %v1399_v53  ;;  %v1460_v51 = vpop.permute.xlu0 %1459 }
 0x20b   : > { %1501 = vst.msk [vmem:[#allocation2 + $0x38] sm:$0xff] %vm1493_vm12, %v1460_v51 }
 0x20d   : > { %v1474_v32 = vpop.permute.xlu1 %1473 }
 0x20e   : > { %1508 = vst.msk [vmem:[#allocation2 + $0x70] sm:$0xff] %vm1493_vm12, %v1474_v32  ;;  %v1527_v12 = vpop.permute.xlu0 %1526 }
 0x20f   : > { %1569 = vst.msk [vmem:[#allocation2 + $0x30] sm:$0xff] %vm1562_vm13, %v1527_v12 }
 0x211   : > { %v1476_v3 = vpop.permute.xlu1 %1475 }
 0x212   : > { %1509 = vst.msk [vmem:[#allocation2 + $0x78] sm:$0xff] %vm1493_vm12, %v1476_v3  ;;  %v1529_v37 = vpop.permute.xlu0 %1528 }
 0x213   : > { %1570 = vst.msk [vmem:[#allocation2 + $0x38] sm:$0xff] %vm1562_vm13, %v1529_v37 }
 0x215   : > { %v1543_v29 = vpop.permute.xlu1 %1542 }
 0x216   : > { %1577 = vst.msk [vmem:[#allocation2 + $0x70] sm:$0xff] %vm1562_vm13, %v1543_v29  ;;  %v1585_v24 = vld [vmem:[#allocation2 + $0x30] sm:$0xff] }
 0x217   : > { %2564 = vmatprep.mubr.msk.bf16.mxu0 %vm1631_vm14, %v1585_v24 }
 0x219   : > { %v1545_v52 = vpop.permute.xlu1 %1544 }
 0x21a   : > { %1578 = vst.msk [vmem:[#allocation2 + $0x78] sm:$0xff] %vm1562_vm13, %v1545_v52  ;;  %v1586_v41 = vld [vmem:[#allocation2 + $0x38] sm:$0xff] }
 0x21b   : > { %2565 = vmatmul.mubr.msk.bf16.gmra.mrb[12].mxu0 %vm1631_vm14, %v1586_v41 }
 0x21d   : > { %v1593_v7 = vld [vmem:[#allocation2 + $0x70] sm:$0xff] }
 0x21e   : > { %2580 = vmatprep.mubr.msk.bf16.mxu1 %vm1631_vm14, %v1593_v7 }
 0x221   : > { %v1594_v2 = vld [vmem:[#allocation2 + $0x78] sm:$0xff] }
 0x222   : > { %2581 = vmatmul.mubr.msk.bf16.gmra.mrb[12].mxu1 %vm1631_vm14, %v1594_v2 }
 0x232   : > { %v4100_v62 = vpop.f32.mrb[0].mxu0 }
 0x233   : > { %v4102_v1 = vpop.f32.mrb[1].mxu0 }
 0x234   : > { %v4104_v14 = vpop.f32.mrb[2].mxu0 }
 0x235   : > { %v4106_v54 = vpop.f32.mrb[3].mxu0 }
 0x239   : > { %v4108_v61 = vpop.f32.mrb[0].mxu1 }
 0x23a   : > { %v4110_v63 = vpop.f32.mrb[1].mxu1 }
 0x23b   : > { %v4112_v4 = vpop.f32.mrb[2].mxu1 }
 0x23c   : > { %v4114_v0 = vpop.f32.mrb[3].mxu1 }
 0x272   : > { %v4116_v16 = vpop.f32.mrb[4].mxu0 }
 0x273   : > { %v4118_v17 = vpop.f32.mrb[5].mxu0 }
 0x274   : > { %v4120_v39 = vpop.f32.mrb[6].mxu0 }
 0x275   : > { %v4122_v59 = vpop.f32.mrb[7].mxu0 }
 0x279   : > { %v4124_v34 = vpop.f32.mrb[4].mxu1 }
 0x27a   : > { %v4126_v19 = vpop.f32.mrb[5].mxu1 }
 0x27b   : > { %v4128_v33 = vpop.f32.mrb[6].mxu1 }
 0x27c   : > { %v4130_v26 = vpop.f32.mrb[7].mxu1 }
 0x2b2   : > { %v4132_v10 = vpop.f32.mrb[8].mxu0 }
 0x2b3   : > { %v4134_v6 = vpop.f32.mrb[9].mxu0 }
 0x2b4   : > { %v4136_v58 = vpop.f32.mrb[10].mxu0 }
 0x2b5   : > { %v4138_v48 = vpop.f32.mrb[11].mxu0 }
 0x2b9   : > { %v4140_v44 = vpop.f32.mrb[8].mxu1 }
 0x2ba   : > { %v4142_v30 = vpop.f32.mrb[9].mxu1 }
 0x2bb   : > { %v4144_v20 = vpop.f32.mrb[10].mxu1 }
 0x2bc   : > { %v4146_v40 = vpop.f32.mrb[11].mxu1 }
 0x2ee   : > { %v4148_v5 = vpop.f32.mrb[12].mxu0 }
 0x2ef   : > { %v4150_v8 = vpop.f32.mrb[13].mxu0 }
 0x2f0   : > { %v4152_v21 = vpop.f32.mrb[14].mxu0 }
 0x2f1   : > { %v4154_v22 = vpop.f32.mrb[15].mxu0 }
 0x2f2   : > { %1848 = sbr.rel (%p2406_p12) target bundleno = 761 (0x2f9), region = 56 }
 0x2f5   : > { %v4156_v25 = vpop.f32.mrb[12].mxu1 }
 0x2f6   : > { %v4158_v13 = vpop.f32.mrb[13].mxu1 }
 0x2f7   : > { %v4160_v9 = vpop.f32.mrb[14].mxu1 }
 0x2f8   : > { %v4162_v56 = vpop.f32.mrb[15].mxu1 }
 0x2f9 PF: > { %v1853_v35 = vsel %vm734_vm0, %v4102_v1, 0.0  ;;  %v1854_v28 = vsel %vm734_vm0, %v4106_v54, 0.0  ;;  %v1856_v60 = vsel %vm734_vm0, %v4100_v62, 0.0  ;;  %v1858_v11 = vsel %vm734_vm0, %v4104_v14, 0.0  ;;  %s2480_s1 = sshll.u32 %s2979_s24, 11  ;;  %s2205_s19 = sshll.u32 %s4166_s2, 4  ;;  %s4411_s19 = int_to_ptr.vmem [resolvable:$true] %s2205_s19 }
 0x2fa   : > { %v1855_v36 = vadd.f32 %v1854_v28, %v1853_v35  ;;  %v1860_v43 = vsel %vm734_vm0, %v4118_v17, 0.0  ;;  %v1862_v23 = vsel %vm734_vm0, %v4122_v59, 0.0  ;;  %v1864_v15 = vsel %vm734_vm0, %v4116_v16, 0.0  ;;  %s4393_s18 = scalar_lea.hbm %s4585_s4, %s2480_s1  ;;  %s2191_s14 = scalar_lea.sflag [#allocation5], %s3256_s15 }
 0x2fb   : > { %v1866_v57 = vsel %vm734_vm0, %v4120_v39, 0.0  ;;  %v1868_v49 = vsel %vm734_vm0, %v4134_v6, 0.0  ;;  %v1870_v55 = vsel %vm734_vm0, %v4138_v48, 0.0  ;;  %v1926_v31 = vmul.f32 %v4102_v1, %v4102_v1  ;;  %s2841_s7 = scalar_lea.vmem %s4411_s19, 2048  ;;  %s3006_s29 = smov [#allocation11]  }
 0x2fc   : > { %v1857_v18 = vadd.f32 %v1856_v60, %v1855_v36  ;;  %v1927_v45 = vmul.f32 %v4106_v54, %v4106_v54  ;;  %v1928_v51 = vmul.f32 %v4100_v62, %v4100_v62  ;;  %v1872_v32 = vsel %vm734_vm0, %v4132_v10, 0.0  ;;  %p2842_p1 = scmp.ne.s32.totalorder %s4411_s19, %s2841_s7  ;;  %s2845_s9 = sshll.u32 %s3006_s29, 4  ;;  %s2846_s9 = int_to_ptr.vmem [resolvable:$false] %s2845_s9 }
 0x2fd   : > { %v1929_v12 = vmul.f32 %v4104_v14, %v4104_v14  ;;  %v1874_v37 = vsel %vm734_vm0, %v4136_v58, 0.0  ;;  %v1876_v29 = vsel %vm734_vm0, %v4150_v8, 0.0  ;;  %v1930_v24 = vmul.f32 %v4118_v17, %v4118_v17  ;;  %s2847_s8 = scalar_lea.vmem %s2846_s9, 4096  ;;  %p2848_p8 = scmp.lt.s32.totalorder %s4411_s19, %s2846_s9 }
 0x2fe   : > { %v1859_v50 = vadd.f32 %v1858_v11, %v1857_v18  ;;  %v1958_v52 = vsel %vm734_vm0, %v1926_v31, 0.0  ;;  %v1959_v41 = vsel %vm734_vm0, %v1927_v45, 0.0  ;;  %v1878_v2 = vsel %vm734_vm0, %v4154_v22, 0.0  ;;  %p2843_p4 = pnand %p2842_p1, %p3197_p2  ;;  %p2849_p0 = scmp.lt.s32.totalorder %s2847_s8, %s2841_s7 }
 0x2ff   : > { %v1960_v27 = vadd.f32 %v1959_v41, %v1958_v52  ;;  %v1961_v35 = vsel %vm734_vm0, %v1928_v51, 0.0  ;;  %v1880_v28 = vsel %vm734_vm0, %v4148_v5, 0.0  ;;  %v1882_v60 = vsel %vm734_vm0, %v4152_v21, 0.0 }
 0x300   : > { %v1861_v38 = vadd.f32 %v1860_v43, %v1859_v50  ;;  %v1931_v36 = vmul.f32 %v4122_v59, %v4122_v59  ;;  %v1963_v11 = vsel %vm734_vm0, %v1929_v12, 0.0  ;;  %v1884_v43 = vsel %vm734_vm0, %v4110_v63, 0.0  ;;  %p2844_p6 = pneg %p2843_p4  ;;  %p2850_p5 = por %p2849_p0, %p2848_p8 }
 0x301   : > { %v1886_v50 = vsel %vm734_vm0, %v4114_v0, 0.0  ;;  %v1936_v31 = vmul.f32 %v4132_v10, %v4132_v10  ;;  %v1937_v45 = vmul.f32 %v4136_v58, %v4136_v58  ;;  %v4243_v12 = vsel %vm734_vm0, %v4112_v4, 0.0 }
 0x302   : > { %v1863_v46 = vadd.f32 %v1862_v23, %v1861_v38  ;;  %v1962_v23 = vadd.f32 %v1961_v35, %v1960_v27  ;;  %v4223_v38 = vsel %vm734_vm0, %v4108_v61, 0.0  ;;  %v1967_v51 = vsel %vm734_vm0, %v1931_v36, 0.0  ;;  %p2851_p10 = pnand %p2850_p5, %p2844_p6 }
 0x303   : > { %v4259_v52 = vmul.f32 %v4148_v5, %v4148_v5  ;;  %vm2157_vm1 = vcmask 60416  }
 0x304   : > { %v1865_v47 = vadd.f32 %v1864_v15, %v1863_v46  ;;  %v1932_v15 = vmul.f32 %v4116_v16, %v4116_v16  ;;  %v1933_v46 = vmul.f32 %v4120_v39, %v4120_v39 }
 0x306   : > { %v1867_v42 = vadd.f32 %v1866_v57, %v1865_v47  ;;  %v1965_v57 = vsel %vm734_vm0, %v1930_v24, 0.0  ;;  %v4255_v24 = vmul.f32 %v4154_v22, %v4154_v22  ;;  %v1969_v41 = vsel %vm734_vm0, %v1932_v15, 0.0 }
 0x307   : > { %v1971_v27 = vsel %vm734_vm0, %v1933_v46, 0.0  ;;  %v2448_v46 = vpack.c.bf16 %v4102_v1, %v4102_v1  ;;  %v2453_v1 = vpack.c.bf16 %v4122_v59, %v4122_v59 }
 0x308   : > { %v1869_v53 = vadd.f32 %v1868_v49, %v1867_v42  ;;  %v1934_v49 = vmul.f32 %v4134_v6, %v4134_v6  ;;  %v1935_v42 = vmul.f32 %v4138_v48, %v4138_v48 }
 0x309   : > { %2158 = vst.msk [vmem:[%s4166_s2] sm:$0xf] %vm2157_vm1, %v2448_v46  ;;  %2163 = vst.msk [vmem:[%s4166_s2 + $0x14] sm:$0xf] %vm2157_vm1, %v2453_v1  ;;  %v1983_v46 = vsel %vm734_vm0, %v4255_v24, 0.0 }
 0x30a   : > { %v1871_v3 = vadd.f32 %v1870_v55, %v1869_v53  ;;  %v1964_v55 = vadd.f32 %v1963_v11, %v1962_v23  ;;  %v1938_v53 = vmul.f32 %v4150_v8, %v4150_v8  ;;  %v1973_v35 = vsel %vm734_vm0, %v1934_v49, 0.0 }
 0x30b   : > { %v1975_v36 = vsel %vm734_vm0, %v1935_v42, 0.0  ;;  %v1977_v11 = vsel %vm734_vm0, %v1936_v31, 0.0  ;;  %v2451_v49 = vpack.c.bf16 %v4104_v14, %v4104_v14  ;;  %v2452_v42 = vpack.c.bf16 %v4118_v17, %v4118_v17 }
 0x30c   : > { %v1873_v7 = vadd.f32 %v1872_v32, %v1871_v3  ;;  %v4247_v3 = vsel %vm734_vm0, %v4126_v19, 0.0  ;;  %v4270_v23 = vsel %vm734_vm0, %v1938_v53, 0.0  ;;  %v2456_v14 = vpack.c.bf16 %v4134_v6, %v4134_v6 }
 0x30d   : > { %2161 = vst.msk [vmem:[%s4166_s2 + $0xc] sm:$0xf] %vm2157_vm1, %v2451_v49  ;;  %2162 = vst.msk [vmem:[%s4166_s2 + $0x10] sm:$0xf] %vm2157_vm1, %v2452_v42  ;;  %v2458_v17 = vpack.c.bf16 %v4132_v10, %v4132_v10  ;;  %v2460_v6 = vpack.c.bf16 %v4150_v8, %v4150_v8  ;;  %v2461_v10 = vpack.c.bf16 %v4154_v22, %v4154_v22  ;;  %v1985_v42 = vsel %vm734_vm0, %v4259_v52, 0.0 }
 0x30e   : > { %v1875_v18 = vadd.f32 %v1874_v37, %v1873_v7  ;;  %v1966_v37 = vadd.f32 %v1965_v57, %v1964_v55  ;;  %v2449_v57 = vpack.c.bf16 %v4106_v54, %v4106_v54  ;;  %v2454_v54 = vpack.c.bf16 %v4116_v16, %v4116_v16  ;;  %2166 = vst.msk [vmem:[%s4166_s2 + $0x20] sm:$0xf] %vm2157_vm1, %v2456_v14 }
 0x30f   : > { %v2457_v16 = vpack.c.bf16 %v4138_v48, %v4138_v48  ;;  %2168 = vst.msk [vmem:[%s4166_s2 + $0x28] sm:$0xf] %vm2157_vm1, %v2458_v17  ;;  %v2463_v48 = vpack.c.bf16 %v4152_v21, %v4152_v21  ;;  %v2464_v8 = vpack.c.bf16 %v4110_v63, %v4110_v63  ;;  %2170 = vst.msk [vmem:[%s4166_s2 + $0x30] sm:$0xf] %vm2157_vm1, %v2460_v6 }
 0x310   : > { %v1877_v47 = vadd.f32 %v1876_v29, %v1875_v18  ;;  %v4251_v29 = vsel %vm734_vm0, %v4130_v26, 0.0  ;;  %v4267_v18 = vsel %vm734_vm0, %v1937_v45, 0.0  ;;  %2159 = vst.msk [vmem:[%s4166_s2 + $0x4] sm:$0xf] %vm2157_vm1, %v2449_v57  ;;  %2164 = vst.msk [vmem:[%s4166_s2 + $0x18] sm:$0xf] %vm2157_vm1, %v2454_v54  ;;  %v2465_v22 = vpack.c.bf16 %v4114_v0, %v4114_v0 }
 0x311   : > { %2167 = vst.msk [vmem:[%s4166_s2 + $0x24] sm:$0xf] %vm2157_vm1, %v2457_v16  ;;  %2171 = vst.msk [vmem:[%s4166_s2 + $0x34] sm:$0xf] %vm2157_vm1, %v2461_v10  ;;  %v2468_v45 = vpack.c.bf16 %v4126_v19, %v4126_v19  ;;  %v2469_v53 = vpack.c.bf16 %v4130_v26, %v4130_v26  ;;  %v2479_v57 = vpack.c.bf16 %v4160_v9, %v4160_v9 }
 0x312   : > { %v1879_v32 = vadd.f32 %v1878_v2, %v1877_v47  ;;  %v1968_v2 = vadd.f32 %v1967_v51, %v1966_v37  ;;  %v2450_v47 = vpack.c.bf16 %v4100_v62, %v4100_v62  ;;  %v2455_v62 = vpack.c.bf16 %v4120_v39, %v4120_v39  ;;  %2173 = vst.msk [vmem:[%s4166_s2 + $0x3c] sm:$0xf] %vm2157_vm1, %v2463_v48 }
 0x313   : > { %v2459_v39 = vpack.c.bf16 %v4136_v58, %v4136_v58  ;;  %v2462_v58 = vpack.c.bf16 %v4148_v5, %v4148_v5  ;;  %v2466_v5 = vpack.c.bf16 %v4108_v61, %v4108_v61  ;;  %2174 = vst.msk [vmem:[%s4166_s2 + $0x40] sm:$0xf] %vm2157_vm1, %v2464_v8  ;;  %v2470_v51 = vpack.c.bf16 %v4124_v34, %v4124_v34 }
 0x314   : > { %v1881_v7 = vadd.f32 %v1880_v28, %v1879_v32  ;;  %v1970_v15 = vadd.f32 %v1969_v41, %v1968_v2  ;;  %2160 = vst.msk [vmem:[%s4166_s2 + $0x8] sm:$0xf] %vm2157_vm1, %v2450_v47  ;;  %2165 = vst.msk [vmem:[%s4166_s2 + $0x1c] sm:$0xf] %vm2157_vm1, %v2455_v62  ;;  %v2471_v41 = vpack.c.bf16 %v4128_v33, %v4128_v33  ;;  %v1898_v47 = vsel %vm734_vm0, %v4128_v33, 0.0 }
 0x315   : > { %2169 = vst.msk [vmem:[%s4166_s2 + $0x2c] sm:$0xf] %vm2157_vm1, %v2459_v39  ;;  %2172 = vst.msk [vmem:[%s4166_s2 + $0x38] sm:$0xf] %vm2157_vm1, %v2462_v58  ;;  %v2474_v2 = vpack.c.bf16 %v4140_v44, %v4140_v44  ;;  %v1942_v49 = vmul.f32 %v4110_v63, %v4110_v63 }
 0x316   : > { %v1883_v28 = vadd.f32 %v1882_v60, %v1881_v7  ;;  %v1972_v55 = vadd.f32 %v1971_v27, %v1970_v15  ;;  %2175 = vst.msk [vmem:[%s4166_s2 + $0x44] sm:$0xf] %vm2157_vm1, %v2465_v22  ;;  %2176 = vst.msk [vmem:[%s4166_s2 + $0x48] sm:$0xf] %vm2157_vm1, %v2466_v5  ;;  %v2472_v7 = vpack.c.bf16 %v4142_v30, %v4142_v30 }
 0x317   : > { %2178 = vst.msk [vmem:[%s4166_s2 + $0x50] sm:$0xf] %vm2157_vm1, %v2468_v45  ;;  %2179 = vst.msk [vmem:[%s4166_s2 + $0x54] sm:$0xf] %vm2157_vm1, %v2469_v53  ;;  %v2475_v27 = vpack.c.bf16 %v4144_v20, %v4144_v20  ;;  %v2478_v15 = vpack.c.bf16 %v4156_v25, %v4156_v25 }
 0x318   : > { %v1885_v60 = vadd.f32 %v1884_v43, %v1883_v28  ;;  %v1974_v43 = vadd.f32 %v1973_v35, %v1972_v55  ;;  %2180 = vst.msk [vmem:[%s4166_s2 + $0x58] sm:$0xf] %vm2157_vm1, %v2470_v51  ;;  %v2476_v35 = vpack.c.bf16 %v4158_v13, %v4158_v13  ;;  %2181 = vst.msk [vmem:[%s4166_s2 + $0x5c] sm:$0xf] %vm2157_vm1, %v2471_v41 }
 0x319   : > { %2182 = vst.msk [vmem:[%s4166_s2 + $0x60] sm:$0xf] %vm2157_vm1, %v2472_v7  ;;  %v2477_v28 = vpack.c.bf16 %v4162_v56, %v4162_v56  ;;  %2184 = vst.msk [vmem:[%s4166_s2 + $0x68] sm:$0xf] %vm2157_vm1, %v2474_v2 }
 0x31a   : > { %v1887_v59 = vadd.f32 %v1886_v50, %v1885_v60  ;;  %v1976_v31 = vadd.f32 %v1975_v36, %v1974_v43  ;;  %2185 = vst.msk [vmem:[%s4166_s2 + $0x6c] sm:$0xf] %vm2157_vm1, %v2475_v27  ;;  %2186 = vst.msk [vmem:[%s4166_s2 + $0x70] sm:$0xf] %vm2157_vm1, %v2476_v35 }
 0x31b   : > { %2187 = vst.msk [vmem:[%s4166_s2 + $0x74] sm:$0xf] %vm2157_vm1, %v2477_v28  ;;  %2188 = vst.msk [vmem:[%s4166_s2 + $0x78] sm:$0xf] %vm2157_vm1, %v2478_v15 }
 0x31c   : > { %v1889_v50 = vadd.f32 %v4223_v38, %v1887_v59  ;;  %v2467_v38 = vpack.c.bf16 %v4112_v4, %v4112_v4  ;;  %v1978_v37 = vadd.f32 %v1977_v11, %v1976_v31  ;;  %2189 = vst.msk [vmem:[%s4166_s2 + $0x7c] sm:$0xf] %vm2157_vm1, %v2479_v57 }
 0x31e   : > { %v1891_v32 = vadd.f32 %v4243_v12, %v1889_v50  ;;  %2177 = vst.msk [vmem:[%s4166_s2 + $0x4c] sm:$0xf] %vm2157_vm1, %v2467_v38  ;;  %v2473_v12 = vpack.c.bf16 %v4146_v40, %v4146_v40  ;;  %v1980_v11 = vadd.f32 %v4267_v18, %v1978_v37  ;;  %v1941_v18 = vmul.f32 %v4152_v21, %v4152_v21 }
 0x320   : > { %v1893_v36 = vadd.f32 %v4247_v3, %v1891_v32  ;;  %v1896_v3 = vsel %vm734_vm0, %v4124_v34, 0.0  ;;  %2183 = vst.msk [vmem:[%s4166_s2 + $0x64] sm:$0xf] %vm2157_vm1, %v2473_v12  ;;  %v1982_v24 = vadd.f32 %v4270_v23, %v1980_v11 }
 0x322   : > { %v1895_v21 = vadd.f32 %v4251_v29, %v1893_v36  ;;  %v1984_v29 = vadd.f32 %v1983_v46, %v1982_v24 }
 0x324   : > { %v1897_v60 = vadd.f32 %v1896_v3, %v1895_v21 }
 0x325   : > { %2854 = shalt.err (!%p2851_p10)
}
 0x326   : > { %s2855_s28 = scalar_lea.hbm %s4393_s18, 2048  ;;  %s2859_s16 = scalar_lea.hbm %s4585_s4, 4096 }
 0x327   : > { %p2856_p13 = scmp.ne.s32.totalorder %s4393_s18, %s2855_s28  ;;  %p2860_p7 = scmp.lt.u32.totalorder %s4393_s18, %s4585_s4 }
 0x328   : > { %p2861_p11 = scmp.lt.u32.totalorder %s2859_s16, %s2855_s28  ;;  %p2863_p1 = scmp.lt.u32.totalorder %s2855_s28, %s4393_s18 }
 0x329   : > { %p2857_p9 = pnand %p2856_p13, %p3197_p2 }
 0x32a   : > { %p2862_p12 = por %p2861_p11, %p2860_p7 }
 0x32b   : > { %p2858_p3 = pneg %p2857_p9 }
 0x32c   : > { %p2864_p4 = por %p2863_p1, %p2862_p12 }
 0x32e   : > { %p2865_p6 = pnand %p2864_p4, %p2858_p3 }
 0x330   : > { %2868 = shalt.err (!%p2865_p6)
}
 0x331   : > { %s3007_s24 = smov 4   ;;  %v1900_v63 = vsel %vm734_vm0, %v4142_v30, 0.0  ;;  %v1943_v52 = vmul.f32 %v4114_v0, %v4114_v0  ;;  %v1987_v23 = vsel %vm734_vm0, %v1941_v18, 0.0  ;;  %v1899_v55 = vadd.f32 %v1898_v47, %v1897_v60  ;;  %s3008_s10 = smov [#allocation12]  }
 0x332   : > { %2613 = dma.vmem_to_hbm [thread:$0]  (%p3197_p2), %s4411_s19, 2048, %s4393_s18, %s2191_s14, %s3004_s12, %s3004_s12, %s3007_s24   ;;  %v1986_v1 = vadd.f32 %v1985_v42, %v1984_v29  ;;  %v1902_v54 = vsel %vm734_vm0, %v4146_v40, 0.0  ;;  %v1944_v62 = vmul.f32 %v4108_v61, %v4108_v61  ;;  %v1989_v14 = vsel %vm734_vm0, %v1942_v49, 0.0 }
 0x333   : > { %v1901_v16 = vadd.f32 %v1900_v63, %v1899_v55  ;;  %v1904_v59 = vsel %vm734_vm0, %v4140_v44, 0.0  ;;  %v1945_v0 = vmul.f32 %v4112_v4, %v4112_v4  ;;  %v1991_v43 = vsel %vm734_vm0, %v1943_v52, 0.0  ;;  %s2221_s15 = sshll.u32 %s3008_s10, 4  ;;  %p4616_p8 = scmp.ne.s32.totalorder %s4599_s30, 0  ;;  %s2222_s15 = int_to_ptr.vmem [resolvable:$true] %s2221_s15 }
 0x334   : > { %v1988_v17 = vadd.f32 %v1987_v23, %v1986_v1  ;;  %v1906_v10 = vsel %vm734_vm0, %v4144_v20, 0.0  ;;  %v1946_v61 = vmul.f32 %v4126_v19, %v4126_v19  ;;  %v1993_v58 = vsel %vm734_vm0, %v1944_v62, 0.0  ;;  %v1852_v1 = vld [vmem:[#allocation12] sm:$0x1]  ;;  %s2869_s12 = scalar_lea.vmem %s2222_s15, 16  ;;  %s2875_s19 = scalar_lea.vmem %s2222_s15, 32 }
 0x335   : > { %v1903_v39 = vadd.f32 %v1902_v54, %v1901_v16  ;;  %v1908_v50 = vsel %vm734_vm0, %v4158_v13, 0.0  ;;  %v1947_v4 = vmul.f32 %v4130_v26, %v4130_v26  ;;  %v1995_v31 = vsel %vm734_vm0, %v1945_v0, 0.0  ;;  %p2870_p2 = scmp.ne.s32.totalorder %s2222_s15, %s2869_s12  ;;  %p2876_p10 = scmp.lt.s32.totalorder %s2222_s15, %s2222_s15 }
 0x336   : > { %v1990_v6 = vadd.f32 %v1989_v14, %v1988_v17  ;;  %v1910_v38 = vsel %vm734_vm0, %v4162_v56, 0.0  ;;  %v1948_v19 = vmul.f32 %v4124_v34, %v4124_v34  ;;  %v1997_v45 = vsel %vm734_vm0, %v1946_v61, 0.0  ;;  %p2877_p13 = scmp.lt.s32.totalorder %s2875_s19, %s2869_s12 }
 0x337   : > { %v1905_v48 = vadd.f32 %v1904_v59, %v1903_v39  ;;  %v1912_v32 = vsel %vm734_vm0, %v4156_v25, 0.0  ;;  %v1949_v26 = vmul.f32 %v4128_v33, %v4128_v33  ;;  %v1999_v37 = vsel %vm734_vm0, %v1947_v4, 0.0  ;;  %p2871_p0 = pnand %p2870_p2, %p4616_p8 }
 0x338   : > { %v1992_v8 = vadd.f32 %v1991_v43, %v1990_v6  ;;  %v1914_v12 = vsel %vm734_vm0, %v4160_v9, 0.0  ;;  %v1950_v34 = vmul.f32 %v4142_v30, %v4142_v30  ;;  %v2001_v2 = vsel %vm734_vm0, %v1948_v19, 0.0  ;;  %p2878_p9 = por %p2877_p13, %p2876_p10 }
 0x339   : > { %v1907_v22 = vadd.f32 %v1906_v10, %v1905_v48  ;;  %v1951_v36 = vmul.f32 %v4146_v40, %v4146_v40  ;;  %v2003_v11 = vsel %vm734_vm0, %v1949_v26, 0.0  ;;  %v1952_v15 = vmul.f32 %v4140_v44, %v4140_v44  ;;  %p2872_p5 = pneg %p2871_p0 }
 0x33a   : > { %v1994_v5 = vadd.f32 %v1993_v58, %v1992_v8  ;;  %v2005_v3 = vsel %vm734_vm0, %v1950_v34, 0.0  ;;  %v1953_v30 = vmul.f32 %v4144_v20, %v4144_v20  ;;  %v1954_v40 = vmul.f32 %v4158_v13, %v4158_v13 }
 0x33b   : > { %v1909_v53 = vadd.f32 %v1908_v50, %v1907_v22  ;;  %v2007_v57 = vsel %vm734_vm0, %v1951_v36, 0.0  ;;  %v2009_v47 = vsel %vm734_vm0, %v1952_v15, 0.0  ;;  %v1955_v44 = vmul.f32 %v4162_v56, %v4162_v56  ;;  %p2879_p3 = pnand %p2878_p9, %p2872_p5 }
 0x33c   : > { %v1996_v51 = vadd.f32 %v1995_v31, %v1994_v5  ;;  %v2011_v60 = vsel %vm734_vm0, %v1953_v30, 0.0  ;;  %v1956_v20 = vmul.f32 %v4156_v25, %v4156_v25  ;;  %v2013_v52 = vsel %vm734_vm0, %v1954_v40, 0.0 }
 0x33d   : > { %v1911_v41 = vadd.f32 %v1910_v38, %v1909_v53  ;;  %v1957_v13 = vmul.f32 %v4160_v9, %v4160_v9  ;;  %v2015_v54 = vsel %vm734_vm0, %v1955_v44, 0.0  ;;  %vm1923_vm2 = vcmask 57344  }
 0x33e   : > { %v1998_v7 = vadd.f32 %v1997_v45, %v1996_v51  ;;  %v2017_v14 = vsel %vm734_vm0, %v1956_v20, 0.0 }
 0x33f   : > { %v1913_v27 = vadd.f32 %v1912_v32, %v1911_v41  ;;  %v2019_v17 = vsel %vm734_vm0, %v1957_v13, 0.0 }
 0x340   : > { %v2000_v35 = vadd.f32 %v1999_v37, %v1998_v7 }
 0x341   : > { %v1915_v33 = vadd.f32 %v1914_v12, %v1913_v27 }
 0x342   : > { %v2002_v28 = vadd.f32 %v2001_v2, %v2000_v35 }
 0x343   : > { %v1916_v18 = vrot.slane %v1915_v33, 4 }
 0x344   : > { %v2004_v46 = vadd.f32 %v2003_v11, %v2002_v28 }
 0x345   : > { %v1917_v21 = vadd.f32 %v1916_v18, %v1915_v33 }
 0x346   : > { %v2006_v24 = vadd.f32 %v2005_v3, %v2004_v46 }
 0x347   : > { %v1918_v49 = vrot.slane %v1917_v21, 2 }
 0x348   : > { %v2008_v42 = vadd.f32 %v2007_v57, %v2006_v24 }
 0x349   : > { %v1919_v29 = vadd.f32 %v1918_v49, %v1917_v21 }
 0x34a   : > { %v2010_v63 = vadd.f32 %v2009_v47, %v2008_v42 }
 0x34b   : > { %v1920_v23 = vrot.slane %v1919_v29, 1 }
 0x34c   : > { %v2012_v55 = vadd.f32 %v2011_v60, %v2010_v63 }
 0x34d   : > { %v1921_v56 = vadd.f32 %v1920_v23, %v1919_v29 }
 0x34e   : > { %v2014_v62 = vadd.f32 %v2013_v52, %v2012_v55 }
 0x34f   : > { %v1922_v16 = vadd.f32 %v1921_v56, %v1852_v1 }
 0x350   : > { %v2016_v25 = vadd.f32 %v2015_v54, %v2014_v62 }
 0x351   : > { %1924 = vst.msk [vmem:[#allocation12] sm:$0x1] %vm1923_vm2, %v1922_v16 }
 0x352   : > { %v2018_v59 = vadd.f32 %v2017_v14, %v2016_v25 }
 0x353   : > { %2882 = shalt.err (!%p2879_p3)
}
 0x354   : > { %s2883_s14 = scalar_lea.hbm %s4586_s5, 16 }
 0x355   : > { %p2884_p7 = scmp.ne.s32.totalorder %s4586_s5, %s2883_s14  ;;  %p2889_p1 = scmp.lt.u32.totalorder %s2883_s14, %s4586_s5 }
 0x357   : > { %p2885_p11 = pnand %p2884_p7, %p4616_p8 }
 0x359   : > { %p2886_p12 = pneg %p2885_p11 }
 0x35b   : > { %p2891_p4 = pnand %p2889_p1, %p2886_p12 }
 0x35d   : > { %2894 = shalt.err (!%p2891_p4)
}
 0x35e   : > { %2615 = dma.vmem_to_hbm [thread:$0]  (%p4616_p8), %s2222_s15, 16, %s4586_s5, [#allocation13]   ;;  %v2020_v9 = vadd.f32 %v2019_v17, %v2018_v59  ;;  %v1925_v61 = vld [vmem:[#allocation14] sm:$0x1] }
 0x35f   : > { %s3009_s20 = smov [#allocation14]  }
 0x360   : > { %v2021_v0 = vrot.slane %v2020_v9, 4  ;;  %s2234_s16 = sshll.u32 %s3009_s20, 4  ;;  %s2235_s16 = int_to_ptr.vmem [resolvable:$true] %s2234_s16 }
 0x361   : > { %s2895_s2 = scalar_lea.vmem %s2235_s16, 16  ;;  %s2901_s1 = scalar_lea.vmem %s2235_s16, 32 }
 0x362   : > { %v2022_v43 = vadd.f32 %v2021_v0, %v2020_v9  ;;  %p2896_p6 = scmp.ne.s32.totalorder %s2235_s16, %s2895_s2  ;;  %p2902_p5 = scmp.lt.s32.totalorder %s2235_s16, %s2235_s16 }
 0x363   : > { %p2903_p10 = scmp.lt.s32.totalorder %s2901_s1, %s2895_s2 }
 0x364   : > { %v2023_v39 = vrot.slane %v2022_v43, 2  ;;  %p2897_p2 = pnand %p2896_p6, %p4616_p8 }
 0x365   : > { %p2904_p13 = por %p2903_p10, %p2902_p5 }
 0x366   : > { %v2024_v6 = vadd.f32 %v2023_v39, %v2022_v43  ;;  %p2898_p0 = pneg %p2897_p2 }
 0x368   : > { %v2025_v10 = vrot.slane %v2024_v6, 1  ;;  %p2905_p9 = pnand %p2904_p13, %p2898_p0 }
 0x36a   : > { %v2026_v58 = vadd.f32 %v2025_v10, %v2024_v6 }
 0x36c   : > { %v2027_v48 = vadd.f32 %v2026_v58, %v1925_v61 }
 0x36e   : > { %2028 = vst.msk [vmem:[#allocation14] sm:$0x1] %vm1923_vm2, %v2027_v48 }
 0x36f   : > { %2908 = shalt.err (!%p2905_p9)
}
 0x370   : > { %s2909_s15 = scalar_lea.hbm %s4587_s6, 16 }
 0x371   : > { %p2910_p3 = scmp.ne.s32.totalorder %s4587_s6, %s2909_s15  ;;  %p2915_p12 = scmp.lt.u32.totalorder %s2909_s15, %s4587_s6 }
 0x373   : > { %p2911_p7 = pnand %p2910_p3, %p4616_p8 }
 0x375   : > { %p2912_p11 = pneg %p2911_p7 }
 0x377   : > { %p2917_p1 = pnand %p2915_p12, %p2912_p11 }
 0x379   : > { %2920 = shalt.err (!%p2917_p1)
}
 0x37a   : > { %2617 = dma.vmem_to_hbm [thread:$0]  (%p4616_p8), %s2235_s16, 16, %s4587_s6, [#allocation13]  }
 0x37b   : > { %2958 = dma.done.wait (%p4616_p8), [#allocation13], 32  }
 0x37c   : > { %2960 = vsyncadd (%p4616_p8), [#allocation13], 4294967264 }
 0x37d PF: > { %s4617_s29 = sld [smem:[#allocation20_spill]]  ;;  %s2254_s9 = sand.u32 1, %s2967_s21  }
 0x37e   : > { %p4619_p6 = scmp.ge.s32.totalorder %s2987_s26, 2  ;;  %s2255_s8 = scalar_lea.sflag [#allocation5], %s2254_s9 }
 0x383   : > { %p4618_p4 = scmp.ne.s32.totalorder %s4617_s29, 0 }
 0x385   : > { %p2638_p2 = pnand %p4619_p6, %p4618_p4 }
 0x387   : > { %2962 = dma.done.wait (!%p2638_p2), %s2255_s8, 2048  }
 0x388   : > { %2964 = vsyncadd (!%p2638_p2), %s2255_s8, 4294965248  ;;  %s26_s26 = sadd.s32 1, %s2987_s26   ;;  %s4620_s21 = smov %s2971_s22 }
 0x389   : > { %p23_p0 = scmp.ge.s32.totalorder %s26_s26, 4   ;;  %s4621_s22 = smov %s2975_s23 }
 0x38a   : > { %s4622_s23 = smov %s3213_s11  ;;  %s4623_s24 = smov %s2983_s25 }
 0x38b   : > { %s4624_s25 = smov %s4626_s27  ;;  %25 = sbr.rel (!%p23_p0) target bundleno = 12 (0xc), region = 116 }
 0x392   :  { %2260 = vsyncpa [#allocation4], 1 }
 0x393   :  { %2262 = vsyncpa [#allocation4 + $0x1], 1 }
 0x394   :  { %2263 = vsyncpa [#allocation7], 1 }
 0x395   :  { %2264 = vsyncpa [#allocation10], 1 }
 0x396   :  { %2265 = vsyncpa [#allocation5], 1 }
 0x397   :  { %2267 = vsyncpa [#allocation5 + $0x1], 1 }
 0x398   :  { %2268 = vsyncpa [#allocation13], 1 }

// kernel: double_conv.3
= control target key start
LH: loop header
LB: loop body
LE: loop exit
PB: predicated region body
PF: predicated region fallthrough
CT: control target
= control target key end

     0   :  { %10 = vsyncpa [#allocation4], 0  ;;  %s7771_s0 = inlined_call_operand.hbm [shape: bf16[2,18,18,4], index: 0, kind: input, shape index: {}]   ;;  %s7772_s1 = inlined_call_operand.hbm [shape: bf16[36,8], index: 1, kind: input, shape index: {}]   ;;  %s7773_s2 = inlined_call_operand.hbm [shape: bf16[2,18,18,8], index: 2, kind: output, shape index: {0}]   ;;  %s7774_s3 = inlined_call_operand.hbm [shape: f32[1,8], index: 3, kind: output, shape index: {1}]   ;;  %s7775_s4 = inlined_call_operand.hbm [shape: f32[1,8], index: 4, kind: output, shape index: {2}]  }
   0x1   :  { %12 = vsyncpa [#allocation4 + $0x1], 0 }
   0x2   :  { %13 = vsyncpa [#allocation7], 0 }
   0x3   :  { %14 = vsyncpa [#allocation5], 0 }
   0x4   :  { %16 = vsyncpa [#allocation5 + $0x1], 0 }
   0x5   :  { %17 = vsyncpa [#allocation10], 0  ;;  %s5644_s15 = smov 0   ;;  %s5646_s16 = smov 0  }
   0x6   :  { %s5648_s17 = smov 0   ;;  %s5650_s18 = smov 0  }
   0x7   :  { %s5652_s19 = smov 0   ;;  %s5654_s20 = smov 0  }
   0x8 LB: > { %s4552_s21 = sadd.s32 4294967295, %s5599_s20   ;;  %s4553_s22 = sadd.s32 4294967294, %s5599_s20   ;;  %s5599_s20 = sphi %s5654_s20, %s23_s20   ;;  %s5595_s19 = sphi %s5652_s19, %s7903_s19   ;;  %s5591_s18 = sphi %s5650_s18, %s7902_s18   ;;  %s5587_s17 = sphi %s5648_s17, %s7901_s17   ;;  %s5583_s16 = sphi %s5646_s16, %s7900_s16   ;;  %s5579_s15 = sphi %s5644_s15, %s7899_s15  }
   0x9   : > { %p55_p0 = scmp.ne.s32.totalorder %s5583_s16, %s5579_s15  ;;  %p5678_p1 = scmp.eq.s32.totalorder %s4552_s21, 0 }
   0xa   : > { %p5682_p2 = scmp.eq.s32.totalorder %s4552_s21, 1  ;;  %p113_p3 = scmp.eq.s32.totalorder %s4553_s22, 1 }
   0xb   : > { %s7805_s23 = scalar_select %p5678_p1, 1, 0 }
   0xc   : > { %s7806_s24 = scalar_select %p5682_p2, 1, 0 }
   0xd   : > { %p5688_p4 = por %p5678_p1, %p55_p0  ;;  %p4554_p5 = scmp.ge.s32.totalorder %s5599_s20, 1 }
   0xe   : > { %p5693_p6 = por %p113_p3, %p55_p0  ;;  %p172_p7 = scmp.lt.s32.totalorder %s5599_s20, 3 }
   0xf   : > { %s7807_s25 = scalar_select %p5688_p4, 1, 0 }
  0x10   : > { %s7808_s26 = scalar_select %p5693_p6, 1, 0 }
  0x11   : > { %p5698_p8 = pnand %p4554_p5, %p172_p7  ;;  %s5601_s28 = smov [#allocation6]  }
  0x12   : > { %s186_s29 = sshll.u32 %s5601_s28, 4  ;;  %s32_s5 = sadd.s32 1, %s5595_s19  ;;  %s187_s29 = int_to_ptr.vmem [resolvable:$true] %s186_s29 }
  0x13   : > { %s7809_s27 = scalar_select %p5698_p8, 1, 0 }
  0x14   : > { %p5264_p9 = pneg %p5698_p8  ;;  %s5399_s8 = scalar_lea.hbm %s7772_s1, 320 }
  0x15   : > { %p5400_p12 = scmp.ne.s32.totalorder %s7772_s1, %s5399_s8  ;;  %p5406_p5 = scmp.lt.u32.totalorder %s5399_s8, %s7772_s1 }
  0x16   : > { %p5707_p11 = pnand %p5264_p9, %p5678_p1 }
  0x18   : > { %p5401_p13 = pneg %p5707_p11 }
  0x1a   : > { %p5402_p0 = pnand %p5401_p13, %p5400_p12 }
  0x1c   : > { %p5403_p3 = pneg %p5402_p0 }
  0x1e   : > { %p5408_p7 = pnand %p5406_p5, %p5403_p3 }
  0x20   : > { %5411 = shalt.err (!%p5408_p7)
}
  0x21   : > { %s5412_s13 = scalar_lea.vmem %s187_s29, 320  ;;  %p5420_p1 = scmp.lt.s32.totalorder %s187_s29, %s187_s29 }
  0x22   : > { %p5413_p9 = scmp.ne.s32.totalorder %s187_s29, %s5412_s13  ;;  %p5421_p4 = scmp.lt.s32.totalorder %s5412_s13, %s5412_s13 }
  0x24   : > { %p5415_p10 = pnand %p5413_p9, %p5401_p13  ;;  %p5422_p8 = por %p5421_p4, %p5420_p1 }
  0x26   : > { %p5416_p6 = pneg %p5415_p10 }
  0x28   : > { %p5423_p2 = pnand %p5422_p8, %p5416_p6 }
  0x2a   : > { %5426 = shalt.err (!%p5423_p2)
}
  0x2b   : > { %s7781_s14 = smov 64   ;;  %s5603_s21 = smov 4  }
  0x2c   : > { %5267 = dma.hbm_to_vmem [thread:$0]  (!%p5707_p11), %s7772_s1, 320, %s187_s29, [#allocation7], %s7781_s14, %s7781_s14, %s5603_s21  }
  0x2d   : > { %p33_p1 = scmp.ge.s32.totalorder %s32_s5, 2  ;;  %s42_s6 = sadd.s32 1, %s5587_s17 }
  0x2e   : > { %p49_p2 = scmp.ne.s32.totalorder %s5587_s17, %s5583_s16  ;;  %p50_p4 = scmp.eq.s32.totalorder %s5599_s20, 0 }
  0x2f   : > { %s7905_s5 = smov (%p33_p1, %s32_s5), 0  ;;  %p7811_p8 = scmp.ne.s32.totalorder %s7806_s24, 0 }
  0x30   : > { %p51_p6 = por %p50_p4, %p49_p2  ;;  %s39_s30 = ssub.s32 %s5595_s19, %s7905_s5 }
  0x31   : > { %p5739_p10 = por %p7811_p8, %p49_p2  ;;  %p5277_p12 = scmp.lt.s32.totalorder %s5599_s20, 2 }
  0x32   : > { %p40_p13 = scmp.eq.s32.totalorder %s39_s30, 0  ;;  %s200_s8 = sand.u32 1, %s5587_s17  }
  0x33   : > { %s5244_s9 = smul.u32 216, %s200_s8  ;;  %p5751_p11 = pnand %p5277_p12, %p51_p6 }
  0x34   : > { %s5748_s10 = scalar_select %p40_p13, %s5587_s17, %s42_s6  }
  0x35   : > { %s5245_s29 = smul.u32 3456, %s5595_s19  ;;  %s204_s11 = scalar_lea.vmem [#allocation3], %s5244_s9 }
  0x36   : > { %s211_s12 = sshll.u32 %s204_s11, 4  ;;  %s5762_s6 = scalar_lea.sflag [#allocation4], %s200_s8  ;;  %s5760_s12 = int_to_ptr.vmem [resolvable:$true] %s211_s12 }
  0x37   : > { %s5758_s14 = scalar_lea.hbm %s7771_s0, %s5245_s29  ;;  %p5429_p3 = pneg %p5751_p11 }
  0x38   : > { %s5427_s30 = scalar_lea.hbm %s5758_s14, 3456  ;;  %s5432_s29 = scalar_lea.hbm %s7771_s0, 6912 }
  0x39   : > { %p5428_p0 = scmp.ne.s32.totalorder %s5758_s14, %s5427_s30  ;;  %p5433_p9 = scmp.lt.u32.totalorder %s5758_s14, %s7771_s0 }
  0x3a   : > { %p5434_p1 = scmp.lt.u32.totalorder %s5432_s29, %s5427_s30  ;;  %p5436_p4 = scmp.lt.u32.totalorder %s5427_s30, %s5758_s14 }
  0x3b   : > { %p5430_p5 = pnand %p5429_p3, %p5428_p0 }
  0x3c   : > { %p5435_p2 = por %p5434_p1, %p5433_p9 }
  0x3d   : > { %p5431_p7 = pneg %p5430_p5 }
  0x3e   : > { %p5437_p6 = por %p5436_p4, %p5435_p2 }
  0x40   : > { %p5438_p8 = pnand %p5437_p6, %p5431_p7 }
  0x42   : > { %5441 = shalt.err (!%p5438_p8)
}
  0x43   : > { %s5442_s8 = scalar_lea.vmem %s5760_s12, 3456  ;;  %s5604_s9 = smov [#allocation3]  }
  0x44   : > { %p5443_p12 = scmp.ne.s32.totalorder %s5760_s12, %s5442_s8  ;;  %s5447_s11 = sshll.u32 %s5604_s9, 4  ;;  %s5448_s11 = int_to_ptr.vmem [resolvable:$false] %s5447_s11 }
  0x45   : > { %s5449_s22 = scalar_lea.vmem %s5448_s11, 6912  ;;  %p5450_p5 = scmp.lt.s32.totalorder %s5760_s12, %s5448_s11 }
  0x46   : > { %p5445_p13 = pnand %p5443_p12, %p5429_p3  ;;  %p5451_p9 = scmp.lt.s32.totalorder %s5449_s22, %s5442_s8 }
  0x48   : > { %p5446_p0 = pneg %p5445_p13  ;;  %p5452_p1 = por %p5451_p9, %p5450_p5 }
  0x4a   : > { %p5453_p2 = pnand %p5452_p1, %p5446_p0 }
  0x4c   : > { %5456 = shalt.err (!%p5453_p2)
}
  0x4d   : > { %s7814_s30 = smov 64   ;;  %p7815_p3 = scmp.ne.s32.totalorder %s7809_s27, 0 }
  0x4e   : > { %5271 = dma.hbm_to_vmem [thread:$0]  (!%p5751_p11), %s5758_s14, 3456, %s5760_s12, %s5762_s6, %s7814_s30, %s7814_s30, %s5603_s21  }
  0x4f   : > { %223 = sbr.rel (%p7815_p3) target bundleno = 908 (0x38c), region = 28 }
  0x56   : > { %s5796_s29 = sand.u32 1, %s5583_s16   ;;  %p7816_p7 = scmp.ne.s32.totalorder %s7807_s25, 0 }
  0x57   : > { %s5246_s28 = smul.u32 216, %s5796_s29  ;;  %s226_s8 = scalar_lea.sflag [#allocation4], %s5796_s29 }
  0x59   : > { %s5802_s13 = scalar_lea.vmem [#allocation3], %s5246_s28 }
  0x5a   : > { %5562 = dma.done.wait (%p7816_p7), %s226_s8, 3456  }
  0x5b   : > { %5564 = vsyncadd (%p7816_p7), %s226_s8, 4294963840  ;;  %p7817_p11 = scmp.ne.s32.totalorder %s7805_s23, 0 }
  0x5d   : > { %5566 = dma.done.wait (%p7817_p11), [#allocation7], 320  }
  0x5e   : > { %5568 = vsyncadd (%p7817_p11), [#allocation7], 4294966976  ;;  %vm1048_vm0 = vcmask 1042432   ;;  %vm1049_vm1 = vcmask 1046532   ;;  %v5348_v1 = vld [vmem:[%s5802_s13 + $0x6c] sm:$0xff]   ;;  %s5605_s25 = smov 12  }
  0x5f   : > { %vm5812_vm2 = vmor %vm1048_vm0, %vm1049_vm1  ;;  %v5349_v2 = vld [vmem:[%s5802_s13 + $0xc] sm:$0xff]   ;;  %1405 = vrot.lane.b32.xlu1 %v5348_v1, %s5605_s25  ;;  %v976_v3 = vld [vmem:[%s5802_s13 + $0x60] sm:$0xe]  ;;  %vm452_vm3 = vsmask.f32 3328  ;;  %s5606_s23 = smov 8  }
  0x60   : > { %v977_v4 = vld [vmem:[%s5802_s13 + $0x64] sm:$0xf]  ;;  %v978_v5 = vld [vmem:[%s5802_s13 + $0x68] sm:$0x1]  ;;  %1389 = vrot.lane.b32.xlu0 %v5349_v2, %s5605_s25  ;;  %v4600_v6 = vrot.slane %v976_v3, 9  ;;  %s5607_s27 = smov 4  }
  0x61   : > { %v1109_v7 = vrot.slane %v977_v4, 5  ;;  %v1112_v8 = vrot.slane %v978_v5, 5  ;;  %v952_v9 = vld [vmem:[%s5802_s13] sm:$0xe]  ;;  %v953_v10 = vld [vmem:[%s5802_s13 + $0x4] sm:$0xf] }
  0x62   : > { %v954_v11 = vld [vmem:[%s5802_s13 + $0x8] sm:$0x1]  ;;  %v4592_v12 = vrot.slane %v952_v9, 9  ;;  %v1053_v15 = vrot.slane %v953_v10, 5  ;;  %v979_v17 = vld [vmem:[%s5802_s13 + $0x6c] sm:$0xe] }
  0x63   : > { %v1110_v13 = vsel %vm5812_vm2, %v4600_v6, %v1109_v7  ;;  %v1111_v14 = vrot.slane %v1109_v7, 4  ;;  %v1056_v16 = vrot.slane %v954_v11, 5  ;;  %vm453_vm4 = vsmask.f32 7440  ;;  %v980_v18 = vld [vmem:[%s5802_s13 + $0x70] sm:$0xf] }
  0x64   : > { %v981_v19 = vld [vmem:[%s5802_s13 + $0x74] sm:$0x1]  ;;  %v4601_v20 = vrot.slane %v979_v17, 9  ;;  %v1054_v22 = vsel %vm5812_vm2, %v4592_v12, %v1053_v15  ;;  %v1055_v23 = vrot.slane %v1053_v15, 4  ;;  %v1116_v24 = vrot.slane %v980_v18, 5  ;;  %vm5862_vm5 = vmor %vm452_vm3, %vm453_vm4  ;;  %s5608_s14 = smov 16  }
  0x65   : > { %v1113_v21 = vsel %vm5812_vm2, %v1111_v14, %v1112_v8  ;;  %v955_v25 = vld [vmem:[%s5802_s13 + $0xc] sm:$0xe]  ;;  %v956_v26 = vld [vmem:[%s5802_s13 + $0x10] sm:$0xf]  ;;  %v1119_v28 = vrot.slane %v981_v19, 5  ;;  %s5609_s21 = smov 20  }
  0x66   : > { %v4616_v27 = vcombine.low %v1110_v13, %v1113_v21  ;;  %v957_v29 = vld [vmem:[%s5802_s13 + $0x14] sm:$0x1]  ;;  %v4593_v30 = vrot.slane %v955_v25, 9  ;;  %v1060_v31 = vrot.slane %v956_v26, 5  ;;  %v1057_v32 = vsel %vm5812_vm2, %v1055_v23, %v1056_v16  ;;  %v407_v36 = vld [vmem:[%s5802_s13 + $0xc] sm:$0xf] }
  0x67   : > { %v1117_v33 = vsel %vm5812_vm2, %v4601_v20, %v1116_v24  ;;  %v1118_v34 = vrot.slane %v1116_v24, 4  ;;  %v1063_v35 = vrot.slane %v957_v29, 5  ;;  %v408_v37 = vld [vmem:[%s5802_s13 + $0x10] sm:$0xf]  ;;  %v4608_v38 = vcombine.low %v1054_v22, %v1057_v32  ;;  %v409_v41 = vld [vmem:[%s5802_s13 + $0x14] sm:$0x1] }
  0x68   : > { %1227 = vrot.lane.b32.xlu1 %v4616_v27, %s5606_s23  ;;  %v1061_v39 = vsel %vm5812_vm2, %v4593_v30, %v1060_v31  ;;  %v1062_v40 = vrot.slane %v1060_v31, 4  ;;  %v480_v42 = vshrl.u32 %v407_v36, 16  ;;  %v404_v43 = vld [vmem:[%s5802_s13] sm:$0xf]  ;;  %v483_v45 = vshll.u32 %v407_v36, 16  ;;  %s5610_s12 = smov 24  }
  0x69   : > { %v1120_v44 = vsel %vm5812_vm2, %v1118_v34, %v1119_v28  ;;  %v489_v46 = vshll.u32 %v408_v37, 16  ;;  %v493_v47 = vshrl.u32 %v408_v37, 16  ;;  %v405_v48 = vld [vmem:[%s5802_s13 + $0x4] sm:$0xf]  ;;  %1211 = vrot.lane.b32.xlu0 %v4608_v38, %s5606_s23  ;;  %v499_v52 = vshll.u32 %v409_v41, 16  ;;  %s5611_s6 = smov 28  }
  0x6a   : > { %v4617_v49 = vcombine.low %v1117_v33, %v1120_v44  ;;  %v1064_v50 = vsel %vm5812_vm2, %v1062_v40, %v1063_v35  ;;  %v482_v51 = vrot.slane %v480_v42, 4  ;;  %v406_v53 = vld [vmem:[%s5802_s13 + $0x8] sm:$0x1]  ;;  %v485_v55 = vrot.slane %v483_v45, 5  ;;  %v431_v58 = vld [vmem:[%s5802_s13 + $0x6c] sm:$0xf] }
  0x6b   : > { %v4609_v54 = vcombine.low %v1061_v39, %v1064_v50  ;;  %v491_v56 = vrot.slane %v489_v46, 5  ;;  %v495_v57 = vrot.slane %v493_v47, 4  ;;  %v501_v59 = vrot.slane %v499_v52, 5  ;;  %v432_v4 = vld [vmem:[%s5802_s13 + $0x70] sm:$0xf]  ;;  %s5612_s9 = smov 32  }
  0x6c   : > { %1229 = vrot.lane.b32.xlu1 %v4617_v49, %s5606_s23  ;;  %v456_v60 = vshrl.u32 %v404_v43, 16  ;;  %v459_v61 = vshll.u32 %v404_v43, 16  ;;  %v465_v62 = vshll.u32 %v405_v48, 16  ;;  %v486_v63 = vor.u32 %v485_v55, %v482_v51  ;;  %v433_v9 = vld [vmem:[%s5802_s13 + $0x74] sm:$0x1]  ;;  %s6965_s11 = scalar_lea.vmem [#allocation8], %s5246_s28 }
  0x6d   : > { %v496_v1 = vor.u32 %v495_v57, %v491_v56  ;;  %v469_v2 = vshrl.u32 %v405_v48, 16  ;;  %v475_v3 = vshll.u32 %v406_v53, 16  ;;  %1213 = vrot.lane.b32.xlu0 %v4609_v54, %s5606_s23  ;;  %v672_v10 = vshrl.u32 %v431_v58, 16  ;;  %v428_v11 = vld [vmem:[%s5802_s13 + $0x60] sm:$0xf]  ;;  %p5027_p4 = scmp.ne.s32.totalorder %s5591_s18, 0 }
  0x6e   : > { %v458_v6 = vrot.slane %v456_v60, 4  ;;  %v461_v7 = vrot.slane %v459_v61, 5  ;;  %v467_v8 = vrot.slane %v465_v62, 5  ;;  %v487_v12 = vrot.slane %v486_v63, 4  ;;  %v429_v16 = vld [vmem:[%s5802_s13 + $0x64] sm:$0xf] }
  0x6f   : > { %v497_v13 = vrot.slane %v496_v1, 4  ;;  %v471_v14 = vrot.slane %v469_v2, 4  ;;  %v477_v15 = vrot.slane %v475_v3, 5  ;;  %v674_v18 = vrot.slane %v672_v10, 4  ;;  %v430_v35 = vld [vmem:[%s5802_s13 + $0x68] sm:$0x1] }
  0x70   : > { %v462_v17 = vor.u32 %v461_v7, %v458_v6  ;;  %v675_v19 = vshll.u32 %v431_v58, 16  ;;  %v681_v20 = vshll.u32 %v432_v4, 16  ;;  %v492_v21 = vsel %vm5862_vm5, %v487_v12, %v491_v56  ;;  %v4696_v38 = vld [vmem:[%s5802_s13 + $0x6c] sm:$0xf]  ;;  %v4697_v43 = vld [vmem:[%s5802_s13 + $0x70] sm:$0xf] }
  0x71   : > { %v502_v22 = vsel %vm5862_vm5, %v497_v13, %v501_v59  ;;  %v472_v23 = vor.u32 %v471_v14, %v467_v8  ;;  %v685_v24 = vshrl.u32 %v432_v4, 16  ;;  %v691_v31 = vshll.u32 %v433_v9, 16  ;;  %v4698_v54 = vld [vmem:[%s5802_s13 + $0x74] sm:$0x1]  ;;  %v4672_v57 = vld [vmem:[%s5802_s13 + $0xc] sm:$0xf] }
  0x72   : > { %v4577_v25 = vcombine.low %v492_v21, %v502_v22  ;;  %v463_v26 = vrot.slane %v462_v17, 4  ;;  %v677_v27 = vrot.slane %v675_v19, 5  ;;  %v683_v28 = vrot.slane %v681_v20, 5  ;;  %v4673_v62 = vld [vmem:[%s5802_s13 + $0x10] sm:$0xf]  ;;  %v5350_v6 = vld [vmem:[%s5802_s13 + $0x78] sm:$0xff]  }
  0x73   : > { %v473_v29 = vrot.slane %v472_v23, 4  ;;  %v687_v30 = vrot.slane %v685_v24, 4  ;;  %v648_v32 = vshrl.u32 %v428_v11, 16  ;;  %v651_v36 = vshll.u32 %v428_v11, 16  ;;  %v4674_v12 = vld [vmem:[%s5802_s13 + $0x14] sm:$0x1] }
  0x74   : > { %889 = vrot.lane.b32.xlu1 %v4577_v25, %s5607_s27  ;;  %v468_v33 = vsel %vm5862_vm5, %v463_v26, %v467_v8  ;;  %v678_v34 = vor.u32 %v677_v27, %v674_v18  ;;  %v657_v37 = vshll.u32 %v429_v16, 16  ;;  %v693_v41 = vrot.slane %v691_v31, 5  ;;  %v4700_v27 = vld [vmem:[%s5802_s13 + $0x7c] sm:$0xf] }
  0x75   : > { %v478_v39 = vsel %vm5862_vm5, %v473_v29, %v477_v15  ;;  %v688_v40 = vor.u32 %v687_v30, %v683_v28  ;;  %v650_v42 = vrot.slane %v648_v32, 4  ;;  %v653_v46 = vrot.slane %v651_v36, 5  ;;  %v4699_v15 = vld [vmem:[%s5802_s13 + $0x78] sm:$0xf] }
  0x76   : > { %v4576_v44 = vcombine.low %v468_v33, %v478_v39  ;;  %v679_v45 = vrot.slane %v678_v34, 4  ;;  %v659_v47 = vrot.slane %v657_v37, 5  ;;  %v661_v49 = vshrl.u32 %v429_v16, 16  ;;  %v4701_v33 = vld [vmem:[%s5802_s13 + $0x80] sm:$0x1] }
  0x77   : > { %v689_v48 = vrot.slane %v688_v40, 4  ;;  %v667_v50 = vshll.u32 %v430_v35, 16  ;;  %v1695_v51 = vshrl.u32 %v4696_v38, 16  ;;  %v654_v53 = vor.u32 %v653_v46, %v650_v42  ;;  %v4675_v34 = vld [vmem:[%s5802_s13 + $0x18] sm:$0xf] }
  0x78   : > { %887 = vrot.lane.b32.xlu0 %v4576_v44, %s5607_s27  ;;  %v684_v52 = vsel %vm5862_vm5, %v679_v45, %v683_v28  ;;  %v1698_v55 = vshll.u32 %v4696_v38, 16  ;;  %v1704_v56 = vshll.u32 %v4697_v43, 16  ;;  %v663_v59 = vrot.slane %v661_v49, 4  ;;  %v4676_v39 = vld [vmem:[%s5802_s13 + $0x1c] sm:$0xf] }
  0x79   : > { %v694_v58 = vsel %vm5862_vm5, %v689_v48, %v693_v41  ;;  %v669_v60 = vrot.slane %v667_v50, 5  ;;  %v1697_v61 = vrot.slane %v1695_v51, 4  ;;  %v655_v1 = vrot.slane %v654_v53, 4  ;;  %v5351_v40 = vld [vmem:[%s5802_s13 + $0x18] sm:$0xff]   ;;  %v4677_v45 = vld [vmem:[%s5802_s13 + $0x20] sm:$0x1] }
  0x7a   : > { %v4585_v63 = vcombine.low %v684_v52, %v694_v58  ;;  %v1700_v2 = vrot.slane %v1698_v55, 5  ;;  %v1706_v3 = vrot.slane %v1704_v56, 5  ;;  %v664_v4 = vor.u32 %v663_v59, %v659_v47  ;;  %v4760_v50 = vld [vmem:[%s5802_s13 + $0x6c] sm:$0xe]  ;;  %v4761_v55 = vld [vmem:[%s5802_s13 + $0x70] sm:$0xf] }
  0x7b   : > { %v1708_v7 = vshrl.u32 %v4697_v43, 16  ;;  %v1714_v8 = vshll.u32 %v4698_v54, 16  ;;  %v1503_v9 = vshrl.u32 %v4672_v57, 16  ;;  %v660_v10 = vsel %vm5862_vm5, %v655_v1, %v659_v47 }
  0x7c   : > { %905 = vrot.lane.b32.xlu1 %v4585_v63, %s5607_s27  ;;  %v1701_v11 = vor.u32 %v1700_v2, %v1697_v61  ;;  %v1506_v13 = vshll.u32 %v4672_v57, 16  ;;  %v1512_v14 = vshll.u32 %v4673_v62, 16  ;;  %v665_v16 = vrot.slane %v664_v4, 4  ;;  %v4736_v61 = vld [vmem:[%s5802_s13 + $0xc] sm:$0xe] }
  0x7d   : > { %v1710_v17 = vrot.slane %v1708_v7, 4  ;;  %v1716_v18 = vrot.slane %v1714_v8, 5  ;;  %v1505_v19 = vrot.slane %v1503_v9, 4  ;;  %v1516_v23 = vshrl.u32 %v4673_v62, 16  ;;  %v4738_v9 = vld [vmem:[%s5802_s13 + $0x14] sm:$0x1] }
  0x7e   : > { %v1702_v20 = vrot.slane %v1701_v11, 4  ;;  %v1508_v21 = vrot.slane %v1506_v13, 5  ;;  %v1514_v22 = vrot.slane %v1512_v14, 5  ;;  %v670_v24 = vsel %vm5862_vm5, %v665_v16, %v669_v60  ;;  %v4762_v60 = vld [vmem:[%s5802_s13 + $0x74] sm:$0x1] }
  0x7f   : > { %v1711_v25 = vor.u32 %v1710_v17, %v1706_v3  ;;  %v1522_v26 = vshll.u32 %v4674_v12, 16  ;;  %v1719_v28 = vshrl.u32 %v4699_v15, 16  ;;  %v4584_v29 = vcombine.low %v660_v10, %v670_v24 }
  0x80   : > { %1407 = vrot.lane.b32.xlu1 %v5350_v6, %s5605_s25  ;;  %v1707_v30 = vsel %vm5862_vm5, %v1702_v20, %v1706_v3  ;;  %v1509_v31 = vor.u32 %v1508_v21, %v1505_v19  ;;  %v1518_v32 = vrot.slane %v1516_v23, 4  ;;  %v1722_v38 = vshll.u32 %v4699_v15, 16  ;;  %v4737_v3 = vld [vmem:[%s5802_s13 + $0x10] sm:$0xf] }
  0x81   : > { %v1712_v35 = vrot.slane %v1711_v25, 4  ;;  %v1524_v36 = vrot.slane %v1522_v26, 5  ;;  %v1721_v37 = vrot.slane %v1719_v28, 4  ;;  %903 = vrot.lane.b32.xlu0 %v4584_v29, %s5607_s27  ;;  %v1728_v43 = vshll.u32 %v4700_v27, 16  ;;  %v4765_v28 = vld [vmem:[%s5802_s13 + $0x80] sm:$0x1] }
  0x82   : > { %v1510_v41 = vrot.slane %v1509_v31, 4  ;;  %v1519_v42 = vor.u32 %v1518_v32, %v1514_v22  ;;  %v1732_v44 = vshrl.u32 %v4700_v27, 16  ;;  %v1724_v47 = vrot.slane %v1722_v38, 5  ;;  %v4764_v27 = vld [vmem:[%s5802_s13 + $0x7c] sm:$0xf] }
  0x83   : > { %v1717_v46 = vsel %vm5862_vm5, %v1712_v35, %v1716_v18  ;;  %v1738_v48 = vshll.u32 %v4701_v33, 16  ;;  %v1527_v49 = vshrl.u32 %v4675_v34, 16  ;;  %v1730_v54 = vrot.slane %v1728_v43, 5  ;;  %v4739_v33 = vld [vmem:[%s5802_s13 + $0x18] sm:$0xe] }
  0x84   : > { %v4728_v51 = vcombine.low %v1707_v30, %v1717_v46  ;;  %v1515_v52 = vsel %vm5862_vm5, %v1510_v41, %v1514_v22  ;;  %v1520_v53 = vrot.slane %v1519_v42, 4  ;;  %v1725_v56 = vor.u32 %v1724_v47, %v1721_v37  ;;  %v4763_v22 = vld [vmem:[%s5802_s13 + $0x78] sm:$0xe]  ;;  %v4740_v38 = vld [vmem:[%s5802_s13 + $0x1c] sm:$0xf] }
  0x85   : > { %v1734_v57 = vrot.slane %v1732_v44, 4  ;;  %v1740_v58 = vrot.slane %v1738_v48, 5  ;;  %v1529_v59 = vrot.slane %v1527_v49, 4  ;;  %1391 = vrot.lane.b32.xlu0 %v5351_v40, %s5605_s25  ;;  %v1530_v63 = vshll.u32 %v4675_v34, 16  ;;  %v4888_v44 = vld [vmem:[%s5802_s13 + $0x78] sm:$0xf] }
  0x86   : > { %1950 = vrot.lane.b32.xlu1 %v4728_v51, %s5608_s14  ;;  %v1525_v62 = vsel %vm5862_vm5, %v1520_v53, %v1524_v36  ;;  %v1536_v1 = vshll.u32 %v4676_v39, 16  ;;  %v1540_v2 = vshrl.u32 %v4676_v39, 16  ;;  %v1726_v6 = vrot.slane %v1725_v56, 4  ;;  %v4741_v39 = vld [vmem:[%s5802_s13 + $0x20] sm:$0x1] }
  0x87   : > { %v4720_v4 = vcombine.low %v1515_v52, %v1525_v62  ;;  %v1735_v7 = vor.u32 %v1734_v57, %v1730_v54  ;;  %v1546_v8 = vshll.u32 %v4677_v45, 16  ;;  %v1532_v10 = vrot.slane %v1530_v63, 5  ;;  %v4889_v45 = vld [vmem:[%s5802_s13 + $0x7c] sm:$0xf] }
  0x88   : > { %v1538_v11 = vrot.slane %v1536_v1, 5  ;;  %v1542_v12 = vrot.slane %v1540_v2, 4  ;;  %v4792_v13 = vrot.slane %v4760_v50, 9  ;;  %v1731_v14 = vsel %vm5862_vm5, %v1726_v6, %v1730_v54  ;;  %v4890_v54 = vld [vmem:[%s5802_s13 + $0x80] sm:$0x1] }
  0x89   : > { %v1736_v15 = vrot.slane %v1735_v7, 4  ;;  %v1548_v16 = vrot.slane %v1546_v8, 5  ;;  %v2153_v17 = vrot.slane %v4761_v55, 5  ;;  %1934 = vrot.lane.b32.xlu0 %v4720_v4, %s5608_s14  ;;  %v1533_v18 = vor.u32 %v1532_v10, %v1529_v59  ;;  %v4864_v59 = vld [vmem:[%s5802_s13 + $0x18] sm:$0xf] }
  0x8a   : > { %v1543_v19 = vor.u32 %v1542_v12, %v1538_v11  ;;  %v2156_v20 = vrot.slane %v4762_v60, 5  ;;  %v4784_v21 = vrot.slane %v4736_v61, 9  ;;  %v2097_v26 = vrot.slane %v4737_v3, 5  ;;  %v4865_v1 = vld [vmem:[%s5802_s13 + $0x1c] sm:$0xf] }
  0x8b   : > { %v1741_v23 = vsel %vm5862_vm5, %v1736_v15, %v1740_v58  ;;  %v2154_v24 = vsel %vm5812_vm2, %v4792_v13, %v2153_v17  ;;  %v2155_v25 = vrot.slane %v2153_v17, 4  ;;  %v1534_v30 = vrot.slane %v1533_v18, 4  ;;  %v4866_v10 = vld [vmem:[%s5802_s13 + $0x20] sm:$0x1]  ;;  %v5352_v17 = vld [vmem:[%s5802_s13 + $0x78] sm:$0xff]  }
  0x8c   : > { %v4729_v29 = vcombine.low %v1731_v14, %v1741_v23  ;;  %v1544_v31 = vrot.slane %v1543_v19, 4  ;;  %v2100_v32 = vrot.slane %v4738_v9, 5  ;;  %v2098_v35 = vsel %vm5812_vm2, %v4784_v21, %v2097_v26 }
  0x8d   : > { %v2157_v34 = vsel %vm5812_vm2, %v2155_v25, %v2156_v20  ;;  %v2099_v36 = vrot.slane %v2097_v26, 4  ;;  %v4793_v37 = vrot.slane %v4763_v22, 9  ;;  %v1539_v40 = vsel %vm5862_vm5, %v1534_v30, %v1538_v11  ;;  %v4892_v22 = vld [vmem:[%s5802_s13 + $0x88] sm:$0xf] }
  0x8e   : > { %1952 = vrot.lane.b32.xlu1 %v4729_v29, %s5608_s14  ;;  %v1549_v41 = vsel %vm5862_vm5, %v1544_v31, %v1548_v16  ;;  %v4808_v42 = vcombine.low %v2154_v24, %v2157_v34  ;;  %v2160_v43 = vrot.slane %v4764_v27, 5  ;;  %v2163_v48 = vrot.slane %v4765_v28, 5  ;;  %v4891_v16 = vld [vmem:[%s5802_s13 + $0x84] sm:$0xf]  ;;  %v5353_v27 = vld [vmem:[%s5802_s13 + $0x18] sm:$0xff]  }
  0x8f   : > { %v4721_v46 = vcombine.low %v1539_v40, %v1549_v41  ;;  %v2101_v47 = vsel %vm5812_vm2, %v2099_v36, %v2100_v32  ;;  %v4785_v49 = vrot.slane %v4739_v33, 9  ;;  %v2104_v53 = vrot.slane %v4740_v38, 5  ;;  %v5354_v38 = vld [vmem:[%s5802_s13 + $0x84] sm:$0xff]  }
  0x90   : > { %v4800_v50 = vcombine.low %v2098_v35, %v2101_v47  ;;  %v2161_v51 = vsel %vm5812_vm2, %v4793_v37, %v2160_v43  ;;  %v2162_v52 = vrot.slane %v2160_v43, 4  ;;  %v2107_v55 = vrot.slane %v4741_v39, 5  ;;  %v4893_v35 = vld [vmem:[%s5802_s13 + $0x8c] sm:$0x1]  ;;  %v4867_v37 = vld [vmem:[%s5802_s13 + $0x24] sm:$0xf] }
  0x91   : > { %1936 = vrot.lane.b32.xlu0 %v4721_v46, %s5608_s14  ;;  %v2739_v56 = vshrl.u32 %v4888_v44, 16  ;;  %v2742_v57 = vshll.u32 %v4888_v44, 16  ;;  %v2748_v58 = vshll.u32 %v4889_v45, 16  ;;  %v2105_v61 = vsel %vm5812_vm2, %v4785_v49, %v2104_v53  ;;  %v4868_v43 = vld [vmem:[%s5802_s13 + $0x28] sm:$0xf] }
  0x92   : > { %2271 = vrot.lane.b32.xlu1 %v4808_v42, %s5609_s21  ;;  %v2164_v60 = vsel %vm5812_vm2, %v2162_v52, %v2163_v48  ;;  %v2106_v62 = vrot.slane %v2104_v53, 4  ;;  %v2752_v63 = vshrl.u32 %v4889_v45, 16  ;;  %v2758_v9 = vshll.u32 %v4890_v54, 16  ;;  %v4869_v48 = vld [vmem:[%s5802_s13 + $0x2c] sm:$0x1]  ;;  %v5355_v54 = vld [vmem:[%s5802_s13 + $0x24] sm:$0xff]  }
  0x93   : > { %v4809_v2 = vcombine.low %v2161_v51, %v2164_v60  ;;  %v2741_v3 = vrot.slane %v2739_v56, 4  ;;  %v2744_v4 = vrot.slane %v2742_v57, 5  ;;  %v2750_v6 = vrot.slane %v2748_v58, 5  ;;  %v4952_v53 = vld [vmem:[%s5802_s13 + $0x78] sm:$0xe] }
  0x94   : > { %v2108_v7 = vsel %vm5812_vm2, %v2106_v62, %v2107_v55  ;;  %v2754_v8 = vrot.slane %v2752_v63, 4  ;;  %v2547_v11 = vshrl.u32 %v4864_v59, 16  ;;  %v2550_v14 = vshll.u32 %v4864_v59, 16  ;;  %v4953_v59 = vld [vmem:[%s5802_s13 + $0x7c] sm:$0xf] }
  0x95   : > { %2255 = vrot.lane.b32.xlu0 %v4800_v50, %s5609_s21  ;;  %v4801_v12 = vcombine.low %v2105_v61, %v2108_v7  ;;  %v2745_v13 = vor.u32 %v2744_v4, %v2741_v3  ;;  %v2556_v15 = vshll.u32 %v4865_v1, 16  ;;  %v2760_v19 = vrot.slane %v2758_v9, 5  ;;  %v4928_v7 = vld [vmem:[%s5802_s13 + $0x18] sm:$0xe] }
  0x96   : > { %2273 = vrot.lane.b32.xlu1 %v4809_v2, %s5609_s21  ;;  %v2755_v18 = vor.u32 %v2754_v8, %v2750_v6  ;;  %v2549_v20 = vrot.slane %v2547_v11, 4  ;;  %v2560_v21 = vshrl.u32 %v4865_v1, 16  ;;  %v2552_v24 = vrot.slane %v2550_v14, 5  ;;  %v4954_v1 = vld [vmem:[%s5802_s13 + $0x80] sm:$0x1] }
  0x97   : > { %v2746_v23 = vrot.slane %v2745_v13, 4  ;;  %v2558_v25 = vrot.slane %v2556_v15, 5  ;;  %v2566_v26 = vshll.u32 %v4866_v10, 16  ;;  %v2763_v30 = vshrl.u32 %v4891_v16, 16  ;;  %v4929_v8 = vld [vmem:[%s5802_s13 + $0x1c] sm:$0xf] }
  0x98   : > { %v2756_v28 = vrot.slane %v2755_v18, 4  ;;  %v2562_v29 = vrot.slane %v2560_v21, 4  ;;  %v2766_v31 = vshll.u32 %v4891_v16, 16  ;;  %v2553_v33 = vor.u32 %v2552_v24, %v2549_v20 }
  0x99   : > { %2257 = vrot.lane.b32.xlu0 %v4801_v12, %s5609_s21  ;;  %v2751_v32 = vsel %vm5862_vm5, %v2746_v23, %v2750_v6  ;;  %v2568_v34 = vrot.slane %v2566_v26, 5  ;;  %v2772_v36 = vshll.u32 %v4892_v22, 16  ;;  %v2765_v41 = vrot.slane %v2763_v30, 4 }
  0x9a   : > { %2449 = vrot.lane.b32.xlu1 %v5352_v17, %s5610_s12  ;;  %v2761_v39 = vsel %vm5862_vm5, %v2756_v28, %v2760_v19  ;;  %v2563_v40 = vor.u32 %v2562_v29, %v2558_v25  ;;  %v2768_v42 = vrot.slane %v2766_v31, 5  ;;  %v2554_v45 = vrot.slane %v2553_v33, 4  ;;  %v4930_v17 = vld [vmem:[%s5802_s13 + $0x20] sm:$0x1] }
  0x9b   : > { %v4920_v44 = vcombine.low %v2751_v32, %v2761_v39  ;;  %v2774_v46 = vrot.slane %v2772_v36, 5  ;;  %v2776_v47 = vshrl.u32 %v4892_v22, 16  ;;  %v2782_v51 = vshll.u32 %v4893_v35, 16  ;;  %v434_v22 = vld [vmem:[%s5802_s13 + $0x78] sm:$0xf] }
  0x9c   : > { %v2564_v49 = vrot.slane %v2563_v40, 4  ;;  %v2769_v50 = vor.u32 %v2768_v42, %v2765_v41  ;;  %v2571_v52 = vshrl.u32 %v4867_v37, 16  ;;  %v2559_v55 = vsel %vm5862_vm5, %v2554_v45, %v2558_v25  ;;  %v436_v32 = vld [vmem:[%s5802_s13 + $0x80] sm:$0x1] }
  0x9d   : > { %2433 = vrot.lane.b32.xlu0 %v5353_v27, %s5610_s12  ;;  %v2778_v56 = vrot.slane %v2776_v47, 4  ;;  %v2574_v57 = vshll.u32 %v4867_v37, 16  ;;  %v2580_v58 = vshll.u32 %v4868_v43, 16  ;;  %v2784_v62 = vrot.slane %v2782_v51, 5  ;;  %v435_v27 = vld [vmem:[%s5802_s13 + $0x7c] sm:$0xf] }
  0x9e   : > { %2451 = vrot.lane.b32.xlu1 %v5354_v38, %s5610_s12  ;;  %v2569_v60 = vsel %vm5862_vm5, %v2564_v49, %v2568_v34  ;;  %v2770_v61 = vrot.slane %v2769_v50, 4  ;;  %v2573_v63 = vrot.slane %v2571_v52, 4  ;;  %v2584_v10 = vshrl.u32 %v4868_v43, 16  ;;  %v410_v37 = vld [vmem:[%s5802_s13 + $0x18] sm:$0xf] }
  0x9f   : > { %v4912_v2 = vcombine.low %v2559_v55, %v2569_v60  ;;  %v2779_v3 = vor.u32 %v2778_v56, %v2774_v46  ;;  %v2576_v4 = vrot.slane %v2574_v57, 5  ;;  %v2582_v6 = vrot.slane %v2580_v58, 5  ;;  %v411_v38 = vld [vmem:[%s5802_s13 + $0x1c] sm:$0xf]  ;;  %v412_v43 = vld [vmem:[%s5802_s13 + $0x20] sm:$0x1] }
  0xa0   : > { %v2775_v9 = vsel %vm5862_vm5, %v2770_v61, %v2774_v46  ;;  %v2590_v11 = vshll.u32 %v4869_v48, 16  ;;  %v4984_v12 = vrot.slane %v4952_v53, 9  ;;  %v3197_v15 = vrot.slane %v4953_v59, 5  ;;  %v4955_v48 = vld [vmem:[%s5802_s13 + $0x84] sm:$0xe] }
  0xa1   : > { %2435 = vrot.lane.b32.xlu0 %v5355_v54, %s5610_s12  ;;  %v2780_v13 = vrot.slane %v2779_v3, 4  ;;  %v2577_v14 = vor.u32 %v2576_v4, %v2573_v63  ;;  %v3200_v16 = vrot.slane %v4954_v1, 5  ;;  %v2586_v18 = vrot.slane %v2584_v10, 4  ;;  %v4956_v53 = vld [vmem:[%s5802_s13 + $0x88] sm:$0xf] }
  0xa2   : > { %2994 = vrot.lane.b32.xlu1 %v4920_v44, %s5611_s6  ;;  %v2592_v19 = vrot.slane %v2590_v11, 5  ;;  %v4976_v20 = vrot.slane %v4928_v7, 9  ;;  %v3141_v21 = vrot.slane %v4929_v8, 5  ;;  %v3198_v25 = vsel %vm5812_vm2, %v4984_v12, %v3197_v15  ;;  %v4957_v54 = vld [vmem:[%s5802_s13 + $0x8c] sm:$0x1] }
  0xa3   : > { %v2785_v23 = vsel %vm5862_vm5, %v2780_v13, %v2784_v62  ;;  %v2578_v24 = vrot.slane %v2577_v14, 4  ;;  %v3199_v26 = vrot.slane %v3197_v15, 4  ;;  %v2587_v29 = vor.u32 %v2586_v18, %v2582_v6  ;;  %v4931_v59 = vld [vmem:[%s5802_s13 + $0x24] sm:$0xe]  ;;  %v4932_v1 = vld [vmem:[%s5802_s13 + $0x28] sm:$0xf] }
  0xa4   : > { %v4921_v28 = vcombine.low %v2775_v9, %v2785_v23  ;;  %v3142_v30 = vsel %vm5812_vm2, %v4976_v20, %v3141_v21  ;;  %v3143_v31 = vrot.slane %v3141_v21, 4  ;;  %v3144_v35 = vrot.slane %v4930_v17, 5  ;;  %v4933_v7 = vld [vmem:[%s5802_s13 + $0x2c] sm:$0x1]  ;;  %v437_v12 = vld [vmem:[%s5802_s13 + $0x84] sm:$0xf] }
  0xa5   : > { %2978 = vrot.lane.b32.xlu0 %v4912_v2, %s5611_s6  ;;  %v2583_v33 = vsel %vm5862_vm5, %v2578_v24, %v2582_v6  ;;  %v3201_v34 = vsel %vm5812_vm2, %v3199_v26, %v3200_v16  ;;  %v696_v36 = vshrl.u32 %v434_v22, 16  ;;  %v2588_v39 = vrot.slane %v2587_v29, 4  ;;  %v438_v21 = vld [vmem:[%s5802_s13 + $0x88] sm:$0xf] }
  0xa6   : > { %2996 = vrot.lane.b32.xlu1 %v4921_v28, %s5611_s6  ;;  %v5000_v40 = vcombine.low %v3198_v25, %v3201_v34  ;;  %v699_v41 = vshll.u32 %v434_v22, 16  ;;  %v705_v42 = vshll.u32 %v435_v27, 16  ;;  %v3145_v44 = vsel %vm5812_vm2, %v3143_v31, %v3144_v35 }
  0xa7   : > { %v698_v45 = vrot.slane %v696_v36, 4  ;;  %v709_v46 = vshrl.u32 %v435_v27, 16  ;;  %v715_v47 = vshll.u32 %v436_v32, 16  ;;  %v2593_v49 = vsel %vm5862_vm5, %v2588_v39, %v2592_v19  ;;  %v413_v39 = vld [vmem:[%s5802_s13 + $0x24] sm:$0xf] }
  0xa8   : > { %v4992_v50 = vcombine.low %v3142_v30, %v3145_v44  ;;  %v701_v51 = vrot.slane %v699_v41, 5  ;;  %v707_v52 = vrot.slane %v705_v42, 5  ;;  %v4913_v55 = vcombine.low %v2583_v33, %v2593_v49  ;;  %v439_v33 = vld [vmem:[%s5802_s13 + $0x8c] sm:$0x1] }
  0xa9   : > { %v711_v56 = vrot.slane %v709_v46, 4  ;;  %v717_v57 = vrot.slane %v715_v47, 5  ;;  %v504_v58 = vshrl.u32 %v410_v37, 16  ;;  %v507_v61 = vshll.u32 %v410_v37, 16  ;;  %v982_v46 = vld [vmem:[%s5802_s13 + $0x78] sm:$0xe] }
  0xaa   : > { %3315 = vrot.lane.b32.xlu1 %v5000_v40, %s5612_s9  ;;  %v702_v60 = vor.u32 %v701_v51, %v698_v45  ;;  %v513_v62 = vshll.u32 %v411_v38, 16  ;;  %v517_v63 = vshrl.u32 %v411_v38, 16  ;;  %2980 = vrot.lane.b32.xlu0 %v4913_v55, %s5611_s6  ;;  %v523_v4 = vshll.u32 %v412_v43, 16  ;;  %v414_v40 = vld [vmem:[%s5802_s13 + $0x28] sm:$0xf] }
  0xab   : > { %v712_v2 = vor.u32 %v711_v56, %v707_v52  ;;  %v506_v3 = vrot.slane %v504_v58, 4  ;;  %v4985_v6 = vrot.slane %v4955_v48, 9  ;;  %v509_v9 = vrot.slane %v507_v61, 5  ;;  %v415_v45 = vld [vmem:[%s5802_s13 + $0x2c] sm:$0x1] }
  0xac   : > { %v703_v8 = vrot.slane %v702_v60, 4  ;;  %v515_v10 = vrot.slane %v513_v62, 5  ;;  %v519_v11 = vrot.slane %v517_v63, 4  ;;  %v525_v14 = vrot.slane %v523_v4, 5  ;;  %v983_v51 = vld [vmem:[%s5802_s13 + $0x7c] sm:$0xf] }
  0xad   : > { %v713_v13 = vrot.slane %v712_v2, 4  ;;  %v3204_v15 = vrot.slane %v4956_v53, 5  ;;  %v3207_v16 = vrot.slane %v4957_v54, 5  ;;  %v510_v18 = vor.u32 %v509_v9, %v506_v3  ;;  %v984_v56 = vld [vmem:[%s5802_s13 + $0x80] sm:$0x1] }
  0xae   : > { %v708_v17 = vsel %vm5862_vm5, %v703_v8, %v707_v52  ;;  %v520_v19 = vor.u32 %v519_v11, %v515_v10  ;;  %v4977_v20 = vrot.slane %v4931_v59, 9  ;;  %3299 = vrot.lane.b32.xlu0 %v4992_v50, %s5612_s9  ;;  %v3148_v25 = vrot.slane %v4932_v1, 5  ;;  %v958_v61 = vld [vmem:[%s5802_s13 + $0x18] sm:$0xe]  ;;  %v959_v3 = vld [vmem:[%s5802_s13 + $0x1c] sm:$0xf] }
  0xaf   : > { %v718_v22 = vsel %vm5862_vm5, %v713_v13, %v717_v57  ;;  %v3205_v23 = vsel %vm5812_vm2, %v4985_v6, %v3204_v15  ;;  %v3206_v24 = vrot.slane %v3204_v15, 4  ;;  %v511_v27 = vrot.slane %v510_v18, 4  ;;  %v960_v9 = vld [vmem:[%s5802_s13 + $0x20] sm:$0x1] }
  0xb0   : > { %v4586_v26 = vcombine.low %v708_v17, %v718_v22  ;;  %v521_v28 = vrot.slane %v520_v19, 4  ;;  %v3151_v29 = vrot.slane %v4933_v7, 5  ;;  %v3149_v31 = vsel %vm5812_vm2, %v4977_v20, %v3148_v25  ;;  %v986_v19 = vld [vmem:[%s5802_s13 + $0x88] sm:$0xf]  ;;  %v987_v20 = vld [vmem:[%s5802_s13 + $0x8c] sm:$0x1] }
  0xb1   : > { %v3208_v30 = vsel %vm5812_vm2, %v3206_v24, %v3207_v16  ;;  %v3150_v32 = vrot.slane %v3148_v25, 4  ;;  %v720_v34 = vshrl.u32 %v437_v12, 16  ;;  %v516_v35 = vsel %vm5862_vm5, %v511_v27, %v515_v10  ;;  %v961_v25 = vld [vmem:[%s5802_s13 + $0x24] sm:$0xe] }
  0xb2   : > { %907 = vrot.lane.b32.xlu1 %v4586_v26, %s5607_s27  ;;  %v526_v36 = vsel %vm5862_vm5, %v521_v28, %v525_v14  ;;  %v5001_v37 = vcombine.low %v3205_v23, %v3208_v30  ;;  %v723_v38 = vshll.u32 %v437_v12, 16  ;;  %v729_v44 = vshll.u32 %v438_v21, 16  ;;  %v985_v14 = vld [vmem:[%s5802_s13 + $0x84] sm:$0xe]  ;;  %v5378_v26 = vld [vmem:[#allocation6] sm:$0xff]  }
  0xb3   : > { %v4578_v41 = vcombine.low %v516_v35, %v526_v36  ;;  %v3152_v42 = vsel %vm5812_vm2, %v3150_v32, %v3151_v29  ;;  %v722_v43 = vrot.slane %v720_v34, 4  ;;  %v733_v49 = vshrl.u32 %v438_v21, 16  ;;  %v5379_v32 = vld [vmem:[#allocation6 + $0x8] sm:$0xff]   ;;  %5198 = vmatprep.subr.bf16.mxu0 %v5378_v26  ;;  %5236 = vmatprep.subr.bf16.mxu1 %v5378_v26 }
  0xb4   : > { %v4993_v47 = vcombine.low %v3149_v31, %v3152_v42  ;;  %v725_v48 = vrot.slane %v723_v38, 5  ;;  %v739_v50 = vshll.u32 %v439_v33, 16  ;;  %v731_v52 = vrot.slane %v729_v44, 5  ;;  %v962_v31 = vld [vmem:[%s5802_s13 + $0x28] sm:$0xf]  ;;  %5199 = vmatpush3.bf16.msra.mxu0 %v5378_v26  ;;  %5239 = vmatpush3.bf16.msra.mxu1 %v5378_v26 }
  0xb5   : > { %891 = vrot.lane.b32.xlu0 %v4578_v41, %s5607_s27  ;;  %v528_v53 = vshrl.u32 %v413_v39, 16  ;;  %v531_v54 = vshll.u32 %v413_v39, 16  ;;  %v537_v55 = vshll.u32 %v414_v40, 16  ;;  %v735_v58 = vrot.slane %v733_v49, 4  ;;  %v4702_v42 = vld [vmem:[%s5802_s13 + $0x84] sm:$0xf]  ;;  %5200 = vmatprep.subr.bf16.mxu0 %v5379_v32 }
  0xb6   : > { %3317 = vrot.lane.b32.xlu1 %v5001_v37, %s5612_s9  ;;  %v726_v57 = vor.u32 %v725_v48, %v722_v43  ;;  %v741_v59 = vrot.slane %v739_v50, 5  ;;  %v541_v60 = vshrl.u32 %v414_v40, 16  ;;  %v547_v2 = vshll.u32 %v415_v45, 16  ;;  %v963_v37 = vld [vmem:[%s5802_s13 + $0x2c] sm:$0x1]  ;;  %5237 = vmatprep.subr.bf16.mxu1 %v5379_v32 }
  0xb7   : > { %v530_v62 = vrot.slane %v528_v53, 4  ;;  %v533_v63 = vrot.slane %v531_v54, 5  ;;  %v539_v1 = vrot.slane %v537_v55, 5  ;;  %v736_v6 = vor.u32 %v735_v58, %v731_v52  ;;  %v4703_v43 = vld [vmem:[%s5802_s13 + $0x88] sm:$0xf] }
  0xb8   : > { %v727_v4 = vrot.slane %v726_v57, 4  ;;  %v543_v7 = vrot.slane %v541_v60, 4  ;;  %v4602_v8 = vrot.slane %v982_v46, 9  ;;  %v549_v11 = vrot.slane %v547_v2, 5  ;;  %v4704_v48 = vld [vmem:[%s5802_s13 + $0x8c] sm:$0x1]  ;;  %5201 = vmatpush3.bf16.msra.mxu0 %v5379_v32  ;;  %5240 = vmatpush3.bf16.msra.mxu1 %v5379_v32 }
  0xb9   : > { %3301 = vrot.lane.b32.xlu0 %v4993_v47, %s5612_s9  ;;  %v534_v10 = vor.u32 %v533_v63, %v530_v62  ;;  %v1123_v12 = vrot.slane %v983_v51, 5  ;;  %v1126_v13 = vrot.slane %v984_v56, 5  ;;  %v737_v16 = vrot.slane %v736_v6, 4  ;;  %v4678_v53 = vld [vmem:[%s5802_s13 + $0x24] sm:$0xf] }
  0xba   : > { %v732_v15 = vsel %vm5862_vm5, %v727_v4, %v731_v52  ;;  %v544_v17 = vor.u32 %v543_v7, %v539_v1  ;;  %v4594_v18 = vrot.slane %v958_v61, 9  ;;  %v1067_v24 = vrot.slane %v959_v3, 5  ;;  %v4679_v54 = vld [vmem:[%s5802_s13 + $0x28] sm:$0xf] }
  0xbb   : > { %v535_v21 = vrot.slane %v534_v10, 4  ;;  %v1124_v22 = vsel %vm5812_vm2, %v4602_v8, %v1123_v12  ;;  %v1125_v23 = vrot.slane %v1123_v12, 4  ;;  %v742_v27 = vsel %vm5862_vm5, %v737_v16, %v741_v59  ;;  %v4680_v59 = vld [vmem:[%s5802_s13 + $0x2c] sm:$0x1] }
  0xbc   : > { %v545_v28 = vrot.slane %v544_v17, 4  ;;  %v1070_v29 = vrot.slane %v960_v9, 5  ;;  %v4603_v30 = vrot.slane %v985_v14, 9  ;;  %v4587_v33 = vcombine.low %v732_v15, %v742_v27 }
  0xbd   : > { %v540_v34 = vsel %vm5862_vm5, %v535_v21, %v539_v1  ;;  %v1127_v35 = vsel %vm5812_vm2, %v1125_v23, %v1126_v13  ;;  %v1068_v36 = vsel %vm5812_vm2, %v4594_v18, %v1067_v24  ;;  %v1069_v40 = vrot.slane %v1067_v24, 4  ;;  %v4705_v1 = vld [vmem:[%s5802_s13 + $0x90] sm:$0xf] }
  0xbe   : > { %v550_v38 = vsel %vm5862_vm5, %v545_v28, %v549_v11  ;;  %v4618_v39 = vcombine.low %v1124_v22, %v1127_v35  ;;  %v1130_v41 = vrot.slane %v986_v19, 5  ;;  %909 = vrot.lane.b32.xlu1 %v4587_v33, %s5607_s27  ;;  %v1133_v45 = vrot.slane %v987_v20, 5  ;;  %v4706_v19 = vld [vmem:[%s5802_s13 + $0x94] sm:$0xf]  ;;  %v5356_v20 = vld [vmem:[%s5802_s13 + $0x84] sm:$0xff]  }
  0xbf   : > { %v4579_v44 = vcombine.low %v540_v34, %v550_v38  ;;  %v4595_v46 = vrot.slane %v961_v25, 9  ;;  %v1074_v47 = vrot.slane %v962_v31, 5  ;;  %v1071_v49 = vsel %vm5812_vm2, %v1069_v40, %v1070_v29  ;;  %v4707_v29 = vld [vmem:[%s5802_s13 + $0x98] sm:$0x1]  ;;  %v4681_v35 = vld [vmem:[%s5802_s13 + $0x30] sm:$0xf] }
  0xc0   : > { %v1131_v50 = vsel %vm5812_vm2, %v4603_v30, %v1130_v41  ;;  %v1132_v51 = vrot.slane %v1130_v41, 4  ;;  %v1077_v52 = vrot.slane %v963_v37, 5  ;;  %v4610_v55 = vcombine.low %v1068_v36, %v1071_v49  ;;  %v5357_v30 = vld [vmem:[%s5802_s13 + $0x24] sm:$0xff]   ;;  %v4682_v40 = vld [vmem:[%s5802_s13 + $0x34] sm:$0xf] }
  0xc1   : > { %893 = vrot.lane.b32.xlu0 %v4579_v44, %s5607_s27  ;;  %v1075_v56 = vsel %vm5812_vm2, %v4595_v46, %v1074_v47  ;;  %v1076_v57 = vrot.slane %v1074_v47, 4  ;;  %v1743_v58 = vshrl.u32 %v4702_v42, 16  ;;  %v1746_v61 = vshll.u32 %v4702_v42, 16  ;;  %v5358_v41 = vld [vmem:[%s5802_s13 + $0x90] sm:$0xff]  }
  0xc2   : > { %v1134_v60 = vsel %vm5812_vm2, %v1132_v51, %v1133_v45  ;;  %v1752_v62 = vshll.u32 %v4703_v43, 16  ;;  %v1756_v63 = vshrl.u32 %v4703_v43, 16  ;;  %1231 = vrot.lane.b32.xlu1 %v4618_v39, %s5606_s23  ;;  %v1762_v6 = vshll.u32 %v4704_v48, 16  ;;  %v5359_v42 = vld [vmem:[%s5802_s13 + $0x30] sm:$0xff]  }
  0xc3   : > { %v4619_v2 = vcombine.low %v1131_v50, %v1134_v60  ;;  %v1078_v3 = vsel %vm5812_vm2, %v1076_v57, %v1077_v52  ;;  %v1745_v4 = vrot.slane %v1743_v58, 4  ;;  %v1748_v8 = vrot.slane %v1746_v61, 5  ;;  %v4683_v50 = vld [vmem:[%s5802_s13 + $0x38] sm:$0x1]  ;;  %v4767_v57 = vld [vmem:[%s5802_s13 + $0x88] sm:$0xf] }
  0xc4   : > { %v4611_v7 = vcombine.low %v1075_v56, %v1078_v3  ;;  %v1754_v9 = vrot.slane %v1752_v62, 5  ;;  %v1758_v10 = vrot.slane %v1756_v63, 4  ;;  %v1764_v11 = vrot.slane %v1762_v6, 5  ;;  %v4766_v56 = vld [vmem:[%s5802_s13 + $0x84] sm:$0xe] }
  0xc5   : > { %1215 = vrot.lane.b32.xlu0 %v4610_v55, %s5606_s23  ;;  %v1551_v12 = vshrl.u32 %v4678_v53, 16  ;;  %v1554_v13 = vshll.u32 %v4678_v53, 16  ;;  %v1560_v14 = vshll.u32 %v4679_v54, 16  ;;  %v1749_v15 = vor.u32 %v1748_v8, %v1745_v4  ;;  %v4768_v62 = vld [vmem:[%s5802_s13 + $0x8c] sm:$0x1] }
  0xc6   : > { %v1759_v16 = vor.u32 %v1758_v10, %v1754_v9  ;;  %v1564_v17 = vshrl.u32 %v4679_v54, 16  ;;  %v1570_v18 = vshll.u32 %v4680_v59, 16  ;;  %1233 = vrot.lane.b32.xlu1 %v4619_v2, %s5606_s23  ;;  %v1767_v24 = vshrl.u32 %v4705_v1, 16  ;;  %v4742_v63 = vld [vmem:[%s5802_s13 + $0x24] sm:$0xe] }
  0xc7   : > { %v1553_v21 = vrot.slane %v1551_v12, 4  ;;  %v1556_v22 = vrot.slane %v1554_v13, 5  ;;  %v1562_v23 = vrot.slane %v1560_v14, 5  ;;  %v1750_v25 = vrot.slane %v1749_v15, 4  ;;  %v4743_v6 = vld [vmem:[%s5802_s13 + $0x28] sm:$0xf] }
  0xc8   : > { %v1760_v26 = vrot.slane %v1759_v16, 4  ;;  %v1566_v27 = vrot.slane %v1564_v17, 4  ;;  %v1572_v28 = vrot.slane %v1570_v18, 5  ;;  %v1769_v32 = vrot.slane %v1767_v24, 4  ;;  %v4769_v16 = vld [vmem:[%s5802_s13 + $0x90] sm:$0xe] }
  0xc9   : > { %1217 = vrot.lane.b32.xlu0 %v4611_v7, %s5606_s23  ;;  %v1557_v31 = vor.u32 %v1556_v22, %v1553_v21  ;;  %v1770_v33 = vshll.u32 %v4705_v1, 16  ;;  %v1776_v34 = vshll.u32 %v4706_v19, 16  ;;  %v1755_v36 = vsel %vm5862_vm5, %v1750_v25, %v1754_v9  ;;  %v4770_v17 = vld [vmem:[%s5802_s13 + $0x94] sm:$0xf]  ;;  %v4771_v22 = vld [vmem:[%s5802_s13 + $0x98] sm:$0x1] }
  0xca   : > { %v1765_v37 = vsel %vm5862_vm5, %v1760_v26, %v1764_v11  ;;  %v1567_v38 = vor.u32 %v1566_v27, %v1562_v23  ;;  %v1780_v39 = vshrl.u32 %v4706_v19, 16  ;;  %1409 = vrot.lane.b32.xlu1 %v5356_v20, %s5605_s25  ;;  %v1786_v49 = vshll.u32 %v4707_v29, 16  ;;  %v4744_v11 = vld [vmem:[%s5802_s13 + $0x2c] sm:$0x1]  ;;  %v4745_v27 = vld [vmem:[%s5802_s13 + $0x30] sm:$0xe] }
  0xcb   : > { %v4730_v43 = vcombine.low %v1755_v36, %v1765_v37  ;;  %v1558_v44 = vrot.slane %v1557_v31, 4  ;;  %v1772_v45 = vrot.slane %v1770_v33, 5  ;;  %v1778_v46 = vrot.slane %v1776_v34, 5  ;;  %v4747_v37 = vld [vmem:[%s5802_s13 + $0x38] sm:$0x1] }
  0xcc   : > { %v1568_v47 = vrot.slane %v1567_v38, 4  ;;  %v1782_v48 = vrot.slane %v1780_v39, 4  ;;  %v1575_v51 = vshrl.u32 %v4681_v35, 16  ;;  %v1578_v54 = vshll.u32 %v4681_v35, 16  ;;  %v4894_v38 = vld [vmem:[%s5802_s13 + $0x90] sm:$0xf] }
  0xcd   : > { %1393 = vrot.lane.b32.xlu0 %v5357_v30, %s5605_s25  ;;  %v1563_v52 = vsel %vm5862_vm5, %v1558_v44, %v1562_v23  ;;  %v1773_v53 = vor.u32 %v1772_v45, %v1769_v32  ;;  %v1584_v55 = vshll.u32 %v4682_v40, 16  ;;  %v1788_v60 = vrot.slane %v1786_v49, 5  ;;  %v4746_v32 = vld [vmem:[%s5802_s13 + $0x34] sm:$0xf]  ;;  %v4896_v44 = vld [vmem:[%s5802_s13 + $0x98] sm:$0x1] }
  0xce   : > { %v1573_v58 = vsel %vm5862_vm5, %v1568_v47, %v1572_v28  ;;  %v1783_v59 = vor.u32 %v1782_v48, %v1778_v46  ;;  %v1577_v61 = vrot.slane %v1575_v51, 4  ;;  %1411 = vrot.lane.b32.xlu1 %v5358_v41, %s5605_s25  ;;  %v1580_v3 = vrot.slane %v1578_v54, 5  ;;  %v4870_v45 = vld [vmem:[%s5802_s13 + $0x30] sm:$0xf] }
  0xcf   : > { %v4722_v1 = vcombine.low %v1563_v52, %v1573_v58  ;;  %v1774_v2 = vrot.slane %v1773_v53, 4  ;;  %v1586_v4 = vrot.slane %v1584_v55, 5  ;;  %v1588_v8 = vshrl.u32 %v4682_v40, 16 }
  0xd0   : > { %v1784_v7 = vrot.slane %v1783_v59, 4  ;;  %v1594_v9 = vshll.u32 %v4683_v50, 16  ;;  %v4794_v10 = vrot.slane %v4766_v56, 9  ;;  %v1581_v13 = vor.u32 %v1580_v3, %v1577_v61  ;;  %v4871_v59 = vld [vmem:[%s5802_s13 + $0x34] sm:$0xf] }
  0xd1   : > { %1395 = vrot.lane.b32.xlu0 %v5359_v42, %s5605_s25  ;;  %v1779_v12 = vsel %vm5862_vm5, %v1774_v2, %v1778_v46  ;;  %v2167_v14 = vrot.slane %v4767_v57, 5  ;;  %v2170_v15 = vrot.slane %v4768_v62, 5  ;;  %v1590_v19 = vrot.slane %v1588_v8, 4  ;;  %v6152_v46 = vpop.permute.xlu1 %1405 }
  0xd2   : > { %v1789_v18 = vsel %vm5862_vm5, %v1784_v7, %v1788_v60  ;;  %v1596_v20 = vrot.slane %v1594_v9, 5  ;;  %v4786_v21 = vrot.slane %v4742_v63, 9  ;;  %1954 = vrot.lane.b32.xlu1 %v4730_v43, %s5608_s14  ;;  %v1582_v24 = vrot.slane %v1581_v13, 4  ;;  %v4895_v43 = vld [vmem:[%s5802_s13 + $0x94] sm:$0xf] }
  0xd3   : > { %v4731_v23 = vcombine.low %v1779_v12, %v1789_v18  ;;  %v2168_v25 = vsel %vm5812_vm2, %v4794_v10, %v2167_v14  ;;  %v2169_v26 = vrot.slane %v2167_v14, 4  ;;  %v1591_v28 = vor.u32 %v1590_v19, %v1586_v4  ;;  %v4897_v12 = vld [vmem:[%s5802_s13 + $0x9c] sm:$0xf]  ;;  %v4898_v18 = vld [vmem:[%s5802_s13 + $0xa0] sm:$0xf] }
  0xd4   : > { %v2111_v29 = vrot.slane %v4743_v6, 5  ;;  %v2114_v30 = vrot.slane %v4744_v11, 5  ;;  %v4795_v31 = vrot.slane %v4769_v16, 9  ;;  %v1587_v33 = vsel %vm5862_vm5, %v1582_v24, %v1586_v4  ;;  %v4872_v4 = vld [vmem:[%s5802_s13 + $0x38] sm:$0x1]  ;;  %v6171_v11 = vpop.permute.xlu0 %1389  ;;  %v5360_v24 = vld [vmem:[%s5802_s13 + $0x90] sm:$0xff]  }
  0xd5   : > { %1938 = vrot.lane.b32.xlu0 %v4722_v1, %s5608_s14  ;;  %v2171_v34 = vsel %vm5812_vm2, %v2169_v26, %v2170_v15  ;;  %v2174_v35 = vrot.slane %v4770_v17, 5  ;;  %v2177_v36 = vrot.slane %v4771_v22, 5  ;;  %v1592_v39 = vrot.slane %v1591_v28, 4 }
  0xd6   : > { %v4810_v40 = vcombine.low %v2168_v25, %v2171_v34  ;;  %v2112_v41 = vsel %vm5812_vm2, %v4786_v21, %v2111_v29  ;;  %v2113_v42 = vrot.slane %v2111_v29, 4  ;;  %1956 = vrot.lane.b32.xlu1 %v4731_v23, %s5608_s14  ;;  %v4787_v49 = vrot.slane %v4745_v27, 9  ;;  %v4899_v23 = vld [vmem:[%s5802_s13 + $0xa4] sm:$0x1]  ;;  %v4873_v29 = vld [vmem:[%s5802_s13 + $0x3c] sm:$0xf] }
  0xd7   : > { %v2175_v47 = vsel %vm5812_vm2, %v4795_v31, %v2174_v35  ;;  %v2176_v48 = vrot.slane %v2174_v35, 4  ;;  %v2118_v50 = vrot.slane %v4746_v32, 5  ;;  %v1597_v51 = vsel %vm5862_vm5, %v1592_v39, %v1596_v20 }
  0xd8   : > { %v2115_v52 = vsel %vm5812_vm2, %v2113_v42, %v2114_v30  ;;  %v2121_v53 = vrot.slane %v4747_v37, 5  ;;  %v2787_v54 = vshrl.u32 %v4894_v38, 16  ;;  %v4723_v55 = vcombine.low %v1587_v33, %v1597_v51  ;;  %v4874_v51 = vld [vmem:[%s5802_s13 + $0x40] sm:$0xf] }
  0xd9   : > { %v4802_v56 = vcombine.low %v2112_v41, %v2115_v52  ;;  %v2178_v57 = vsel %vm5812_vm2, %v2176_v48, %v2177_v36  ;;  %v2119_v58 = vsel %vm5812_vm2, %v4787_v49, %v2118_v50  ;;  %v2120_v61 = vrot.slane %v2118_v50, 4 }
  0xda   : > { %v4811_v60 = vcombine.low %v2175_v47, %v2178_v57  ;;  %v2789_v62 = vrot.slane %v2787_v54, 4  ;;  %v2790_v63 = vshll.u32 %v4894_v38, 16  ;;  %1940 = vrot.lane.b32.xlu0 %v4723_v55, %s5608_s14  ;;  %2275 = vrot.lane.b32.xlu1 %v4810_v40, %s5609_s21  ;;  %v2796_v1 = vshll.u32 %v4895_v43, 16  ;;  %v6174_v13 = vpop.permute.xlu1 %1227  ;;  %v5361_v38 = vld [vmem:[%s5802_s13 + $0x30] sm:$0xff]   ;;  %v4875_v55 = vld [vmem:[%s5802_s13 + $0x44] sm:$0x1] }
  0xdb   : > { %v2800_v2 = vshrl.u32 %v4895_v43, 16  ;;  %v2806_v3 = vshll.u32 %v4896_v44, 16  ;;  %v2595_v6 = vshrl.u32 %v4870_v45, 16  ;;  %v2122_v7 = vsel %vm5812_vm2, %v2120_v61, %v2121_v53  ;;  %v6185_v43 = vpop.permute.xlu0 %1211  ;;  %v5363_v57 = vld [vmem:[%s5802_s13 + $0x3c] sm:$0xff]  }
  0xdc   : > { %v2792_v8 = vrot.slane %v2790_v63, 5  ;;  %v2598_v9 = vshll.u32 %v4870_v45, 16  ;;  %v2604_v10 = vshll.u32 %v4871_v59, 16  ;;  %v4803_v14 = vcombine.low %v2119_v58, %v2122_v7  ;;  %v5362_v45 = vld [vmem:[%s5802_s13 + $0x9c] sm:$0xff]  }
  0xdd   : > { %v2798_v15 = vrot.slane %v2796_v1, 5  ;;  %v2802_v16 = vrot.slane %v2800_v2, 4  ;;  %v2808_v17 = vrot.slane %v2806_v3, 5  ;;  %v2597_v20 = vrot.slane %v2595_v6, 4 }
  0xde   : > { %v2793_v19 = vor.u32 %v2792_v8, %v2789_v62  ;;  %v2600_v21 = vrot.slane %v2598_v9, 5  ;;  %v2606_v22 = vrot.slane %v2604_v10, 5  ;;  %2259 = vrot.lane.b32.xlu0 %v4802_v56, %s5609_s21  ;;  %2277 = vrot.lane.b32.xlu1 %v4811_v60, %s5609_s21  ;;  %v2608_v26 = vshrl.u32 %v4871_v59, 16  ;;  %v6187_v44 = vpop.permute.xlu1 %1229  ;;  %v4958_v62 = vld [vmem:[%s5802_s13 + $0x90] sm:$0xe] }
  0xdf   : > { %v2803_v25 = vor.u32 %v2802_v16, %v2798_v15  ;;  %v2614_v27 = vshll.u32 %v4872_v4, 16  ;;  %v2811_v28 = vshrl.u32 %v4897_v12, 16  ;;  %v2814_v32 = vshll.u32 %v4897_v12, 16  ;;  %v4959_v4 = vld [vmem:[%s5802_s13 + $0x94] sm:$0xf] }
  0xe0   : > { %v2794_v30 = vrot.slane %v2793_v19, 4  ;;  %v2601_v31 = vor.u32 %v2600_v21, %v2597_v20  ;;  %v2820_v33 = vshll.u32 %v4898_v18, 16  ;;  %v2610_v35 = vrot.slane %v2608_v26, 4  ;;  %v4960_v10 = vld [vmem:[%s5802_s13 + $0x98] sm:$0x1]  ;;  %v6211_v20 = vpop.permute.xlu0 %1213 }
  0xe1   : > { %v2804_v34 = vrot.slane %v2803_v25, 4  ;;  %v2616_v36 = vrot.slane %v2614_v27, 5  ;;  %v2813_v37 = vrot.slane %v2811_v28, 4  ;;  %v2816_v41 = vrot.slane %v2814_v32, 5  ;;  %v4934_v12 = vld [vmem:[%s5802_s13 + $0x30] sm:$0xe] }
  0xe2   : > { %v2799_v39 = vsel %vm5862_vm5, %v2794_v30, %v2798_v15  ;;  %v2602_v40 = vrot.slane %v2601_v31, 4  ;;  %v2822_v42 = vrot.slane %v2820_v33, 5  ;;  %2261 = vrot.lane.b32.xlu0 %v4803_v14, %s5609_s21  ;;  %2453 = vrot.lane.b32.xlu1 %v5360_v24, %s5610_s12  ;;  %v2611_v48 = vor.u32 %v2610_v35, %v2606_v22  ;;  %v4936_v19 = vld [vmem:[%s5802_s13 + $0x38] sm:$0x1]  ;;  %v440_v30 = vld [vmem:[%s5802_s13 + $0x90] sm:$0xf] }
  0xe3   : > { %v2809_v47 = vsel %vm5862_vm5, %v2804_v34, %v2808_v17  ;;  %v2824_v49 = vshrl.u32 %v4898_v18, 16  ;;  %v2830_v50 = vshll.u32 %v4899_v23, 16  ;;  %v2817_v54 = vor.u32 %v2816_v41, %v2813_v37  ;;  %v4935_v18 = vld [vmem:[%s5802_s13 + $0x34] sm:$0xf]  ;;  %v416_v41 = vld [vmem:[%s5802_s13 + $0x30] sm:$0xf] }
  0xe4   : > { %v4922_v52 = vcombine.low %v2799_v39, %v2809_v47  ;;  %v2607_v53 = vsel %vm5862_vm5, %v2602_v40, %v2606_v22  ;;  %v2619_v56 = vshrl.u32 %v4873_v29, 16  ;;  %v2612_v58 = vrot.slane %v2611_v48, 4  ;;  %v441_v35 = vld [vmem:[%s5802_s13 + $0x94] sm:$0xf]  ;;  %v442_v40 = vld [vmem:[%s5802_s13 + $0x98] sm:$0x1] }
  0xe5   : > { %v2826_v59 = vrot.slane %v2824_v49, 4  ;;  %v2832_v60 = vrot.slane %v2830_v50, 5  ;;  %v2622_v61 = vshll.u32 %v4873_v29, 16  ;;  %v2818_v63 = vrot.slane %v2817_v54, 4  ;;  %v417_v49 = vld [vmem:[%s5802_s13 + $0x34] sm:$0xf] }
  0xe6   : > { %v2621_v1 = vrot.slane %v2619_v56, 4  ;;  %v2628_v2 = vshll.u32 %v4874_v51, 16  ;;  %v2632_v3 = vshrl.u32 %v4874_v51, 16  ;;  %2437 = vrot.lane.b32.xlu0 %v5361_v38, %s5610_s12  ;;  %2455 = vrot.lane.b32.xlu1 %v5362_v45, %s5610_s12  ;;  %v2617_v6 = vsel %vm5862_vm5, %v2612_v58, %v2616_v36  ;;  %v6213_v21 = vpop.permute.xlu1 %889  ;;  %v418_v50 = vld [vmem:[%s5802_s13 + $0x38] sm:$0x1] }
  0xe7   : > { %v2827_v7 = vor.u32 %v2826_v59, %v2822_v42  ;;  %v2624_v8 = vrot.slane %v2622_v61, 5  ;;  %v2638_v9 = vshll.u32 %v4875_v55, 16  ;;  %v4914_v14 = vcombine.low %v2607_v53, %v2617_v6  ;;  %v5367_v6 = vld [vmem:[%s5802_s13 + $0x60] sm:$0xff]  }
  0xe8   : > { %v2823_v15 = vsel %vm5862_vm5, %v2818_v63, %v2822_v42  ;;  %v2630_v16 = vrot.slane %v2628_v2, 5  ;;  %v2634_v17 = vrot.slane %v2632_v3, 4  ;;  %v4986_v25 = vrot.slane %v4958_v62, 9  ;;  %v5364_v2 = vld [vmem:[%s5802_s13 + $0xc] sm:$0xff]   ;;  %v5365_v3 = vld [vmem:[%s5802_s13] sm:$0xff]  }
  0xe9   : > { %v2828_v22 = vrot.slane %v2827_v7, 4  ;;  %v2625_v23 = vor.u32 %v2624_v8, %v2621_v1  ;;  %v2640_v24 = vrot.slane %v2638_v9, 5  ;;  %v3211_v27 = vrot.slane %v4959_v4, 5  ;;  %v5366_v4 = vld [vmem:[%s5802_s13 + $0x6c] sm:$0xff]   ;;  %v5376_v7 = vld [vmem:[%s5802_s13 + $0x78] sm:$0xff]   ;;  %v5380_v9 = vld [vmem:[%s5802_s13 + $0x84] sm:$0xff]  }
  0xea   : > { %v2635_v26 = vor.u32 %v2634_v17, %v2630_v16  ;;  %v3214_v28 = vrot.slane %v4960_v10, 5  ;;  %v4978_v29 = vrot.slane %v4934_v12, 9  ;;  %2439 = vrot.lane.b32.xlu0 %v5363_v57, %s5610_s12  ;;  %2998 = vrot.lane.b32.xlu1 %v4922_v52, %s5611_s6  ;;  %v3155_v33 = vrot.slane %v4935_v18, 5  ;;  %v6237_v55 = vpop.permute.xlu0 %887  ;;  %v5377_v8 = vld [vmem:[%s5802_s13 + $0x18] sm:$0xff]  }
  0xeb   : > { %v2833_v31 = vsel %vm5862_vm5, %v2828_v22, %v2832_v60  ;;  %v2626_v32 = vrot.slane %v2625_v23, 4  ;;  %v3158_v34 = vrot.slane %v4936_v19, 5  ;;  %v3212_v38 = vsel %vm5812_vm2, %v4986_v25, %v3211_v27  ;;  %v4962_v23 = vld [vmem:[%s5802_s13 + $0xa0] sm:$0xf]  ;;  %v4937_v25 = vld [vmem:[%s5802_s13 + $0x3c] sm:$0xe] }
  0xec   : > { %v4923_v36 = vcombine.low %v2823_v15, %v2833_v31  ;;  %v2636_v37 = vrot.slane %v2635_v26, 4  ;;  %v3213_v39 = vrot.slane %v3211_v27, 4  ;;  %v6229_v45 = vsel %vm5812_vm2, %v4978_v29, %v3155_v33  ;;  %v5381_v26 = vld [vmem:[%s5802_s13 + $0x24] sm:$0xff]  }
  0xed   : > { %v2631_v42 = vsel %vm5862_vm5, %v2626_v32, %v2630_v16  ;;  %v3157_v47 = vrot.slane %v3155_v33, 4  ;;  %v744_v48 = vshrl.u32 %v440_v30, 16  ;;  %v747_v53 = vshll.u32 %v440_v30, 16  ;;  %v6256_v16 = vld [vmem:[%s5802_s13 + $0x9c] sm:$0xe] }
  0xee   : > { %v2641_v51 = vsel %vm5862_vm5, %v2636_v37, %v2640_v24  ;;  %v3215_v52 = vsel %vm5812_vm2, %v3213_v39, %v3214_v28  ;;  %v753_v54 = vshll.u32 %v441_v35, 16  ;;  %v6239_v56 = vpop.permute.xlu1 %905  ;;  %2982 = vrot.lane.b32.xlu0 %v4914_v14, %s5611_s6  ;;  %3000 = vrot.lane.b32.xlu1 %v4923_v36, %s5611_s6  ;;  %v757_v1 = vshrl.u32 %v441_v35, 16  ;;  %v6260_v24 = vld [vmem:[%s5802_s13 + $0xa4] sm:$0x1]  ;;  %v4938_v35 = vld [vmem:[%s5802_s13 + $0x40] sm:$0xf] }
  0xef   : > { %v4915_v57 = vcombine.low %v2631_v42, %v2641_v51  ;;  %v5002_v58 = vcombine.low %v3212_v38, %v3215_v52  ;;  %v3159_v59 = vsel %vm5812_vm2, %v3157_v47, %v3158_v34  ;;  %v746_v60 = vrot.slane %v744_v48, 4  ;;  %v4939_v39 = vld [vmem:[%s5802_s13 + $0x44] sm:$0x1]  ;;  %v443_v51 = vld [vmem:[%s5802_s13 + $0x9c] sm:$0xf] }
  0xf0   : > { %v4994_v61 = vcombine.low %v6229_v45, %v3159_v59  ;;  %v749_v62 = vrot.slane %v747_v53, 5  ;;  %v6246_v63 = vrot.slane %v753_v54, 5  ;;  %v763_v10 = vshll.u32 %v442_v40, 16 }
  0xf1   : > { %v552_v12 = vshrl.u32 %v416_v41, 16  ;;  %v555_v14 = vshll.u32 %v416_v41, 16  ;;  %v561_v15 = vshll.u32 %v417_v49, 16  ;;  %v759_v18 = vrot.slane %v757_v1, 4 }
  0xf2   : > { %v750_v17 = vor.u32 %v749_v62, %v746_v60  ;;  %v565_v19 = vshrl.u32 %v417_v49, 16  ;;  %v571_v22 = vshll.u32 %v418_v50, 16  ;;  %2984 = vrot.lane.b32.xlu0 %v4915_v57, %s5611_s6  ;;  %3319 = vrot.lane.b32.xlu1 %v5002_v58, %s5612_s9  ;;  %v765_v27 = vrot.slane %v763_v10, 5  ;;  %v6268_v37 = vpop.permute.xlu1 %1407  ;;  %v445_v60 = vld [vmem:[%s5802_s13 + $0xa4] sm:$0x1] }
  0xf3   : > { %v554_v28 = vrot.slane %v552_v12, 4  ;;  %v557_v29 = vrot.slane %v555_v14, 5  ;;  %v563_v30 = vrot.slane %v561_v15, 5  ;;  %v760_v32 = vor.u32 %v759_v18, %v6246_v63  ;;  %v904_v36 = vpop.permute.xlu0 %903  ;;  %v421_v12 = vld [vmem:[%s5802_s13 + $0x44] sm:$0x1] }
  0xf4   : > { %v751_v31 = vrot.slane %v750_v17, 4  ;;  %v567_v33 = vrot.slane %v565_v19, 4  ;;  %v573_v34 = vrot.slane %v571_v22, 5  ;;  %vm387_vm6 = vcmask 31744   ;;  %v988_v18 = vld [vmem:[%s5802_s13 + $0x90] sm:$0xe] }
  0xf5   : > { %v558_v38 = vor.u32 %v557_v29, %v554_v28  ;;  %vm935_vm7 = vcmask 64544   ;;  %vm1259_vm8 = vcmask 97344   ;;  %v761_v41 = vrot.slane %v760_v32, 4  ;;  %389 = vst.msk [vmem:[#allocation2 + $0x8] sm:$0xff] %vm387_vm6, %v5364_v2  ;;  %388 = vst.msk [vmem:[#allocation2] sm:$0xff] %vm387_vm6, %v5365_v3 }
  0xf6   : > { %v756_v40 = vsel %vm5862_vm5, %v751_v31, %v6246_v63  ;;  %v568_v42 = vor.u32 %v567_v33, %v563_v30  ;;  %v4987_v45 = vrot.slane %v6256_v16, 9  ;;  %397 = vst.msk [vmem:[#allocation2 + $0x48] sm:$0xff] %vm387_vm6, %v5366_v4  ;;  %396 = vst.msk [vmem:[#allocation2 + $0x40] sm:$0xff] %vm387_vm6, %v5367_v6  ;;  %3303 = vrot.lane.b32.xlu0 %v4994_v61, %s5612_s9  ;;  %v3218_v48 = vrot.slane %v4962_v23, 5  ;;  %v419_v4 = vld [vmem:[%s5802_s13 + $0x3c] sm:$0xf] }
  0xf7   : > { %398 = vst.msk [vmem:[#allocation2 + $0x50] sm:$0xff] %vm387_vm6, %v5376_v7  ;;  %390 = vst.msk [vmem:[#allocation2 + $0x10] sm:$0xff] %vm387_vm6, %v5377_v8  ;;  %v559_v47 = vrot.slane %v558_v38, 4  ;;  %v3221_v49 = vrot.slane %v6260_v24, 5  ;;  %v4979_v50 = vrot.slane %v4937_v25, 9  ;;  %v766_v52 = vsel %vm5862_vm5, %v761_v41, %v765_v27 }
  0xf8   : > { %399 = vst.msk [vmem:[#allocation2 + $0x58] sm:$0xff] %vm387_vm6, %v5380_v9  ;;  %391 = vst.msk [vmem:[#allocation2 + $0x18] sm:$0xff] %vm387_vm6, %v5381_v26  ;;  %v569_v53 = vrot.slane %v568_v42, 4  ;;  %v3165_v54 = vrot.slane %v4939_v39, 5  ;;  %v4588_v57 = vcombine.low %v756_v40, %v766_v52  ;;  %v768_v61 = vshrl.u32 %v443_v51, 16  ;;  %v6313_v62 = vpop.permute.xlu1 %1950  ;;  %v5391_v40 = vld [vmem:[%s5802_s13 + $0x90] sm:$0xff]  }
  0xf9   : > { %937 = vst.msk [vmem:[#allocation2 + $0x8] sm:$0xff] %vm935_vm7, %v6213_v21  ;;  %936 = vst.msk [vmem:[#allocation2] sm:$0xff] %vm935_vm7, %v6237_v55  ;;  %v3162_v21 = vrot.slane %v4938_v35, 5  ;;  %v444_v55 = vld [vmem:[%s5802_s13 + $0xa0] sm:$0xf]  ;;  %v564_v58 = vsel %vm5862_vm5, %v559_v47, %v563_v30  ;;  %v771_v2 = vshll.u32 %v443_v51, 16 }
  0xfa   : > { %945 = vst.msk [vmem:[#allocation2 + $0x48] sm:$0xff] %vm935_vm7, %v6239_v56  ;;  %944 = vst.msk [vmem:[#allocation2 + $0x40] sm:$0xff] %vm935_vm7, %v904_v36  ;;  %v1392_v56 = vpop.permute.xlu0 %1391  ;;  %v574_v59 = vsel %vm5862_vm5, %v569_v53, %v573_v34  ;;  %911 = vrot.lane.b32.xlu1 %v4588_v57, %s5607_s27  ;;  %v777_v3 = vshll.u32 %v444_v55, 16  ;;  %v420_v6 = vld [vmem:[%s5802_s13 + $0x40] sm:$0xf]  ;;  %v770_v9 = vrot.slane %v768_v61, 4 }
  0xfb   : > { %1260 = vst.msk [vmem:[#allocation2] sm:$0xff] %vm1259_vm8, %v6185_v43  ;;  %1261 = vst.msk [vmem:[#allocation2 + $0x8] sm:$0xff] %vm1259_vm8, %v6211_v20  ;;  %v3219_v43 = vsel %vm5812_vm2, %v4987_v45, %v3218_v48  ;;  %v3220_v20 = vrot.slane %v3218_v48, 4  ;;  %v4580_v63 = vcombine.low %v564_v58, %v574_v59  ;;  %v781_v10 = vshrl.u32 %v444_v55, 16  ;;  %v989_v19 = vld [vmem:[%s5802_s13 + $0x94] sm:$0xf] }
  0xfc   : > { %1269 = vst.msk [vmem:[#allocation2 + $0x48] sm:$0xff] %vm1259_vm8, %v6187_v44  ;;  %1268 = vst.msk [vmem:[#allocation2 + $0x40] sm:$0xff] %vm1259_vm8, %v6174_v13  ;;  %v3163_v44 = vsel %vm5812_vm2, %v4979_v50, %v3162_v21  ;;  %v3164_v13 = vrot.slane %v3162_v21, 4  ;;  %v773_v15 = vrot.slane %v771_v2, 5  ;;  %v779_v16 = vrot.slane %v777_v3, 5  ;;  %v5392_v53 = vld [vmem:[%s5802_s13 + $0x30] sm:$0xff]  }
  0xfd   : > { %v3222_v1 = vsel %vm5812_vm2, %v3220_v20, %v3221_v49  ;;  %895 = vrot.lane.b32.xlu0 %v4580_v63, %s5607_s27  ;;  %v787_v17 = vshll.u32 %v445_v60, 16  ;;  %v783_v23 = vrot.slane %v781_v10, 4  ;;  %v576_v24 = vshrl.u32 %v419_v4, 16  ;;  %v990_v27 = vld [vmem:[%s5802_s13 + $0x98] sm:$0x1]  ;;  %400 = vst.msk [vmem:[#allocation2 + $0x60] sm:$0xff] %vm387_vm6, %v5391_v40 }
  0xfe   : > { %v5003_v7 = vcombine.low %v3219_v43, %v3222_v1  ;;  %v3166_v8 = vsel %vm5812_vm2, %v3164_v13, %v3165_v54  ;;  %v6326_v22 = vpop.permute.xlu0 %1934  ;;  %v579_v25 = vshll.u32 %v419_v4, 16  ;;  %v585_v26 = vshll.u32 %v420_v6, 16  ;;  %v964_v32 = vld [vmem:[%s5802_s13 + $0x30] sm:$0xe]  ;;  %v965_v38 = vld [vmem:[%s5802_s13 + $0x34] sm:$0xf] }
  0xff   : > { %v4995_v14 = vcombine.low %v3163_v44, %v3166_v8  ;;  %v774_v28 = vor.u32 %v773_v15, %v770_v9  ;;  %v789_v29 = vrot.slane %v787_v17, 5  ;;  %v589_v30 = vshrl.u32 %v420_v6, 16  ;;  %v966_v47 = vld [vmem:[%s5802_s13 + $0x38] sm:$0x1]  ;;  %v991_v52 = vld [vmem:[%s5802_s13 + $0x9c] sm:$0xe] }
 0x100   : > { %3321 = vrot.lane.b32.xlu1 %v5003_v7, %s5612_s9  ;;  %v595_v31 = vshll.u32 %v421_v12, 16  ;;  %v784_v33 = vor.u32 %v783_v23, %v779_v16  ;;  %v578_v34 = vrot.slane %v576_v24, 4  ;;  %v581_v35 = vrot.slane %v579_v25, 5  ;;  %v1953_v39 = vpop.permute.xlu1 %1952  ;;  %v6349_v57 = vld [vmem:[%s5802_s13 + $0xa4] sm:$0x1]  ;;  %392 = vst.msk [vmem:[#allocation2 + $0x20] sm:$0xff] %vm387_vm6, %v5392_v53 }
 0x101   : > { %v587_v36 = vrot.slane %v585_v26, 5  ;;  %3305 = vrot.lane.b32.xlu0 %v4995_v14, %s5612_s9  ;;  %v775_v41 = vrot.slane %v774_v28, 4  ;;  %v591_v42 = vrot.slane %v589_v30, 4  ;;  %vm1437_vm9 = vcmask 130144   ;;  %v968_v44 = vld [vmem:[%s5802_s13 + $0x40] sm:$0xf] }
 0x102   : > { %v597_v45 = vrot.slane %v595_v31, 5  ;;  %v785_v48 = vrot.slane %v784_v33, 4  ;;  %v582_v49 = vor.u32 %v581_v35, %v578_v34  ;;  %1447 = vst.msk [vmem:[#allocation2 + $0x48] sm:$0xff] %vm1437_vm9, %v6268_v37  ;;  %1438 = vst.msk [vmem:[#allocation2] sm:$0xff] %vm1437_vm9, %v6171_v11  ;;  %v4604_v50 = vrot.slane %v988_v18, 9  ;;  %v5393_v17 = vld [vmem:[%s5802_s13 + $0x9c] sm:$0xff]  }
 0x103   : > { %1446 = vst.msk [vmem:[#allocation2 + $0x40] sm:$0xff] %vm1437_vm9, %v6152_v46  ;;  %1439 = vst.msk [vmem:[#allocation2 + $0x8] sm:$0xff] %vm1437_vm9, %v1392_v56  ;;  %v1137_v51 = vrot.slane %v989_v19, 5  ;;  %v780_v21 = vsel %vm5862_vm5, %v775_v41, %v779_v16  ;;  %v592_v37 = vor.u32 %v591_v42, %v587_v36  ;;  %v1140_v54 = vrot.slane %v990_v27, 5  ;;  %v992_v11 = vld [vmem:[%s5802_s13 + $0xa0] sm:$0xf]  ;;  %v1937_v56 = vpop.permute.xlu0 %1936 }
 0x104   : > { %v4596_v55 = vrot.slane %v964_v32, 9  ;;  %v967_v46 = vld [vmem:[%s5802_s13 + $0x3c] sm:$0xe]  ;;  %v790_v58 = vsel %vm5862_vm5, %v785_v48, %v789_v29  ;;  %v583_v43 = vrot.slane %v582_v49, 4  ;;  %v6358_v13 = vld [vmem:[%s5802_s13 + $0x44] sm:$0x1]  ;;  %v2272_v60 = vpop.permute.xlu1 %2271 }
 0x105   : > { %v1138_v20 = vsel %vm5812_vm2, %v4604_v50, %v1137_v51  ;;  %v1139_v59 = vrot.slane %v1137_v51, 4  ;;  %v4589_v61 = vcombine.low %v780_v21, %v790_v58  ;;  %v593_v63 = vrot.slane %v592_v37, 4  ;;  %v4708_v3 = vld [vmem:[%s5802_s13 + $0x9c] sm:$0xf]  ;;  %v4709_v8 = vld [vmem:[%s5802_s13 + $0xa0] sm:$0xf] }
 0x106   : > { %v1081_v1 = vrot.slane %v965_v38, 5  ;;  %v1084_v2 = vrot.slane %v966_v47, 5  ;;  %v588_v4 = vsel %vm5862_vm5, %v583_v43, %v587_v36  ;;  %vm1982_vm10 = vcmask 162944   ;;  %v4710_v16 = vld [vmem:[%s5802_s13 + $0xa4] sm:$0x1]  ;;  %v5394_v26 = vld [vmem:[%s5802_s13 + $0x3c] sm:$0xff]  }
 0x107   : > { %v1141_v6 = vsel %vm5812_vm2, %v1139_v59, %v1140_v54  ;;  %v4605_v7 = vrot.slane %v991_v52, 9  ;;  %913 = vrot.lane.b32.xlu1 %v4589_v61, %s5607_s27  ;;  %v598_v9 = vsel %vm5862_vm5, %v593_v63, %v597_v45  ;;  %1991 = vst.msk [vmem:[#allocation2 + $0x40] sm:$0xff] %vm1982_vm10, %v6313_v62  ;;  %1983 = vst.msk [vmem:[#allocation2] sm:$0xff] %vm1982_vm10, %v6326_v22  ;;  %v2256_v15 = vpop.permute.xlu0 %2255  ;;  %v1144_v19 = vrot.slane %v992_v11, 5  ;;  %v4684_v28 = vld [vmem:[%s5802_s13 + $0x3c] sm:$0xf] }
 0x108   : > { %v4620_v10 = vcombine.low %v1138_v20, %v1141_v6  ;;  %v1082_v12 = vsel %vm5812_vm2, %v4596_v55, %v1081_v1  ;;  %v1083_v14 = vrot.slane %v1081_v1, 4  ;;  %1992 = vst.msk [vmem:[#allocation2 + $0x48] sm:$0xff] %vm1982_vm10, %v1953_v39  ;;  %1984 = vst.msk [vmem:[#allocation2 + $0x8] sm:$0xff] %vm1982_vm10, %v1937_v56  ;;  %v4581_v18 = vcombine.low %v588_v4, %v598_v9  ;;  %v2274_v25 = vpop.permute.xlu1 %2273  ;;  %v4685_v33 = vld [vmem:[%s5802_s13 + $0x40] sm:$0xf] }
 0x109   : > { %v1147_v23 = vrot.slane %v6349_v57, 5  ;;  %v4597_v24 = vrot.slane %v967_v46, 9  ;;  %v1088_v22 = vrot.slane %v968_v44, 5  ;;  %v1091_v27 = vrot.slane %v6358_v13, 5  ;;  %401 = vst.msk [vmem:[#allocation2 + $0x68] sm:$0xff] %vm387_vm6, %v5393_v17  ;;  %393 = vst.msk [vmem:[#allocation2 + $0x28] sm:$0xff] %vm387_vm6, %v5394_v26 }
 0x10a   : > { %v1085_v62 = vsel %vm5812_vm2, %v1083_v14, %v1084_v2  ;;  %vm2303_vm11 = vcmask 195744   ;;  %897 = vrot.lane.b32.xlu0 %v4581_v18, %s5607_s27  ;;  %v1145_v30 = vsel %vm5812_vm2, %v4605_v7, %v1144_v19  ;;  %v1146_v31 = vrot.slane %v1144_v19, 4  ;;  %v4686_v40 = vld [vmem:[%s5802_s13 + $0x44] sm:$0x1]  ;;  %v5368_v55 = vld [vmem:[%s5802_s13 + $0x9c] sm:$0xff]  }
 0x10b   : > { %v4612_v29 = vcombine.low %v1082_v12, %v1085_v62  ;;  %2312 = vst.msk [vmem:[#allocation2 + $0x40] sm:$0xff] %vm2303_vm11, %v2272_v60  ;;  %2304 = vst.msk [vmem:[#allocation2] sm:$0xff] %vm2303_vm11, %v2256_v15  ;;  %v1791_v32 = vshrl.u32 %v4708_v3, 16  ;;  %1235 = vrot.lane.b32.xlu1 %v4620_v10, %s5606_s23  ;;  %v1089_v34 = vsel %vm5812_vm2, %v4597_v24, %v1088_v22  ;;  %v1090_v35 = vrot.slane %v1088_v22, 4  ;;  %v2258_v36 = vpop.permute.xlu0 %2257  ;;  %v4711_v43 = vld [vmem:[%s5802_s13 + $0xa8] sm:$0xf] }
 0x10c   : > { %2313 = vst.msk [vmem:[#allocation2 + $0x48] sm:$0xff] %vm2303_vm11, %v2274_v25  ;;  %v1794_v38 = vshll.u32 %v4708_v3, 16  ;;  %v1800_v39 = vshll.u32 %v4709_v8, 16  ;;  %v1148_v41 = vsel %vm5812_vm2, %v1146_v31, %v1147_v23  ;;  %2305 = vst.msk [vmem:[#allocation2 + $0x8] sm:$0xff] %vm2303_vm11, %v2258_v36  ;;  %v1804_v45 = vshrl.u32 %v4709_v8, 16  ;;  %v2450_v48 = vpop.permute.xlu1 %2449  ;;  %v5369_v61 = vld [vmem:[%s5802_s13 + $0x3c] sm:$0xff]  }
 0x10d   : > { %v1793_v42 = vrot.slane %v1791_v32, 4  ;;  %v1810_v47 = vshll.u32 %v4710_v16, 16  ;;  %v4621_v49 = vcombine.low %v1145_v30, %v1148_v41  ;;  %v1092_v50 = vsel %vm5812_vm2, %v1090_v35, %v1091_v27  ;;  %v4712_v13 = vld [vmem:[%s5802_s13 + $0xac] sm:$0xf]  ;;  %v4713_v7 = vld [vmem:[%s5802_s13 + $0xb0] sm:$0x1] }
 0x10e   : > { %v1796_v51 = vrot.slane %v1794_v38, 5  ;;  %v1802_v52 = vrot.slane %v1800_v39, 5  ;;  %1219 = vrot.lane.b32.xlu0 %v4612_v29, %s5606_s23  ;;  %v4613_v53 = vcombine.low %v1089_v34, %v1092_v50  ;;  %v1806_v21 = vrot.slane %v1804_v45, 4  ;;  %v5370_v10 = vld [vmem:[%s5802_s13 + $0xa8] sm:$0xff]   ;;  %v4689_v30 = vld [vmem:[%s5802_s13 + $0x50] sm:$0x1] }
 0x10f   : > { %v1812_v37 = vrot.slane %v1810_v47, 5  ;;  %v1599_v54 = vshrl.u32 %v4684_v28, 16  ;;  %1237 = vrot.lane.b32.xlu1 %v4621_v49, %s5606_s23  ;;  %v1602_v57 = vshll.u32 %v4684_v28, 16  ;;  %v1608_v46 = vshll.u32 %v4685_v33, 16  ;;  %v2434_v58 = vpop.permute.xlu0 %2433  ;;  %v4687_v17 = vld [vmem:[%s5802_s13 + $0x48] sm:$0xf] }
 0x110   : > { %v1797_v11 = vor.u32 %v1796_v51, %v1793_v42  ;;  %v1612_v56 = vshrl.u32 %v4685_v33, 16  ;;  %v1807_v20 = vor.u32 %v1806_v21, %v1802_v52  ;;  %v1618_v44 = vshll.u32 %v4686_v40, 16  ;;  %v2452_v60 = vpop.permute.xlu1 %2451  ;;  %v4688_v18 = vld [vmem:[%s5802_s13 + $0x4c] sm:$0xf]  ;;  %v4772_v36 = vld [vmem:[%s5802_s13 + $0x9c] sm:$0xe] }
 0x111   : > { %v1601_v59 = vrot.slane %v1599_v54, 4  ;;  %vm2481_vm12 = vcmask 228544   ;;  %v1604_v1 = vrot.slane %v1602_v57, 5  ;;  %v1610_v2 = vrot.slane %v1608_v46, 5  ;;  %v5371_v31 = vld [vmem:[%s5802_s13 + $0x48] sm:$0xff]  }
 0x112   : > { %v1798_v63 = vrot.slane %v1797_v11, 4  ;;  %v1614_v3 = vrot.slane %v1612_v56, 4  ;;  %2490 = vst.msk [vmem:[#allocation2 + $0x40] sm:$0xff] %vm2481_vm12, %v2450_v48  ;;  %2482 = vst.msk [vmem:[#allocation2] sm:$0xff] %vm2481_vm12, %v2434_v58  ;;  %1221 = vrot.lane.b32.xlu0 %v4613_v53, %s5606_s23  ;;  %v1808_v4 = vrot.slane %v1807_v20, 4  ;;  %v1620_v6 = vrot.slane %v1618_v44, 5 }
 0x113   : > { %2491 = vst.msk [vmem:[#allocation2 + $0x48] sm:$0xff] %vm2481_vm12, %v2452_v60  ;;  %v1815_v8 = vshrl.u32 %v4711_v43, 16  ;;  %v1818_v9 = vshll.u32 %v4711_v43, 16  ;;  %1413 = vrot.lane.b32.xlu1 %v5368_v55, %s5605_s25  ;;  %v1605_v14 = vor.u32 %v1604_v1, %v1601_v59  ;;  %v1824_v16 = vshll.u32 %v4712_v13, 16  ;;  %v2436_v19 = vpop.permute.xlu0 %2435  ;;  %v4773_v42 = vld [vmem:[%s5802_s13 + $0xa0] sm:$0xf] }
 0x114   : > { %v1803_v12 = vsel %vm5862_vm5, %v1798_v63, %v1802_v52  ;;  %v1615_v15 = vor.u32 %v1614_v3, %v1610_v2  ;;  %v1813_v23 = vsel %vm5862_vm5, %v1808_v4, %v1812_v37  ;;  %v1828_v26 = vshrl.u32 %v4712_v13, 16  ;;  %2483 = vst.msk [vmem:[#allocation2 + $0x8] sm:$0xff] %vm2481_vm12, %v2436_v19  ;;  %v6424_v62 = vpop.permute.xlu1 %2994  ;;  %v4774_v45 = vld [vmem:[%s5802_s13 + $0xa4] sm:$0x1]  ;;  %v4748_v52 = vld [vmem:[%s5802_s13 + $0x3c] sm:$0xe] }
 0x115   : > { %v1817_v24 = vrot.slane %v1815_v8, 4  ;;  %v1820_v25 = vrot.slane %v1818_v9, 5  ;;  %v4732_v22 = vcombine.low %v1803_v12, %v1813_v23  ;;  %v1606_v27 = vrot.slane %v1605_v14, 4  ;;  %v4749_v53 = vld [vmem:[%s5802_s13 + $0x40] sm:$0xf] }
 0x116   : > { %v1616_v28 = vrot.slane %v1615_v15, 4  ;;  %v1826_v29 = vrot.slane %v1824_v16, 5  ;;  %1397 = vrot.lane.b32.xlu0 %v5369_v61, %s5605_s25  ;;  %v1830_v33 = vrot.slane %v1828_v26, 4  ;;  %v1834_v34 = vshll.u32 %v4713_v7, 16  ;;  %v4750_v57 = vld [vmem:[%s5802_s13 + $0x44] sm:$0x1] }
 0x117   : > { %v1821_v32 = vor.u32 %v1820_v25, %v1817_v24  ;;  %v1623_v35 = vshrl.u32 %v4687_v17, 16  ;;  %1415 = vrot.lane.b32.xlu1 %v5370_v10, %s5605_s25  ;;  %v1611_v38 = vsel %vm5862_vm5, %v1606_v27, %v1610_v2  ;;  %v1626_v40 = vshll.u32 %v4687_v17, 16  ;;  %v2979_v47 = vpop.permute.xlu0 %2978  ;;  %v4775_v20 = vld [vmem:[%s5802_s13 + $0xa8] sm:$0xe]  ;;  %v4776_v61 = vld [vmem:[%s5802_s13 + $0xac] sm:$0xf] }
 0x118   : > { %v1621_v39 = vsel %vm5862_vm5, %v1616_v28, %v1620_v6  ;;  %v1632_v41 = vshll.u32 %v4688_v18, 16  ;;  %v1831_v50 = vor.u32 %v1830_v33, %v1826_v29  ;;  %v1836_v51 = vrot.slane %v1834_v34, 5  ;;  %v2997_v21 = vpop.permute.xlu1 %2996  ;;  %v4777_v63 = vld [vmem:[%s5802_s13 + $0xb0] sm:$0x1]  ;;  %v4751_v17 = vld [vmem:[%s5802_s13 + $0x48] sm:$0xe] }
 0x119   : > { %v4724_v48 = vcombine.low %v1611_v38, %v1621_v39  ;;  %v1822_v49 = vrot.slane %v1821_v32, 4  ;;  %v1625_v37 = vrot.slane %v1623_v35, 4  ;;  %v1628_v54 = vrot.slane %v1626_v40, 5  ;;  %v4752_v25 = vld [vmem:[%s5802_s13 + $0x4c] sm:$0xf] }
 0x11a   : > { %v1634_v55 = vrot.slane %v1632_v41, 5  ;;  %v1636_v11 = vshrl.u32 %v4688_v18, 16  ;;  %1399 = vrot.lane.b32.xlu0 %v5371_v31, %s5605_s25  ;;  %v1832_v56 = vrot.slane %v1831_v50, 4  ;;  %v1642_v58 = vshll.u32 %v4689_v30, 16  ;;  %v4900_v30 = vld [vmem:[%s5802_s13 + $0xa8] sm:$0xf] }
 0x11b   : > { %v1827_v46 = vsel %vm5862_vm5, %v1822_v49, %v1826_v29  ;;  %v4796_v43 = vrot.slane %v4772_v36, 9  ;;  %1958 = vrot.lane.b32.xlu1 %v4732_v22, %s5608_s14  ;;  %v1629_v59 = vor.u32 %v1628_v54, %v1625_v37  ;;  %v2181_v13 = vrot.slane %v4773_v42, 5  ;;  %v4753_v29 = vld [vmem:[%s5802_s13 + $0x50] sm:$0x1]  ;;  %v4901_v35 = vld [vmem:[%s5802_s13 + $0xac] sm:$0xf] }
 0x11c   : > { %v1638_v44 = vrot.slane %v1636_v11, 4  ;;  %v2184_v60 = vrot.slane %v4774_v45, 5  ;;  %v1837_v1 = vsel %vm5862_vm5, %v1832_v56, %v1836_v51  ;;  %v1644_v2 = vrot.slane %v1642_v58, 5  ;;  %v2981_v10 = vpop.permute.xlu0 %2980  ;;  %v3316_v18 = vpop.permute.xlu1 %3315  ;;  %v4902_v41 = vld [vmem:[%s5802_s13 + $0xb0] sm:$0x1] }
 0x11d   : > { %v4788_v3 = vrot.slane %v4748_v52, 9  ;;  %v2125_v4 = vrot.slane %v4749_v53, 5  ;;  %v4733_v6 = vcombine.low %v1827_v46, %v1837_v1  ;;  %v1630_v7 = vrot.slane %v1629_v59, 4  ;;  %v4877_v11 = vld [vmem:[%s5802_s13 + $0x4c] sm:$0xf] }
 0x11e   : > { %v1639_v8 = vor.u32 %v1638_v44, %v1634_v55  ;;  %v2182_v9 = vsel %vm5812_vm2, %v4796_v43, %v2181_v13  ;;  %1942 = vrot.lane.b32.xlu0 %v4724_v48, %s5608_s14  ;;  %v2183_v12 = vrot.slane %v2181_v13, 4  ;;  %v2128_v16 = vrot.slane %v4750_v57, 5  ;;  %v4876_v48 = vld [vmem:[%s5802_s13 + $0x48] sm:$0xf]  ;;  %v4878_v58 = vld [vmem:[%s5802_s13 + $0x50] sm:$0x1] }
 0x11f   : > { %v6454_v14 = vsel %vm5812_vm2, %v4788_v3, %v2125_v4  ;;  %v2127_v15 = vrot.slane %v2125_v4, 4  ;;  %1960 = vrot.lane.b32.xlu1 %v4733_v6, %s5608_s14  ;;  %v1635_v19 = vsel %vm5862_vm5, %v1630_v7, %v1634_v55  ;;  %vm3026_vm13 = vcmask 261344   ;;  %v5372_v59 = vld [vmem:[%s5802_s13 + $0xa8] sm:$0xff]  }
 0x120   : > { %v1640_v23 = vrot.slane %v1639_v8, 4  ;;  %v4797_v24 = vrot.slane %v4775_v20, 9  ;;  %v2185_v26 = vsel %vm5812_vm2, %v2183_v12, %v2184_v60  ;;  %3035 = vst.msk [vmem:[#allocation2 + $0x40] sm:$0xff] %vm3026_vm13, %v6424_v62  ;;  %3027 = vst.msk [vmem:[#allocation2] sm:$0xff] %vm3026_vm13, %v2979_v47  ;;  %v2188_v27 = vrot.slane %v4776_v61, 5  ;;  %v3300_v62 = vpop.permute.xlu0 %3299 }
 0x121   : > { %v2129_v22 = vsel %vm5812_vm2, %v2127_v15, %v2128_v16  ;;  %v2191_v28 = vrot.slane %v4777_v63, 5  ;;  %3036 = vst.msk [vmem:[#allocation2 + $0x48] sm:$0xff] %vm3026_vm13, %v2997_v21  ;;  %3028 = vst.msk [vmem:[#allocation2 + $0x8] sm:$0xff] %vm3026_vm13, %v2981_v10  ;;  %v4812_v32 = vcombine.low %v2182_v9, %v2185_v26  ;;  %v4789_v34 = vrot.slane %v4751_v17, 9  ;;  %v4903_v63 = vld [vmem:[%s5802_s13 + $0xb4] sm:$0xf] }
 0x122   : > { %v1645_v31 = vsel %vm5862_vm5, %v1640_v23, %v1644_v2  ;;  %v4804_v33 = vcombine.low %v6454_v14, %v2129_v22  ;;  %v2189_v38 = vsel %vm5812_vm2, %v4797_v24, %v2188_v27  ;;  %v2190_v39 = vrot.slane %v2188_v27, 4  ;;  %v4904_v12 = vld [vmem:[%s5802_s13 + $0xb8] sm:$0xf]  ;;  %v4905_v16 = vld [vmem:[%s5802_s13 + $0xbc] sm:$0x1] }
 0x123   : > { %v4725_v36 = vcombine.low %v1635_v19, %v1645_v31  ;;  %v2132_v40 = vrot.slane %v4752_v25, 5  ;;  %2279 = vrot.lane.b32.xlu1 %v4812_v32, %s5609_s21  ;;  %v2135_v42 = vrot.slane %v4753_v29, 5  ;;  %vm3347_vm14 = vcmask 294144  }
 0x124   : > { %v2835_v45 = vshrl.u32 %v4900_v30, 16  ;;  %v2838_v47 = vshll.u32 %v4900_v30, 16  ;;  %v2192_v49 = vsel %vm5812_vm2, %v2190_v39, %v2191_v28  ;;  %3356 = vst.msk [vmem:[#allocation2 + $0x40] sm:$0xff] %vm3347_vm14, %v3316_v18  ;;  %3348 = vst.msk [vmem:[#allocation2] sm:$0xff] %vm3347_vm14, %v3300_v62  ;;  %v908_v52 = vpop.permute.xlu1 %907  ;;  %v2844_v53 = vshll.u32 %v4901_v35, 16  ;;  %v5374_v18 = vld [vmem:[%s5802_s13 + $0xb4] sm:$0xff]  }
 0x125   : > { %1944 = vrot.lane.b32.xlu0 %v4725_v36, %s5608_s14  ;;  %v2133_v50 = vsel %vm5812_vm2, %v4789_v34, %v2132_v40  ;;  %v2134_v51 = vrot.slane %v2132_v40, 4  ;;  %v4813_v21 = vcombine.low %v2189_v38, %v2192_v49  ;;  %946 = vst.msk [vmem:[#allocation2 + $0x50] sm:$0xff] %vm935_vm7, %v908_v52  ;;  %v2848_v55 = vshrl.u32 %v4901_v35, 16  ;;  %v5373_v28 = vld [vmem:[%s5802_s13 + $0x48] sm:$0xff]   ;;  %v4880_v38 = vld [vmem:[%s5802_s13 + $0x58] sm:$0xf] }
 0x126   : > { %v2837_v37 = vrot.slane %v2835_v45, 4  ;;  %v2840_v54 = vrot.slane %v2838_v47, 5  ;;  %v2846_v46 = vrot.slane %v2844_v53, 5  ;;  %v2854_v56 = vshll.u32 %v4902_v41, 16  ;;  %v4881_v45 = vld [vmem:[%s5802_s13 + $0x5c] sm:$0x1] }
 0x127   : > { %v2136_v57 = vsel %vm5812_vm2, %v2134_v51, %v2135_v42  ;;  %v2643_v43 = vshrl.u32 %v4876_v48, 16  ;;  %2281 = vrot.lane.b32.xlu1 %v4813_v21, %s5609_s21  ;;  %v892_v44 = vpop.permute.xlu0 %891  ;;  %v2850_v60 = vrot.slane %v2848_v55, 4  ;;  %v2646_v61 = vshll.u32 %v4876_v48, 16  ;;  %v5382_v51 = vld [vmem:[#allocation6 + $0x10] ss:$0 sps:$4 sm:$0x33]  }
 0x128   : > { %v4805_v20 = vcombine.low %v2133_v50, %v2136_v57  ;;  %v2841_v13 = vor.u32 %v2840_v54, %v2837_v37  ;;  %938 = vst.msk [vmem:[#allocation2 + $0x10] sm:$0xff] %vm935_vm7, %v892_v44  ;;  %v2856_v1 = vrot.slane %v2854_v56, 5  ;;  %v2652_v3 = vshll.u32 %v4877_v11, 16  ;;  %v3318_v6 = vpop.permute.xlu1 %3317  ;;  %v5375_v52 = vld [vmem:[%s5802_s13 + $0x54] sm:$0xff]   ;;  %v4964_v55 = vld [vmem:[%s5802_s13 + $0xa8] sm:$0xe] }
 0x129   : > { %2263 = vrot.lane.b32.xlu0 %v4804_v33, %s5609_s21  ;;  %v2645_v2 = vrot.slane %v2643_v43, 4  ;;  %v2656_v4 = vshrl.u32 %v4877_v11, 16  ;;  %v2851_v8 = vor.u32 %v2850_v60, %v2846_v46  ;;  %v2648_v9 = vrot.slane %v2646_v61, 5  ;;  %3357 = vst.msk [vmem:[#allocation2 + $0x48] sm:$0xff] %vm3347_vm14, %v3318_v6  ;;  %v4879_v33 = vld [vmem:[%s5802_s13 + $0x54] sm:$0xf] }
 0x12a   : > { %v2842_v7 = vrot.slane %v2841_v13, 4  ;;  %v2662_v10 = vshll.u32 %v4878_v58, 16  ;;  %v2654_v14 = vrot.slane %v2652_v3, 5  ;;  %vm3400_vm15 = vcmask 293888   ;;  %v4965_v43 = vld [vmem:[%s5802_s13 + $0xac] sm:$0xf] }
 0x12b   : > { %v2658_v15 = vrot.slane %v2656_v4, 4  ;;  %v2859_v17 = vshrl.u32 %v4903_v63, 16  ;;  %2457 = vrot.lane.b32.xlu1 %v5372_v59, %s5610_s12  ;;  %v2852_v23 = vrot.slane %v2851_v8, 4  ;;  %v2649_v24 = vor.u32 %v2648_v9, %v2645_v2  ;;  %v3302_v26 = vpop.permute.xlu0 %3301  ;;  %v3364_v22 = vld [vmem:[#allocation2] sm:$0xff] }
 0x12c   : > { %v2847_v19 = vsel %vm5862_vm5, %v2842_v7, %v2846_v46  ;;  %v2664_v25 = vrot.slane %v2662_v10, 5  ;;  %v3372_v27 = vld [vmem:[#allocation2 + $0x40] sm:$0xff]  ;;  %3349 = vst.msk [vmem:[#allocation2 + $0x8] sm:$0xff] %vm3347_vm14, %v3302_v26  ;;  %5204 = vmatprep.mubr.msk.bf16.mxu0 %vm3400_vm15, %v3364_v22  ;;  %v2862_v31 = vshll.u32 %v4903_v63, 16  ;;  %v2868_v32 = vshll.u32 %v4904_v12, 16 }
 0x12d   : > { %2265 = vrot.lane.b32.xlu0 %v4805_v20, %s5609_s21  ;;  %v2659_v29 = vor.u32 %v2658_v15, %v2654_v14  ;;  %v2861_v30 = vrot.slane %v2859_v17, 4  ;;  %v2857_v34 = vsel %vm5862_vm5, %v2852_v23, %v2856_v1  ;;  %v2650_v62 = vrot.slane %v2649_v24, 4  ;;  %5220 = vmatprep.mubr.msk.bf16.mxu1 %vm3400_vm15, %v3372_v27  ;;  %v4966_v20 = vld [vmem:[%s5802_s13 + $0xb0] sm:$0x1]  ;;  %v4940_v61 = vld [vmem:[%s5802_s13 + $0x48] sm:$0xe] }
 0x12e   : > { %v2872_v35 = vshrl.u32 %v4904_v12, 16  ;;  %v2878_v36 = vshll.u32 %v4905_v16, 16  ;;  %v4924_v39 = vcombine.low %v2847_v19, %v2857_v34  ;;  %v2864_v41 = vrot.slane %v2862_v31, 5  ;;  %v4941_v4 = vld [vmem:[%s5802_s13 + $0x4c] sm:$0xf] }
 0x12f   : > { %v2660_v40 = vrot.slane %v2659_v29, 4  ;;  %v2870_v42 = vrot.slane %v2868_v32, 5  ;;  %2459 = vrot.lane.b32.xlu1 %v5374_v18, %s5610_s12  ;;  %v2655_v47 = vsel %vm5862_vm5, %v2650_v62, %v2654_v14  ;;  %v2667_v50 = vshrl.u32 %v4879_v33, 16  ;;  %v4942_v10 = vld [vmem:[%s5802_s13 + $0x50] sm:$0x1] }
 0x130   : > { %v2874_v48 = vrot.slane %v2872_v35, 4  ;;  %v2880_v49 = vrot.slane %v2878_v36, 5  ;;  %v2865_v21 = vor.u32 %v2864_v41, %v2861_v30  ;;  %v2670_v37 = vshll.u32 %v4879_v33, 16  ;;  %v910_v58 = vpop.permute.xlu1 %909  ;;  %v446_v18 = vld [vmem:[%s5802_s13 + $0xa8] sm:$0xf] }
 0x131   : > { %2441 = vrot.lane.b32.xlu0 %v5373_v28, %s5610_s12  ;;  %v2665_v53 = vsel %vm5862_vm5, %v2660_v40, %v2664_v25  ;;  %v2676_v54 = vshll.u32 %v4880_v38, 16  ;;  %v2669_v46 = vrot.slane %v2667_v50, 4  ;;  %v2680_v56 = vshrl.u32 %v4880_v38, 16  ;;  %947 = vst.msk [vmem:[#allocation2 + $0x58] sm:$0xff] %vm935_vm7, %v910_v58  ;;  %v447_v19 = vld [vmem:[%s5802_s13 + $0xac] sm:$0xf] }
 0x132   : > { %v4916_v11 = vcombine.low %v2655_v47, %v2665_v53  ;;  %v2875_v57 = vor.u32 %v2874_v48, %v2870_v42  ;;  %v2866_v59 = vrot.slane %v2865_v21, 4  ;;  %v2672_v44 = vrot.slane %v2670_v37, 5  ;;  %v3373_v27 = vld [vmem:[#allocation2 + $0x48] sm:$0xff] }
 0x133   : > { %v2678_v13 = vrot.slane %v2676_v54, 5  ;;  %v2686_v60 = vshll.u32 %v4881_v45, 16  ;;  %3002 = vrot.lane.b32.xlu1 %v4924_v39, %s5611_s6  ;;  %v2682_v1 = vrot.slane %v2680_v56, 4  ;;  %v894_v2 = vpop.permute.xlu0 %893  ;;  %vm3449_vm0 = vcmask 1041408   ;;  %v3365_v22 = vld [vmem:[#allocation2 + $0x8] sm:$0xff] }
 0x134   : > { %v2876_v63 = vrot.slane %v2875_v57, 4  ;;  %v4988_v3 = vrot.slane %v4964_v55, 9  ;;  %v2871_v6 = vsel %vm5862_vm5, %v2866_v59, %v2870_v42  ;;  %v2673_v7 = vor.u32 %v2672_v44, %v2669_v46  ;;  %939 = vst.msk [vmem:[#allocation2 + $0x18] sm:$0xff] %vm935_vm7, %v894_v2  ;;  %5242 = vmatprep.subr.msk.bf16.mxu0 %vm3449_vm0, %v5382_v51  ;;  %5243 = vmatprep.subr.msk.bf16.mxu1 %vm3449_vm0, %v5382_v51  ;;  %v1232_v17 = vpop.permute.xlu1 %1231  ;;  %v448_v35 = vld [vmem:[%s5802_s13 + $0xb0] sm:$0x1]  ;;  %v5395_v53 = vld [vmem:[%s5802_s13 + $0xa8] sm:$0xff]  }
 0x135   : > { %2443 = vrot.lane.b32.xlu0 %v5375_v52, %s5610_s12  ;;  %v2688_v8 = vrot.slane %v2686_v60, 5  ;;  %v3451_v9 = vsel %vm3449_vm0, %v5382_v51, 0  ;;  %v2683_v14 = vor.u32 %v2682_v1, %v2678_v13  ;;  %v3225_v15 = vrot.slane %v4965_v43, 5  ;;  %1270 = vst.msk [vmem:[#allocation2 + $0x50] sm:$0xff] %vm1259_vm8, %v1232_v17  ;;  %v422_v38 = vld [vmem:[%s5802_s13 + $0x48] sm:$0xf] }
 0x136   : > { %v2881_v12 = vsel %vm5862_vm5, %v2876_v63, %v2880_v49  ;;  %5203 = vmatpush3.bf16.msra.mxu0 %v3451_v9  ;;  %v3228_v16 = vrot.slane %v4966_v20, 5  ;;  %v2674_v24 = vrot.slane %v2673_v7, 4  ;;  %5241 = vmatpush3.bf16.msra.mxu1 %v3451_v9  ;;  %v4980_v25 = vrot.slane %v4940_v61, 9  ;;  %v423_v45 = vld [vmem:[%s5802_s13 + $0x4c] sm:$0xf]  ;;  %402 = vst.msk [vmem:[#allocation2 + $0x70] sm:$0xff] %vm387_vm6, %v5395_v53 }
 0x137   : > { %v4925_v23 = vcombine.low %v2871_v6, %v2881_v12  ;;  %v3169_v26 = vrot.slane %v4941_v4, 5  ;;  %v2684_v28 = vrot.slane %v2683_v14, 4  ;;  %v3226_v29 = vsel %vm5812_vm2, %v4988_v3, %v3225_v15  ;;  %v1216_v32 = vpop.permute.xlu0 %1215  ;;  %v424_v47 = vld [vmem:[%s5802_s13 + $0x50] sm:$0x1]  ;;  %v4967_v57 = vld [vmem:[%s5802_s13 + $0xb4] sm:$0xe] }
 0x138   : > { %v3227_v30 = vrot.slane %v3225_v15, 4  ;;  %v3172_v31 = vrot.slane %v4942_v10, 5  ;;  %v2679_v33 = vsel %vm5862_vm5, %v2674_v24, %v2678_v13  ;;  %1262 = vst.msk [vmem:[#allocation2 + $0x10] sm:$0xff] %vm1259_vm8, %v1216_v32  ;;  %v792_v36 = vshrl.u32 %v446_v18, 16  ;;  %v1234_v48 = vpop.permute.xlu1 %1233  ;;  %v4968_v46 = vld [vmem:[%s5802_s13 + $0xb8] sm:$0xf] }
 0x139   : > { %2986 = vrot.lane.b32.xlu0 %v4916_v11, %s5611_s6  ;;  %3004 = vrot.lane.b32.xlu1 %v4925_v23, %s5611_s6  ;;  %v3170_v34 = vsel %vm5812_vm2, %v4980_v25, %v3169_v26  ;;  %v3171_v62 = vrot.slane %v3169_v26, 4  ;;  %v2689_v39 = vsel %vm5862_vm5, %v2684_v28, %v2688_v8  ;;  %v795_v41 = vshll.u32 %v446_v18, 16  ;;  %1271 = vst.msk [vmem:[#allocation2 + $0x58] sm:$0xff] %vm1259_vm8, %v1234_v48  ;;  %v4969_v56 = vld [vmem:[%s5802_s13 + $0xbc] sm:$0x1]  ;;  %v5396_v58 = vld [vmem:[%s5802_s13 + $0x48] sm:$0xff]  }
 0x13a   : > { %v3229_v40 = vsel %vm5812_vm2, %v3227_v30, %v3228_v16  ;;  %5205 = vmatmul.mubr.msk.bf16.vlgmr.msra.gmra.mrb[0].mxu0 %vm3400_vm15, %v3365_v22  ;;  %5221 = vmatmul.mubr.msk.bf16.vlgmr.msra.gmra.mrb[0].mxu1 %vm3400_vm15, %v3373_v27  ;;  %v801_v42 = vshll.u32 %v447_v19, 16  ;;  %v4917_v49 = vcombine.low %v2679_v33, %v2689_v39  ;;  %v794_v52 = vrot.slane %v792_v36, 4  ;;  %v4943_v13 = vld [vmem:[%s5802_s13 + $0x54] sm:$0xe]  ;;  %v4944_v2 = vld [vmem:[%s5802_s13 + $0x58] sm:$0xf] }
 0x13b   : > { %v5004_v50 = vcombine.low %v3226_v29, %v3229_v40  ;;  %v3173_v51 = vsel %vm5812_vm2, %v3171_v62, %v3172_v31  ;;  %v797_v37 = vrot.slane %v795_v41, 5  ;;  %v805_v55 = vshrl.u32 %v447_v19, 16  ;;  %v1218_v11 = vpop.permute.xlu0 %1217  ;;  %394 = vst.msk [vmem:[#allocation2 + $0x30] sm:$0xff] %vm387_vm6, %v5396_v58  ;;  %v4945_v9 = vld [vmem:[%s5802_s13 + $0x5c] sm:$0x1]  ;;  %v5397_v39 = vld [vmem:[%s5802_s13 + $0xb4] sm:$0xff]  }
 0x13c   : > { %v4996_v21 = vcombine.low %v3170_v34, %v3173_v51  ;;  %v803_v54 = vrot.slane %v801_v42, 5  ;;  %v811_v43 = vshll.u32 %v448_v35, 16  ;;  %v600_v20 = vshrl.u32 %v422_v38, 16  ;;  %1263 = vst.msk [vmem:[#allocation2 + $0x18] sm:$0xff] %vm1259_vm8, %v1218_v11  ;;  %v1410_v3 = vpop.permute.xlu1 %1409  ;;  %v449_v10 = vld [vmem:[%s5802_s13 + $0xb4] sm:$0xf] }
 0x13d   : > { %2988 = vrot.lane.b32.xlu0 %v4917_v49, %s5611_s6  ;;  %3323 = vrot.lane.b32.xlu1 %v5004_v50, %s5612_s9  ;;  %v603_v59 = vshll.u32 %v422_v38, 16  ;;  %v609_v44 = vshll.u32 %v423_v45, 16  ;;  %v798_v60 = vor.u32 %v797_v37, %v794_v52  ;;  %v807_v61 = vrot.slane %v805_v55, 4  ;;  %1448 = vst.msk [vmem:[#allocation2 + $0x50] sm:$0xff] %vm1437_vm9, %v1410_v3  ;;  %v450_v35 = vld [vmem:[%s5802_s13 + $0xb8] sm:$0xf] }
 0x13e   : > { %v613_v63 = vshrl.u32 %v423_v45, 16  ;;  %v619_v1 = vshll.u32 %v424_v47, 16  ;;  %v813_v4 = vrot.slane %v811_v43, 5  ;;  %v602_v6 = vrot.slane %v600_v20, 4  ;;  %v451_v47 = vld [vmem:[%s5802_s13 + $0xbc] sm:$0x1] }
 0x13f   : > { %v605_v7 = vrot.slane %v603_v59, 5  ;;  %v611_v8 = vrot.slane %v609_v44, 5  ;;  %v799_v12 = vrot.slane %v798_v60, 4  ;;  %v808_v14 = vor.u32 %v807_v61, %v803_v54  ;;  %v1394_v17 = vpop.permute.xlu0 %1393  ;;  %v425_v48 = vld [vmem:[%s5802_s13 + $0x54] sm:$0xf]  ;;  %403 = vst.msk [vmem:[#allocation2 + $0x78] sm:$0xff] %vm387_vm6, %v5397_v39 }
 0x140   : > { %v615_v15 = vrot.slane %v613_v63, 4  ;;  %v621_v16 = vrot.slane %v619_v1, 5  ;;  %v4989_v19 = vrot.slane %v4967_v57, 9  ;;  %v3232_v23 = vrot.slane %v4968_v46, 5  ;;  %1440 = vst.msk [vmem:[#allocation2 + $0x10] sm:$0xff] %vm1437_vm9, %v1394_v17  ;;  %v1412_v28 = vpop.permute.xlu1 %1411  ;;  %v5398_v46 = vld [vmem:[%s5802_s13 + $0x54] sm:$0xff]  }
 0x141   : > { %3307 = vrot.lane.b32.xlu0 %v4996_v21, %s5612_s9  ;;  %v606_v18 = vor.u32 %v605_v7, %v602_v6  ;;  %v3235_v24 = vrot.slane %v4969_v56, 5  ;;  %v804_v25 = vsel %vm5862_vm5, %v799_v12, %v803_v54  ;;  %v809_v26 = vrot.slane %v808_v14, 4  ;;  %1449 = vst.msk [vmem:[#allocation2 + $0x58] sm:$0xff] %vm1437_vm9, %v1412_v28  ;;  %v426_v53 = vld [vmem:[%s5802_s13 + $0x58] sm:$0xf] }
 0x142   : > { %v616_v22 = vor.u32 %v615_v15, %v611_v8  ;;  %v4981_v27 = vrot.slane %v4943_v13, 9  ;;  %v3233_v30 = vsel %vm5812_vm2, %v4989_v19, %v3232_v23  ;;  %v3234_v31 = vrot.slane %v3232_v23, 4  ;;  %v427_v57 = vld [vmem:[%s5802_s13 + $0x5c] sm:$0x1]  ;;  %v994_v59 = vld [vmem:[%s5802_s13 + $0xa8] sm:$0xe] }
 0x143   : > { %v607_v29 = vrot.slane %v606_v18, 4  ;;  %v3176_v32 = vrot.slane %v4944_v2, 5  ;;  %v814_v33 = vsel %vm5862_vm5, %v809_v26, %v813_v4  ;;  %v3179_v62 = vrot.slane %v4945_v9, 5  ;;  %v1396_v38 = vpop.permute.xlu0 %1395  ;;  %v995_v1 = vld [vmem:[%s5802_s13 + $0xac] sm:$0xf]  ;;  %395 = vst.msk [vmem:[#allocation2 + $0x38] sm:$0xff] %vm387_vm6, %v5398_v46 }
 0x144   : > { %v617_v34 = vrot.slane %v616_v22, 4  ;;  %v816_v36 = vshrl.u32 %v449_v10, 16  ;;  %v4590_v40 = vcombine.low %v804_v25, %v814_v33  ;;  %v3236_v42 = vsel %vm5812_vm2, %v3234_v31, %v3235_v24  ;;  %1441 = vst.msk [vmem:[#allocation2 + $0x18] sm:$0xff] %vm1437_vm9, %v1396_v38  ;;  %v1955_v21 = vpop.permute.xlu1 %1954  ;;  %v996_v7 = vld [vmem:[%s5802_s13 + $0xb0] sm:$0x1] }
 0x145   : > { %v612_v41 = vsel %vm5862_vm5, %v607_v29, %v611_v8  ;;  %v3177_v45 = vsel %vm5812_vm2, %v4981_v27, %v3176_v32  ;;  %v5005_v50 = vcombine.low %v3233_v30, %v3236_v42  ;;  %v3178_v51 = vrot.slane %v3176_v32, 4  ;;  %1993 = vst.msk [vmem:[#allocation2 + $0x50] sm:$0xff] %vm1982_vm10, %v1955_v21  ;;  %v970_v15 = vld [vmem:[%s5802_s13 + $0x48] sm:$0xe]  ;;  %v972_v24 = vld [vmem:[%s5802_s13 + $0x50] sm:$0x1] }
 0x146   : > { %v622_v49 = vsel %vm5862_vm5, %v617_v34, %v621_v16  ;;  %v818_v52 = vrot.slane %v816_v36, 4  ;;  %915 = vrot.lane.b32.xlu1 %v4590_v40, %s5607_s27  ;;  %v819_v54 = vshll.u32 %v449_v10, 16  ;;  %v825_v55 = vshll.u32 %v450_v35, 16  ;;  %v971_v16 = vld [vmem:[%s5802_s13 + $0x4c] sm:$0xf] }
 0x147   : > { %v4582_v37 = vcombine.low %v612_v41, %v622_v49  ;;  %v829_v11 = vshrl.u32 %v450_v35, 16  ;;  %v3180_v56 = vsel %vm5812_vm2, %v3178_v51, %v3179_v62  ;;  %v835_v58 = vshll.u32 %v451_v47, 16  ;;  %v1939_v44 = vpop.permute.xlu0 %1938  ;;  %v997_v25 = vld [vmem:[%s5802_s13 + $0xb4] sm:$0xe]  ;;  %v998_v29 = vld [vmem:[%s5802_s13 + $0xb8] sm:$0xf] }
 0x148   : > { %v624_v43 = vshrl.u32 %v425_v48, 16  ;;  %v627_v20 = vshll.u32 %v425_v48, 16  ;;  %v4997_v13 = vcombine.low %v3177_v45, %v3180_v56  ;;  %v821_v60 = vrot.slane %v819_v54, 5  ;;  %1985 = vst.msk [vmem:[#allocation2 + $0x10] sm:$0xff] %vm1982_vm10, %v1939_v44  ;;  %v1957_v8 = vpop.permute.xlu1 %1956  ;;  %v999_v34 = vld [vmem:[%s5802_s13 + $0xbc] sm:$0x1] }
 0x149   : > { %899 = vrot.lane.b32.xlu0 %v4582_v37, %s5607_s27  ;;  %v827_v61 = vrot.slane %v825_v55, 5  ;;  %v831_v63 = vrot.slane %v829_v11, 4  ;;  %v837_v2 = vrot.slane %v835_v58, 5  ;;  %v633_v6 = vshll.u32 %v426_v53, 16  ;;  %1994 = vst.msk [vmem:[#allocation2 + $0x58] sm:$0xff] %vm1982_vm10, %v1957_v8 }
 0x14a   : > { %v626_v3 = vrot.slane %v624_v43, 4  ;;  %v629_v4 = vrot.slane %v627_v20, 5  ;;  %3325 = vrot.lane.b32.xlu1 %v5005_v50, %s5612_s9  ;;  %v822_v9 = vor.u32 %v821_v60, %v818_v52  ;;  %v637_v12 = vshrl.u32 %v426_v53, 16  ;;  %v973_v41 = vld [vmem:[%s5802_s13 + $0x54] sm:$0xe] }
 0x14b   : > { %v832_v10 = vor.u32 %v831_v63, %v827_v61  ;;  %v643_v14 = vshll.u32 %v427_v57, 16  ;;  %v635_v18 = vrot.slane %v633_v6, 5  ;;  %v4606_v19 = vrot.slane %v994_v59, 9  ;;  %v974_v42 = vld [vmem:[%s5802_s13 + $0x58] sm:$0xf] }
 0x14c   : > { %v630_v17 = vor.u32 %v629_v4, %v626_v3  ;;  %v1151_v23 = vrot.slane %v995_v1, 5  ;;  %v823_v26 = vrot.slane %v822_v9, 4  ;;  %v639_v27 = vrot.slane %v637_v12, 4  ;;  %v1941_v62 = vpop.permute.xlu0 %1940  ;;  %v2276_v35 = vpop.permute.xlu1 %2275  ;;  %v975_v50 = vld [vmem:[%s5802_s13 + $0x5c] sm:$0x1] }
 0x14d   : > { %3309 = vrot.lane.b32.xlu0 %v4997_v13, %s5612_s9  ;;  %v833_v22 = vrot.slane %v832_v10, 4  ;;  %v645_v28 = vrot.slane %v643_v14, 5  ;;  %v1154_v33 = vrot.slane %v996_v7, 5  ;;  %v4598_v40 = vrot.slane %v970_v15, 9  ;;  %1986 = vst.msk [vmem:[#allocation2 + $0x18] sm:$0xff] %vm1982_vm10, %v1941_v62 }
 0x14e   : > { %v631_v30 = vrot.slane %v630_v17, 4  ;;  %v1152_v31 = vsel %vm5812_vm2, %v4606_v19, %v1151_v23  ;;  %v1153_v32 = vrot.slane %v1151_v23, 4  ;;  %v828_v36 = vsel %vm5862_vm5, %v823_v26, %v827_v61  ;;  %2314 = vst.msk [vmem:[#allocation2 + $0x50] sm:$0xff] %vm2303_vm11, %v2276_v35  ;;  %v4714_v51 = vld [vmem:[%s5802_s13 + $0xb4] sm:$0xf] }
 0x14f   : > { %v838_v38 = vsel %vm5862_vm5, %v833_v22, %v837_v2  ;;  %v640_v39 = vor.u32 %v639_v27, %v635_v18  ;;  %v1095_v49 = vrot.slane %v971_v16, 5  ;;  %v1098_v21 = vrot.slane %v972_v24, 5  ;;  %v4715_v54 = vld [vmem:[%s5802_s13 + $0xb8] sm:$0xf]  ;;  %v4716_v43 = vld [vmem:[%s5802_s13 + $0xbc] sm:$0x1] }
 0x150   : > { %v4591_v45 = vcombine.low %v828_v36, %v838_v38  ;;  %v636_v47 = vsel %vm5862_vm5, %v631_v30, %v635_v18  ;;  %v1155_v48 = vsel %vm5812_vm2, %v1153_v32, %v1154_v33  ;;  %v4607_v37 = vrot.slane %v997_v25, 9  ;;  %v2260_v56 = vpop.permute.xlu0 %2259  ;;  %v2278_v58 = vpop.permute.xlu1 %2277  ;;  %v4690_v2 = vld [vmem:[%s5802_s13 + $0x54] sm:$0xf]  ;;  %v4691_v3 = vld [vmem:[%s5802_s13 + $0x58] sm:$0xf] }
 0x151   : > { %v641_v52 = vrot.slane %v640_v39, 4  ;;  %v4622_v53 = vcombine.low %v1152_v31, %v1155_v48  ;;  %v1096_v55 = vsel %vm5812_vm2, %v4598_v40, %v1095_v49  ;;  %v1097_v11 = vrot.slane %v1095_v49, 4  ;;  %2306 = vst.msk [vmem:[#allocation2 + $0x10] sm:$0xff] %vm2303_vm11, %v2260_v56  ;;  %2315 = vst.msk [vmem:[#allocation2 + $0x58] sm:$0xff] %vm2303_vm11, %v2278_v58  ;;  %v4692_v9 = vld [vmem:[%s5802_s13 + $0x5c] sm:$0x1] }
 0x152   : > { %917 = vrot.lane.b32.xlu1 %v4591_v45, %s5607_s27  ;;  %v1158_v57 = vrot.slane %v998_v29, 5  ;;  %v1161_v46 = vrot.slane %v999_v34, 5  ;;  %v4599_v59 = vrot.slane %v973_v41, 9  ;;  %v1102_v44 = vrot.slane %v974_v42, 5  ;;  %v4717_v18 = vld [vmem:[%s5802_s13 + $0xc0] sm:$0xf] }
 0x153   : > { %v646_v20 = vsel %vm5862_vm5, %v641_v52, %v645_v28  ;;  %v1105_v13 = vrot.slane %v975_v50, 5  ;;  %v1099_v61 = vsel %vm5812_vm2, %v1097_v11, %v1098_v21  ;;  %v1839_v8 = vshrl.u32 %v4714_v51, 16  ;;  %v5383_v22 = vld [vmem:[%s5802_s13 + $0xb4] sm:$0xff]   ;;  %v4718_v30 = vld [vmem:[%s5802_s13 + $0xc4] sm:$0xf] }
 0x154   : > { %v4583_v60 = vcombine.low %v636_v47, %v646_v20  ;;  %v1159_v63 = vsel %vm5812_vm2, %v4607_v37, %v1158_v57  ;;  %v1160_v1 = vrot.slane %v1158_v57, 4  ;;  %v4614_v4 = vcombine.low %v1096_v55, %v1099_v61  ;;  %v2262_v12 = vpop.permute.xlu0 %2261  ;;  %v2454_v17 = vpop.permute.xlu1 %2453  ;;  %v4719_v52 = vld [vmem:[%s5802_s13 + $0xc8] sm:$0x1]  ;;  %v4693_v11 = vld [vmem:[%s5802_s13 + $0x60] sm:$0xf] }
 0x155   : > { %v1103_v6 = vsel %vm5812_vm2, %v4599_v59, %v1102_v44  ;;  %v1104_v7 = vrot.slane %v1102_v44, 4  ;;  %v1842_v14 = vshll.u32 %v4714_v51, 16  ;;  %v1848_v15 = vshll.u32 %v4715_v54, 16  ;;  %2307 = vst.msk [vmem:[#allocation2 + $0x18] sm:$0xff] %vm2303_vm11, %v2262_v12  ;;  %v5385_v57 = vld [vmem:[%s5802_s13 + $0xc0] sm:$0xff]  }
 0x156   : > { %901 = vrot.lane.b32.xlu0 %v4583_v60, %s5607_s27  ;;  %1239 = vrot.lane.b32.xlu1 %v4622_v53, %s5606_s23  ;;  %v1162_v10 = vsel %vm5812_vm2, %v1160_v1, %v1161_v46  ;;  %v1852_v16 = vshrl.u32 %v4715_v54, 16  ;;  %v1841_v24 = vrot.slane %v1839_v8, 4  ;;  %v1858_v25 = vshll.u32 %v4716_v43, 16  ;;  %2492 = vst.msk [vmem:[#allocation2 + $0x50] sm:$0xff] %vm2481_vm12, %v2454_v17  ;;  %v5384_v53 = vld [vmem:[%s5802_s13 + $0x54] sm:$0xff]   ;;  %v5386_v1 = vld [vmem:[%s5802_s13 + $0x60] sm:$0xff]  }
 0x157   : > { %v4623_v19 = vcombine.low %v1159_v63, %v1162_v10  ;;  %v1106_v23 = vsel %vm5812_vm2, %v1104_v7, %v1105_v13  ;;  %v1844_v27 = vrot.slane %v1842_v14, 5  ;;  %v1850_v28 = vrot.slane %v1848_v15, 5  ;;  %v4694_v20 = vld [vmem:[%s5802_s13 + $0x64] sm:$0xf]  ;;  %v4778_v14 = vld [vmem:[%s5802_s13 + $0xb4] sm:$0xe] }
 0x158   : > { %v4615_v26 = vcombine.low %v1103_v6, %v1106_v23  ;;  %v1854_v29 = vrot.slane %v1852_v16, 4  ;;  %v1860_v31 = vrot.slane %v1858_v25, 5  ;;  %v1647_v32 = vshrl.u32 %v4690_v2, 16  ;;  %v2438_v39 = vpop.permute.xlu0 %2437  ;;  %v2456_v40 = vpop.permute.xlu1 %2455  ;;  %v4695_v6 = vld [vmem:[%s5802_s13 + $0x68] sm:$0x1] }
 0x159   : > { %v1650_v33 = vshll.u32 %v4690_v2, 16  ;;  %v1656_v34 = vshll.u32 %v4691_v3, 16  ;;  %v1845_v62 = vor.u32 %v1844_v27, %v1841_v24  ;;  %v1660_v36 = vshrl.u32 %v4691_v3, 16  ;;  %2484 = vst.msk [vmem:[#allocation2 + $0x10] sm:$0xff] %vm2481_vm12, %v2438_v39  ;;  %2493 = vst.msk [vmem:[#allocation2 + $0x58] sm:$0xff] %vm2481_vm12, %v2456_v40 }
 0x15a   : > { %1223 = vrot.lane.b32.xlu0 %v4614_v4, %s5606_s23  ;;  %1241 = vrot.lane.b32.xlu1 %v4623_v19, %s5606_s23  ;;  %v1855_v35 = vor.u32 %v1854_v29, %v1850_v28  ;;  %v1666_v38 = vshll.u32 %v4692_v9, 16  ;;  %v1649_v41 = vrot.slane %v1647_v32, 4  ;;  %v1863_v47 = vshrl.u32 %v4717_v18, 16  ;;  %v4779_v15 = vld [vmem:[%s5802_s13 + $0xb8] sm:$0xf] }
 0x15b   : > { %v1652_v42 = vrot.slane %v1650_v33, 5  ;;  %v1658_v45 = vrot.slane %v1656_v34, 5  ;;  %v1846_v48 = vrot.slane %v1845_v62, 4  ;;  %v1662_v50 = vrot.slane %v1660_v36, 4  ;;  %v4780_v23 = vld [vmem:[%s5802_s13 + $0xbc] sm:$0x1] }
 0x15c   : > { %v1856_v49 = vrot.slane %v1855_v35, 4  ;;  %v1668_v51 = vrot.slane %v1666_v38, 5  ;;  %v1865_v37 = vrot.slane %v1863_v47, 4  ;;  %v1866_v54 = vshll.u32 %v4717_v18, 16  ;;  %v2440_v59 = vpop.permute.xlu0 %2439  ;;  %v2999_v44 = vpop.permute.xlu1 %2998  ;;  %v4754_v24 = vld [vmem:[%s5802_s13 + $0x54] sm:$0xe] }
 0x15d   : > { %v1653_v21 = vor.u32 %v1652_v42, %v1649_v41  ;;  %v1872_v55 = vshll.u32 %v4718_v30, 16  ;;  %v1851_v46 = vsel %vm5862_vm5, %v1846_v48, %v1850_v28  ;;  %v1663_v58 = vor.u32 %v1662_v50, %v1658_v45  ;;  %2485 = vst.msk [vmem:[#allocation2 + $0x18] sm:$0xff] %vm2481_vm12, %v2440_v59  ;;  %v4781_v32 = vld [vmem:[%s5802_s13 + $0xc0] sm:$0xe]  ;;  %v4782_v36 = vld [vmem:[%s5802_s13 + $0xc4] sm:$0xf] }
 0x15e   : > { %1225 = vrot.lane.b32.xlu0 %v4615_v26, %s5606_s23  ;;  %1417 = vrot.lane.b32.xlu1 %v5383_v22, %s5605_s25  ;;  %v1861_v56 = vsel %vm5862_vm5, %v1856_v49, %v1860_v31  ;;  %v1876_v43 = vshrl.u32 %v4718_v30, 16  ;;  %v1868_v61 = vrot.slane %v1866_v54, 5  ;;  %3037 = vst.msk [vmem:[#allocation2 + $0x50] sm:$0xff] %vm3026_vm13, %v2999_v44  ;;  %v1882_v4 = vshll.u32 %v4719_v52, 16  ;;  %v4755_v30 = vld [vmem:[%s5802_s13 + $0x58] sm:$0xf] }
 0x15f   : > { %v4734_v13 = vcombine.low %v1851_v46, %v1861_v56  ;;  %v1654_v60 = vrot.slane %v1653_v21, 4  ;;  %v1874_v63 = vrot.slane %v1872_v55, 5  ;;  %v1664_v2 = vrot.slane %v1663_v58, 4  ;;  %v4756_v31 = vld [vmem:[%s5802_s13 + $0x5c] sm:$0x1] }
 0x160   : > { %v1878_v3 = vrot.slane %v1876_v43, 4  ;;  %v1671_v7 = vshrl.u32 %v4693_v11, 16  ;;  %v1869_v9 = vor.u32 %v1868_v61, %v1865_v37  ;;  %v1674_v10 = vshll.u32 %v4693_v11, 16  ;;  %v2983_v25 = vpop.permute.xlu0 %2982  ;;  %v3001_v26 = vpop.permute.xlu1 %3000  ;;  %v4783_v38 = vld [vmem:[%s5802_s13 + $0xc8] sm:$0x1] }
 0x161   : > { %v1659_v8 = vsel %vm5862_vm5, %v1654_v60, %v1658_v45  ;;  %v1680_v12 = vshll.u32 %v4694_v20, 16  ;;  %v1669_v16 = vsel %vm5862_vm5, %v1664_v2, %v1668_v51  ;;  %v1884_v18 = vrot.slane %v1882_v4, 5  ;;  %3029 = vst.msk [vmem:[#allocation2 + $0x10] sm:$0xff] %vm3026_vm13, %v2983_v25  ;;  %3038 = vst.msk [vmem:[#allocation2 + $0x58] sm:$0xff] %vm3026_vm13, %v3001_v26  ;;  %v4757_v54 = vld [vmem:[%s5802_s13 + $0x60] sm:$0xe] }
 0x162   : > { %1401 = vrot.lane.b32.xlu0 %v5384_v53, %s5605_s25  ;;  %1419 = vrot.lane.b32.xlu1 %v5385_v57, %s5605_s25  ;;  %v1879_v17 = vor.u32 %v1878_v3, %v1874_v63  ;;  %v1673_v19 = vrot.slane %v1671_v7, 4  ;;  %v4726_v22 = vcombine.low %v1659_v8, %v1669_v16  ;;  %v1870_v27 = vrot.slane %v1869_v9, 4  ;;  %v4758_v56 = vld [vmem:[%s5802_s13 + $0x64] sm:$0xf]  ;;  %v4759_v44 = vld [vmem:[%s5802_s13 + $0x68] sm:$0x1] }
 0x163   : > { %v1676_v28 = vrot.slane %v1674_v10, 5  ;;  %v1682_v29 = vrot.slane %v1680_v12, 5  ;;  %v1684_v34 = vshrl.u32 %v4694_v20, 16  ;;  %v1690_v62 = vshll.u32 %v4695_v6, 16  ;;  %v4907_v8 = vld [vmem:[%s5802_s13 + $0xc4] sm:$0xf] }
 0x164   : > { %v1880_v33 = vrot.slane %v1879_v17, 4  ;;  %v4798_v35 = vrot.slane %v4778_v14, 9  ;;  %v1875_v39 = vsel %vm5862_vm5, %v1870_v27, %v1874_v63  ;;  %v2195_v41 = vrot.slane %v4779_v15, 5  ;;  %v2985_v50 = vpop.permute.xlu0 %2984  ;;  %v3320_v51 = vpop.permute.xlu1 %3319  ;;  %v4908_v14 = vld [vmem:[%s5802_s13 + $0xc8] sm:$0x1] }
 0x165   : > { %v1677_v40 = vor.u32 %v1676_v28, %v1673_v19  ;;  %v2198_v42 = vrot.slane %v4780_v23, 5  ;;  %v1686_v47 = vrot.slane %v1684_v34, 4  ;;  %v1692_v48 = vrot.slane %v1690_v62, 5  ;;  %3030 = vst.msk [vmem:[#allocation2 + $0x18] sm:$0xff] %vm3026_vm13, %v2985_v50  ;;  %v4882_v16 = vld [vmem:[%s5802_s13 + $0x60] sm:$0xf] }
 0x166   : > { %1403 = vrot.lane.b32.xlu0 %v5386_v1, %s5605_s25  ;;  %1962 = vrot.lane.b32.xlu1 %v4734_v13, %s5608_s14  ;;  %v1885_v45 = vsel %vm5862_vm5, %v1880_v33, %v1884_v18  ;;  %v4790_v49 = vrot.slane %v4754_v24, 9  ;;  %v2196_v21 = vsel %vm5812_vm2, %v4798_v35, %v2195_v41  ;;  %v2197_v37 = vrot.slane %v2195_v41, 4  ;;  %3358 = vst.msk [vmem:[#allocation2 + $0x50] sm:$0xff] %vm3347_vm14, %v3320_v51  ;;  %v4906_v13 = vld [vmem:[%s5802_s13 + $0xc0] sm:$0xf] }
 0x167   : > { %v4735_v52 = vcombine.low %v1875_v39, %v1885_v45  ;;  %v1678_v53 = vrot.slane %v1677_v40, 4  ;;  %v1687_v55 = vor.u32 %v1686_v47, %v1682_v29  ;;  %v2139_v11 = vrot.slane %v4755_v30, 5  ;;  %v4883_v24 = vld [vmem:[%s5802_s13 + $0x64] sm:$0xf]  ;;  %v4910_v35 = vld [vmem:[%s5802_s13 + $0xd0] sm:$0xf] }
 0x168   : > { %v2142_v57 = vrot.slane %v4756_v31, 5  ;;  %v4799_v46 = vrot.slane %v4781_v32, 9  ;;  %v2199_v43 = vsel %vm5812_vm2, %v2197_v37, %v2198_v42  ;;  %v2202_v20 = vrot.slane %v4782_v36, 5  ;;  %v3304_v2 = vpop.permute.xlu0 %3303  ;;  %v4909_v31 = vld [vmem:[%s5802_s13 + $0xcc] sm:$0xf]  ;;  %v5387_v45 = vld [vmem:[%s5802_s13 + $0xc0] sm:$0xff]  }
 0x169   : > { %v1683_v58 = vsel %vm5862_vm5, %v1678_v53, %v1682_v29  ;;  %v2205_v59 = vrot.slane %v4783_v38, 5  ;;  %v1688_v60 = vrot.slane %v1687_v55, 4  ;;  %v4814_v61 = vcombine.low %v2196_v21, %v2199_v43  ;;  %3350 = vst.msk [vmem:[#allocation2 + $0x10] sm:$0xff] %vm3347_vm14, %v3304_v2  ;;  %v4884_v29 = vld [vmem:[%s5802_s13 + $0x68] sm:$0x1] }
 0x16a   : > { %1946 = vrot.lane.b32.xlu0 %v4726_v22, %s5608_s14  ;;  %1964 = vrot.lane.b32.xlu1 %v4735_v52, %s5608_s14  ;;  %v2140_v63 = vsel %vm5812_vm2, %v4790_v49, %v2139_v11  ;;  %v2141_v1 = vrot.slane %v2139_v11, 4  ;;  %v2203_v3 = vsel %vm5812_vm2, %v4799_v46, %v2202_v20  ;;  %v2204_v4 = vrot.slane %v2202_v20, 4 }
 0x16b   : > { %v4791_v6 = vrot.slane %v4757_v54, 9  ;;  %v2146_v7 = vrot.slane %v4758_v56, 5  ;;  %v1693_v9 = vsel %vm5862_vm5, %v1688_v60, %v1692_v48  ;;  %v2149_v12 = vrot.slane %v4759_v44, 5  ;;  %v4911_v54 = vld [vmem:[%s5802_s13 + $0xd4] sm:$0x1] }
 0x16c   : > { %v2143_v10 = vsel %vm5812_vm2, %v2141_v1, %v2142_v57  ;;  %v2883_v15 = vshrl.u32 %v4906_v13, 16  ;;  %v4727_v17 = vcombine.low %v1683_v58, %v1693_v9  ;;  %v2206_v19 = vsel %vm5812_vm2, %v2204_v4, %v2205_v59  ;;  %v912_v22 = vpop.permute.xlu1 %911  ;;  %v5389_v1 = vld [vmem:[%s5802_s13 + $0xcc] sm:$0xff]  }
 0x16d   : > { %v4806_v18 = vcombine.low %v2140_v63, %v2143_v10  ;;  %v2147_v23 = vsel %vm5812_vm2, %v4791_v6, %v2146_v7  ;;  %v4815_v25 = vcombine.low %v2203_v3, %v2206_v19  ;;  %v2148_v26 = vrot.slane %v2146_v7, 4  ;;  %v3374_v30 = vld [vmem:[#allocation2 + $0x50] sm:$0xff]  ;;  %948 = vst.msk [vmem:[#allocation2 + $0x60] sm:$0xff] %vm935_vm7, %v912_v22  ;;  %v4885_v63 = vld [vmem:[%s5802_s13 + $0x6c] sm:$0xf]  ;;  %v5388_v7 = vld [vmem:[%s5802_s13 + $0x60] sm:$0xff]  }
 0x16e   : > { %2283 = vrot.lane.b32.xlu1 %v4814_v61, %s5609_s21  ;;  %v2885_v27 = vrot.slane %v2883_v15, 4  ;;  %v2886_v28 = vshll.u32 %v4906_v13, 16  ;;  %1948 = vrot.lane.b32.xlu0 %v4727_v17, %s5608_s14  ;;  %v2892_v32 = vshll.u32 %v4907_v8, 16  ;;  %v2896_v33 = vshrl.u32 %v4907_v8, 16 }
 0x16f   : > { %v2902_v34 = vshll.u32 %v4908_v14, 16  ;;  %v2691_v62 = vshrl.u32 %v4882_v16, 16  ;;  %5224 = vmatprep.mubr.msk.bf16.mxu1 %vm3400_vm15, %v3374_v30  ;;  %v2150_v36 = vsel %vm5812_vm2, %v2148_v26, %v2149_v12  ;;  %v896_v38 = vpop.permute.xlu0 %895  ;;  %v2694_v40 = vshll.u32 %v4882_v16, 16  ;;  %v4886_v14 = vld [vmem:[%s5802_s13 + $0x70] sm:$0xf] }
 0x170   : > { %v2888_v39 = vrot.slane %v2886_v28, 5  ;;  %v2700_v41 = vshll.u32 %v4883_v24, 16  ;;  %v4807_v42 = vcombine.low %v2147_v23, %v2150_v36  ;;  %940 = vst.msk [vmem:[#allocation2 + $0x20] sm:$0xff] %vm935_vm7, %v896_v38  ;;  %v2894_v47 = vrot.slane %v2892_v32, 5  ;;  %v3366_v37 = vld [vmem:[#allocation2 + $0x10] sm:$0xff] }
 0x171   : > { %v2898_v48 = vrot.slane %v2896_v33, 4  ;;  %v2904_v49 = vrot.slane %v2902_v34, 5  ;;  %v2693_v51 = vrot.slane %v2691_v62, 4  ;;  %v2696_v52 = vrot.slane %v2694_v40, 5  ;;  %5208 = vmatprep.mubr.msk.bf16.mxu0 %vm3400_vm15, %v3366_v37  ;;  %v4970_v23 = vld [vmem:[%s5802_s13 + $0xc0] sm:$0xe] }
 0x172   : > { %2285 = vrot.lane.b32.xlu1 %v4815_v25, %s5609_s21  ;;  %v2889_v50 = vor.u32 %v2888_v39, %v2885_v27  ;;  %v6751_v53 = vrot.slane %v2700_v41, 5  ;;  %v3322_v21 = vpop.permute.xlu1 %3321  ;;  %2267 = vrot.lane.b32.xlu0 %v4806_v18, %s5609_s21  ;;  %v2704_v11 = vshrl.u32 %v4883_v24, 16  ;;  %v2710_v57 = vshll.u32 %v4884_v29, 16  ;;  %v4887_v18 = vld [vmem:[%s5802_s13 + $0x74] sm:$0x1]  ;;  %v5390_v29 = vld [vmem:[%s5802_s13 + $0x6c] sm:$0xff]  }
 0x173   : > { %v2899_v55 = vor.u32 %v2898_v48, %v2894_v47  ;;  %3359 = vst.msk [vmem:[#allocation2 + $0x58] sm:$0xff] %vm3347_vm14, %v3322_v21  ;;  %v2907_v46 = vshrl.u32 %v4909_v31, 16  ;;  %v2697_v58 = vor.u32 %v2696_v52, %v2693_v51  ;;  %v3306_v43 = vpop.permute.xlu0 %3305  ;;  %v2910_v20 = vshll.u32 %v4909_v31, 16  ;;  %v4971_v27 = vld [vmem:[%s5802_s13 + $0xc4] sm:$0xf] }
 0x174   : > { %v2890_v56 = vrot.slane %v2889_v50, 4  ;;  %v2916_v59 = vshll.u32 %v4910_v35, 16  ;;  %v2706_v13 = vrot.slane %v2704_v11, 4  ;;  %v2712_v60 = vrot.slane %v2710_v57, 5  ;;  %3351 = vst.msk [vmem:[#allocation2 + $0x18] sm:$0xff] %vm3347_vm14, %v3306_v43 }
 0x175   : > { %v2900_v44 = vrot.slane %v2899_v55, 4  ;;  %v2909_v61 = vrot.slane %v2907_v46, 4  ;;  %v2698_v3 = vrot.slane %v2697_v58, 4  ;;  %v2912_v4 = vrot.slane %v2910_v20, 5  ;;  %v4972_v28 = vld [vmem:[%s5802_s13 + $0xc8] sm:$0x1] }
 0x176   : > { %2461 = vrot.lane.b32.xlu1 %v5387_v45, %s5610_s12  ;;  %v2895_v2 = vsel %vm5862_vm5, %v2890_v56, %v2894_v47  ;;  %v6763_v6 = vrot.slane %v2916_v59, 5  ;;  %2269 = vrot.lane.b32.xlu0 %v4807_v42, %s5609_s21  ;;  %v2707_v9 = vor.u32 %v2706_v13, %v6751_v53  ;;  %v2920_v10 = vshrl.u32 %v4910_v35, 16  ;;  %v4946_v40 = vld [vmem:[%s5802_s13 + $0x60] sm:$0xe]  ;;  %v4947_v41 = vld [vmem:[%s5802_s13 + $0x64] sm:$0xf] }
 0x177   : > { %v2905_v8 = vsel %vm5862_vm5, %v2900_v44, %v2904_v49  ;;  %v2926_v12 = vshll.u32 %v4911_v54, 16  ;;  %v2703_v16 = vsel %vm5862_vm5, %v2698_v3, %v6751_v53  ;;  %v2913_v17 = vor.u32 %v2912_v4, %v2909_v61  ;;  %v4948_v49 = vld [vmem:[%s5802_s13 + $0x68] sm:$0x1]  ;;  %v4973_v54 = vld [vmem:[%s5802_s13 + $0xcc] sm:$0xe] }
 0x178   : > { %v4926_v15 = vcombine.low %v2895_v2, %v2905_v8  ;;  %v2715_v19 = vshrl.u32 %v4885_v63, 16  ;;  %v2708_v24 = vrot.slane %v2707_v9, 4  ;;  %v2922_v25 = vrot.slane %v2920_v10, 4  ;;  %v4974_v58 = vld [vmem:[%s5802_s13 + $0xd0] sm:$0xf] }
 0x179   : > { %v2928_v26 = vrot.slane %v2926_v12, 5  ;;  %v2718_v22 = vshll.u32 %v4885_v63, 16  ;;  %v2914_v30 = vrot.slane %v2913_v17, 4  ;;  %v2724_v32 = vshll.u32 %v4886_v14, 16  ;;  %v914_v34 = vpop.permute.xlu1 %913  ;;  %v4975_v13 = vld [vmem:[%s5802_s13 + $0xd4] sm:$0x1] }
 0x17a   : > { %2463 = vrot.lane.b32.xlu1 %v5389_v1, %s5610_s12  ;;  %v2717_v31 = vrot.slane %v2715_v19, 4  ;;  %v2728_v33 = vshrl.u32 %v4886_v14, 16  ;;  %v3375_v62 = vld [vmem:[#allocation2 + $0x58] sm:$0xff]  ;;  %2445 = vrot.lane.b32.xlu0 %v5388_v7, %s5610_s12  ;;  %v2713_v35 = vsel %vm5862_vm5, %v2708_v24, %v2712_v60  ;;  %v2923_v36 = vor.u32 %v2922_v25, %v6763_v6  ;;  %949 = vst.msk [vmem:[#allocation2 + $0x68] sm:$0xff] %vm935_vm7, %v914_v34  ;;  %v4949_v7 = vld [vmem:[%s5802_s13 + $0x6c] sm:$0xe] }
 0x17b   : > { %v2720_v38 = vrot.slane %v2718_v22, 5  ;;  %v2734_v39 = vshll.u32 %v4887_v18, 16  ;;  %5225 = vmatmul.mubr.msk.bf16.gmra.mrb[4].mxu1 %vm3400_vm15, %v3375_v62  ;;  %v4918_v42 = vcombine.low %v2703_v16, %v2713_v35  ;;  %v2919_v45 = vsel %vm5862_vm5, %v2914_v30, %v6763_v6  ;;  %v3367_v50 = vld [vmem:[#allocation2 + $0x18] sm:$0xff]  ;;  %v4950_v8 = vld [vmem:[%s5802_s13 + $0x70] sm:$0xf] }
 0x17c   : > { %v2726_v47 = vrot.slane %v2724_v32, 5  ;;  %v2730_v48 = vrot.slane %v2728_v33, 4  ;;  %v2924_v51 = vrot.slane %v2923_v36, 4  ;;  %v898_v21 = vpop.permute.xlu0 %897  ;;  %v4990_v37 = vrot.slane %v4970_v23, 9  ;;  %5209 = vmatmul.mubr.msk.bf16.gmra.mrb[4].mxu0 %vm3400_vm15, %v3367_v50 }
 0x17d   : > { %v2721_v52 = vor.u32 %v2720_v38, %v2717_v31  ;;  %v2736_v53 = vrot.slane %v2734_v39, 5  ;;  %941 = vst.msk [vmem:[#allocation2 + $0x28] sm:$0xff] %vm935_vm7, %v898_v21  ;;  %v3239_v11 = vrot.slane %v4971_v27, 5  ;;  %v3242_v57 = vrot.slane %v4972_v28, 5  ;;  %v1236_v56 = vpop.permute.xlu1 %1235 }
 0x17e   : > { %3006 = vrot.lane.b32.xlu1 %v4926_v15, %s5611_s6  ;;  %v2731_v55 = vor.u32 %v2730_v48, %v2726_v47  ;;  %v4982_v46 = vrot.slane %v4946_v40, 9  ;;  %2447 = vrot.lane.b32.xlu0 %v5390_v29, %s5610_s12  ;;  %v2929_v43 = vsel %vm5862_vm5, %v2924_v51, %v2928_v26  ;;  %v3183_v59 = vrot.slane %v4947_v41, 5  ;;  %1272 = vst.msk [vmem:[#allocation2 + $0x60] sm:$0xff] %vm1259_vm8, %v1236_v56  ;;  %v4951_v15 = vld [vmem:[%s5802_s13 + $0x74] sm:$0x1] }
 0x17f   : > { %v2722_v20 = vrot.slane %v2721_v52, 4  ;;  %v3186_v44 = vrot.slane %v4948_v49, 5  ;;  %v4927_v60 = vcombine.low %v2919_v45, %v2929_v43  ;;  %v3240_v63 = vsel %vm5812_vm2, %v4990_v37, %v3239_v11 }
 0x180   : > { %v2732_v61 = vrot.slane %v2731_v55, 4  ;;  %v3241_v1 = vrot.slane %v3239_v11, 4  ;;  %v3185_v3 = vrot.slane %v3183_v59, 4  ;;  %v1220_v4 = vpop.permute.xlu0 %1219  ;;  %v4991_v6 = vrot.slane %v4973_v54, 9 }
 0x181   : > { %v2727_v2 = vsel %vm5862_vm5, %v2722_v20, %v2726_v47  ;;  %1264 = vst.msk [vmem:[#allocation2 + $0x20] sm:$0xff] %vm1259_vm8, %v1220_v4  ;;  %v3246_v12 = vrot.slane %v4974_v58, 5  ;;  %v3249_v14 = vrot.slane %v4975_v13, 5  ;;  %v1238_v16 = vpop.permute.xlu1 %1237  ;;  %v3184_v19 = vsel %vm5812_vm2, %v4982_v46, %v3183_v59 }
 0x182   : > { %3008 = vrot.lane.b32.xlu1 %v4927_v60, %s5611_s6  ;;  %v2737_v9 = vsel %vm5862_vm5, %v2732_v61, %v2736_v53  ;;  %v3243_v10 = vsel %vm5812_vm2, %v3241_v1, %v3242_v57  ;;  %2990 = vrot.lane.b32.xlu0 %v4918_v42, %s5611_s6  ;;  %v3187_v5 = vsel %vm5812_vm2, %v3185_v3, %v3186_v44  ;;  %v4983_v25 = vrot.slane %v4949_v7, 9 }
 0x183   : > { %v4919_v17 = vcombine.low %v2727_v2, %v2737_v9  ;;  %v5006_v18 = vcombine.low %v3240_v63, %v3243_v10  ;;  %1273 = vst.msk [vmem:[#allocation2 + $0x68] sm:$0xff] %vm1259_vm8, %v1238_v16  ;;  %v3247_v23 = vsel %vm5812_vm2, %v4991_v6, %v3246_v12  ;;  %v3248_v24 = vrot.slane %v3246_v12, 4 }
 0x184   : > { %v3190_v26 = vrot.slane %v4950_v8, 5  ;;  %v3193_v22 = vrot.slane %v4951_v15, 5  ;;  %v1222_v27 = vpop.permute.xlu0 %1221  ;;  %v4998_v31 = vcombine.low %v3184_v19, %v3187_v5  ;;  %vm3618_vm1 = vcmask (!%p5027_p4), 57344  }
 0x185   : > { %v3250_v28 = vsel %vm5812_vm2, %v3248_v24, %v3249_v14  ;;  %1265 = vst.msk [vmem:[#allocation2 + $0x28] sm:$0xff] %vm1259_vm8, %v1222_v27  ;;  %v1414_v30 = vpop.permute.xlu1 %1413 }
 0x186   : > { %3327 = vrot.lane.b32.xlu1 %v5006_v18, %s5612_s9  ;;  %v3192_v29 = vrot.slane %v3190_v26, 4  ;;  %2992 = vrot.lane.b32.xlu0 %v4919_v17, %s5611_s6  ;;  %v5007_v32 = vcombine.low %v3247_v23, %v3250_v28  ;;  %1450 = vst.msk [vmem:[#allocation2 + $0x60] sm:$0xff] %vm1437_vm9, %v1414_v30  ;;  %v3191_v33 = vsel %vm5812_vm2, %v4983_v25, %v3190_v26 }
 0x188   : > { %v3194_v34 = vsel %vm5812_vm2, %v3192_v29, %v3193_v22  ;;  %v1398_v62 = vpop.permute.xlu0 %1397 }
 0x189   : > { %1442 = vst.msk [vmem:[#allocation2 + $0x20] sm:$0xff] %vm1437_vm9, %v1398_v62  ;;  %v1416_v35 = vpop.permute.xlu1 %1415  ;;  %v4999_v36 = vcombine.low %v3191_v33, %v3194_v34 }
 0x18a   : > { %3329 = vrot.lane.b32.xlu1 %v5007_v32, %s5612_s9  ;;  %3311 = vrot.lane.b32.xlu0 %v4998_v31, %s5612_s9  ;;  %1451 = vst.msk [vmem:[#allocation2 + $0x68] sm:$0xff] %vm1437_vm9, %v1416_v35 }
 0x18c   : > { %v1400_v38 = vpop.permute.xlu0 %1399 }
 0x18d   : > { %1443 = vst.msk [vmem:[#allocation2 + $0x28] sm:$0xff] %vm1437_vm9, %v1400_v38  ;;  %v1959_v39 = vpop.permute.xlu1 %1958 }
 0x18e   : > { %3313 = vrot.lane.b32.xlu0 %v4999_v36, %s5612_s9  ;;  %1995 = vst.msk [vmem:[#allocation2 + $0x60] sm:$0xff] %vm1982_vm10, %v1959_v39 }
 0x190   : > { %v1943_v0 = vpop.permute.xlu0 %1942 }
 0x191   : > { %1987 = vst.msk [vmem:[#allocation2 + $0x20] sm:$0xff] %vm1982_vm10, %v1943_v0  ;;  %v1961_v40 = vpop.permute.xlu1 %1960 }
 0x192   : > { %1996 = vst.msk [vmem:[#allocation2 + $0x68] sm:$0xff] %vm1982_vm10, %v1961_v40 }
 0x195   : > { %v2280_v41 = vpop.permute.xlu1 %2279 }
 0x196   : > { %2316 = vst.msk [vmem:[#allocation2 + $0x60] sm:$0xff] %vm2303_vm11, %v2280_v41 }
 0x197   : > { %v1945_v42 = vpop.permute.xlu0 %1944 }
 0x198   : > { %1988 = vst.msk [vmem:[#allocation2 + $0x28] sm:$0xff] %vm1982_vm10, %v1945_v42 }
 0x199   : > { %v2282_v45 = vpop.permute.xlu1 %2281 }
 0x19a   : > { %2317 = vst.msk [vmem:[#allocation2 + $0x68] sm:$0xff] %vm2303_vm11, %v2282_v45 }
 0x19b   : > { %v2264_v47 = vpop.permute.xlu0 %2263 }
 0x19c   : > { %2308 = vst.msk [vmem:[#allocation2 + $0x20] sm:$0xff] %vm2303_vm11, %v2264_v47 }
 0x19d   : > { %v2458_v48 = vpop.permute.xlu1 %2457 }
 0x19e   : > { %2494 = vst.msk [vmem:[#allocation2 + $0x60] sm:$0xff] %vm2481_vm12, %v2458_v48 }
 0x19f   : > { %v2266_v49 = vpop.permute.xlu0 %2265 }
 0x1a0   : > { %2309 = vst.msk [vmem:[#allocation2 + $0x28] sm:$0xff] %vm2303_vm11, %v2266_v49 }
 0x1a1   : > { %v2460_v50 = vpop.permute.xlu1 %2459 }
 0x1a2   : > { %2495 = vst.msk [vmem:[#allocation2 + $0x68] sm:$0xff] %vm2481_vm12, %v2460_v50 }
 0x1a3   : > { %v2442_v51 = vpop.permute.xlu0 %2441 }
 0x1a4   : > { %2486 = vst.msk [vmem:[#allocation2 + $0x20] sm:$0xff] %vm2481_vm12, %v2442_v51 }
 0x1a5   : > { %v3003_v52 = vpop.permute.xlu1 %3002 }
 0x1a6   : > { %3039 = vst.msk [vmem:[#allocation2 + $0x60] sm:$0xff] %vm3026_vm13, %v3003_v52 }
 0x1a7   : > { %v2444_v53 = vpop.permute.xlu0 %2443 }
 0x1a8   : > { %2487 = vst.msk [vmem:[#allocation2 + $0x28] sm:$0xff] %vm2481_vm12, %v2444_v53 }
 0x1ab   : > { %v2987_v21 = vpop.permute.xlu0 %2986  ;;  %v3005_v37 = vpop.permute.xlu1 %3004 }
 0x1ac   : > { %3031 = vst.msk [vmem:[#allocation2 + $0x20] sm:$0xff] %vm3026_vm13, %v2987_v21  ;;  %3040 = vst.msk [vmem:[#allocation2 + $0x68] sm:$0xff] %vm3026_vm13, %v3005_v37 }
 0x1af   : > { %v2989_v54 = vpop.permute.xlu0 %2988  ;;  %v3324_v55 = vpop.permute.xlu1 %3323 }
 0x1b0   : > { %3032 = vst.msk [vmem:[#allocation2 + $0x28] sm:$0xff] %vm3026_vm13, %v2989_v54 }
 0x1b1   : > { %3360 = vst.msk [vmem:[#allocation2 + $0x60] sm:$0xff] %vm3347_vm14, %v3324_v55 }
 0x1b3   : > { %v3308_v11 = vpop.permute.xlu0 %3307 }
 0x1b4   : > { %3352 = vst.msk [vmem:[#allocation2 + $0x20] sm:$0xff] %vm3347_vm14, %v3308_v11 }
 0x1b8   : > { %v3376_v57 = vld [vmem:[#allocation2 + $0x60] sm:$0xff]  ;;  %v916_v46 = vpop.permute.xlu1 %915 }
 0x1b9   : > { %5228 = vmatprep.mubr.msk.bf16.mxu1 %vm3400_vm15, %v3376_v57  ;;  %950 = vst.msk [vmem:[#allocation2 + $0x70] sm:$0xff] %vm935_vm7, %v916_v46 }
 0x1bb   : > { %v900_v56 = vpop.permute.xlu0 %899  ;;  %v3368_v58 = vld [vmem:[#allocation2 + $0x20] sm:$0xff] }
 0x1bc   : > { %942 = vst.msk [vmem:[#allocation2 + $0x30] sm:$0xff] %vm935_vm7, %v900_v56  ;;  %5212 = vmatprep.mubr.msk.bf16.mxu0 %vm3400_vm15, %v3368_v58  ;;  %v3326_v43 = vpop.permute.xlu1 %3325 }
 0x1bd   : > { %3361 = vst.msk [vmem:[#allocation2 + $0x68] sm:$0xff] %vm3347_vm14, %v3326_v43 }
 0x1bf   : > { %v3310_v20 = vpop.permute.xlu0 %3309 }
 0x1c0   : > { %3353 = vst.msk [vmem:[#allocation2 + $0x28] sm:$0xff] %vm3347_vm14, %v3310_v20 }
 0x1c4   : > { %v918_v59 = vpop.permute.xlu1 %917  ;;  %v3377_v44 = vld [vmem:[#allocation2 + $0x68] sm:$0xff] }
 0x1c5   : > { %951 = vst.msk [vmem:[#allocation2 + $0x78] sm:$0xff] %vm935_vm7, %v918_v59  ;;  %5229 = vmatmul.mubr.msk.bf16.gmra.mrb[8].mxu1 %vm3400_vm15, %v3377_v44 }
 0x1c7   : > { %v3369_v13 = vld [vmem:[#allocation2 + $0x28] sm:$0xff] }
 0x1c8   : > { %v902_v60 = vpop.permute.xlu0 %901  ;;  %v1240_v61 = vpop.permute.xlu1 %1239  ;;  %5213 = vmatmul.mubr.msk.bf16.gmra.mrb[8].mxu0 %vm3400_vm15, %v3369_v13 }
 0x1c9   : > { %943 = vst.msk [vmem:[#allocation2 + $0x38] sm:$0xff] %vm935_vm7, %v902_v60 }
 0x1ca   : > { %1274 = vst.msk [vmem:[#allocation2 + $0x70] sm:$0xff] %vm1259_vm8, %v1240_v61  ;;  %v5613_v61 = vmov (!%p5027_p4), 0.0  }
 0x1cb   : > { %3619 = vst.msk [vmem:[#allocation9] sm:$0x1] (!%p5027_p4), %vm3618_vm1, %v5613_v61  ;;  %3620 = vst.msk [vmem:[#allocation11] sm:$0x1] (!%p5027_p4), %vm3618_vm1, %v5613_v61 }
 0x1cc   : > { %v1224_v63 = vpop.permute.xlu0 %1223  ;;  %v1242_v1 = vpop.permute.xlu1 %1241 }
 0x1cd   : > { %1266 = vst.msk [vmem:[#allocation2 + $0x30] sm:$0xff] %vm1259_vm8, %v1224_v63  ;;  %1275 = vst.msk [vmem:[#allocation2 + $0x78] sm:$0xff] %vm1259_vm8, %v1242_v1 }
 0x1d0   : > { %v1226_v2 = vpop.permute.xlu0 %1225  ;;  %v1418_v3 = vpop.permute.xlu1 %1417 }
 0x1d1   : > { %1267 = vst.msk [vmem:[#allocation2 + $0x38] sm:$0xff] %vm1259_vm8, %v1226_v2 }
 0x1d2   : > { %1452 = vst.msk [vmem:[#allocation2 + $0x70] sm:$0xff] %vm1437_vm9, %v1418_v3 }
 0x1d4   : > { %v1402_v4 = vpop.permute.xlu0 %1401  ;;  %v1420_v6 = vpop.permute.xlu1 %1419 }
 0x1d5   : > { %1444 = vst.msk [vmem:[#allocation2 + $0x30] sm:$0xff] %vm1437_vm9, %v1402_v4  ;;  %1453 = vst.msk [vmem:[#allocation2 + $0x78] sm:$0xff] %vm1437_vm9, %v1420_v6 }
 0x1d8   : > { %v1404_v7 = vpop.permute.xlu0 %1403  ;;  %v1963_v8 = vpop.permute.xlu1 %1962 }
 0x1d9   : > { %1445 = vst.msk [vmem:[#allocation2 + $0x38] sm:$0xff] %vm1437_vm9, %v1404_v7 }
 0x1da   : > { %1997 = vst.msk [vmem:[#allocation2 + $0x70] sm:$0xff] %vm1982_vm10, %v1963_v8 }
 0x1dc   : > { %v1947_v9 = vpop.permute.xlu0 %1946  ;;  %v1965_v10 = vpop.permute.xlu1 %1964 }
 0x1dd   : > { %1989 = vst.msk [vmem:[#allocation2 + $0x30] sm:$0xff] %vm1982_vm10, %v1947_v9  ;;  %1998 = vst.msk [vmem:[#allocation2 + $0x78] sm:$0xff] %vm1982_vm10, %v1965_v10 }
 0x1e0   : > { %v2284_v12 = vpop.permute.xlu1 %2283  ;;  %v1949_v14 = vpop.permute.xlu0 %1948 }
 0x1e1   : > { %2318 = vst.msk [vmem:[#allocation2 + $0x70] sm:$0xff] %vm2303_vm11, %v2284_v12 }
 0x1e2   : > { %1990 = vst.msk [vmem:[#allocation2 + $0x38] sm:$0xff] %vm1982_vm10, %v1949_v14 }
 0x1e4   : > { %v2286_v15 = vpop.permute.xlu1 %2285  ;;  %v2268_v16 = vpop.permute.xlu0 %2267 }
 0x1e5   : > { %2319 = vst.msk [vmem:[#allocation2 + $0x78] sm:$0xff] %vm2303_vm11, %v2286_v15  ;;  %2310 = vst.msk [vmem:[#allocation2 + $0x30] sm:$0xff] %vm2303_vm11, %v2268_v16 }
 0x1e8   : > { %v2462_v17 = vpop.permute.xlu1 %2461  ;;  %v2270_v18 = vpop.permute.xlu0 %2269 }
 0x1e9   : > { %2496 = vst.msk [vmem:[#allocation2 + $0x70] sm:$0xff] %vm2481_vm12, %v2462_v17 }
 0x1ea   : > { %2311 = vst.msk [vmem:[#allocation2 + $0x38] sm:$0xff] %vm2303_vm11, %v2270_v18 }
 0x1ec   : > { %v2464_v19 = vpop.permute.xlu1 %2463  ;;  %v2446_v5 = vpop.permute.xlu0 %2445 }
 0x1ed   : > { %2497 = vst.msk [vmem:[#allocation2 + $0x78] sm:$0xff] %vm2481_vm12, %v2464_v19  ;;  %2488 = vst.msk [vmem:[#allocation2 + $0x30] sm:$0xff] %vm2481_vm12, %v2446_v5 }
 0x1f0   : > { %v3007_v23 = vpop.permute.xlu1 %3006  ;;  %v2448_v24 = vpop.permute.xlu0 %2447 }
 0x1f1   : > { %3041 = vst.msk [vmem:[#allocation2 + $0x70] sm:$0xff] %vm3026_vm13, %v3007_v23 }
 0x1f2   : > { %2489 = vst.msk [vmem:[#allocation2 + $0x38] sm:$0xff] %vm2481_vm12, %v2448_v24 }
 0x1f4   : > { %v3009_v25 = vpop.permute.xlu1 %3008  ;;  %v2991_v26 = vpop.permute.xlu0 %2990 }
 0x1f5   : > { %3042 = vst.msk [vmem:[#allocation2 + $0x78] sm:$0xff] %vm3026_vm13, %v3009_v25  ;;  %3033 = vst.msk [vmem:[#allocation2 + $0x30] sm:$0xff] %vm3026_vm13, %v2991_v26 }
 0x1f8   : > { %v3328_v22 = vpop.permute.xlu1 %3327  ;;  %v2993_v27 = vpop.permute.xlu0 %2992 }
 0x1f9   : > { %3362 = vst.msk [vmem:[#allocation2 + $0x70] sm:$0xff] %vm3347_vm14, %v3328_v22 }
 0x1fa   : > { %3034 = vst.msk [vmem:[#allocation2 + $0x38] sm:$0xff] %vm3026_vm13, %v2993_v27 }
 0x1fc   : > { %v3330_v28 = vpop.permute.xlu1 %3329  ;;  %v3312_v29 = vpop.permute.xlu0 %3311 }
 0x1fd   : > { %3363 = vst.msk [vmem:[#allocation2 + $0x78] sm:$0xff] %vm3347_vm14, %v3330_v28  ;;  %3354 = vst.msk [vmem:[#allocation2 + $0x30] sm:$0xff] %vm3347_vm14, %v3312_v29 }
 0x200   : > { %v3378_v30 = vld [vmem:[#allocation2 + $0x70] sm:$0xff]  ;;  %v3314_v31 = vpop.permute.xlu0 %3313 }
 0x201   : > { %5232 = vmatprep.mubr.msk.bf16.mxu1 %vm3400_vm15, %v3378_v30  ;;  %3355 = vst.msk [vmem:[#allocation2 + $0x38] sm:$0xff] %vm3347_vm14, %v3314_v31 }
 0x204   : > { %v3379_v32 = vld [vmem:[#allocation2 + $0x78] sm:$0xff]  ;;  %v3370_v33 = vld [vmem:[#allocation2 + $0x30] sm:$0xff] }
 0x205   : > { %5233 = vmatmul.mubr.msk.bf16.gmra.mrb[12].mxu1 %vm3400_vm15, %v3379_v32  ;;  %5216 = vmatprep.mubr.msk.bf16.mxu0 %vm3400_vm15, %v3370_v33 }
 0x208   : > { %v3371_v34 = vld [vmem:[#allocation2 + $0x38] sm:$0xff] }
 0x209   : > { %5217 = vmatmul.mubr.msk.bf16.gmra.mrb[12].mxu0 %vm3400_vm15, %v3371_v34 }
 0x20d   : > { %v6899_v62 = vpop.f32.mrb[0].mxu0  ;;  %v6901_v35 = vpop.f32.mrb[0].mxu1 }
 0x20e   : > { %7822 = vst [vmem:[#allocation16_spill] sm:$0xff] %v6901_v35  ;;  %v6903_v36 = vpop.f32.mrb[1].mxu0  ;;  %v6905_v38 = vpop.f32.mrb[1].mxu1 }
 0x20f   : > { %7823 = vst [vmem:[#allocation17_spill] sm:$0xff] %v6905_v38  ;;  %v6907_v39 = vpop.f32.mrb[2].mxu0  ;;  %v6909_v0 = vpop.f32.mrb[2].mxu1 }
 0x210   : > { %7824 = vst [vmem:[#allocation18_spill] sm:$0xff] %v6909_v0  ;;  %v6911_v40 = vpop.f32.mrb[3].mxu0  ;;  %v6913_v41 = vpop.f32.mrb[3].mxu1 }
 0x211   : > { %7825 = vst [vmem:[#allocation19_spill] sm:$0xff] %v6913_v41 }
 0x24e   : > { %v6915_v42 = vpop.f32.mrb[4].mxu1 }
 0x24f   : > { %7826 = vst [vmem:[#allocation20_spill] sm:$0xff] %v6915_v42  ;;  %v6917_v45 = vpop.f32.mrb[5].mxu1  ;;  %v6919_v47 = vpop.f32.mrb[4].mxu0 }
 0x250   : > { %7827 = vst [vmem:[#allocation21_spill] sm:$0xff] %v6917_v45  ;;  %v6921_v48 = vpop.f32.mrb[6].mxu1  ;;  %v6923_v49 = vpop.f32.mrb[5].mxu0 }
 0x251   : > { %7828 = vst [vmem:[#allocation22_spill] sm:$0xff] %v6921_v48  ;;  %v6925_v50 = vpop.f32.mrb[7].mxu1  ;;  %v6927_v51 = vpop.f32.mrb[6].mxu0 }
 0x252   : > { %7829 = vst [vmem:[#allocation23_spill] sm:$0xff] %v6925_v50  ;;  %v6929_v52 = vpop.f32.mrb[7].mxu0 }
 0x298   : > { %v6931_v53 = vpop.f32.mrb[8].mxu1 }
 0x299   : > { %7830 = vst [vmem:[#allocation24_spill] sm:$0xff] %v6931_v53  ;;  %v6933_v21 = vpop.f32.mrb[9].mxu1 }
 0x29a   : > { %7831 = vst [vmem:[#allocation25_spill] sm:$0xff] %v6933_v21  ;;  %v6937_v54 = vpop.f32.mrb[10].mxu1 }
 0x29b   : > { %v6935_v37 = vpop.f32.mrb[8].mxu0  ;;  %7832 = vst [vmem:[#allocation26_spill] sm:$0xff] %v6937_v54  ;;  %v6941_v11 = vpop.f32.mrb[11].mxu1 }
 0x29c   : > { %v6939_v55 = vpop.f32.mrb[9].mxu0  ;;  %7834 = vst [vmem:[#allocation28_spill] sm:$0xff] %v6941_v11 }
 0x29d   : > { %7833 = vst [vmem:[#allocation27_spill] sm:$0xff] %v6939_v55  ;;  %v6943_v57 = vpop.f32.mrb[10].mxu0 }
 0x29e   : > { %7835 = vst [vmem:[#allocation29_spill] sm:$0xff] %v6943_v57  ;;  %v6945_v46 = vpop.f32.mrb[11].mxu0 }
 0x29f   : > { %7836 = vst [vmem:[#allocation30_spill] sm:$0xff] %v6945_v46 }
 0x2d8   : > { %v6947_v56 = vpop.f32.mrb[12].mxu1 }
 0x2d9   : > { %7837 = vst [vmem:[#allocation31_spill] sm:$0xff] %v6947_v56  ;;  %v6949_v58 = vpop.f32.mrb[13].mxu1 }
 0x2da   : > { %7838 = vst [vmem:[#allocation32_spill] sm:$0xff] %v6949_v58  ;;  %v6951_v43 = vpop.f32.mrb[14].mxu1  ;;  %3617 = sbr.rel (%p5027_p4) target bundleno = 737 (0x2e1), region = 40 }
 0x2db   : > { %7839 = vst [vmem:[#allocation33_spill] sm:$0xff] %v6951_v43  ;;  %v6953_v20 = vpop.f32.mrb[15].mxu1 }
 0x2dc   : > { %7840 = vst [vmem:[#allocation34_spill] sm:$0xff] %v6953_v20  ;;  %v6955_v59 = vpop.f32.mrb[12].mxu0 }
 0x2dd   : > { %7841 = vst [vmem:[#allocation35_spill] sm:$0xff] %v6955_v59  ;;  %v6957_v44 = vpop.f32.mrb[13].mxu0 }
 0x2de   : > { %7842 = vst [vmem:[#allocation36_spill] sm:$0xff] %v6957_v44  ;;  %v6959_v13 = vpop.f32.mrb[14].mxu0 }
 0x2df   : > { %7843 = vst [vmem:[#allocation37_spill] sm:$0xff] %v6959_v13  ;;  %v6961_v60 = vpop.f32.mrb[15].mxu0 }
 0x2e0   : > { %7844 = vst [vmem:[#allocation38_spill] sm:$0xff] %v6961_v60 }
 0x2e1 PF: > { %vm3815_vm2 = vcmask 60416   ;;  %vm3693_vm3 = vcmask 57344   ;;  %v6970_v63 = vmul.f32 %v6903_v36, %v6903_v36  ;;  %v5614_v1 = vmov 0   ;;  %s5615_s22 = smov [#allocation9]   ;;  %p7885_p8 = scmp.ne.s32.totalorder %s7806_s24, 0 }
 0x2e2   : > { %3819 = vst.msk [vmem:[%s6965_s11 + $0xc] sm:$0xf] %vm3815_vm2, %v5614_v1  ;;  %3816 = vst.msk [vmem:[%s6965_s11] sm:$0xf] %vm3815_vm2, %v5614_v1  ;;  %vm3622_vm4 = vcmask 64512   ;;  %v7082_v2 = vmul.f32 %v6911_v40, %v6911_v40  ;;  %v7086_v3 = vmul.f32 %v6899_v62, %v6899_v62  ;;  %v7090_v4 = vmul.f32 %v6907_v39, %v6907_v39  ;;  %s4422_s30 = sshll.u32 %s5615_s22, 4  ;;  %s7538_s30 = int_to_ptr.vmem [resolvable:$true] %s4422_s30 }
 0x2e3   : > { %3817 = vst.msk [vmem:[%s6965_s11 + $0x4] sm:$0xf] %vm3815_vm2, %v5614_v1  ;;  %3820 = vst.msk [vmem:[%s6965_s11 + $0x10] sm:$0xf] %vm3815_vm2, %v5614_v1  ;;  %v3623_v6 = vsel %vm3622_vm4, %v6903_v36, 0.0  ;;  %v3624_v7 = vsel %vm3622_vm4, %v6911_v40, 0.0  ;;  %p5464_p0 = scmp.lt.s32.totalorder %s7538_s30, %s7538_s30 }
 0x2e4   : > { %3822 = vst.msk [vmem:[%s6965_s11 + $0x18] sm:$0xf] %vm3815_vm2, %v5614_v1  ;;  %3823 = vst.msk [vmem:[%s6965_s11 + $0x1c] sm:$0xf] %vm3815_vm2, %v5614_v1  ;;  %v3626_v8 = vsel %vm3622_vm4, %v6899_v62, 0.0  ;;  %v3628_v9 = vsel %vm3622_vm4, %v6907_v39, 0.0  ;;  %v3625_v10 = vadd.f32 %v3624_v7, %v3623_v6 }
 0x2e5   : > { %3825 = vst.msk [vmem:[%s6965_s11 + $0x24] sm:$0xf] %vm3815_vm2, %v5614_v1  ;;  %3826 = vst.msk [vmem:[%s6965_s11 + $0x28] sm:$0xf] %vm3815_vm2, %v5614_v1  ;;  %v3630_v12 = vsel %vm3622_vm4, %v6923_v49, 0.0  ;;  %v3632_v14 = vsel %vm3622_vm4, %v6929_v52, 0.0 }
 0x2e6   : > { %3828 = vst.msk [vmem:[%s6965_s11 + $0x30] sm:$0xf] %vm3815_vm2, %v5614_v1  ;;  %3829 = vst.msk [vmem:[%s6965_s11 + $0x34] sm:$0xf] %vm3815_vm2, %v5614_v1  ;;  %v3634_v15 = vsel %vm3622_vm4, %v6919_v47, 0.0  ;;  %v3636_v16 = vsel %vm3622_vm4, %v6927_v51, 0.0  ;;  %v3627_v5 = vadd.f32 %v3626_v8, %v3625_v10 }
 0x2e7   : > { %3831 = vst.msk [vmem:[%s6965_s11 + $0x3c] sm:$0xf] %vm3815_vm2, %v5614_v1  ;;  %3832 = vst.msk [vmem:[%s6965_s11 + $0x40] sm:$0xf] %vm3815_vm2, %v5614_v1  ;;  %v3638_v17 = vsel %vm3622_vm4, %v6939_v55, 0.0  ;;  %v3640_v18 = vsel %vm3622_vm4, %v6945_v46, 0.0 }
 0x2e8   : > { %3834 = vst.msk [vmem:[%s6965_s11 + $0x48] sm:$0xf] %vm3815_vm2, %v5614_v1  ;;  %3835 = vst.msk [vmem:[%s6965_s11 + $0x4c] sm:$0xf] %vm3815_vm2, %v5614_v1  ;;  %v7114_v19 = vsel %vm3622_vm4, %v6935_v37, 0.0  ;;  %v7118_v23 = vsel %vm3622_vm4, %v6943_v57, 0.0  ;;  %v3629_v29 = vadd.f32 %v3628_v9, %v3627_v5 }
 0x2e9   : > { %3837 = vst.msk [vmem:[%s6965_s11 + $0x54] sm:$0xf] %vm3815_vm2, %v5614_v1  ;;  %3838 = vst.msk [vmem:[%s6965_s11 + $0x58] sm:$0xf] %vm3815_vm2, %v5614_v1  ;;  %v7122_v24 = vsel %vm3622_vm4, %v6957_v44, 0.0  ;;  %v7126_v25 = vsel %vm3622_vm4, %v6961_v60, 0.0 }
 0x2ea   : > { %3840 = vst.msk [vmem:[%s6965_s11 + $0x60] sm:$0xf] %vm3815_vm2, %v5614_v1  ;;  %3841 = vst.msk [vmem:[%s6965_s11 + $0x64] sm:$0xf] %vm3815_vm2, %v5614_v1  ;;  %v7130_v26 = vsel %vm3622_vm4, %v6955_v59, 0.0  ;;  %v7134_v22 = vsel %vm3622_vm4, %v6959_v13, 0.0  ;;  %v3631_v6 = vadd.f32 %v3630_v12, %v3629_v29 }
 0x2eb   : > { %3843 = vst.msk [vmem:[%s6965_s11 + $0x6c] sm:$0xf] %vm3815_vm2, %v5614_v1  ;;  %3844 = vst.msk [vmem:[%s6965_s11 + $0x70] sm:$0xf] %vm3815_vm2, %v5614_v1  ;;  %v7138_v27 = vsel %vm3622_vm4, %v6905_v38, 0.0  ;;  %v7142_v28 = vsel %vm3622_vm4, %v6913_v41, 0.0 }
 0x2ec   : > { %3846 = vst.msk [vmem:[%s6965_s11 + $0x78] sm:$0xf] %vm3815_vm2, %v5614_v1  ;;  %3847 = vst.msk [vmem:[%s6965_s11 + $0x7c] sm:$0xf] %vm3815_vm2, %v5614_v1  ;;  %v7146_v30 = vsel %vm3622_vm4, %v6901_v35, 0.0  ;;  %v7150_v31 = vsel %vm3622_vm4, %v6909_v0, 0.0 }
 0x2ed   : > { %3849 = vst.msk [vmem:[%s6965_s11 + $0x84] sm:$0xf] %vm3815_vm2, %v5614_v1  ;;  %3850 = vst.msk [vmem:[%s6965_s11 + $0x88] sm:$0xf] %vm3815_vm2, %v5614_v1  ;;  %v7154_v32 = vsel %vm3622_vm4, %v6917_v45, 0.0  ;;  %v7158_v33 = vsel %vm3622_vm4, %v6925_v50, 0.0 }
 0x2ee   : > { %3852 = vst.msk [vmem:[%s6965_s11 + $0x90] sm:$0xf] %vm3815_vm2, %v5614_v1  ;;  %3853 = vst.msk [vmem:[%s6965_s11 + $0x94] sm:$0xf] %vm3815_vm2, %v5614_v1  ;;  %v7162_v34 = vsel %vm3622_vm4, %v6915_v42, 0.0  ;;  %v7166_v61 = vsel %vm3622_vm4, %v6921_v48, 0.0 }
 0x2ef   : > { %3855 = vst.msk [vmem:[%s6965_s11 + $0x9c] sm:$0xf] %vm3815_vm2, %v5614_v1  ;;  %3856 = vst.msk [vmem:[%s6965_s11 + $0xa0] sm:$0xf] %vm3815_vm2, %v5614_v1  ;;  %v7174_v7 = vsel %vm3622_vm4, %v6941_v11, 0.0  ;;  %v7178_v8 = vsel %vm3622_vm4, %v6931_v53, 0.0 }
 0x2f0   : > { %3858 = vst.msk [vmem:[%s6965_s11 + $0xa8] sm:$0xf] %vm3815_vm2, %v5614_v1  ;;  %3859 = vst.msk [vmem:[%s6965_s11 + $0xac] sm:$0xf] %vm3815_vm2, %v5614_v1  ;;  %v7182_v9 = vsel %vm3622_vm4, %v6937_v54, 0.0  ;;  %v7186_v10 = vsel %vm3622_vm4, %v6949_v58, 0.0 }
 0x2f1   : > { %3861 = vst.msk [vmem:[%s6965_s11 + $0xb4] sm:$0xf] %vm3815_vm2, %v5614_v1  ;;  %3862 = vst.msk [vmem:[%s6965_s11 + $0xb8] sm:$0xf] %vm3815_vm2, %v5614_v1  ;;  %v7190_v5 = vsel %vm3622_vm4, %v6953_v20, 0.0  ;;  %v7194_v12 = vsel %vm3622_vm4, %v6947_v56, 0.0 }
 0x2f2   : > { %3864 = vst.msk [vmem:[%s6965_s11 + $0xc0] sm:$0xf] %vm3815_vm2, %v5614_v1  ;;  %3865 = vst.msk [vmem:[%s6965_s11 + $0xc4] sm:$0xf] %vm3815_vm2, %v5614_v1  ;;  %v7198_v29 = vsel %vm3622_vm4, %v6951_v43, 0.0  ;;  %s5457_s28 = scalar_lea.vmem %s7538_s30, 16 }
 0x2f3   : > { %3867 = vst.msk [vmem:[%s6965_s11 + $0xcc] sm:$0xf] %vm3815_vm2, %v5614_v1  ;;  %3868 = vst.msk [vmem:[%s6965_s11 + $0xd0] sm:$0xf] %vm3815_vm2, %v5614_v1  ;;  %vm4275_vm5 = vsmask.f32 7938  ;;  %p5458_p6 = scmp.ne.s32.totalorder %s7538_s30, %s5457_s28 }
 0x2f4   : > { %3821 = vst.msk [vmem:[%s6965_s11 + $0x14] sm:$0x1] %vm3693_vm3, %v5614_v1  ;;  %3818 = vst.msk [vmem:[%s6965_s11 + $0x8] sm:$0x1] %vm3693_vm3, %v5614_v1  ;;  %vm3950_vm6 = vsmask.f32 256 }
 0x2f5   : > { %3824 = vst.msk [vmem:[%s6965_s11 + $0x20] sm:$0x1] %vm3693_vm3, %v5614_v1  ;;  %3827 = vst.msk [vmem:[%s6965_s11 + $0x2c] sm:$0x1] %vm3693_vm3, %v5614_v1  ;;  %vm3951_vm7 = vsmask.f32 4368  ;;  %p5459_p12 = pnand %p5458_p6, %p7885_p8 }
 0x2f6   : > { %3830 = vst.msk [vmem:[%s6965_s11 + $0x38] sm:$0x1] %vm3693_vm3, %v5614_v1  ;;  %3833 = vst.msk [vmem:[%s6965_s11 + $0x44] sm:$0x1] %vm3693_vm3, %v5614_v1  ;;  %s5463_s8 = scalar_lea.vmem %s7538_s30, 32 }
 0x2f7   : > { %3836 = vst.msk [vmem:[%s6965_s11 + $0x50] sm:$0x1] %vm3693_vm3, %v5614_v1  ;;  %3839 = vst.msk [vmem:[%s6965_s11 + $0x5c] sm:$0x1] %vm3693_vm3, %v5614_v1  ;;  %p5460_p13 = pneg %p5459_p12  ;;  %p5465_p5 = scmp.lt.s32.totalorder %s5463_s8, %s5457_s28 }
 0x2f8   : > { %3842 = vst.msk [vmem:[%s6965_s11 + $0x68] sm:$0x1] %vm3693_vm3, %v5614_v1  ;;  %3845 = vst.msk [vmem:[%s6965_s11 + $0x74] sm:$0x1] %vm3693_vm3, %v5614_v1 }
 0x2f9   : > { %3848 = vst.msk [vmem:[%s6965_s11 + $0x80] sm:$0x1] %vm3693_vm3, %v5614_v1  ;;  %3851 = vst.msk [vmem:[%s6965_s11 + $0x8c] sm:$0x1] %vm3693_vm3, %v5614_v1  ;;  %p5466_p9 = por %p5465_p5, %p5464_p0 }
 0x2fa   : > { %3854 = vst.msk [vmem:[%s6965_s11 + $0x98] sm:$0x1] %vm3693_vm3, %v5614_v1  ;;  %3857 = vst.msk [vmem:[%s6965_s11 + $0xa4] sm:$0x1] %vm3693_vm3, %v5614_v1 }
 0x2fb   : > { %3860 = vst.msk [vmem:[%s6965_s11 + $0xb0] sm:$0x1] %vm3693_vm3, %v5614_v1  ;;  %3863 = vst.msk [vmem:[%s6965_s11 + $0xbc] sm:$0x1] %vm3693_vm3, %v5614_v1  ;;  %p5467_p1 = pnand %p5466_p9, %p5460_p13 }
 0x2fc   : > { %3866 = vst.msk [vmem:[%s6965_s11 + $0xc8] sm:$0x1] %vm3693_vm3, %v5614_v1  ;;  %3869 = vst.msk [vmem:[%s6965_s11 + $0xd4] sm:$0x1] %vm3693_vm3, %v5614_v1  ;;  %v7170_v1 = vsel %vm3622_vm4, %v6933_v21, 0.0 }
 0x2fd   : > { %7845 = vst [vmem:[#allocation39_spill] sm:$0xff] %v7158_v33  ;;  %7846 = vst [vmem:[#allocation40_spill] sm:$0xff] %v7162_v34  ;;  %v3709_v34 = vmul.f32 %v6961_v60, %v6961_v60  ;;  %v3710_v33 = vmul.f32 %v6955_v59, %v6955_v59  ;;  %v3716_v60 = vmul.f32 %v6917_v45, %v6917_v45 }
 0x2fe   : > { %7847 = vst [vmem:[#allocation41_spill] sm:$0xff] %v7166_v61  ;;  %7848 = vst [vmem:[#allocation42_spill] sm:$0xff] %v7170_v1  ;;  %v3705_v1 = vmul.f32 %v6945_v46, %v6945_v46  ;;  %v3708_v61 = vmul.f32 %v6957_v44, %v6957_v44  ;;  %v3712_v46 = vmul.f32 %v6905_v38, %v6905_v38 }
 0x2ff   : > { %7849 = vst [vmem:[#allocation43_spill] sm:$0xff] %v7174_v7  ;;  %7850 = vst [vmem:[#allocation44_spill] sm:$0xff] %v7178_v8  ;;  %v3633_v8 = vadd.f32 %v3632_v14, %v3631_v6  ;;  %v3701_v7 = vmul.f32 %v6929_v52, %v6929_v52  ;;  %v3706_v14 = vmul.f32 %v6935_v37, %v6935_v37 }
 0x300   : > { %7851 = vst [vmem:[#allocation45_spill] sm:$0xff] %v7182_v9  ;;  %7852 = vst [vmem:[#allocation46_spill] sm:$0xff] %v7186_v10  ;;  %v3700_v9 = vmul.f32 %v6923_v49, %v6923_v49  ;;  %v3702_v10 = vmul.f32 %v6919_v47, %v6919_v47  ;;  %v3715_v44 = vmul.f32 %v6909_v0, %v6909_v0 }
 0x301   : > { %7853 = vst [vmem:[#allocation47_spill] sm:$0xff] %v7190_v5  ;;  %7854 = vst [vmem:[#allocation48_spill] sm:$0xff] %v7194_v12  ;;  %v3703_v5 = vmul.f32 %v6927_v51, %v6927_v51  ;;  %v3704_v12 = vmul.f32 %v6939_v55, %v6939_v55  ;;  %v3635_v6 = vadd.f32 %v3634_v15, %v3633_v8 }
 0x302   : > { %7855 = vst [vmem:[#allocation49_spill] sm:$0xff] %v7198_v29  ;;  %v3707_v29 = vmul.f32 %v6943_v57, %v6943_v57  ;;  %v3711_v55 = vmul.f32 %v6959_v13, %v6959_v13  ;;  %v3713_v15 = vmul.f32 %v6913_v41, %v6913_v41  ;;  %v3714_v57 = vmul.f32 %v6901_v35, %v6901_v35  ;;  %vm7350_vm8 = vmand %vm3815_vm2, %vm4275_vm5 }
 0x303   : > { %v3637_v8 = vadd.f32 %v3636_v16, %v3635_v6  ;;  %v3717_v59 = vmul.f32 %v6925_v50, %v6925_v50  ;;  %v3718_v13 = vmul.f32 %v6915_v42, %v6915_v42  ;;  %v3719_v38 = vmul.f32 %v6921_v48, %v6921_v48  ;;  %vm7360_vm9 = vmor %vm3950_vm6, %vm3951_vm7 }
 0x304   : > { %v3720_v16 = vmul.f32 %v6933_v21, %v6933_v21  ;;  %v3721_v35 = vmul.f32 %v6941_v11, %v6941_v11  ;;  %v3722_v0 = vmul.f32 %v6931_v53, %v6931_v53  ;;  %v3723_v45 = vmul.f32 %v6937_v54, %v6937_v54  ;;  %vm7367_vm10 = vmand %vm3693_vm3, %vm3950_vm6 }
 0x305   : > { %v3639_v6 = vadd.f32 %v3638_v17, %v3637_v8  ;;  %v3724_v50 = vmul.f32 %v6949_v58, %v6949_v58  ;;  %v3725_v42 = vmul.f32 %v6953_v20, %v6953_v20  ;;  %v3726_v48 = vmul.f32 %v6947_v56, %v6947_v56 }
 0x306   : > { %v3727_v17 = vmul.f32 %v6951_v43, %v6951_v43  ;;  %v3728_v11 = vsel %vm3622_vm4, %v6970_v63, 0.0  ;;  %v3729_v53 = vsel %vm3622_vm4, %v7082_v2, 0.0  ;;  %v3731_v54 = vsel %vm3622_vm4, %v7086_v3, 0.0 }
 0x307   : > { %v3641_v8 = vadd.f32 %v3640_v18, %v3639_v6  ;;  %v3730_v58 = vadd.f32 %v3729_v53, %v3728_v11  ;;  %v3733_v20 = vsel %vm3622_vm4, %v7090_v4, 0.0  ;;  %v3735_v21 = vsel %vm3622_vm4, %v3700_v9, 0.0 }
 0x308   : > { %v3737_v56 = vsel %vm3622_vm4, %v3701_v7, 0.0  ;;  %v3739_v18 = vsel %vm3622_vm4, %v3702_v10, 0.0  ;;  %v3741_v63 = vsel %vm3622_vm4, %v3703_v5, 0.0  ;;  %v3743_v6 = vsel %vm3622_vm4, %v3704_v12, 0.0 }
 0x309   : > { %v3643_v43 = vadd.f32 %v7114_v19, %v3641_v8  ;;  %v3732_v2 = vadd.f32 %v3731_v54, %v3730_v58  ;;  %v3745_v41 = vsel %vm3622_vm4, %v3705_v1, 0.0  ;;  %v7272_v53 = vsel %vm3622_vm4, %v3706_v14, 0.0 }
 0x30a   : > { %v7275_v11 = vsel %vm3622_vm4, %v3707_v29, 0.0  ;;  %v7279_v4 = vsel %vm3622_vm4, %v3708_v61, 0.0  ;;  %v7282_v19 = vsel %vm3622_vm4, %v3709_v34, 0.0  ;;  %v7285_v7 = vsel %vm3622_vm4, %v3710_v33, 0.0 }
 0x30b   : > { %v3645_v3 = vadd.f32 %v7118_v23, %v3643_v43  ;;  %v3734_v54 = vadd.f32 %v3733_v20, %v3732_v2  ;;  %v7288_v58 = vsel %vm3622_vm4, %v3711_v55, 0.0  ;;  %v7291_v1 = vsel %vm3622_vm4, %v3712_v46, 0.0 }
 0x30c   : > { %v7294_v9 = vsel %vm3622_vm4, %v3713_v15, 0.0  ;;  %v7298_v23 = vsel %vm3622_vm4, %v3714_v57, 0.0  ;;  %v7301_v34 = vsel %vm3622_vm4, %v3715_v44, 0.0  ;;  %v7304_v33 = vsel %vm3622_vm4, %v3716_v60, 0.0 }
 0x30d   : > { %v3647_v43 = vadd.f32 %v7122_v24, %v3645_v3  ;;  %v3736_v20 = vadd.f32 %v3735_v21, %v3734_v54  ;;  %v7307_v55 = vsel %vm3622_vm4, %v3717_v59, 0.0  ;;  %v7310_v46 = vsel %vm3622_vm4, %v3718_v13, 0.0 }
 0x30e   : > { %v7313_v61 = vsel %vm3622_vm4, %v3719_v38, 0.0  ;;  %v7317_v57 = vsel %vm3622_vm4, %v3720_v16, 0.0  ;;  %v7320_v44 = vsel %vm3622_vm4, %v3721_v35, 0.0  ;;  %v7323_v60 = vsel %vm3622_vm4, %v3722_v0, 0.0 }
 0x30f   : > { %v3649_v24 = vadd.f32 %v7126_v25, %v3647_v43  ;;  %v3738_v21 = vadd.f32 %v3737_v56, %v3736_v20  ;;  %v7326_v59 = vsel %vm3622_vm4, %v3723_v45, 0.0  ;;  %v7329_v13 = vsel %vm3622_vm4, %v3724_v50, 0.0 }
 0x310   : > { %v7332_v38 = vsel %vm3622_vm4, %v3725_v42, 0.0  ;;  %v7336_v10 = vsel %vm3622_vm4, %v3726_v48, 0.0  ;;  %v7339_v35 = vsel %vm3622_vm4, %v3727_v17, 0.0  ;;  %v5147_v0 = vpack.c.bf16 %v6903_v36, %v6903_v36  ;;  %v5060_v17 = vld [vmem:[%s6965_s11 + $0xc] sm:$0xf] }
 0x311   : > { %v3651_v25 = vadd.f32 %v7130_v26, %v3649_v24  ;;  %v3740_v56 = vadd.f32 %v3739_v18, %v3738_v21  ;;  %v5148_v45 = vpack.c.bf16 %v6911_v40, %v6911_v40  ;;  %v5149_v29 = vpack.c.bf16 %v6899_v62, %v6899_v62 }
 0x312   : > { %v3954_v50 = vshrl.u32 %v5147_v0, 16  ;;  %v3957_v26 = vshll.u32 %v5147_v0, 16  ;;  %v5151_v15 = vpack.c.bf16 %v6923_v49, %v6923_v49  ;;  %v5063_v49 = vld [vmem:[%s6965_s11 + $0x14] sm:$0x1] }
 0x313   : > { %v3653_v42 = vadd.f32 %v7134_v22, %v3651_v25  ;;  %v3742_v48 = vadd.f32 %v3741_v63, %v3740_v56  ;;  %v3962_v5 = vshrl.u32 %v5148_v45, 16  ;;  %v3965_v12 = vshll.u32 %v5148_v45, 16  ;;  %v5065_v25 = vld [vmem:[%s6965_s11 + $0x18] sm:$0xf] }
 0x314   : > { %v3956_v14 = vrot.slane %v3954_v50, 7  ;;  %v5150_v22 = vpack.c.bf16 %v6907_v39, %v6907_v39  ;;  %v3971_v8 = vshrl.u32 %v5149_v29, 16  ;;  %v3974_v18 = vshll.u32 %v5149_v29, 16 }
 0x315   : > { %v3655_v36 = vadd.f32 %v7138_v27, %v3653_v42  ;;  %v3744_v16 = vadd.f32 %v3743_v6, %v3742_v48  ;;  %v3964_v27 = vrot.slane %v3962_v5, 7 }
 0x316   : > { %v3959_v2 = vor.u32 %v3957_v26, %v3956_v14  ;;  %v3960_v3 = vrot.slane %v3956_v14, 4  ;;  %v3979_v6 = vshrl.u32 %v5150_v22, 16  ;;  %v3973_v24 = vrot.slane %v3971_v8, 7  ;;  %v5068_v26 = vld [vmem:[%s6965_s11 + $0x20] sm:$0x1]  ;;  %v7862_v8 = vld [vmem:[#allocation39_spill] sm:$0xff] }
 0x317   : > { %v3657_v63 = vadd.f32 %v7142_v28, %v3655_v36  ;;  %v3746_v54 = vadd.f32 %v3745_v41, %v3744_v16  ;;  %v3967_v43 = vor.u32 %v3965_v12, %v3964_v27  ;;  %v3969_v20 = vrot.slane %v3964_v27, 4 }
 0x318   : > { %v4278_v21 = vsel %vm7350_vm8, %v3959_v2, %v5060_v17  ;;  %v3981_v0 = vrot.slane %v3979_v6, 7  ;;  %v3982_v56 = vshll.u32 %v5150_v22, 16  ;;  %v3976_v50 = vor.u32 %v3974_v18, %v3973_v24 }
 0x319   : > { %v3659_v28 = vadd.f32 %v7146_v30, %v3657_v63  ;;  %v3748_v45 = vadd.f32 %v7272_v53, %v3746_v54  ;;  %5061 = vst [vmem:[%s6965_s11 + $0xc] sm:$0xf] %v4278_v21  ;;  %v3968_v41 = vsel %vm7360_vm9, %v3960_v3, %v3967_v43  ;;  %v4284_v42 = vsel %vm7367_vm10, %v3969_v20, %v5063_v49  ;;  %v5070_v63 = vld [vmem:[%s6965_s11 + $0x24] sm:$0xf]  ;;  %v7863_v49 = vld [vmem:[#allocation27_spill] sm:$0xff] }
 0x31a   : > { %5062 = vst.msk [vmem:[%s6965_s11 + $0x10] sm:$0xf] %vm3815_vm2, %v3968_v41  ;;  %5064 = vst [vmem:[%s6965_s11 + $0x14] sm:$0x1] %v4284_v42  ;;  %v3977_v48 = vrot.slane %v3973_v24, 4  ;;  %v3984_v5 = vor.u32 %v3982_v56, %v3981_v0  ;;  %v3986_v53 = vrot.slane %v3981_v0, 4  ;;  %v4287_v29 = vsel %vm7350_vm8, %v3976_v50, %v5065_v25 }
 0x31b   : > { %v3661_v30 = vadd.f32 %v7150_v31, %v3659_v28  ;;  %v3750_v12 = vadd.f32 %v7275_v11, %v3748_v45  ;;  %v3988_v36 = vshrl.u32 %v5151_v15, 16  ;;  %v3991_v14 = vshll.u32 %v5151_v15, 16  ;;  %5066 = vst [vmem:[%s6965_s11 + $0x18] sm:$0xf] %v4287_v29  ;;  %v5073_v0 = vld [vmem:[%s6965_s11 + $0x2c] sm:$0x1] }
 0x31c   : > { %v3985_v31 = vsel %vm7360_vm9, %v3977_v48, %v3984_v5  ;;  %v4291_v16 = vsel %vm7367_vm10, %v3986_v53, %v5068_v26  ;;  %v5152_v17 = vpack.c.bf16 %v6929_v52, %v6929_v52  ;;  %v5153_v15 = vpack.c.bf16 %v6919_v47, %v6919_v47  ;;  %v7864_v47 = vld [vmem:[#allocation40_spill] sm:$0xff]  ;;  %v7865_v41 = vld [vmem:[#allocation41_spill] sm:$0xff]  ;;  %v5075_v26 = vld [vmem:[%s6965_s11 + $0x30] sm:$0xf] }
 0x31d   : > { %v3663_v22 = vadd.f32 %v7154_v32, %v3661_v30  ;;  %v3752_v11 = vadd.f32 %v7279_v4, %v3750_v12  ;;  %5067 = vst.msk [vmem:[%s6965_s11 + $0x1c] sm:$0xf] %vm3815_vm2, %v3985_v31  ;;  %5069 = vst [vmem:[%s6965_s11 + $0x20] sm:$0x1] %v4291_v16  ;;  %v3990_v27 = vrot.slane %v3988_v36, 7  ;;  %v5154_v32 = vpack.c.bf16 %v6927_v51, %v6927_v51  ;;  %v7866_v12 = vld [vmem:[#allocation42_spill] sm:$0xff] }
 0x31e   : > { %v3996_v2 = vshrl.u32 %v5152_v17, 16  ;;  %v3999_v3 = vshll.u32 %v5152_v17, 16  ;;  %v5155_v52 = vpack.c.bf16 %v7863_v49, %v7863_v49  ;;  %v4005_v43 = vshrl.u32 %v5153_v15, 16  ;;  %v5078_v31 = vld [vmem:[%s6965_s11 + $0x38] sm:$0x1] }
 0x31f   : > { %v3665_v18 = vadd.f32 %v7862_v8, %v3663_v22  ;;  %v3754_v4 = vadd.f32 %v7282_v19, %v3752_v11  ;;  %v3993_v6 = vor.u32 %v3991_v14, %v3990_v27  ;;  %v3994_v54 = vrot.slane %v3990_v27, 4  ;;  %v7867_v27 = vld [vmem:[#allocation43_spill] sm:$0xff] }
 0x320   : > { %v3998_v24 = vrot.slane %v3996_v2, 7  ;;  %v4008_v51 = vshll.u32 %v5153_v15, 16  ;;  %v4013_v28 = vshrl.u32 %v5154_v32, 16  ;;  %v4007_v56 = vrot.slane %v4005_v43, 7 }
 0x321   : > { %v3667_v20 = vadd.f32 %v7864_v47, %v3665_v18  ;;  %v3756_v21 = vadd.f32 %v7285_v7, %v3754_v4  ;;  %v4294_v25 = vsel %vm7350_vm8, %v3993_v6, %v5070_v63  ;;  %v4016_v45 = vshll.u32 %v5154_v32, 16  ;;  %v7868_v18 = vld [vmem:[#allocation30_spill] sm:$0xff]  ;;  %v7869_v6 = vld [vmem:[#allocation44_spill] sm:$0xff] }
 0x322   : > { %5071 = vst [vmem:[%s6965_s11 + $0x24] sm:$0xf] %v4294_v25  ;;  %v4001_v42 = vor.u32 %v3999_v3, %v3998_v24  ;;  %v4003_v50 = vrot.slane %v3998_v24, 4  ;;  %v4015_v30 = vrot.slane %v4013_v28, 7  ;;  %v4010_v7 = vor.u32 %v4008_v51, %v4007_v56  ;;  %v5080_v3 = vld [vmem:[%s6965_s11 + $0x3c] sm:$0xf] }
 0x323   : > { %v3669_v19 = vadd.f32 %v7865_v41, %v3667_v20  ;;  %v3758_v48 = vadd.f32 %v7288_v58, %v3756_v21  ;;  %v4011_v5 = vrot.slane %v4007_v56, 4  ;;  %v4022_v53 = vshrl.u32 %v5155_v52, 16  ;;  %v7870_v51 = vld [vmem:[#allocation29_spill] sm:$0xff]  ;;  %v7872_v56 = vld [vmem:[#allocation36_spill] sm:$0xff] }
 0x324   : > { %v4002_v36 = vsel %vm7360_vm9, %v3994_v54, %v4001_v42  ;;  %v4298_v14 = vsel %vm7367_vm10, %v4003_v50, %v5073_v0  ;;  %v4018_v22 = vor.u32 %v4016_v45, %v4015_v30  ;;  %v4301_v58 = vsel %vm7350_vm8, %v4010_v7, %v5075_v26  ;;  %v7871_v21 = vld [vmem:[#allocation45_spill] sm:$0xff]  ;;  %v7873_v26 = vld [vmem:[#allocation46_spill] sm:$0xff] }
 0x325   : > { %v3671_v29 = vadd.f32 %v7866_v12, %v3669_v19  ;;  %v3760_v16 = vadd.f32 %v7291_v1, %v3758_v48  ;;  %5072 = vst.msk [vmem:[%s6965_s11 + $0x28] sm:$0xf] %vm3815_vm2, %v4002_v36  ;;  %5074 = vst [vmem:[%s6965_s11 + $0x2c] sm:$0x1] %v4298_v14  ;;  %v4020_v17 = vrot.slane %v4015_v30, 4  ;;  %v4024_v11 = vrot.slane %v4022_v53, 7 }
 0x326   : > { %5076 = vst [vmem:[%s6965_s11 + $0x30] sm:$0xf] %v4301_v58  ;;  %v4019_v32 = vsel %vm7360_vm9, %v4011_v5, %v4018_v22  ;;  %v4025_v8 = vshll.u32 %v5155_v52, 16  ;;  %v5156_v63 = vpack.c.bf16 %v7868_v18, %v7868_v18  ;;  %v5157_v4 = vpack.c.bf16 %v6935_v37, %v6935_v37  ;;  %v5083_v19 = vld [vmem:[%s6965_s11 + $0x44] sm:$0x1]  ;;  %v7874_v14 = vld [vmem:[#allocation47_spill] sm:$0xff] }
 0x327   : > { %v3673_v15 = vadd.f32 %v7867_v27, %v3671_v29  ;;  %v3762_v1 = vadd.f32 %v7294_v9, %v3760_v16  ;;  %5077 = vst.msk [vmem:[%s6965_s11 + $0x34] sm:$0xf] %vm3815_vm2, %v4019_v32  ;;  %v4305_v2 = vsel %vm7367_vm10, %v4020_v17, %v5078_v31  ;;  %v4028_v49 = vrot.slane %v4024_v11, 4  ;;  %v5085_v5 = vld [vmem:[%s6965_s11 + $0x48] sm:$0xf]  ;;  %v7875_v32 = vld [vmem:[#allocation48_spill] sm:$0xff] }
 0x328   : > { %5079 = vst [vmem:[%s6965_s11 + $0x38] sm:$0x1] %v4305_v2  ;;  %v4027_v52 = vor.u32 %v4025_v8, %v4024_v11  ;;  %v4030_v43 = vshrl.u32 %v5156_v63, 16  ;;  %v4033_v47 = vshll.u32 %v5156_v63, 16  ;;  %v4039_v20 = vshrl.u32 %v5157_v4, 16  ;;  %v7876_v63 = vld [vmem:[#allocation38_spill] sm:$0xff] }
 0x329   : > { %v3675_v54 = vadd.f32 %v7869_v6, %v3673_v15  ;;  %v3764_v9 = vadd.f32 %v7298_v23, %v3762_v1  ;;  %v4042_v24 = vshll.u32 %v5157_v4, 16  ;;  %v5158_v28 = vpack.c.bf16 %v7870_v51, %v7870_v51  ;;  %v5088_v58 = vld [vmem:[%s6965_s11 + $0x50] sm:$0x1]  ;;  %v5090_v4 = vld [vmem:[%s6965_s11 + $0x54] sm:$0xf] }
 0x32a   : > { %v4308_v37 = vsel %vm7350_vm8, %v4027_v52, %v5080_v3  ;;  %v4032_v0 = vrot.slane %v4030_v43, 7  ;;  %v5159_v45 = vpack.c.bf16 %v7872_v56, %v7872_v56  ;;  %v4041_v23 = vrot.slane %v4039_v20, 7  ;;  %v7877_v6 = vld [vmem:[#allocation35_spill] sm:$0xff]  ;;  %v7878_v52 = vld [vmem:[#allocation49_spill] sm:$0xff] }
 0x32b   : > { %v3677_v25 = vadd.f32 %v7871_v21, %v3675_v54  ;;  %v3766_v41 = vadd.f32 %v7301_v34, %v3764_v9  ;;  %5081 = vst [vmem:[%s6965_s11 + $0x3c] sm:$0xf] %v4308_v37  ;;  %v4047_v42 = vshrl.u32 %v5158_v28, 16  ;;  %v4050_v50 = vshll.u32 %v5158_v28, 16  ;;  %v7879_v28 = vld [vmem:[#allocation37_spill] sm:$0xff] }
 0x32c   : > { %v4035_v48 = vor.u32 %v4033_v47, %v4032_v0  ;;  %v4037_v7 = vrot.slane %v4032_v0, 4  ;;  %v4056_v53 = vshrl.u32 %v5159_v45, 16  ;;  %v4044_v29 = vor.u32 %v4042_v24, %v4041_v23  ;;  %v7880_v56 = vld [vmem:[#allocation17_spill] sm:$0xff] }
 0x32d   : > { %v3679_v30 = vadd.f32 %v7873_v26, %v3677_v25  ;;  %v3768_v12 = vadd.f32 %v7304_v33, %v3766_v41  ;;  %v4045_v36 = vrot.slane %v4041_v23, 4  ;;  %v4049_v34 = vrot.slane %v4047_v42, 7 }
 0x32e   : > { %v4036_v31 = vsel %vm7360_vm9, %v4028_v49, %v4035_v48  ;;  %v4312_v16 = vsel %vm7367_vm10, %v4037_v7, %v5083_v19  ;;  %v4058_v17 = vrot.slane %v4056_v53, 7  ;;  %v4315_v33 = vsel %vm7350_vm8, %v4044_v29, %v5085_v5  ;;  %v5093_v19 = vld [vmem:[%s6965_s11 + $0x5c] sm:$0x1]  ;;  %v5095_v48 = vld [vmem:[%s6965_s11 + $0x60] sm:$0xf] }
 0x32f   : > { %v3681_v22 = vadd.f32 %v7874_v14, %v3679_v30  ;;  %v3770_v11 = vadd.f32 %v7307_v55, %v3768_v12  ;;  %5082 = vst.msk [vmem:[%s6965_s11 + $0x40] sm:$0xf] %vm3815_vm2, %v4036_v31  ;;  %5084 = vst [vmem:[%s6965_s11 + $0x44] sm:$0x1] %v4312_v16  ;;  %v4052_v27 = vor.u32 %v4050_v50, %v4049_v34  ;;  %v4054_v15 = vrot.slane %v4049_v34, 4 }
 0x330   : > { %5086 = vst [vmem:[%s6965_s11 + $0x48] sm:$0xf] %v4315_v33  ;;  %v4059_v18 = vshll.u32 %v5159_v45, 16  ;;  %v5160_v1 = vpack.c.bf16 %v7876_v63, %v7876_v63  ;;  %v4062_v2 = vrot.slane %v4058_v17, 4  ;;  %v5161_v54 = vpack.c.bf16 %v7877_v6, %v7877_v6  ;;  %v5098_v14 = vld [vmem:[%s6965_s11 + $0x68] sm:$0x1] }
 0x331   : > { %v3683_v8 = vadd.f32 %v7875_v32, %v3681_v22  ;;  %v3772_v55 = vadd.f32 %v7310_v46, %v3770_v11  ;;  %v4053_v3 = vsel %vm7360_vm9, %v4045_v36, %v4052_v27  ;;  %v4319_v49 = vsel %vm7367_vm10, %v4054_v15, %v5088_v58  ;;  %v7881_v33 = vld [vmem:[#allocation19_spill] sm:$0xff]  ;;  %v7882_v63 = vld [vmem:[#allocation16_spill] sm:$0xff] }
 0x332   : > { %5087 = vst.msk [vmem:[%s6965_s11 + $0x4c] sm:$0xf] %vm3815_vm2, %v4053_v3  ;;  %5089 = vst [vmem:[%s6965_s11 + $0x50] sm:$0x1] %v4319_v49  ;;  %v4061_v47 = vor.u32 %v4059_v18, %v4058_v17  ;;  %v4064_v9 = vshrl.u32 %v5160_v1, 16  ;;  %v4067_v46 = vshll.u32 %v5160_v1, 16  ;;  %v5162_v21 = vpack.c.bf16 %v7879_v28, %v7879_v28 }
 0x333   : > { %v3685_v43 = vadd.f32 %v7878_v52, %v3683_v8  ;;  %v3774_v20 = vadd.f32 %v7313_v61, %v3772_v55  ;;  %v4073_v24 = vshrl.u32 %v5161_v54, 16  ;;  %v4076_v51 = vshll.u32 %v5161_v54, 16  ;;  %v5100_v18 = vld [vmem:[%s6965_s11 + $0x6c] sm:$0xf] }
 0x334   : > { %v4322_v37 = vsel %vm7350_vm8, %v4061_v47, %v5090_v4  ;;  %v4066_v0 = vrot.slane %v4064_v9, 7  ;;  %v5163_v45 = vpack.c.bf16 %v7880_v56, %v7880_v56  ;;  %v4081_v23 = vshrl.u32 %v5162_v21, 16  ;;  %v7883_v52 = vld [vmem:[#allocation18_spill] sm:$0xff] }
 0x335   : > { %v3686_v25 = vrot.slane %v3685_v43, 4  ;;  %v3776_v41 = vadd.f32 %v7317_v57, %v3774_v20  ;;  %5091 = vst [vmem:[%s6965_s11 + $0x54] sm:$0xf] %v4322_v37  ;;  %v4075_v61 = vrot.slane %v4073_v24, 7  ;;  %v4084_v42 = vshll.u32 %v5162_v21, 16  ;;  %v7884_v20 = vld [vmem:[#allocation21_spill] sm:$0xff] }
 0x336   : > { %v4069_v26 = vor.u32 %v4067_v46, %v4066_v0  ;;  %v4071_v30 = vrot.slane %v4066_v0, 4  ;;  %v4090_v7 = vshrl.u32 %v5163_v45, 16  ;;  %v4083_v29 = vrot.slane %v4081_v23, 7 }
 0x337   : > { %v3687_v50 = vadd.f32 %v3686_v25, %v3685_v43  ;;  %v3778_v5 = vadd.f32 %v7320_v44, %v3776_v41  ;;  %v4078_v53 = vor.u32 %v4076_v51, %v4075_v61  ;;  %v4079_v12 = vrot.slane %v4075_v61, 4 }
 0x338   : > { %v4070_v36 = vsel %vm7360_vm9, %v4062_v2, %v4069_v26  ;;  %v4326_v34 = vsel %vm7367_vm10, %v4071_v30, %v5093_v19  ;;  %v4092_v22 = vrot.slane %v4090_v7, 7  ;;  %v4086_v16 = vor.u32 %v4084_v42, %v4083_v29  ;;  %v5108_v26 = vld [vmem:[%s6965_s11 + $0x80] sm:$0x1] }
 0x339   : > { %v3688_v57 = vrot.slane %v3687_v50, 2  ;;  %v3780_v31 = vadd.f32 %v7323_v60, %v3778_v5  ;;  %5092 = vst.msk [vmem:[%s6965_s11 + $0x58] sm:$0xf] %vm3815_vm2, %v4070_v36  ;;  %5094 = vst [vmem:[%s6965_s11 + $0x5c] sm:$0x1] %v4326_v34  ;;  %v4329_v44 = vsel %vm7350_vm8, %v4078_v53, %v5095_v48  ;;  %v4088_v58 = vrot.slane %v4083_v29, 4 }
 0x33a   : > { %5096 = vst [vmem:[%s6965_s11 + $0x60] sm:$0xf] %v4329_v44  ;;  %v4093_v11 = vshll.u32 %v5163_v45, 16  ;;  %v5164_v27 = vpack.c.bf16 %v7881_v33, %v7881_v33  ;;  %v4096_v15 = vrot.slane %v4092_v22, 4  ;;  %v4087_v60 = vsel %vm7360_vm9, %v4079_v12, %v4086_v16  ;;  %v5105_v45 = vld [vmem:[%s6965_s11 + $0x78] sm:$0xf] }
 0x33b   : > { %v3689_v17 = vadd.f32 %v3688_v57, %v3687_v50  ;;  %v3782_v32 = vadd.f32 %v7326_v59, %v3780_v31  ;;  %v4333_v8 = vsel %vm7367_vm10, %v4088_v58, %v5098_v14  ;;  %v5165_v1 = vpack.c.bf16 %v7882_v63, %v7882_v63  ;;  %5097 = vst.msk [vmem:[%s6965_s11 + $0x64] sm:$0xf] %vm3815_vm2, %v4087_v60  ;;  %v3621_v59 = vld [vmem:[#allocation9] sm:$0x1]  ;;  %v5110_v12 = vld [vmem:[%s6965_s11 + $0x84] sm:$0xf] }
 0x33c   : > { %5099 = vst [vmem:[%s6965_s11 + $0x68] sm:$0x1] %v4333_v8  ;;  %v4095_v55 = vor.u32 %v4093_v11, %v4092_v22  ;;  %v4098_v3 = vshrl.u32 %v5164_v27, 16  ;;  %v4101_v49 = vshll.u32 %v5164_v27, 16  ;;  %v5166_v43 = vpack.c.bf16 %v7883_v52, %v7883_v52 }
 0x33d   : > { %v3690_v2 = vrot.slane %v3689_v17, 1  ;;  %v3784_v4 = vadd.f32 %v7329_v13, %v3782_v32  ;;  %v4107_v6 = vshrl.u32 %v5165_v1, 16  ;;  %v4110_v54 = vshll.u32 %v5165_v1, 16  ;;  %v5103_v13 = vld [vmem:[%s6965_s11 + $0x74] sm:$0x1] }
 0x33e   : > { %v4336_v9 = vsel %vm7350_vm8, %v4095_v55, %v5100_v18  ;;  %v4100_v46 = vrot.slane %v4098_v3, 7  ;;  %v5167_v24 = vpack.c.bf16 %v7884_v20, %v7884_v20  ;;  %v4115_v21 = vshrl.u32 %v5166_v43, 16 }
 0x33f   : > { %v3691_v47 = vadd.f32 %v3690_v2, %v3689_v17  ;;  %v3786_v51 = vadd.f32 %v7332_v38, %v3784_v4  ;;  %5101 = vst [vmem:[%s6965_s11 + $0x6c] sm:$0xf] %v4336_v9  ;;  %v4109_v28 = vrot.slane %v4107_v6, 7  ;;  %v4118_v25 = vshll.u32 %v5166_v43, 16 }
 0x340   : > { %v4103_v0 = vor.u32 %v4101_v49, %v4100_v46  ;;  %v4105_v56 = vrot.slane %v4100_v46, 4  ;;  %v4124_v41 = vshrl.u32 %v5167_v24, 16  ;;  %v4117_v23 = vrot.slane %v4115_v21, 7 }
 0x341   : > { %v3692_v37 = vadd.f32 %v3691_v47, %v3621_v59  ;;  %v3788_v19 = vadd.f32 %v7336_v10, %v3786_v51  ;;  %v4112_v61 = vor.u32 %v4110_v54, %v4109_v28  ;;  %v4113_v38 = vrot.slane %v4109_v28, 4 }
 0x342   : > { %v4104_v42 = vsel %vm7360_vm9, %v4096_v15, %v4103_v0  ;;  %v4340_v50 = vsel %vm7367_vm10, %v4105_v56, %v5103_v13  ;;  %v7547_v30 = vrot.slane %v4124_v41, 7  ;;  %v4127_v10 = vshll.u32 %v5167_v24, 16 }
 0x343   : > { %3694 = vst.msk [vmem:[#allocation9] sm:$0x1] %vm3693_vm3, %v3692_v37  ;;  %v3790_v48 = vadd.f32 %v7339_v35, %v3788_v19  ;;  %5104 = vst [vmem:[%s6965_s11 + $0x74] sm:$0x1] %v4340_v50  ;;  %v4343_v7 = vsel %vm7350_vm8, %v4112_v61, %v5105_v45  ;;  %v4120_v5 = vor.u32 %v4118_v25, %v4117_v23  ;;  %v4122_v53 = vrot.slane %v4117_v23, 4 }
 0x344   : > { %5102 = vst.msk [vmem:[%s6965_s11 + $0x70] sm:$0xf] %vm3815_vm2, %v4104_v42 }
 0x345   : > { %5470 = shalt.err (!%p5467_p1)
}
 0x346   : > { %s5471_s23 = scalar_lea.hbm %s7774_s3, 16 }
 0x347   : > { %p5472_p2 = scmp.ne.s32.totalorder %s7774_s3, %s5471_s23  ;;  %p5477_p11 = scmp.lt.u32.totalorder %s5471_s23, %s7774_s3 }
 0x349   : > { %p5473_p3 = pnand %p5472_p2, %p7885_p8 }
 0x34b   : > { %p5474_p7 = pneg %p5473_p3 }
 0x34d   : > { %p5479_p4 = pnand %p5477_p11, %p5474_p7 }
 0x34f   : > { %5482 = shalt.err (!%p5479_p4)
}
 0x350   : > { %5256 = dma.vmem_to_hbm [thread:$0]  (%p7885_p8), %s7538_s30, 16, %s7774_s3, [#allocation10]   ;;  %5106 = vst [vmem:[%s6965_s11 + $0x78] sm:$0xf] %v4343_v7  ;;  %v4129_v35 = vor.u32 %v4127_v10, %v7547_v30  ;;  %v7886_v29 = vld [vmem:[#allocation23_spill] sm:$0xff]  ;;  %v4130_v36 = vrot.slane %v7547_v30, 4  ;;  %v4121_v31 = vsel %vm7360_vm9, %v4113_v38, %v4120_v5  ;;  %v4347_v44 = vsel %vm7367_vm10, %v4122_v53, %v5108_v26 }
 0x351   : > { %v5168_v57 = vpack.c.bf16 %v7886_v29, %v7886_v29  ;;  %v7887_v34 = vld [vmem:[#allocation20_spill] sm:$0xff]  ;;  %v3791_v22 = vrot.slane %v3790_v48, 4  ;;  %v7888_v16 = vld [vmem:[#allocation22_spill] sm:$0xff]  ;;  %5107 = vst.msk [vmem:[%s6965_s11 + $0x7c] sm:$0xf] %vm3815_vm2, %v4121_v31  ;;  %v7889_v1 = vld [vmem:[#allocation25_spill] sm:$0xff] }
 0x352   : > { %v5169_v14 = vpack.c.bf16 %v7887_v34, %v7887_v34  ;;  %v5170_v58 = vpack.c.bf16 %v7888_v16, %v7888_v16  ;;  %5109 = vst [vmem:[%s6965_s11 + $0x80] sm:$0x1] %v4347_v44  ;;  %v4350_v17 = vsel %vm7350_vm8, %v4129_v35, %v5110_v12  ;;  %v5171_v2 = vpack.c.bf16 %v7889_v1, %v7889_v1  ;;  %v7890_v55 = vld [vmem:[#allocation28_spill] sm:$0xff]  ;;  %v5113_v59 = vld [vmem:[%s6965_s11 + $0x8c] sm:$0x1]  ;;  %s5616_s30 = smov [#allocation11]  }
 0x353   : > { %v4132_v11 = vshrl.u32 %v5168_v57, 16  ;;  %v4135_v33 = vshll.u32 %v5168_v57, 16  ;;  %v3792_v15 = vadd.f32 %v3791_v22, %v3790_v48  ;;  %5111 = vst [vmem:[%s6965_s11 + $0x84] sm:$0xf] %v4350_v17  ;;  %v5172_v3 = vpack.c.bf16 %v7890_v55, %v7890_v55  ;;  %v5115_v4 = vld [vmem:[%s6965_s11 + $0x90] sm:$0xf] }
 0x354   : > { %v4141_v27 = vshrl.u32 %v5169_v14, 16  ;;  %v4144_v32 = vshll.u32 %v5169_v14, 16  ;;  %v4149_v60 = vshrl.u32 %v5170_v58, 16  ;;  %v4152_v8 = vshll.u32 %v5170_v58, 16  ;;  %v7891_v54 = vld [vmem:[#allocation24_spill] sm:$0xff]  ;;  %v7892_v43 = vld [vmem:[#allocation26_spill] sm:$0xff] }
 0x355   : > { %v4134_v18 = vrot.slane %v4132_v11, 7  ;;  %v3793_v49 = vrot.slane %v3792_v15, 2  ;;  %v5173_v52 = vpack.c.bf16 %v7891_v54, %v7891_v54  ;;  %v5174_v47 = vpack.c.bf16 %v7892_v43, %v7892_v43  ;;  %v5118_v51 = vld [vmem:[%s6965_s11 + $0x98] sm:$0x1]  ;;  %v3695_v41 = vld [vmem:[#allocation11] sm:$0x1] }
 0x356   : > { %v4143_v63 = vrot.slane %v4141_v27, 7  ;;  %v4151_v6 = vrot.slane %v4149_v60, 7  ;;  %v4158_v25 = vshrl.u32 %v5171_v2, 16  ;;  %v4161_v45 = vshll.u32 %v5171_v2, 16  ;;  %s4435_s28 = sshll.u32 %s5616_s30, 4  ;;  %v7893_v57 = vld [vmem:[#allocation32_spill] sm:$0xff]  ;;  %s7636_s28 = int_to_ptr.vmem [resolvable:$true] %s4435_s28 }
 0x357   : > { %v4137_v9 = vor.u32 %v4135_v33, %v4134_v18  ;;  %v4139_v46 = vrot.slane %v4134_v18, 4  ;;  %v3794_v13 = vadd.f32 %v3793_v49, %v3792_v15  ;;  %v5120_v42 = vld [vmem:[%s6965_s11 + $0x9c] sm:$0xf]  ;;  %v4166_v50 = vshrl.u32 %v5172_v3, 16  ;;  %v5123_v22 = vld [vmem:[%s6965_s11 + $0xa4] sm:$0x1]  ;;  %p5490_p0 = scmp.lt.s32.totalorder %s7636_s28, %s7636_s28 }
 0x358   : > { %v4146_v20 = vor.u32 %v4144_v32, %v4143_v63  ;;  %v4147_v24 = vrot.slane %v4143_v63, 4  ;;  %v4154_v28 = vor.u32 %v4152_v8, %v4151_v6  ;;  %v4156_v21 = vrot.slane %v4151_v6, 4  ;;  %v5125_v31 = vld [vmem:[%s6965_s11 + $0xa8] sm:$0xf]  ;;  %v5128_v15 = vld [vmem:[%s6965_s11 + $0xb0] sm:$0x1] }
 0x359   : > { %v4138_v37 = vsel %vm7360_vm9, %v4130_v36, %v4137_v9  ;;  %v4354_v0 = vsel %vm7367_vm10, %v4139_v46, %v5113_v59  ;;  %v3795_v19 = vrot.slane %v3794_v13, 1  ;;  %v4160_v23 = vrot.slane %v4158_v25, 7  ;;  %v7894_v16 = vld [vmem:[#allocation34_spill] sm:$0xff]  ;;  %s5483_s8 = scalar_lea.vmem %s7636_s28, 16  ;;  %s5489_s13 = scalar_lea.vmem %s7636_s28, 32 }
 0x35a   : > { %v4357_v56 = vsel %vm7350_vm8, %v4146_v20, %v5115_v4  ;;  %5112 = vst.msk [vmem:[%s6965_s11 + $0x88] sm:$0xf] %vm3815_vm2, %v4138_v37  ;;  %5114 = vst [vmem:[%s6965_s11 + $0x8c] sm:$0x1] %v4354_v0  ;;  %v4155_v61 = vsel %vm7360_vm9, %v4147_v24, %v4154_v28  ;;  %v4361_v38 = vsel %vm7367_vm10, %v4156_v21, %v5118_v51  ;;  %v4169_v26 = vshll.u32 %v5172_v3, 16  ;;  %p5484_p6 = scmp.ne.s32.totalorder %s7636_s28, %s5483_s8  ;;  %p5491_p5 = scmp.lt.s32.totalorder %s5489_s13, %s5483_s8 }
 0x35b   : > { %5116 = vst [vmem:[%s6965_s11 + $0x90] sm:$0xf] %v4357_v56  ;;  %5117 = vst.msk [vmem:[%s6965_s11 + $0x94] sm:$0xf] %vm3815_vm2, %v4155_v61  ;;  %v4175_v30 = vshrl.u32 %v5173_v52, 16  ;;  %v4178_v10 = vshll.u32 %v5173_v52, 16  ;;  %v3796_v48 = vadd.f32 %v3795_v19, %v3794_v13  ;;  %v4163_v7 = vor.u32 %v4161_v45, %v4160_v23 }
 0x35c   : > { %5119 = vst [vmem:[%s6965_s11 + $0x98] sm:$0x1] %v4361_v38  ;;  %v4164_v5 = vrot.slane %v4160_v23, 4  ;;  %v4183_v53 = vshrl.u32 %v5174_v47, 16  ;;  %v4168_v12 = vrot.slane %v4166_v50, 7  ;;  %v4186_v29 = vshll.u32 %v5174_v47, 16  ;;  %p5485_p12 = pnand %p5484_p6, %p7885_p8  ;;  %p5492_p9 = por %p5491_p5, %p5490_p0 }
 0x35d   : > { %v4177_v35 = vrot.slane %v4175_v30, 7  ;;  %v5175_v36 = vpack.c.bf16 %v7893_v57, %v7893_v57  ;;  %v3797_v34 = vadd.f32 %v3796_v48, %v3695_v41  ;;  %v4364_v14 = vsel %vm7350_vm8, %v4163_v7, %v5120_v42 }
 0x35e   : > { %v4185_v44 = vrot.slane %v4183_v53, 7  ;;  %v5176_v58 = vpack.c.bf16 %v7894_v16, %v7894_v16  ;;  %5121 = vst [vmem:[%s6965_s11 + $0x9c] sm:$0xf] %v4364_v14  ;;  %v4171_v17 = vor.u32 %v4169_v26, %v4168_v12  ;;  %v4173_v11 = vrot.slane %v4168_v12, 4  ;;  %p5486_p13 = pneg %p5485_p12 }
 0x35f   : > { %v4180_v33 = vor.u32 %v4178_v10, %v4177_v35  ;;  %v4181_v27 = vrot.slane %v4177_v35, 4  ;;  %3798 = vst.msk [vmem:[#allocation11] sm:$0x1] %vm3693_vm3, %v3797_v34  ;;  %v4192_v8 = vshrl.u32 %v5175_v36, 16  ;;  %v4195_v18 = vshll.u32 %v5175_v36, 16 }
 0x360   : > { %v4188_v32 = vor.u32 %v4186_v29, %v4185_v44  ;;  %v4190_v60 = vrot.slane %v4185_v44, 4  ;;  %v4172_v63 = vsel %vm7360_vm9, %v4164_v5, %v4171_v17  ;;  %v4368_v1 = vsel %vm7367_vm10, %v4173_v11, %v5123_v22  ;;  %p5493_p1 = pnand %p5492_p9, %p5486_p13 }
 0x361   : > { %v4371_v2 = vsel %vm7350_vm8, %v4180_v33, %v5125_v31  ;;  %v4200_v55 = vshrl.u32 %v5176_v58, 16 }
 0x362   : > { %5496 = shalt.err (!%p5493_p1)
}
 0x363   : > { %s5497_s14 = scalar_lea.hbm %s7775_s4, 16 }
 0x364   : > { %p5498_p2 = scmp.ne.s32.totalorder %s7775_s4, %s5497_s14  ;;  %p5503_p11 = scmp.lt.u32.totalorder %s5497_s14, %s7775_s4 }
 0x366   : > { %p5499_p3 = pnand %p5498_p2, %p7885_p8 }
 0x368   : > { %p5500_p7 = pneg %p5499_p3 }
 0x36a   : > { %p5505_p4 = pnand %p5503_p11, %p5500_p7 }
 0x36c   : > { %5508 = shalt.err (!%p5505_p4)
}
 0x36d   : > { %5258 = dma.vmem_to_hbm [thread:$0]  (%p7885_p8), %s7636_s28, 16, %s7775_s4, [#allocation10]   ;;  %5122 = vst.msk [vmem:[%s6965_s11 + $0xa0] sm:$0xf] %vm3815_vm2, %v4172_v63  ;;  %5124 = vst [vmem:[%s6965_s11 + $0xa4] sm:$0x1] %v4368_v1  ;;  %v4189_v3 = vsel %vm7360_vm9, %v4181_v27, %v4188_v32  ;;  %v4375_v49 = vsel %vm7367_vm10, %v4190_v60, %v5128_v15 }
 0x36e   : > { %5126 = vst [vmem:[%s6965_s11 + $0xa8] sm:$0xf] %v4371_v2  ;;  %v4194_v59 = vrot.slane %v4192_v8, 7  ;;  %v4203_v4 = vshll.u32 %v5176_v58, 16  ;;  %5127 = vst.msk [vmem:[%s6965_s11 + $0xac] sm:$0xf] %vm3815_vm2, %v4189_v3 }
 0x36f   : > { %5129 = vst [vmem:[%s6965_s11 + $0xb0] sm:$0x1] %v4375_v49  ;;  %v5130_v6 = vld [vmem:[%s6965_s11 + $0xb4] sm:$0xf]  ;;  %v4202_v54 = vrot.slane %v4200_v55, 7  ;;  %v7896_v47 = vld [vmem:[#allocation33_spill] sm:$0xff] }
 0x370   : > { %v7895_v52 = vld [vmem:[#allocation31_spill] sm:$0xff]  ;;  %v5178_v9 = vpack.c.bf16 %v7896_v47, %v7896_v47  ;;  %v4197_v46 = vor.u32 %v4195_v18, %v4194_v59  ;;  %v4198_v20 = vrot.slane %v4194_v59, 4  ;;  %v5133_v24 = vld [vmem:[%s6965_s11 + $0xbc] sm:$0x1]  ;;  %s5247_s28 = smul.u32 3456, %s5591_s18  ;;  %s4406_s8 = sshll.u32 %s6965_s11, 4  ;;  %s7709_s8 = int_to_ptr.vmem [resolvable:$true] %s4406_s8 }
 0x371   : > { %v5177_v43 = vpack.c.bf16 %v7895_v52, %v7895_v52  ;;  %v4205_v51 = vor.u32 %v4203_v4, %v4202_v54  ;;  %v4207_v13 = vrot.slane %v4202_v54, 4  ;;  %v5135_v19 = vld [vmem:[%s6965_s11 + $0xc0] sm:$0xf]  ;;  %v5138_v42 = vld [vmem:[%s6965_s11 + $0xc8] sm:$0x1]  ;;  %s4392_s23 = scalar_lea.sflag [#allocation5], %s5796_s29 }
 0x372   : > { %v4378_v25 = vsel %vm7350_vm8, %v4197_v46, %v5130_v6  ;;  %v4217_v37 = vshrl.u32 %v5178_v9, 16  ;;  %v4220_v0 = vshll.u32 %v5178_v9, 16  ;;  %s7705_s25 = scalar_lea.hbm %s7773_s2, %s5247_s28  ;;  %s5509_s14 = scalar_lea.vmem %s7709_s8, 3456 }
 0x373   : > { %v4209_v28 = vshrl.u32 %v5177_v43, 16  ;;  %v4212_v21 = vshll.u32 %v5177_v43, 16  ;;  %5131 = vst [vmem:[%s6965_s11 + $0xb4] sm:$0xf] %v4378_v25  ;;  %v4206_v56 = vsel %vm7360_vm9, %v4198_v20, %v4205_v51  ;;  %v4382_v45 = vsel %vm7367_vm10, %v4207_v13, %v5133_v24  ;;  %p5510_p6 = scmp.ne.s32.totalorder %s7709_s8, %s5509_s14  ;;  %s5617_s21 = smov [#allocation8]  }
 0x374   : > { %5132 = vst.msk [vmem:[%s6965_s11 + $0xb8] sm:$0xf] %vm3815_vm2, %v4206_v56  ;;  %5134 = vst [vmem:[%s6965_s11 + $0xbc] sm:$0x1] %v4382_v45  ;;  %v4219_v61 = vrot.slane %v4217_v37, 7  ;;  %s5513_s12 = sshll.u32 %s5617_s21, 4  ;;  %s5514_s12 = int_to_ptr.vmem [resolvable:$false] %s5513_s12 }
 0x375   : > { %v4211_v41 = vrot.slane %v4209_v28, 7  ;;  %p5511_p12 = pnand %p5510_p6, %p5739_p10  ;;  %s5515_s6 = scalar_lea.vmem %s5514_s12, 6912 }
 0x376   : > { %v4222_v50 = vor.u32 %v4220_v0, %v4219_v61  ;;  %v4224_v26 = vrot.slane %v4219_v61, 4  ;;  %p5516_p0 = scmp.lt.s32.totalorder %s7709_s8, %s5514_s12  ;;  %p5517_p5 = scmp.lt.s32.totalorder %s5515_s6, %s5509_s14 }
 0x377   : > { %v4214_v38 = vor.u32 %v4212_v21, %v4211_v41  ;;  %v4215_v23 = vrot.slane %v4211_v41, 4  ;;  %p5512_p13 = pneg %p5511_p12 }
 0x378   : > { %v4389_v48 = vsel %vm7367_vm10, %v4224_v26, %v5138_v42  ;;  %p5518_p9 = por %p5517_p5, %p5516_p0 }
 0x379   : > { %v4385_v30 = vsel %vm7350_vm8, %v4214_v38, %v5135_v19  ;;  %v4223_v10 = vsel %vm7360_vm9, %v4215_v23, %v4222_v50  ;;  %5139 = vst [vmem:[%s6965_s11 + $0xc8] sm:$0x1] %v4389_v48 }
 0x37a   : > { %5136 = vst [vmem:[%s6965_s11 + $0xc0] sm:$0xf] %v4385_v30  ;;  %5137 = vst.msk [vmem:[%s6965_s11 + $0xc4] sm:$0xf] %vm3815_vm2, %v4223_v10  ;;  %p5519_p1 = pnand %p5518_p9, %p5512_p13 }
 0x37c   : > { %5522 = shalt.err (!%p5519_p1)
}
 0x37d   : > { %s5523_s11 = scalar_lea.hbm %s7705_s25, 3456  ;;  %s5527_s30 = scalar_lea.hbm %s7773_s2, 6912 }
 0x37e   : > { %p5524_p2 = scmp.ne.s32.totalorder %s7705_s25, %s5523_s11  ;;  %p5528_p11 = scmp.lt.u32.totalorder %s7705_s25, %s7773_s2 }
 0x37f   : > { %p5529_p4 = scmp.lt.u32.totalorder %s5527_s30, %s5523_s11  ;;  %p5531_p12 = scmp.lt.u32.totalorder %s5523_s11, %s7705_s25 }
 0x380   : > { %p5525_p3 = pnand %p5524_p2, %p5739_p10 }
 0x381   : > { %p5530_p6 = por %p5529_p4, %p5528_p11 }
 0x382   : > { %p5526_p7 = pneg %p5525_p3 }
 0x383   : > { %p5532_p13 = por %p5531_p12, %p5530_p6 }
 0x385   : > { %p5533_p0 = pnand %p5532_p13, %p5526_p7 }
 0x387   : > { %5536 = shalt.err (!%p5533_p0)
}
 0x388   : > { %s5618_s13 = smov 64  }
 0x389   : > { %5254 = dma.vmem_to_hbm [thread:$0]  (%p5739_p10), %s7709_s8, 3456, %s7705_s25, %s4392_s23, %s5618_s13, %s5618_s13, %s5607_s27  }
 0x38a   : > { %5570 = dma.done.wait (%p7885_p8), [#allocation10], 32  }
 0x38b   : > { %5572 = vsyncadd (%p7885_p8), [#allocation10], 4294967264 }
 0x38c PF: > { %s4455_s14 = sand.u32 1, %s5579_s15   ;;  %p7897_p5 = scmp.ne.s32.totalorder %s7808_s26, 0 }
 0x38d   : > { %p7898_p9 = scmp.ge.s32.totalorder %s5599_s20, 2  ;;  %s4456_s7 = scalar_lea.sflag [#allocation5], %s4455_s14 }
 0x38f   : > { %p5273_p1 = pnand %p7898_p9, %p7897_p5 }
 0x391   : > { %5574 = dma.done.wait (!%p5273_p1), %s4456_s7, 3456  }
 0x392   : > { %5576 = vsyncadd (!%p5273_p1), %s4456_s7, 4294963840  ;;  %s23_s20 = sadd.s32 1, %s5599_s20   ;;  %s7899_s15 = smov %s5583_s16 }
 0x393   : > { %p20_p2 = scmp.ge.s32.totalorder %s23_s20, 4   ;;  %s7900_s16 = smov %s5587_s17 }
 0x394   : > { %s7901_s17 = smov %s5748_s10  ;;  %s7902_s18 = smov %s5595_s19 }
 0x395   : > { %s7903_s19 = smov %s7905_s5  ;;  %22 = sbr.rel (!%p20_p2) target bundleno = 8 (0x8), region = 103 }
 0x39c   :  { %4461 = vsyncpa [#allocation4], 1 }
 0x39d   :  { %4463 = vsyncpa [#allocation4 + $0x1], 1 }
 0x39e   :  { %4464 = vsyncpa [#allocation7], 1 }
 0x39f   :  { %4465 = vsyncpa [#allocation5], 1 }
 0x3a0   :  { %4467 = vsyncpa [#allocation5 + $0x1], 1 }
 0x3a1   :  { %4468 = vsyncpa [#allocation10], 1 }

</bundles_post_ra>
